<compile_context>
chip_gen: v7x
topology: tpu7x:2x2x1
jax: 0.10.0
libtpu: 0.0.40
codegen_flags: <defaults>
</compile_context>

<pallas_src>
import functools

import jax
import jax.numpy as jnp
from jax.experimental import pallas as pl
from jax.experimental.pallas import tpu as pltpu

_LANE = 128


def _round_up(x, m):
    return ((x + m - 1) // m) * m


# ----------------------------------------------------------------------------
# Fused 5-layer MLP kernel: one batch tile through all layers.
#   x:        (TB, E_pad)      bf16
#   w1/w2/w5: (K, N)           bf16   (BN scale pre-folded into columns)
#   w3q/w4q:  (K, N)           int8   (per-column symmetric quant)
#   sc3/sc4:  (1, N)           f32    (int8 per-column dequant scales)
#   s_i:      (1, N)           f32    (folded bias/BN shift)
#   o:        (TB, N_pad)      f32    (final layer zero-padded to 128 lanes)
# Weights/shifts use constant index_maps -> resident in VMEM across the grid.
# ----------------------------------------------------------------------------
def _fused_mlp_kernel(x_ref,
                      w1_ref, s1_ref,
                      w2_ref, s2_ref,
                      w3_ref, sc3_ref, s3_ref,
                      w4_ref, sc4_ref, s4_ref,
                      w5_ref, s5_ref,
                      o_ref):
    h = x_ref[...]                                              # bf16 (TB, E_pad)

    # Layer 1: Linear + folded-BN + ReLU
    a = jnp.dot(h, w1_ref[...], preferred_element_type=jnp.float32)
    h = jnp.maximum(a + s1_ref[...], 0.0).astype(jnp.bfloat16)

    # Layer 2
    a = jnp.dot(h, w2_ref[...], preferred_element_type=jnp.float32)
    h = jnp.maximum(a + s2_ref[...], 0.0).astype(jnp.bfloat16)

    # Layer 3: int8 weights dequantized in-kernel (exact int8->bf16 cast),
    # per-column scale applied in the f32 epilogue.
    a = jnp.dot(h, w3_ref[...].astype(jnp.bfloat16),
                preferred_element_type=jnp.float32)
    h = jnp.maximum(a * sc3_ref[...] + s3_ref[...], 0.0).astype(jnp.bfloat16)

    # Layer 4: int8
    a = jnp.dot(h, w4_ref[...].astype(jnp.bfloat16),
                preferred_element_type=jnp.float32)
    h = jnp.maximum(a * sc4_ref[...] + s4_ref[...], 0.0).astype(jnp.bfloat16)

    # Layer 5: final Linear (no BN / ReLU), lane-padded output
    a = jnp.dot(h, w5_ref[...], preferred_element_type=jnp.float32)
    o_ref[...] = (a + s5_ref[...]).astype(o_ref.dtype)


def encoding_model_forward(params, x, out_dim, *, batch_tile=256):
    B, E = x.shape
    e_pad = params["w1"].shape[0]
    n_pad = params["w5"].shape[1]

    # Batch tile: 256 rows for large batches (fills the 256-deep MXU on
    # v6e/v7x, 2x128 on v5e), otherwise the padded batch itself.
    tb = batch_tile if B >= batch_tile else max(8, _round_up(B, 8))
    b_pad = _round_up(B, tb)

    xp = x.astype(jnp.bfloat16)
    if b_pad != B or e_pad != E:
        xp = jnp.pad(xp, ((0, b_pad - B), (0, e_pad - E)))

    args = (xp,
            params["w1"], params["s1"],
            params["w2"], params["s2"],
            params["w3q"], params["w3s"], params["s3"],
            params["w4q"], params["w4s"], params["s4"],
            params["w5"], params["s5"])

    def resident_spec(a):
        # Whole-array block, constant index -> DMA'd once, VMEM-resident.
        return pl.BlockSpec(a.shape, lambda i, _nd=a.ndim: (0,) * _nd)

    in_specs = [pl.BlockSpec((tb, e_pad), lambda i: (i, 0))]
    in_specs += [resident_spec(a) for a in args[1:]]
    out_spec = pl.BlockSpec((tb, n_pad), lambda i: (i, 0))

    weight_bytes = sum(int(a.size) * a.dtype.itemsize for a in args[1:])
    flops = 2 * b_pad * (e_pad * 512 + 512 * 1024 + 1024 * 2048
                         + 2048 * 512 + 512 * n_pad)
    bytes_accessed = (weight_bytes
                      + int(xp.size) * xp.dtype.itemsize
                      + b_pad * n_pad * 4)

    out = pl.pallas_call(
        _fused_mlp_kernel,
        grid=(b_pad // tb,),
        out_shape=jax.ShapeDtypeStruct((b_pad, n_pad), jnp.float32),
        in_specs=in_specs,
        out_specs=out_spec,
        compiler_params=pltpu.CompilerParams(
            dimension_semantics=("parallel",),          # megacore split on v7x
            vmem_limit_bytes=48 * 1024 * 1024),
        cost_estimate=pl.CostEstimate(
            flops=flops, transcendentals=0, bytes_accessed=bytes_accessed),
    )(*args)
    return out[:B, :out_dim]


# ----------------------------------------------------------------------------
# Deterministic parameter construction (mimics the module's __init__ shapes).
# BN eval-mode stats: mean=0, var=1, gamma=1, beta=0, eps=1e-5, folded into
# the weights/shifts. Layers 3 & 4 are quantized to per-column int8.
# ----------------------------------------------------------------------------
def init_params(key, video_embed_dim, fmri_dim, *, lane=_LANE):
    dims = [video_embed_dim, 512, 1024, 2048, 512, fmri_dim]
    eps = 1e-5
    n_layers = len(dims) - 1
    e_pad = _round_up(video_embed_dim, lane)
    n_pad = _round_up(fmri_dim, lane)

    params = {}
    for li in range(n_layers):
        k_in, k_out = dims[li], dims[li + 1]
        key, kw, kb = jax.random.split(key, 3)
        # PyTorch Linear default init: U(-1/sqrt(k_in), 1/sqrt(k_in))
        bound = 1.0 / (float(k_in) ** 0.5)
        w = jax.random.uniform(kw, (k_in, k_out), jnp.float32, -bound, bound)
        b = jax.random.uniform(kb, (k_out,), jnp.float32, -bound, bound)

        is_last = li == n_layers - 1
        if not is_last:
            gamma = jnp.ones((k_out,), jnp.float32)
            beta = jnp.zeros((k_out,), jnp.float32)
            mean = jnp.zeros((k_out,), jnp.float32)
            var = jnp.ones((k_out,), jnp.float32)
            # bn(x@W + b) = x@(W*s) + (b - mean)*s + beta, s = gamma/sqrt(var+eps)
            s = gamma / jnp.sqrt(var + eps)
            w = w * s[None, :]
            shift = (b - mean) * s + beta
        else:
            shift = b

        if li == 0 and e_pad != k_in:            # pad E -> 128-lane multiple
            w = jnp.pad(w, ((0, e_pad - k_in), (0, 0)))
        if is_last and n_pad != k_out:           # pad fmri_dim -> lane multiple
            w = jnp.pad(w, ((0, 0), (0, n_pad - k_out)))
            shift = jnp.pad(shift, (0, n_pad - k_out))

        idx = li + 1
        params[f"s{idx}"] = shift.reshape(1, -1).astype(jnp.float32)

        if li in (2, 3):
            # Per-column symmetric int8 quantization of the two large weights.
            amax = jnp.max(jnp.abs(w), axis=0)
            scale = jnp.where(amax > 0, amax / 127.0, 1.0)
            q = jnp.clip(jnp.round(w / scale[None, :]), -127, 127).astype(jnp.int8)
            params[f"w{idx}q"] = q
            params[f"w{idx}s"] = scale.reshape(1, -1).astype(jnp.float32)
        else:
            params[f"w{idx}"] = w.astype(jnp.bfloat16)
    return params


def encoding_model_reference(params, x, out_dim):
    """Pure-JAX reference using the same bf16/int8-dequant math as the kernel."""
    e_pad = params["w1"].shape[0]
    h = x.astype(jnp.bfloat16)
    if h.shape[1] != e_pad:
        h = jnp.pad(h, ((0, 0), (0, e_pad - h.shape[1])))

    def dense(h, w, shift, relu, scale=None):
        a = jnp.dot(h, w, preferred_element_type=jnp.float32)
        if scale is not None:
            a = a * scale
        y = a + shift
        if relu:
            y = jnp.maximum(y, 0.0)
        return y

    h = dense(h, params["w1"], params["s1"], True).astype(jnp.bfloat16)
    h = dense(h, params["w2"], params["s2"], True).astype(jnp.bfloat16)
    h = dense(h, params["w3q"].astype(jnp.bfloat16), params["s3"], True,
              scale=params["w3s"]).astype(jnp.bfloat16)
    h = dense(h, params["w4q"].astype(jnp.bfloat16), params["s4"], True,
              scale=params["w4s"]).astype(jnp.bfloat16)
    h = dense(h, params["w5"], params["s5"], False)
    return h[:, :out_dim]


if __name__ == "__main__":
    video_embed_dim = 64
    fmri_dim = 32
    batch = 8

    key = jax.random.PRNGKey(0)
    key, kx = jax.random.split(key)
    x = jax.random.normal(kx, (batch, video_embed_dim), jnp.float32)

    params = init_params(key, video_embed_dim, fmri_dim)

    fwd = jax.jit(functools.partial(encoding_model_forward, out_dim=fmri_dim))
    out = jax.block_until_ready(fwd(params, x))

    ref = encoding_model_reference(params, x, fmri_dim)
    assert out.shape == (batch, fmri_dim), out.shape
    assert jnp.allclose(out, ref, atol=2e-2, rtol=2e-2), "mismatch vs reference"

    print("KERNEL_OK")
</pallas_src>

<mosaic_0001>
module attributes {stable_mosaic.version = 11 : i64} {
  func.func @_fused_mlp_kernel(%arg0: i32, %arg1: memref<8x128xbf16, #tpu.memory_space<vmem>>, %arg2: memref<128x512xbf16, #tpu.memory_space<vmem>>, %arg3: memref<1x512xf32, #tpu.memory_space<vmem>>, %arg4: memref<512x1024xbf16, #tpu.memory_space<vmem>>, %arg5: memref<1x1024xf32, #tpu.memory_space<vmem>>, %arg6: memref<1024x2048xi8, #tpu.memory_space<vmem>>, %arg7: memref<1x2048xf32, #tpu.memory_space<vmem>>, %arg8: memref<1x2048xf32, #tpu.memory_space<vmem>>, %arg9: memref<2048x512xi8, #tpu.memory_space<vmem>>, %arg10: memref<1x512xf32, #tpu.memory_space<vmem>>, %arg11: memref<1x512xf32, #tpu.memory_space<vmem>>, %arg12: memref<512x128xbf16, #tpu.memory_space<vmem>>, %arg13: memref<1x128xf32, #tpu.memory_space<vmem>>, %arg14: memref<8x128xf32, #tpu.memory_space<vmem>>) attributes {dimension_semantics = [#tpu.dimension_semantics<parallel>], iteration_bounds = array<i64: 1>, scalar_prefetch = 0 : i64, scratch_operands = 0 : i64, tpu.core_type = #tpu.core_type<tc>, window_params = [{transform_indices = @transform_0, window_bounds = array<i64: 8, 128>}, {pipeline_mode = #tpu.pipeline_mode<synchronous>, transform_indices = @transform_1, window_bounds = array<i64: 128, 512>}, {pipeline_mode = #tpu.pipeline_mode<synchronous>, transform_indices = @transform_2, window_bounds = array<i64: 1, 512>}, {pipeline_mode = #tpu.pipeline_mode<synchronous>, transform_indices = @transform_3, window_bounds = array<i64: 512, 1024>}, {pipeline_mode = #tpu.pipeline_mode<synchronous>, transform_indices = @transform_4, window_bounds = array<i64: 1, 1024>}, {pipeline_mode = #tpu.pipeline_mode<synchronous>, transform_indices = @transform_5, window_bounds = array<i64: 1024, 2048>}, {pipeline_mode = #tpu.pipeline_mode<synchronous>, transform_indices = @transform_6, window_bounds = array<i64: 1, 2048>}, {pipeline_mode = #tpu.pipeline_mode<synchronous>, transform_indices = @transform_7, window_bounds = array<i64: 1, 2048>}, {pipeline_mode = #tpu.pipeline_mode<synchronous>, transform_indices = @transform_8, window_bounds = array<i64: 2048, 512>}, {pipeline_mode = #tpu.pipeline_mode<synchronous>, transform_indices = @transform_9, window_bounds = array<i64: 1, 512>}, {pipeline_mode = #tpu.pipeline_mode<synchronous>, transform_indices = @transform_10, window_bounds = array<i64: 1, 512>}, {pipeline_mode = #tpu.pipeline_mode<synchronous>, transform_indices = @transform_11, window_bounds = array<i64: 512, 128>}, {pipeline_mode = #tpu.pipeline_mode<synchronous>, transform_indices = @transform_12, window_bounds = array<i64: 1, 128>}, {transform_indices = @transform_13, window_bounds = array<i64: 8, 128>}]} {
    %c0 = arith.constant 0 : index
    %c0_0 = arith.constant 0 : index
    %0 = vector.load %arg1[%c0, %c0_0] : memref<8x128xbf16, #tpu.memory_space<vmem>>, vector<8x128xbf16>
    %c0_1 = arith.constant 0 : index
    %c0_2 = arith.constant 0 : index
    %1 = vector.load %arg2[%c0_1, %c0_2] : memref<128x512xbf16, #tpu.memory_space<vmem>>, vector<128x512xbf16>
    %cst = arith.constant dense<0.000000e+00> : vector<8x512xf32>
    %2 = tpu.matmul %0, %1, %cst {dimension_numbers = #tpu.dot_dimension_numbers<[1], [0], [0], [1], [0, 0, 1, 1], [], []>} : vector<8x128xbf16>, vector<128x512xbf16>, vector<8x512xf32> -> vector<8x512xf32>
    %c0_3 = arith.constant 0 : index
    %c0_4 = arith.constant 0 : index
    %3 = vector.load %arg3[%c0_3, %c0_4] : memref<1x512xf32, #tpu.memory_space<vmem>>, vector<1x512xf32>
    %4 = vector.broadcast %3 : vector<1x512xf32> to vector<8x512xf32>
    %5 = arith.addf %2, %4 : vector<8x512xf32>
    %cst_5 = arith.constant 0.000000e+00 : f32
    %6 = vector.broadcast %cst_5 : f32 to vector<8x512xf32>
    %7 = arith.maximumf %5, %6 : vector<8x512xf32>
    %8 = arith.truncf %7 : vector<8x512xf32> to vector<8x512xbf16>
    %c0_6 = arith.constant 0 : index
    %c0_7 = arith.constant 0 : index
    %9 = vector.load %arg4[%c0_6, %c0_7] : memref<512x1024xbf16, #tpu.memory_space<vmem>>, vector<512x1024xbf16>
    %cst_8 = arith.constant dense<0.000000e+00> : vector<8x1024xf32>
    %10 = tpu.matmul %8, %9, %cst_8 {dimension_numbers = #tpu.dot_dimension_numbers<[1], [0], [0], [1], [0, 0, 1, 1], [], []>} : vector<8x512xbf16>, vector<512x1024xbf16>, vector<8x1024xf32> -> vector<8x1024xf32>
    %c0_9 = arith.constant 0 : index
    %c0_10 = arith.constant 0 : index
    %11 = vector.load %arg5[%c0_9, %c0_10] : memref<1x1024xf32, #tpu.memory_space<vmem>>, vector<1x1024xf32>
    %12 = vector.broadcast %11 : vector<1x1024xf32> to vector<8x1024xf32>
    %13 = arith.addf %10, %12 : vector<8x1024xf32>
    %cst_11 = arith.constant 0.000000e+00 : f32
    %14 = vector.broadcast %cst_11 : f32 to vector<8x1024xf32>
    %15 = arith.maximumf %13, %14 : vector<8x1024xf32>
    %16 = arith.truncf %15 : vector<8x1024xf32> to vector<8x1024xbf16>
    %c0_12 = arith.constant 0 : index
    %c0_13 = arith.constant 0 : index
    %17 = vector.load %arg6[%c0_12, %c0_13] : memref<1024x2048xi8, #tpu.memory_space<vmem>>, vector<1024x2048xi8>
    %18 = arith.sitofp %17 : vector<1024x2048xi8> to vector<1024x2048xbf16>
    %cst_14 = arith.constant dense<0.000000e+00> : vector<8x2048xf32>
    %19 = tpu.matmul %16, %18, %cst_14 {dimension_numbers = #tpu.dot_dimension_numbers<[1], [0], [0], [1], [0, 0, 1, 1], [], []>} : vector<8x1024xbf16>, vector<1024x2048xbf16>, vector<8x2048xf32> -> vector<8x2048xf32>
    %c0_15 = arith.constant 0 : index
    %c0_16 = arith.constant 0 : index
    %20 = vector.load %arg7[%c0_15, %c0_16] : memref<1x2048xf32, #tpu.memory_space<vmem>>, vector<1x2048xf32>
    %21 = vector.broadcast %20 : vector<1x2048xf32> to vector<8x2048xf32>
    %22 = arith.mulf %19, %21 : vector<8x2048xf32>
    %c0_17 = arith.constant 0 : index
    %c0_18 = arith.constant 0 : index
    %23 = vector.load %arg8[%c0_17, %c0_18] : memref<1x2048xf32, #tpu.memory_space<vmem>>, vector<1x2048xf32>
    %24 = vector.broadcast %23 : vector<1x2048xf32> to vector<8x2048xf32>
    %25 = arith.addf %22, %24 : vector<8x2048xf32>
    %cst_19 = arith.constant 0.000000e+00 : f32
    %26 = vector.broadcast %cst_19 : f32 to vector<8x2048xf32>
    %27 = arith.maximumf %25, %26 : vector<8x2048xf32>
    %28 = arith.truncf %27 : vector<8x2048xf32> to vector<8x2048xbf16>
    %c0_20 = arith.constant 0 : index
    %c0_21 = arith.constant 0 : index
    %29 = vector.load %arg9[%c0_20, %c0_21] : memref<2048x512xi8, #tpu.memory_space<vmem>>, vector<2048x512xi8>
    %30 = arith.sitofp %29 : vector<2048x512xi8> to vector<2048x512xbf16>
    %cst_22 = arith.constant dense<0.000000e+00> : vector<8x512xf32>
    %31 = tpu.matmul %28, %30, %cst_22 {dimension_numbers = #tpu.dot_dimension_numbers<[1], [0], [0], [1], [0, 0, 1, 1], [], []>} : vector<8x2048xbf16>, vector<2048x512xbf16>, vector<8x512xf32> -> vector<8x512xf32>
    %c0_23 = arith.constant 0 : index
    %c0_24 = arith.constant 0 : index
    %32 = vector.load %arg10[%c0_23, %c0_24] : memref<1x512xf32, #tpu.memory_space<vmem>>, vector<1x512xf32>
    %33 = vector.broadcast %32 : vector<1x512xf32> to vector<8x512xf32>
    %34 = arith.mulf %31, %33 : vector<8x512xf32>
    %c0_25 = arith.constant 0 : index
    %c0_26 = arith.constant 0 : index
    %35 = vector.load %arg11[%c0_25, %c0_26] : memref<1x512xf32, #tpu.memory_space<vmem>>, vector<1x512xf32>
    %36 = vector.broadcast %35 : vector<1x512xf32> to vector<8x512xf32>
    %37 = arith.addf %34, %36 : vector<8x512xf32>
    %cst_27 = arith.constant 0.000000e+00 : f32
    %38 = vector.broadcast %cst_27 : f32 to vector<8x512xf32>
    %39 = arith.maximumf %37, %38 : vector<8x512xf32>
    %40 = arith.truncf %39 : vector<8x512xf32> to vector<8x512xbf16>
    %c0_28 = arith.constant 0 : index
    %c0_29 = arith.constant 0 : index
    %41 = vector.load %arg12[%c0_28, %c0_29] : memref<512x128xbf16, #tpu.memory_space<vmem>>, vector<512x128xbf16>
    %cst_30 = arith.constant dense<0.000000e+00> : vector<8x128xf32>
    %42 = tpu.matmul %40, %41, %cst_30 {dimension_numbers = #tpu.dot_dimension_numbers<[1], [0], [0], [1], [0, 0, 1, 1], [], []>} : vector<8x512xbf16>, vector<512x128xbf16>, vector<8x128xf32> -> vector<8x128xf32>
    %c0_31 = arith.constant 0 : index
    %c0_32 = arith.constant 0 : index
    %43 = vector.load %arg13[%c0_31, %c0_32] : memref<1x128xf32, #tpu.memory_space<vmem>>, vector<1x128xf32>
    %44 = vector.broadcast %43 : vector<1x128xf32> to vector<8x128xf32>
    %45 = arith.addf %42, %44 : vector<8x128xf32>
    %c0_33 = arith.constant 0 : index
    %c0_34 = arith.constant 0 : index
    %46 = vector.load %arg14[%c0_33, %c0_34] : memref<8x128xf32, #tpu.memory_space<vmem>>, vector<8x128xf32>
    tpu.vector_store %arg14[%c0_33, %c0_34], %45 {strides = array<i32>} : memref<8x128xf32, #tpu.memory_space<vmem>>, vector<8x128xf32>,
    return
  }
  func.func @transform_0(%arg0: i32) -> (i32, i32) {
    %c0_i32 = arith.constant 0 : i32
    %c0_i32_0 = arith.constant 0 : i32
    return %arg0, %c0_i32 : i32, i32
  }
  func.func @transform_1(%arg0: i32) -> (i32, i32) {
    %c0_i32 = arith.constant 0 : i32
    %c0_i32_0 = arith.constant 0 : i32
    %c0_i32_1 = arith.constant 0 : i32
    return %c0_i32, %c0_i32_0 : i32, i32
  }
  func.func @transform_2(%arg0: i32) -> (i32, i32) {
    %c0_i32 = arith.constant 0 : i32
    %c0_i32_0 = arith.constant 0 : i32
    %c0_i32_1 = arith.constant 0 : i32
    return %c0_i32, %c0_i32_0 : i32, i32
  }
  func.func @transform_3(%arg0: i32) -> (i32, i32) {
    %c0_i32 = arith.constant 0 : i32
    %c0_i32_0 = arith.constant 0 : i32
    %c0_i32_1 = arith.constant 0 : i32
    return %c0_i32, %c0_i32_0 : i32, i32
  }
  func.func @transform_4(%arg0: i32) -> (i32, i32) {
    %c0_i32 = arith.constant 0 : i32
    %c0_i32_0 = arith.constant 0 : i32
    %c0_i32_1 = arith.constant 0 : i32
    return %c0_i32, %c0_i32_0 : i32, i32
  }
  func.func @transform_5(%arg0: i32) -> (i32, i32) {
    %c0_i32 = arith.constant 0 : i32
    %c0_i32_0 = arith.constant 0 : i32
    %c0_i32_1 = arith.constant 0 : i32
    return %c0_i32, %c0_i32_0 : i32, i32
  }
  func.func @transform_6(%arg0: i32) -> (i32, i32) {
    %c0_i32 = arith.constant 0 : i32
    %c0_i32_0 = arith.constant 0 : i32
    %c0_i32_1 = arith.constant 0 : i32
    return %c0_i32, %c0_i32_0 : i32, i32
  }
  func.func @transform_7(%arg0: i32) -> (i32, i32) {
    %c0_i32 = arith.constant 0 : i32
    %c0_i32_0 = arith.constant 0 : i32
    %c0_i32_1 = arith.constant 0 : i32
    return %c0_i32, %c0_i32_0 : i32, i32
  }
  func.func @transform_8(%arg0: i32) -> (i32, i32) {
    %c0_i32 = arith.constant 0 : i32
    %c0_i32_0 = arith.constant 0 : i32
    %c0_i32_1 = arith.constant 0 : i32
    return %c0_i32, %c0_i32_0 : i32, i32
  }
  func.func @transform_9(%arg0: i32) -> (i32, i32) {
    %c0_i32 = arith.constant 0 : i32
    %c0_i32_0 = arith.constant 0 : i32
    %c0_i32_1 = arith.constant 0 : i32
    return %c0_i32, %c0_i32_0 : i32, i32
  }
  func.func @transform_10(%arg0: i32) -> (i32, i32) {
    %c0_i32 = arith.constant 0 : i32
    %c0_i32_0 = arith.constant 0 : i32
    %c0_i32_1 = arith.constant 0 : i32
    return %c0_i32, %c0_i32_0 : i32, i32
  }
  func.func @transform_11(%arg0: i32) -> (i32, i32) {
    %c0_i32 = arith.constant 0 : i32
    %c0_i32_0 = arith.constant 0 : i32
    %c0_i32_1 = arith.constant 0 : i32
    return %c0_i32, %c0_i32_0 : i32, i32
  }
  func.func @transform_12(%arg0: i32) -> (i32, i32) {
    %c0_i32 = arith.constant 0 : i32
    %c0_i32_0 = arith.constant 0 : i32
    %c0_i32_1 = arith.constant 0 : i32
    return %c0_i32, %c0_i32_0 : i32, i32
  }
  func.func @transform_13(%arg0: i32) -> (i32, i32) {
    %c0_i32 = arith.constant 0 : i32
    %c0_i32_0 = arith.constant 0 : i32
    return %arg0, %c0_i32 : i32, i32
  }
}

</mosaic_0001>

<bundles_post_ra>
// kernel: encoding_model_forward.1
= control target key start
LH: loop header
LB: loop body
LE: loop exit
PB: predicated region body
PF: predicated region fallthrough
CT: control target
= control target key end

     0   :  { %18 = vsyncpa [#allocation3], 0  ;;  %s8867_s0 = inlined_call_operand.vmem [shape: bf16[8,128], index: 0, kind: input, shape index: {}]   ;;  %s8868_s1 = inlined_call_operand.hbm [shape: bf16[128,512], index: 1, kind: input, shape index: {}]   ;;  %s8869_s2 = inlined_call_operand.hbm [shape: f32[1,512], index: 2, kind: input, shape index: {}]   ;;  %s8870_s3 = inlined_call_operand.hbm [shape: bf16[512,1024], index: 3, kind: input, shape index: {}]   ;;  %s8871_s4 = inlined_call_operand.hbm [shape: f32[1,1024], index: 4, kind: input, shape index: {}]   ;;  %s8872_s5 = inlined_call_operand.hbm [shape: s8[1024,2048], index: 5, kind: input, shape index: {}]   ;;  %s8873_s6 = inlined_call_operand.hbm [shape: f32[1,2048], index: 6, kind: input, shape index: {}]   ;;  %s8874_s7 = inlined_call_operand.hbm [shape: f32[1,2048], index: 7, kind: input, shape index: {}]   ;;  %s8875_s8 = inlined_call_operand.hbm [shape: s8[2048,512], index: 8, kind: input, shape index: {}]   ;;  %s8876_s9 = inlined_call_operand.hbm [shape: f32[1,512], index: 9, kind: input, shape index: {}]   ;;  %s8877_s10 = inlined_call_operand.hbm [shape: f32[1,512], index: 10, kind: input, shape index: {}]   ;;  %s8878_s11 = inlined_call_operand.hbm [shape: bf16[512,128], index: 11, kind: input, shape index: {}]   ;;  %s8879_s12 = inlined_call_operand.hbm [shape: f32[1,128], index: 12, kind: input, shape index: {}]   ;;  %s8880_s13 = inlined_call_operand.hbm [shape: f32[8,128], index: 13, kind: output, shape index: {}]  }
   0x1   :  { %19 = vsyncpa [#allocation6], 0 }
   0x2   :  { %20 = vsyncpa [#allocation9], 0 }
   0x3   :  { %21 = vsyncpa [#allocation12], 0 }
   0x4   :  { %22 = vsyncpa [#allocation15], 0 }
   0x5   :  { %23 = vsyncpa [#allocation18], 0 }
   0x6   :  { %24 = vsyncpa [#allocation21], 0 }
   0x7   :  { %25 = vsyncpa [#allocation4], 0  ;;  %s8301_s25 = smov [#allocation5]   ;;  %s8302_s27 = smov [#allocation8]  }
   0x8   :  { %s46_s26 = sshll.u32 %s8301_s25, 4  ;;  %s68_s28 = sshll.u32 %s8302_s27, 4  ;;  %s47_s26 = int_to_ptr.vmem [resolvable:$true] %s46_s26  ;;  %s69_s28 = int_to_ptr.vmem [resolvable:$true] %s68_s28 }
   0x9   :  { %s7999_s14 = scalar_lea.hbm %s8869_s2, 64 }
   0xa   :  { %p8000_p0 = scmp.ne.s32.totalorder %s8869_s2, %s7999_s14  ;;  %p8003_p1 = scmp.lt.u32.totalorder %s7999_s14, %s8869_s2 }
   0xc   :  { %p8005_p2 = pnand %p8003_p1, %p8000_p0 }
   0xe   :  { %8008 = shalt.err (!%p8005_p2)
}
   0xf   :  { %s8009_s19 = scalar_lea.vmem %s47_s26, 64  ;;  %p8014_p4 = scmp.lt.s32.totalorder %s47_s26, %s47_s26 }
  0x10   :  { %p8010_p3 = scmp.ne.s32.totalorder %s47_s26, %s8009_s19  ;;  %p8015_p5 = scmp.lt.s32.totalorder %s8009_s19, %s8009_s19 }
  0x12   :  { %p8016_p6 = por %p8015_p5, %p8014_p4 }
  0x14   :  { %p8017_p7 = pnand %p8016_p6, %p8010_p3 }
  0x16   :  { %8020 = shalt.err (!%p8017_p7)
}
  0x17   :  { %49 = dma.hbm_to_vmem [thread:$0]  %s8869_s2, 64, %s47_s26, [#allocation6]  }
  0x18   :  { %s8021_s24 = scalar_lea.hbm %s8871_s4, 128 }
  0x19   :  { %p8022_p8 = scmp.ne.s32.totalorder %s8871_s4, %s8021_s24  ;;  %p8025_p9 = scmp.lt.u32.totalorder %s8021_s24, %s8871_s4 }
  0x1b   :  { %p8027_p10 = pnand %p8025_p9, %p8022_p8 }
  0x1d   :  { %8030 = shalt.err (!%p8027_p10)
}
  0x1e   :  { %s8031_s14 = scalar_lea.vmem %s69_s28, 128  ;;  %p8036_p12 = scmp.lt.s32.totalorder %s69_s28, %s69_s28 }
  0x1f   :  { %p8032_p11 = scmp.ne.s32.totalorder %s69_s28, %s8031_s14  ;;  %p8037_p13 = scmp.lt.s32.totalorder %s8031_s14, %s8031_s14 }
  0x21   :  { %p8038_p0 = por %p8037_p13, %p8036_p12 }
  0x23   :  { %p8039_p1 = pnand %p8038_p0, %p8032_p11 }
  0x25   :  { %8042 = shalt.err (!%p8039_p1)
}
  0x26   :  { %71 = dma.hbm_to_vmem [thread:$0]  %s8871_s4, 128, %s69_s28, [#allocation9]  }
  0x27   :  { %s8303_s15 = smov [#allocation11]   ;;  %s8043_s19 = scalar_lea.hbm %s8873_s6, 256 }
  0x28   :  { %s90_s16 = sshll.u32 %s8303_s15, 4  ;;  %p8044_p2 = scmp.ne.s32.totalorder %s8873_s6, %s8043_s19  ;;  %s91_s16 = int_to_ptr.vmem [resolvable:$true] %s90_s16 }
  0x29   :  { %p8047_p3 = scmp.lt.u32.totalorder %s8043_s19, %s8873_s6 }
  0x2b   :  { %p8049_p4 = pnand %p8047_p3, %p8044_p2 }
  0x2d   :  { %8052 = shalt.err (!%p8049_p4)
}
  0x2e   :  { %s8053_s24 = scalar_lea.vmem %s91_s16, 256  ;;  %p8058_p6 = scmp.lt.s32.totalorder %s91_s16, %s91_s16 }
  0x2f   :  { %p8054_p5 = scmp.ne.s32.totalorder %s91_s16, %s8053_s24  ;;  %p8059_p7 = scmp.lt.s32.totalorder %s8053_s24, %s8053_s24 }
  0x31   :  { %p8060_p8 = por %p8059_p7, %p8058_p6 }
  0x33   :  { %p8061_p9 = pnand %p8060_p8, %p8054_p5 }
  0x35   :  { %8064 = shalt.err (!%p8061_p9)
}
  0x36   :  { %93 = dma.hbm_to_vmem [thread:$0]  %s8873_s6, 256, %s91_s16, [#allocation12]  }
  0x37   :  { %s8304_s25 = smov [#allocation14]   ;;  %s8305_s29 = smov [#allocation17]  }
  0x38   :  { %s109_s27 = sshll.u32 %s8304_s25, 4  ;;  %s132_s30 = sshll.u32 %s8305_s29, 4  ;;  %s110_s27 = int_to_ptr.vmem [resolvable:$true] %s109_s27  ;;  %s133_s30 = int_to_ptr.vmem [resolvable:$true] %s132_s30 }
  0x39   :  { %s8065_s26 = scalar_lea.hbm %s8875_s8, 32768 }
  0x3a   :  { %p8066_p10 = scmp.ne.s32.totalorder %s8875_s8, %s8065_s26  ;;  %p8069_p11 = scmp.lt.u32.totalorder %s8065_s26, %s8875_s8 }
  0x3c   :  { %p8071_p12 = pnand %p8069_p11, %p8066_p10 }
  0x3e   :  { %8074 = shalt.err (!%p8071_p12)
}
  0x3f   :  { %s8075_s6 = scalar_lea.vmem %s110_s27, 32768  ;;  %p8080_p0 = scmp.lt.s32.totalorder %s110_s27, %s110_s27 }
  0x40   :  { %p8076_p13 = scmp.ne.s32.totalorder %s110_s27, %s8075_s6  ;;  %p8081_p1 = scmp.lt.s32.totalorder %s8075_s6, %s8075_s6 }
  0x42   :  { %p8082_p2 = por %p8081_p1, %p8080_p0 }
  0x44   :  { %p8083_p3 = pnand %p8082_p2, %p8076_p13 }
  0x46   :  { %8086 = shalt.err (!%p8083_p3)
}
  0x47   :  { %s8306_s16 = smov 512   ;;  %s8307_s20 = smov 32  }
  0x48   :  { %115 = dma.hbm_to_vmem [thread:$0]  %s8875_s8, 32768, %s110_s27, [#allocation15], %s8306_s16, %s8306_s16, %s8307_s20  }
  0x49   :  { %s8087_s4 = scalar_lea.hbm %s8877_s10, 64 }
  0x4a   :  { %p8088_p4 = scmp.ne.s32.totalorder %s8877_s10, %s8087_s4  ;;  %p8091_p5 = scmp.lt.u32.totalorder %s8087_s4, %s8877_s10 }
  0x4c   :  { %p8093_p6 = pnand %p8091_p5, %p8088_p4 }
  0x4e   :  { %8096 = shalt.err (!%p8093_p6)
}
  0x4f   :  { %s8097_s2 = scalar_lea.vmem %s133_s30, 64  ;;  %p8102_p8 = scmp.lt.s32.totalorder %s133_s30, %s133_s30 }
  0x50   :  { %p8098_p7 = scmp.ne.s32.totalorder %s133_s30, %s8097_s2  ;;  %p8103_p9 = scmp.lt.s32.totalorder %s8097_s2, %s8097_s2 }
  0x52   :  { %p8104_p10 = por %p8103_p9, %p8102_p8 }
  0x54   :  { %p8105_p11 = pnand %p8104_p10, %p8098_p7 }
  0x56   :  { %8108 = shalt.err (!%p8105_p11)
}
  0x57   :  { %135 = dma.hbm_to_vmem [thread:$0]  %s8877_s10, 64, %s133_s30, [#allocation18]  }
  0x58   :  { %s8308_s26 = smov [#allocation2]   ;;  %s8109_s19 = scalar_lea.hbm %s8868_s1, 4096 }
  0x59   :  { %s33_s15 = sshll.u32 %s8308_s26, 4  ;;  %p8110_p12 = scmp.ne.s32.totalorder %s8868_s1, %s8109_s19  ;;  %s34_s15 = int_to_ptr.vmem [resolvable:$true] %s33_s15 }
  0x5a   :  { %p8113_p13 = scmp.lt.u32.totalorder %s8109_s19, %s8868_s1 }
  0x5c   :  { %p8115_p0 = pnand %p8113_p13, %p8110_p12 }
  0x5e   :  { %8118 = shalt.err (!%p8115_p0)
}
  0x5f   :  { %s8119_s24 = scalar_lea.vmem %s34_s15, 4096  ;;  %p8124_p2 = scmp.lt.s32.totalorder %s34_s15, %s34_s15 }
  0x60   :  { %p8120_p1 = scmp.ne.s32.totalorder %s34_s15, %s8119_s24  ;;  %p8125_p3 = scmp.lt.s32.totalorder %s8119_s24, %s8119_s24 }
  0x62   :  { %p8126_p4 = por %p8125_p3, %p8124_p2 }
  0x64   :  { %p8127_p5 = pnand %p8126_p4, %p8120_p1 }
  0x66   :  { %8130 = shalt.err (!%p8127_p5)
}
  0x67   :  { %s8309_s10 = smov 256   ;;  %s8310_s30 = smov 16  }
  0x68   :  { %39 = dma.hbm_to_vmem [thread:$0]  %s8868_s1, 4096, %s34_s15, [#allocation3], %s8309_s10, %s8309_s10, %s8310_s30  }
  0x69   :  { %s8311_s25 = smov [#allocation7]   ;;  %s8312_s14 = smov [#allocation10]  }
  0x6a   :  { %s55_s29 = sshll.u32 %s8311_s25, 4  ;;  %s77_s2 = sshll.u32 %s8312_s14, 4  ;;  %s56_s29 = int_to_ptr.vmem [resolvable:$true] %s55_s29  ;;  %s8468_s2 = int_to_ptr.vmem [resolvable:$true] %s77_s2 }
  0x6b   :  { %s8131_s26 = scalar_lea.hbm %s8870_s3, 32768 }
  0x6c   :  { %p8132_p6 = scmp.ne.s32.totalorder %s8870_s3, %s8131_s26  ;;  %p8135_p7 = scmp.lt.u32.totalorder %s8131_s26, %s8870_s3 }
  0x6e   :  { %p8137_p8 = pnand %p8135_p7, %p8132_p6 }
  0x70   :  { %8140 = shalt.err (!%p8137_p8)
}
  0x71   :  { %s8141_s1 = scalar_lea.vmem %s56_s29, 32768  ;;  %p8146_p10 = scmp.lt.s32.totalorder %s56_s29, %s56_s29 }
  0x72   :  { %p8142_p9 = scmp.ne.s32.totalorder %s56_s29, %s8141_s1  ;;  %p8147_p11 = scmp.lt.s32.totalorder %s8141_s1, %s8141_s1 }
  0x74   :  { %p8148_p12 = por %p8147_p11, %p8146_p10 }
  0x76   :  { %p8149_p13 = pnand %p8148_p12, %p8142_p9 }
  0x78   :  { %8152 = shalt.err (!%p8149_p13)
}
  0x79   :  { %61 = dma.hbm_to_vmem [thread:$0]  %s8870_s3, 32768, %s56_s29, [#allocation6], %s8306_s16, %s8306_s16, %s8307_s20  }
  0x7a   :  { %s8153_s24 = scalar_lea.hbm %s8872_s5, 65536 }
  0x7b   :  { %p8154_p0 = scmp.ne.s32.totalorder %s8872_s5, %s8153_s24  ;;  %p8157_p1 = scmp.lt.u32.totalorder %s8153_s24, %s8872_s5 }
  0x7d   :  { %p8159_p2 = pnand %p8157_p1, %p8154_p0 }
  0x7f   :  { %8162 = shalt.err (!%p8159_p2)
}
  0x80   :  { %s8163_s25 = scalar_lea.vmem %s8468_s2, 65536  ;;  %p8168_p4 = scmp.lt.s32.totalorder %s8468_s2, %s8468_s2 }
  0x81   :  { %p8164_p3 = scmp.ne.s32.totalorder %s8468_s2, %s8163_s25  ;;  %p8169_p5 = scmp.lt.s32.totalorder %s8163_s25, %s8163_s25 }
  0x83   :  { %p8170_p6 = por %p8169_p5, %p8168_p4 }
  0x85   :  { %p8171_p7 = pnand %p8170_p6, %p8164_p3 }
  0x87   :  { %8174 = shalt.err (!%p8171_p7)
}
  0x88   :  { %s8313_s3 = smov 2048   ;;  %s8314_s16 = smov 128  }
  0x89   :  { %83 = dma.hbm_to_vmem [thread:$0]  %s8872_s5, 65536, %s8468_s2, [#allocation9], %s8313_s3, %s8313_s3, %s8314_s16  }
  0x8a   :  { %s8315_s14 = smov [#allocation13]   ;;  %s8316_s27 = smov [#allocation16]  }
  0x8b   :  { %s100_s8 = sshll.u32 %s8315_s14, 4  ;;  %s122_s26 = sshll.u32 %s8316_s27, 4  ;;  %s101_s8 = int_to_ptr.vmem [resolvable:$true] %s100_s8  ;;  %s123_s26 = int_to_ptr.vmem [resolvable:$true] %s122_s26 }
  0x8c   :  { %s8175_s19 = scalar_lea.hbm %s8874_s7, 256 }
  0x8d   :  { %p8176_p8 = scmp.ne.s32.totalorder %s8874_s7, %s8175_s19  ;;  %p8179_p9 = scmp.lt.u32.totalorder %s8175_s19, %s8874_s7 }
  0x8f   :  { %p8181_p10 = pnand %p8179_p9, %p8176_p8 }
  0x91   :  { %8184 = shalt.err (!%p8181_p10)
}
  0x92   :  { %s8185_s5 = scalar_lea.vmem %s101_s8, 256  ;;  %p8190_p12 = scmp.lt.s32.totalorder %s101_s8, %s101_s8 }
  0x93   :  { %p8186_p11 = scmp.ne.s32.totalorder %s101_s8, %s8185_s5  ;;  %p8191_p13 = scmp.lt.s32.totalorder %s8185_s5, %s8185_s5 }
  0x95   :  { %p8192_p0 = por %p8191_p13, %p8190_p12 }
  0x97   :  { %p8193_p1 = pnand %p8192_p0, %p8186_p11 }
  0x99   :  { %8196 = shalt.err (!%p8193_p1)
}
  0x9a   :  { %103 = dma.hbm_to_vmem [thread:$0]  %s8874_s7, 256, %s101_s8, [#allocation12]  }
  0x9b   :  { %s8197_s10 = scalar_lea.hbm %s8876_s9, 64 }
  0x9c   :  { %p8198_p2 = scmp.ne.s32.totalorder %s8876_s9, %s8197_s10  ;;  %p8201_p3 = scmp.lt.u32.totalorder %s8197_s10, %s8876_s9 }
  0x9e   :  { %p8203_p4 = pnand %p8201_p3, %p8198_p2 }
  0xa0   :  { %8206 = shalt.err (!%p8203_p4)
}
  0xa1   :  { %s8207_s3 = scalar_lea.vmem %s123_s26, 64  ;;  %p8212_p6 = scmp.lt.s32.totalorder %s123_s26, %s123_s26 }
  0xa2   :  { %p8208_p5 = scmp.ne.s32.totalorder %s123_s26, %s8207_s3  ;;  %p8213_p7 = scmp.lt.s32.totalorder %s8207_s3, %s8207_s3 }
  0xa4   :  { %p8214_p8 = por %p8213_p7, %p8212_p6 }
  0xa6   :  { %p8215_p9 = pnand %p8214_p8, %p8208_p5 }
  0xa8   :  { %8218 = shalt.err (!%p8215_p9)
}
  0xa9   :  { %125 = dma.hbm_to_vmem [thread:$0]  %s8876_s9, 64, %s123_s26, [#allocation15]  }
  0xaa   :  { %s8317_s20 = smov [#allocation19]   ;;  %s8219_s27 = scalar_lea.hbm %s8878_s11, 4096 }
  0xab   :  { %s141_s29 = sshll.u32 %s8317_s20, 4  ;;  %p8220_p10 = scmp.ne.s32.totalorder %s8878_s11, %s8219_s27  ;;  %s142_s29 = int_to_ptr.vmem [resolvable:$true] %s141_s29 }
  0xac   :  { %p8223_p11 = scmp.lt.u32.totalorder %s8219_s27, %s8878_s11 }
  0xae   :  { %p8225_p12 = pnand %p8223_p11, %p8220_p10 }
  0xb0   :  { %8228 = shalt.err (!%p8225_p12)
}
  0xb1   :  { %s8229_s1 = scalar_lea.vmem %s142_s29, 4096  ;;  %p8234_p0 = scmp.lt.s32.totalorder %s142_s29, %s142_s29 }
  0xb2   :  { %p8230_p13 = scmp.ne.s32.totalorder %s142_s29, %s8229_s1  ;;  %p8235_p1 = scmp.lt.s32.totalorder %s8229_s1, %s8229_s1 }
  0xb4   :  { %p8236_p2 = por %p8235_p1, %p8234_p0 }
  0xb6   :  { %p8237_p3 = pnand %p8236_p2, %p8230_p13 }
  0xb8   :  { %8240 = shalt.err (!%p8237_p3)
}
  0xb9   :  { %s8318_s9 = smov 64   ;;  %s8319_s26 = smov 4  }
  0xba   :  { %147 = dma.hbm_to_vmem [thread:$0]  %s8878_s11, 4096, %s142_s29, [#allocation18], %s8318_s9, %s8318_s9, %s8319_s26  }
  0xbb   :  { %s8320_s5 = smov [#allocation20]   ;;  %s8241_s24 = scalar_lea.hbm %s8879_s12, 16 }
  0xbc   :  { %s154_s2 = sshll.u32 %s8320_s5, 4  ;;  %p8242_p4 = scmp.ne.s32.totalorder %s8879_s12, %s8241_s24  ;;  %s155_s2 = int_to_ptr.vmem [resolvable:$true] %s154_s2 }
  0xbd   :  { %p8245_p5 = scmp.lt.u32.totalorder %s8241_s24, %s8879_s12 }
  0xbf   :  { %p8247_p6 = pnand %p8245_p5, %p8242_p4 }
  0xc1   :  { %8250 = shalt.err (!%p8247_p6)
}
  0xc2   :  { %s8251_s25 = scalar_lea.vmem %s155_s2, 16  ;;  %s8255_s11 = scalar_lea.vmem %s155_s2, 32 }
  0xc3   :  { %p8252_p7 = scmp.ne.s32.totalorder %s155_s2, %s8251_s25  ;;  %p8256_p8 = scmp.lt.s32.totalorder %s155_s2, %s155_s2 }
  0xc4   :  { %p8257_p9 = scmp.lt.s32.totalorder %s8255_s11, %s8251_s25 }
  0xc6   :  { %p8258_p10 = por %p8257_p9, %p8256_p8 }
  0xc8   :  { %p8259_p11 = pnand %p8258_p10, %p8252_p7 }
  0xca   :  { %8262 = shalt.err (!%p8259_p11)
}
  0xcb   :  { %157 = dma.hbm_to_vmem [thread:$0]  %s8879_s12, 16, %s155_s2, [#allocation21]  }
  0xcc   :  { %8285 = dma.done.wait [#allocation3], 4096  }
  0xcd   :  { %8286 = vsyncadd [#allocation3], 4294963200 }
  0xce   :  { %8287 = dma.done.wait [#allocation6], 32832  }
  0xcf   :  { %8288 = vsyncadd [#allocation6], 4294934464 }
  0xd0   :  { %8289 = dma.done.wait [#allocation9], 65664  }
  0xd1   :  { %8290 = vsyncadd [#allocation9], 4294901632 }
  0xd2   :  { %8291 = dma.done.wait [#allocation12], 512  }
  0xd3   :  { %8292 = vsyncadd [#allocation12], 4294966784 }
  0xd4   :  { %8293 = dma.done.wait [#allocation15], 32832  }
  0xd5   :  { %8294 = vsyncadd [#allocation15], 4294934464 }
  0xd6   :  { %8295 = dma.done.wait [#allocation18], 4160  }
  0xd7   :  { %8296 = vsyncadd [#allocation18], 4294963136 }
  0xd8   :  { %8297 = dma.done.wait [#allocation21], 16  }
  0xd9   :  { %8298 = vsyncadd [#allocation21], 4294967280  ;;  %v8321_v0 = vmov 0   ;;  %v7914_v1 = vld [vmem:[#allocation2 + $0x4] ss:$16 sps:$4 sm:$0xff]   ;;  %v501_v43 = vld [vmem:[#allocation7 + $0x8] sm:$0xff] }
  0xda   :  { %442 = vmatprep.mubr.bf16.mxu0 %v8321_v0  ;;  %483 = vmatprep.mubr.bf16.mxu1 %v8321_v0  ;;  %v7916_v2 = vld [vmem:[#allocation2] ss:$16 sps:$4 sm:$0xff]   ;;  %v7917_v3 = vld [vmem:[#allocation2 + $0x24] ss:$16 sps:$4 sm:$0xff]   ;;  %v7938_v10 = vld [vmem:[#allocation2 + $0xc] ss:$16 sps:$4 sm:$0xff]  }
  0xdb   :  { %410 = vmatprep.subr.bf16.mxu0 %v7914_v1  ;;  %v7919_v4 = vld [vmem:[#allocation2 + $0x20] ss:$16 sps:$4 sm:$0xff]   ;;  %v7920_v5 = vld [vmem:[#allocation2 + $0x44] ss:$16 sps:$4 sm:$0xff]   ;;  %v7940_v11 = vld [vmem:[#allocation2 + $0x8] ss:$16 sps:$4 sm:$0xff]   ;;  %451 = vmatprep.subr.bf16.mxu1 %v7938_v10 }
  0xdc   :  { %411 = vmatpush1.bf16.msra.mxu0 %v7916_v2  ;;  %v7922_v6 = vld [vmem:[#allocation2 + $0x40] ss:$16 sps:$4 sm:$0xff]   ;;  %v7923_v7 = vld [vmem:[#allocation2 + $0x64] ss:$16 sps:$4 sm:$0xff]   ;;  %v7941_v12 = vld [vmem:[#allocation2 + $0x2c] ss:$16 sps:$4 sm:$0xff]   ;;  %452 = vmatpush1.bf16.msra.mxu1 %v7940_v11 }
  0xdd   :  { %412 = vmatprep.subr.bf16.mxu0 %v7917_v3  ;;  %v7925_v8 = vld [vmem:[#allocation2 + $0x60] ss:$16 sps:$4 sm:$0xff]   ;;  %v7926_v9 = vld [vmem:[#allocation2 + $0x84] ss:$16 sps:$4 sm:$0xff]   ;;  %v7943_v14 = vld [vmem:[#allocation2 + $0x28] ss:$16 sps:$4 sm:$0xff]   ;;  %453 = vmatprep.subr.bf16.mxu1 %v7941_v12 }
  0xde   :  { %v7928_v13 = vld [vmem:[#allocation2 + $0x80] ss:$16 sps:$4 sm:$0xff]   ;;  %v7944_v15 = vld [vmem:[#allocation2 + $0x4c] ss:$16 sps:$4 sm:$0xff]   ;;  %v7929_v16 = vld [vmem:[#allocation2 + $0xa4] ss:$16 sps:$4 sm:$0xff]  }
  0xdf   :  { %v7931_v17 = vld [vmem:[#allocation2 + $0xa0] ss:$16 sps:$4 sm:$0xff]   ;;  %v7946_v18 = vld [vmem:[#allocation2 + $0x48] ss:$16 sps:$4 sm:$0xff]   ;;  %v7947_v19 = vld [vmem:[#allocation2 + $0x6c] ss:$16 sps:$4 sm:$0xff]  }
  0xe0   :  { %413 = vmatpush1.bf16.msra.mxu0 %v7919_v4  ;;  %454 = vmatpush1.bf16.msra.mxu1 %v7943_v14  ;;  %v7932_v20 = vld [vmem:[#allocation2 + $0xc4] ss:$16 sps:$4 sm:$0xff]   ;;  %v7949_v21 = vld [vmem:[#allocation2 + $0x68] ss:$16 sps:$4 sm:$0xff]   ;;  %v7934_v22 = vld [vmem:[#allocation2 + $0xc0] ss:$16 sps:$4 sm:$0xff]  }
  0xe1   :  { %414 = vmatprep.subr.bf16.mxu0 %v7920_v5  ;;  %455 = vmatprep.subr.bf16.mxu1 %v7944_v15  ;;  %v7950_v23 = vld [vmem:[#allocation2 + $0x8c] ss:$16 sps:$4 sm:$0xff]   ;;  %v7935_v24 = vld [vmem:[#allocation2 + $0xe4] ss:$16 sps:$4 sm:$0xff]   ;;  %v7952_v27 = vld [vmem:[#allocation2 + $0x88] ss:$16 sps:$4 sm:$0xff]  }
  0xe2   :  { %v500_v25 = vld [vmem:[#allocation7] sm:$0xff]  ;;  %v7937_v28 = vld [vmem:[#allocation2 + $0xe0] ss:$16 sps:$4 sm:$0xff]   ;;  %v7953_v29 = vld [vmem:[#allocation2 + $0xac] ss:$16 sps:$4 sm:$0xff]  }
  0xe3   :  { %v504_v26 = vld [vmem:[#allocation7 + $0x20] sm:$0xff]  ;;  %v195_v34 = vld [vmem:[%s8867_s0] sm:$0xf]  ;;  %v7956_v35 = vld [vmem:[#allocation2 + $0xcc] ss:$16 sps:$4 sm:$0xff]   ;;  %s8322_s0 = smov [#allocation22]  }
  0xe4   :  { %415 = vmatpush1.bf16.msra.mxu0 %v7922_v6  ;;  %456 = vmatpush1.bf16.msra.mxu1 %v7946_v18  ;;  %v7384_v30 = vcombine.high %v500_v25, %v504_v26  ;;  %v508_v31 = vld [vmem:[#allocation7 + $0x40] sm:$0xff]  ;;  %v7383_v36 = vcombine.low %v500_v25, %v504_v26  ;;  %v7959_v41 = vld [vmem:[#allocation2 + $0xec] ss:$16 sps:$4 sm:$0xff]   ;;  %s7336_s20 = sshll.u32 %s8322_s0, 4  ;;  %s7337_s20 = int_to_ptr.vmem [resolvable:$true] %s7336_s20 }
  0xe5   :  { %416 = vmatprep.subr.bf16.mxu0 %v7923_v7  ;;  %457 = vmatprep.subr.bf16.mxu1 %v7947_v19  ;;  %v512_v32 = vld [vmem:[#allocation7 + $0x60] sm:$0xff]  ;;  %v505_v44 = vld [vmem:[#allocation7 + $0x28] sm:$0xff]  ;;  %s8263_s29 = scalar_lea.vmem %s7337_s20, 128  ;;  %p8268_p13 = scmp.lt.s32.totalorder %s7337_s20, %s7337_s20 }
  0xe6   :  { %v7955_v33 = vld [vmem:[#allocation2 + $0xa8] ss:$16 sps:$4 sm:$0xff]   ;;  %v7392_v37 = vcombine.high %v508_v31, %v512_v32  ;;  %v7391_v42 = vcombine.low %v508_v31, %v512_v32  ;;  %v7386_v49 = vcombine.high %v501_v43, %v505_v44  ;;  %v509_v50 = vld [vmem:[#allocation7 + $0x48] sm:$0xff]  ;;  %v7385_v56 = vcombine.low %v501_v43, %v505_v44  ;;  %p8264_p12 = scmp.ne.s32.totalorder %s7337_s20, %s8263_s29  ;;  %p8269_p0 = scmp.lt.s32.totalorder %s8263_s29, %s8263_s29 }
  0xe7   :  { %v516_v38 = vld [vmem:[#allocation7 + $0x80] sm:$0xff]  ;;  %v513_v51 = vld [vmem:[#allocation7 + $0x68] sm:$0xff] }
  0xe8   :  { %417 = vmatpush1.bf16.msra.mxu0 %v7925_v8  ;;  %458 = vmatpush1.bf16.msra.mxu1 %v7949_v21  ;;  %v520_v39 = vld [vmem:[#allocation7 + $0xa0] sm:$0xff]  ;;  %v517_v57 = vld [vmem:[#allocation7 + $0x88] sm:$0xff]  ;;  %v7394_v59 = vcombine.high %v509_v50, %v513_v51  ;;  %v7393_v0 = vcombine.low %v509_v50, %v513_v51  ;;  %p8270_p1 = por %p8269_p0, %p8268_p13 }
  0xe9   :  { %418 = vmatprep.subr.bf16.mxu0 %v7926_v9  ;;  %459 = vmatprep.subr.bf16.mxu1 %v7950_v23  ;;  %v7958_v40 = vld [vmem:[#allocation2 + $0xc8] ss:$16 sps:$4 sm:$0xff]   ;;  %v7400_v45 = vcombine.high %v516_v38, %v520_v39  ;;  %v7399_v52 = vcombine.low %v516_v38, %v520_v39  ;;  %v521_v58 = vld [vmem:[#allocation7 + $0xa8] sm:$0xff] }
  0xea   :  { %v524_v46 = vld [vmem:[#allocation7 + $0xc0] sm:$0xff]  ;;  %v525_v1 = vld [vmem:[#allocation7 + $0xc8] sm:$0xff]  ;;  %v7402_v3 = vcombine.high %v517_v57, %v521_v58  ;;  %v7401_v8 = vcombine.low %v517_v57, %v521_v58  ;;  %p8271_p2 = pnand %p8270_p1, %p8264_p12 }
  0xeb   :  { %v528_v47 = vld [vmem:[#allocation7 + $0xe0] sm:$0xff]  ;;  %v529_v2 = vld [vmem:[#allocation7 + $0xe8] sm:$0xff] }
  0xec   :  { %419 = vmatpush1.bf16.msra.mxu0 %v7928_v13  ;;  %460 = vmatpush1.bf16.msra.mxu1 %v7952_v27  ;;  %v7961_v48 = vld [vmem:[#allocation2 + $0xe8] ss:$16 sps:$4 sm:$0xff]   ;;  %v7408_v53 = vcombine.high %v524_v46, %v528_v47  ;;  %v7407_v60 = vcombine.low %v524_v46, %v528_v47  ;;  %v533_v9 = vld [vmem:[#allocation7 + $0x108] sm:$0xff]  ;;  %v7410_v11 = vcombine.high %v525_v1, %v529_v2 }
  0xed   :  { %420 = vmatprep.subr.bf16.mxu0 %v7929_v16  ;;  %461 = vmatprep.subr.bf16.mxu1 %v7953_v29  ;;  %v532_v54 = vld [vmem:[#allocation7 + $0x100] sm:$0xff]  ;;  %v537_v10 = vld [vmem:[#allocation7 + $0x128] sm:$0xff]  ;;  %v7409_v16 = vcombine.low %v525_v1, %v529_v2 }
  0xee   :  { %v536_v55 = vld [vmem:[#allocation7 + $0x120] sm:$0xff]  ;;  %v545_v18 = vld [vmem:[#allocation7 + $0x168] sm:$0xff]  ;;  %v7418_v19 = vcombine.high %v533_v9, %v537_v10 }
  0xef   :  { %v540_v61 = vld [vmem:[#allocation7 + $0x140] sm:$0xff]  ;;  %v7416_v63 = vcombine.high %v532_v54, %v536_v55  ;;  %v7415_v4 = vcombine.low %v532_v54, %v536_v55  ;;  %v549_v25 = vld [vmem:[#allocation7 + $0x188] sm:$0xff] }
  0xf0   :  { %421 = vmatpush1.bf16.msra.mxu0 %v7931_v17  ;;  %462 = vmatpush1.bf16.msra.mxu1 %v7955_v33  ;;  %v544_v62 = vld [vmem:[#allocation7 + $0x160] sm:$0xff]  ;;  %v541_v17 = vld [vmem:[#allocation7 + $0x148] sm:$0xff] }
  0xf1   :  { %422 = vmatprep.subr.bf16.mxu0 %v7932_v20  ;;  %463 = vmatprep.subr.bf16.mxu1 %v7956_v35  ;;  %v548_v5 = vld [vmem:[#allocation7 + $0x180] sm:$0xff]  ;;  %v7424_v7 = vcombine.high %v540_v61, %v544_v62  ;;  %v7423_v12 = vcombine.low %v540_v61, %v544_v62  ;;  %v553_v26 = vld [vmem:[#allocation7 + $0x1a8] sm:$0xff]  ;;  %v7426_v27 = vcombine.high %v541_v17, %v545_v18 }
  0xf2   :  { %v552_v6 = vld [vmem:[#allocation7 + $0x1a0] sm:$0xff]  ;;  %v7425_v32 = vcombine.low %v541_v17, %v545_v18  ;;  %v7434_v33 = vcombine.high %v549_v25, %v553_v26  ;;  %v557_v35 = vld [vmem:[#allocation7 + $0x1c8] sm:$0xff] }
  0xf3   :  { %v556_v13 = vld [vmem:[#allocation7 + $0x1c0] sm:$0xff]  ;;  %v7432_v15 = vcombine.high %v548_v5, %v552_v6  ;;  %v7431_v20 = vcombine.low %v548_v5, %v552_v6  ;;  %v565_v43 = vld [vmem:[#allocation7 + $0x208] sm:$0xff] }
  0xf4   :  { %423 = vmatpush1.bf16.msra.mxu0 %v7934_v22  ;;  %464 = vmatpush1.bf16.msra.mxu1 %v7958_v40  ;;  %v560_v14 = vld [vmem:[#allocation7 + $0x1e0] sm:$0xff]  ;;  %v7433_v40 = vcombine.low %v549_v25, %v553_v26  ;;  %v569_v44 = vld [vmem:[#allocation7 + $0x228] sm:$0xff] }
  0xf5   :  { %424 = vmatprep.subr.bf16.mxu0 %v7935_v24  ;;  %465 = vmatprep.subr.bf16.mxu1 %v7959_v41  ;;  %v564_v21 = vld [vmem:[#allocation7 + $0x200] sm:$0xff]  ;;  %v7440_v23 = vcombine.high %v556_v13, %v560_v14  ;;  %v7417_v24 = vcombine.low %v533_v9, %v537_v10  ;;  %v573_v51 = vld [vmem:[#allocation7 + $0x248] sm:$0xff] }
  0xf6   :  { %v568_v22 = vld [vmem:[#allocation7 + $0x220] sm:$0xff]  ;;  %v597_v9 = vld [vmem:[#allocation7 + $0x308] sm:$0xff] }
  0xf7   :  { %v572_v29 = vld [vmem:[#allocation7 + $0x240] sm:$0xff]  ;;  %v7448_v31 = vcombine.high %v564_v21, %v568_v22  ;;  %v601_v10 = vld [vmem:[#allocation7 + $0x328] sm:$0xff] }
  0xf8   :  { %425 = vmatpush1.bf16.msra.mxu0 %v7937_v28  ;;  %466 = vmatpush1.bf16.msra.mxu1 %v7961_v48  ;;  %v7439_v28 = vcombine.low %v556_v13, %v560_v14  ;;  %v580_v38 = vld [vmem:[#allocation7 + $0x280] sm:$0xff]  ;;  %v605_v13 = vld [vmem:[#allocation7 + $0x348] sm:$0xff] }
  0xf9   :  { %2078 = vmatprep.subr.bf16.mxu0 %v7384_v30  ;;  %2160 = vmatprep.subr.bf16.mxu1 %v7386_v49  ;;  %v576_v30 = vld [vmem:[#allocation7 + $0x260] sm:$0xff]  ;;  %v7450_v49 = vcombine.high %v565_v43, %v569_v44  ;;  %v609_v14 = vld [vmem:[#allocation7 + $0x368] sm:$0xff] }
  0xfa   :  { %v584_v39 = vld [vmem:[#allocation7 + $0x2a0] sm:$0xff]  ;;  %v7489_v17 = vcombine.low %v605_v13, %v609_v14 }
  0xfb   :  { %443 = vmatmul.mubr.bf16.vlgmr.msra.gmra.mrb[0].mxu0 %v195_v34  ;;  %484 = vmatmul.mubr.bf16.vlgmr.msra.gmra.mrb[0].mxu1 %v195_v34  ;;  %v7447_v34 = vcombine.low %v564_v21, %v568_v22  ;;  %v588_v46 = vld [vmem:[#allocation7 + $0x2c0] sm:$0xff]  ;;  %v7463_v50 = vcombine.low %v580_v38, %v584_v39  ;;  %v617_v22 = vld [vmem:[#allocation7 + $0x3a8] sm:$0xff] }
  0xfc   :  { %2079 = vmatpush1.bf16.msra.mxu0 %v7383_v36  ;;  %2161 = vmatpush1.bf16.msra.mxu1 %v7385_v56  ;;  %v561_v36 = vld [vmem:[#allocation7 + $0x1e8] sm:$0xff]  ;;  %v592_v47 = vld [vmem:[#allocation7 + $0x2e0] sm:$0xff]  ;;  %v7449_v56 = vcombine.low %v565_v43, %v569_v44 }
  0xfd   :  { %2080 = vmatprep.subr.bf16.mxu0 %v7392_v37  ;;  %2162 = vmatprep.subr.bf16.mxu1 %v7394_v59  ;;  %v7456_v37 = vcombine.high %v572_v29, %v576_v30  ;;  %v7442_v41 = vcombine.high %v557_v35, %v561_v36  ;;  %v7441_v48 = vcombine.low %v557_v35, %v561_v36  ;;  %v596_v54 = vld [vmem:[#allocation7 + $0x300] sm:$0xff]  ;;  %v581_v59 = vld [vmem:[#allocation7 + $0x288] sm:$0xff] }
  0xfe   :  { %v600_v55 = vld [vmem:[#allocation7 + $0x320] sm:$0xff]  ;;  %v7471_v58 = vcombine.low %v588_v46, %v592_v47  ;;  %v629_v36 = vld [vmem:[#allocation7 + $0x408] sm:$0xff] }
  0xff   :  { %v7480_v61 = vcombine.high %v596_v54, %v600_v55  ;;  %v604_v62 = vld [vmem:[#allocation7 + $0x340] sm:$0xff]  ;;  %v7479_v2 = vcombine.low %v596_v54, %v600_v55 }
 0x100   :  { %2081 = vmatpush1.bf16.msra.mxu0 %v7391_v42  ;;  %2163 = vmatpush1.bf16.msra.mxu1 %v7393_v0  ;;  %v7455_v42 = vcombine.low %v572_v29, %v576_v30  ;;  %v612_v18 = vld [vmem:[#allocation7 + $0x380] sm:$0xff]  ;;  %v625_v30 = vld [vmem:[#allocation7 + $0x3e8] sm:$0xff] }
 0x101   :  { %2082 = vmatprep.subr.bf16.mxu0 %v7400_v45  ;;  %2164 = vmatprep.subr.bf16.mxu1 %v7402_v3  ;;  %v7464_v45 = vcombine.high %v580_v38, %v584_v39  ;;  %v589_v3 = vld [vmem:[#allocation7 + $0x2c8] sm:$0xff]  ;;  %v620_v26 = vld [vmem:[#allocation7 + $0x3c0] sm:$0xff] }
 0x102   :  { %v632_v35 = vld [vmem:[#allocation7 + $0x420] sm:$0xff]  ;;  %v633_v38 = vld [vmem:[#allocation7 + $0x428] sm:$0xff] }
 0x104   :  { %2083 = vmatpush1.bf16.msra.mxu0 %v7399_v52  ;;  %2165 = vmatpush1.bf16.msra.mxu1 %v7401_v8  ;;  %v577_v52 = vld [vmem:[#allocation7 + $0x268] sm:$0xff] }
 0x105   :  { %2084 = vmatprep.subr.bf16.mxu0 %v7408_v53  ;;  %2166 = vmatprep.subr.bf16.mxu1 %v7410_v11  ;;  %v7472_v53 = vcombine.high %v588_v46, %v592_v47  ;;  %v7458_v57 = vcombine.high %v573_v51, %v577_v52  ;;  %v7457_v0 = vcombine.low %v573_v51, %v577_v52 }
 0x108   :  { %2085 = vmatpush1.bf16.msra.mxu0 %v7407_v60  ;;  %2167 = vmatpush1.bf16.msra.mxu1 %v7409_v16  ;;  %v585_v60 = vld [vmem:[#allocation7 + $0x2a8] sm:$0xff]  ;;  %v7490_v16 = vcombine.high %v605_v13, %v609_v14  ;;  %v656_v13 = vld [vmem:[#allocation7 + $0x4e0] sm:$0xff] }
 0x109   :  { %2086 = vmatprep.subr.bf16.mxu0 %v7416_v63  ;;  %2168 = vmatprep.subr.bf16.mxu1 %v7418_v19  ;;  %v608_v63 = vld [vmem:[#allocation7 + $0x360] sm:$0xff]  ;;  %v7466_v1 = vcombine.high %v581_v59, %v585_v60  ;;  %v7465_v6 = vcombine.low %v581_v59, %v585_v60  ;;  %v637_v59 = vld [vmem:[#allocation7 + $0x448] sm:$0xff] }
 0x10a   :  { %v7488_v5 = vcombine.high %v604_v62, %v608_v63  ;;  %v7487_v8 = vcombine.low %v604_v62, %v608_v63  ;;  %v616_v19 = vld [vmem:[#allocation7 + $0x3a0] sm:$0xff]  ;;  %v641_v60 = vld [vmem:[#allocation7 + $0x468] sm:$0xff] }
 0x10b   :  { %v7496_v21 = vcombine.high %v612_v18, %v616_v19  ;;  %v653_v14 = vld [vmem:[#allocation7 + $0x4c8] sm:$0xff] }
 0x10c   :  { %2087 = vmatpush1.bf16.msra.mxu0 %v7415_v4  ;;  %2169 = vmatpush1.bf16.msra.mxu1 %v7417_v24  ;;  %v593_v4 = vld [vmem:[#allocation7 + $0x2e8] sm:$0xff] }
 0x10d   :  { %2088 = vmatprep.subr.bf16.mxu0 %v7424_v7  ;;  %2170 = vmatprep.subr.bf16.mxu1 %v7426_v27  ;;  %v7474_v7 = vcombine.high %v589_v3, %v593_v4  ;;  %v7473_v11 = vcombine.low %v589_v3, %v593_v4  ;;  %v624_v27 = vld [vmem:[#allocation7 + $0x3e0] sm:$0xff]  ;;  %v645_v4 = vld [vmem:[#allocation7 + $0x488] sm:$0xff] }
 0x10e   :  { %v7504_v29 = vcombine.high %v620_v26, %v624_v27  ;;  %v648_v3 = vld [vmem:[#allocation7 + $0x4a0] sm:$0xff] }
 0x110   :  { %2089 = vmatpush1.bf16.msra.mxu0 %v7423_v12  ;;  %2171 = vmatpush1.bf16.msra.mxu1 %v7425_v32  ;;  %v7482_v12 = vcombine.high %v597_v9, %v601_v10 }
 0x111   :  { %2090 = vmatprep.subr.bf16.mxu0 %v7432_v15  ;;  %2172 = vmatprep.subr.bf16.mxu1 %v7434_v33  ;;  %v7481_v15 = vcombine.low %v597_v9, %v601_v10 }
 0x114   :  { %2091 = vmatpush1.bf16.msra.mxu0 %v7431_v20  ;;  %2173 = vmatpush1.bf16.msra.mxu1 %v7433_v40  ;;  %v613_v20 = vld [vmem:[#allocation7 + $0x388] sm:$0xff]  ;;  %v7513_v40 = vcombine.low %v629_v36, %v633_v38 }
 0x115   :  { %2092 = vmatprep.subr.bf16.mxu0 %v7440_v23  ;;  %2174 = vmatprep.subr.bf16.mxu1 %v7442_v41  ;;  %v7495_v23 = vcombine.low %v612_v18, %v616_v19  ;;  %v7497_v24 = vcombine.low %v613_v20, %v617_v22  ;;  %v7498_v25 = vcombine.high %v613_v20, %v617_v22 }
 0x116   :  { %v7514_v41 = vcombine.high %v629_v36, %v633_v38  ;;  %v669_v36 = vld [vmem:[#allocation7 + $0x548] sm:$0xff] }
 0x118   :  { %2093 = vmatpush1.bf16.msra.mxu0 %v7439_v28  ;;  %2175 = vmatpush1.bf16.msra.mxu1 %v7441_v48  ;;  %v621_v28 = vld [vmem:[#allocation7 + $0x3c8] sm:$0xff] }
 0x119   :  { %2094 = vmatprep.subr.bf16.mxu0 %v7448_v31  ;;  %2176 = vmatprep.subr.bf16.mxu1 %v7450_v49  ;;  %v7503_v31 = vcombine.low %v620_v26, %v624_v27  ;;  %v7505_v32 = vcombine.low %v621_v28, %v625_v30  ;;  %v7506_v33 = vcombine.high %v621_v28, %v625_v30  ;;  %v664_v26 = vld [vmem:[#allocation7 + $0x520] sm:$0xff]  ;;  %v661_v27 = vld [vmem:[#allocation7 + $0x508] sm:$0xff] }
 0x11a   :  { %v665_v28 = vld [vmem:[#allocation7 + $0x528] sm:$0xff] }
 0x11c   :  { %2095 = vmatpush1.bf16.msra.mxu0 %v7447_v34  ;;  %2177 = vmatpush1.bf16.msra.mxu1 %v7449_v56  ;;  %v628_v34 = vld [vmem:[#allocation7 + $0x400] sm:$0xff] }
 0x11d   :  { %2096 = vmatprep.subr.bf16.mxu0 %v7456_v37  ;;  %2178 = vmatprep.subr.bf16.mxu1 %v7458_v57  ;;  %v7512_v37 = vcombine.high %v628_v34, %v632_v35  ;;  %v7511_v39 = vcombine.low %v628_v34, %v632_v35  ;;  %v636_v56 = vld [vmem:[#allocation7 + $0x440] sm:$0xff] }
 0x11e   :  { %v668_v34 = vld [vmem:[#allocation7 + $0x540] sm:$0xff] }
 0x11f   :  { %v672_v35 = vld [vmem:[#allocation7 + $0x560] sm:$0xff] }
 0x120   :  { %2097 = vmatpush1.bf16.msra.mxu0 %v7455_v42  ;;  %2179 = vmatpush1.bf16.msra.mxu1 %v7457_v0  ;;  %v230_v42 = vlaneseq }
 0x121   :  { %2098 = vmatprep.subr.bf16.mxu0 %v7464_v45  ;;  %2180 = vmatprep.subr.bf16.mxu1 %v7466_v1  ;;  %v8558_v45 = vld [vmem:[#allocation5] sm:$0xf]  ;;  %v7522_v1 = vcombine.high %v637_v59, %v641_v60 }
 0x122   :  { %v8553_v43 = vshrl.u32 %v230_v42, 7  ;;  %v676_v42 = vld [vmem:[#allocation7 + $0x580] sm:$0xff] }
 0x124   :  { %2099 = vmatpush1.bf16.msra.mxu0 %v7463_v50  ;;  %2181 = vmatpush1.bf16.msra.mxu1 %v7465_v6  ;;  %v8556_v44 = vsub.s32 0, %v8553_v43  ;;  %v8561_v46 = vsub.s32 1, %v8553_v43 }
 0x125   :  { %2100 = vmatprep.subr.bf16.mxu0 %v7472_v53  ;;  %2182 = vmatprep.subr.bf16.mxu1 %v7474_v7 }
 0x126   :  { %v233_v47 = vrot.slane %v8558_v45, %v8556_v44  ;;  %v237_v48 = vrot.slane %v8558_v45, %v8561_v46 }
 0x128   :  { %2101 = vmatpush1.bf16.msra.mxu0 %v7471_v58  ;;  %2183 = vmatpush1.bf16.msra.mxu1 %v7473_v11  ;;  %v640_v58 = vld [vmem:[#allocation7 + $0x460] sm:$0xff] }
 0x129   :  { %2102 = vmatprep.subr.bf16.mxu0 %v7480_v61  ;;  %2184 = vmatprep.subr.bf16.mxu1 %v7482_v12  ;;  %v8568_v61 = vsub.s32 3, %v8553_v43  ;;  %v7520_v0 = vcombine.high %v636_v56, %v640_v58  ;;  %v7519_v7 = vcombine.low %v636_v56, %v640_v58  ;;  %v652_v11 = vld [vmem:[#allocation7 + $0x4c0] sm:$0xff]  ;;  %v685_v56 = vld [vmem:[#allocation7 + $0x5c8] sm:$0xff] }
 0x12a   :  { %v7536_v22 = vcombine.high %v652_v11, %v656_v13  ;;  %v7535_v30 = vcombine.low %v652_v11, %v656_v13  ;;  %v701_v11 = vld [vmem:[#allocation7 + $0x648] sm:$0xff] }
 0x12b   :  { %v245_v6 = vrot.slane %v8558_v45, %v8568_v61  ;;  %v705_v13 = vld [vmem:[#allocation7 + $0x668] sm:$0xff] }
 0x12c   :  { %2103 = vmatpush1.bf16.msra.mxu0 %v7479_v2  ;;  %2185 = vmatpush1.bf16.msra.mxu1 %v7481_v15  ;;  %v644_v2 = vld [vmem:[#allocation7 + $0x480] sm:$0xff]  ;;  %v657_v15 = vld [vmem:[#allocation7 + $0x4e8] sm:$0xff] }
 0x12d   :  { %2104 = vmatprep.subr.bf16.mxu0 %v7488_v5  ;;  %2186 = vmatprep.subr.bf16.mxu1 %v7490_v16  ;;  %v649_v5 = vld [vmem:[#allocation7 + $0x4a8] sm:$0xff]  ;;  %v7528_v9 = vcombine.high %v644_v2, %v648_v3  ;;  %v7527_v19 = vcombine.low %v644_v2, %v648_v3  ;;  %v696_v2 = vld [vmem:[#allocation7 + $0x620] sm:$0xff] }
 0x12e   :  { %v7530_v10 = vcombine.high %v645_v4, %v649_v5  ;;  %v7529_v20 = vcombine.low %v645_v4, %v649_v5  ;;  %v693_v3 = vld [vmem:[#allocation7 + $0x608] sm:$0xff] }
 0x12f   :  { %v697_v4 = vld [vmem:[#allocation7 + $0x628] sm:$0xff] }
 0x130   :  { %2105 = vmatpush1.bf16.msra.mxu0 %v7487_v8  ;;  %2187 = vmatpush1.bf16.msra.mxu1 %v7489_v17  ;;  %v7521_v8 = vcombine.low %v637_v59, %v641_v60 }
 0x131   :  { %2106 = vmatprep.subr.bf16.mxu0 %v7496_v21  ;;  %2188 = vmatprep.subr.bf16.mxu1 %v7498_v25 }
 0x134   :  { %2107 = vmatpush1.bf16.msra.mxu0 %v7495_v23  ;;  %2189 = vmatpush1.bf16.msra.mxu1 %v7497_v24  ;;  %v7538_v23 = vcombine.high %v653_v14, %v657_v15  ;;  %v660_v24 = vld [vmem:[#allocation7 + $0x500] sm:$0xff] }
 0x135   :  { %2108 = vmatprep.subr.bf16.mxu0 %v7504_v29  ;;  %2190 = vmatprep.subr.bf16.mxu1 %v7506_v33  ;;  %v7546_v33 = vcombine.high %v661_v27, %v665_v28  ;;  %v7543_v38 = vcombine.low %v660_v24, %v664_v26 }
 0x138   :  { %2109 = vmatpush1.bf16.msra.mxu0 %v7503_v31  ;;  %2191 = vmatpush1.bf16.msra.mxu1 %v7505_v32  ;;  %v7537_v31 = vcombine.low %v653_v14, %v657_v15  ;;  %v7544_v32 = vcombine.high %v660_v24, %v664_v26  ;;  %v7577_v15 = vcombine.low %v693_v3, %v697_v4  ;;  %v716_v26 = vld [vmem:[#allocation7 + $0x6c0] sm:$0xff] }
 0x139   :  { %2119 = vmatprep.subr.bf16.mxu0 %v7512_v37  ;;  %2201 = vmatprep.subr.bf16.mxu1 %v7514_v41  ;;  %v673_v37 = vld [vmem:[#allocation7 + $0x568] sm:$0xff] }
 0x13a   :  { %v7554_v41 = vcombine.high %v669_v36, %v673_v37 }
 0x1ce   :  { %v444_v49 = vpop.f32.mrb[0].mxu0  ;;  %v8580_v12 = vpop.f32.mrb[0].mxu1 }
 0x1cf   :  { %v445_v50 = vadd.f32 %v444_v49, %v233_v47  ;;  %v446_v51 = vpop.f32.mrb[1].mxu0  ;;  %v487_v16 = vpop.f32.mrb[1].mxu1  ;;  %v680_v47 = vld [vmem:[#allocation7 + $0x5a0] sm:$0xff]  ;;  %v681_v49 = vld [vmem:[#allocation7 + $0x5a8] sm:$0xff] }
 0x1d0   :  { %v447_v52 = vadd.f32 %v446_v51, %v237_v48  ;;  %v448_v53 = vpop.f32.mrb[2].mxu0  ;;  %v488_v17 = vadd.f32 %v487_v16, %v245_v6  ;;  %v489_v18 = vpop.f32.mrb[2].mxu1  ;;  %v677_v48 = vld [vmem:[#allocation7 + $0x588] sm:$0xff]  ;;  %v7553_v51 = vcombine.low %v669_v36, %v673_v37  ;;  %v7559_v58 = vcombine.low %v676_v42, %v680_v47  ;;  %v728_v36 = vld [vmem:[#allocation7 + $0x720] sm:$0xff] }
 0x1d1   :  { %v492_v54 = vmax.f32 %v445_v50, 0.0  ;;  %v449_v55 = vpop.f32.mrb[3].mxu0  ;;  %v490_v21 = vpop.f32.mrb[3].mxu1  ;;  %v7551_v50 = vcombine.low %v668_v34, %v672_v35  ;;  %v7562_v53 = vcombine.high %v677_v48, %v681_v49  ;;  %v7561_v59 = vcombine.low %v677_v48, %v681_v49  ;;  %v708_v18 = vld [vmem:[#allocation7 + $0x680] sm:$0xff]  ;;  %v725_v37 = vld [vmem:[#allocation7 + $0x708] sm:$0xff] }
 0x1d2   :  { %v493_v57 = vmax.f32 %v447_v52, 0.0  ;;  %v495_v25 = vmax.f32 %v488_v17, 0.0  ;;  %v7560_v52 = vcombine.high %v676_v42, %v680_v47  ;;  %v688_v55 = vld [vmem:[#allocation7 + $0x5e0] sm:$0xff]  ;;  %v7586_v17 = vcombine.high %v701_v11, %v705_v13  ;;  %v713_v21 = vld [vmem:[#allocation7 + $0x6a8] sm:$0xff] }
 0x1d3   :  { %v8572_v63 = vpack.c.bf16 %v492_v54, %v492_v54  ;;  %v684_v54 = vld [vmem:[#allocation7 + $0x5c0] sm:$0xff]  ;;  %v733_v49 = vld [vmem:[#allocation7 + $0x748] sm:$0xff] }
 0x1d4   :  { %v8570_v62 = vpack.c.bf16 %v493_v57, %v493_v57  ;;  %v8582_v29 = vpack.c.bf16 %v495_v25, %v495_v25  ;;  %v689_v57 = vld [vmem:[#allocation7 + $0x5e8] sm:$0xff]  ;;  %v7568_v60 = vcombine.high %v684_v54, %v688_v55  ;;  %v7567_v5 = vcombine.low %v684_v54, %v688_v55  ;;  %v732_v47 = vld [vmem:[#allocation7 + $0x740] sm:$0xff] }
 0x1d5   :  { %v7569_v6 = vcombine.low %v685_v56, %v689_v57  ;;  %v736_v48 = vld [vmem:[#allocation7 + $0x760] sm:$0xff] }
 0x1d6   :  { %2110 = vmatprep.mubr.bf16.mxu0 %v8570_v62  ;;  %2192 = vmatprep.mubr.bf16.mxu1 %v8570_v62  ;;  %v7616_v54 = vcombine.high %v732_v47, %v736_v48 }
 0x1d7   :  { %2111 = vmatmul.mubr.bf16.vlgmr.msra.gmra.mrb[4].mxu0 %v8572_v63  ;;  %2193 = vmatmul.mubr.bf16.vlgmr.msra.gmra.mrb[4].mxu1 %v8572_v63 }
 0x1d8   :  { %2120 = vmatpush1.bf16.msra.mxu0 %v7511_v39  ;;  %2202 = vmatpush1.bf16.msra.mxu1 %v7513_v40  ;;  %v7545_v39 = vcombine.low %v661_v27, %v665_v28  ;;  %v7552_v40 = vcombine.high %v668_v34, %v672_v35  ;;  %v720_v27 = vld [vmem:[#allocation7 + $0x6e0] sm:$0xff]  ;;  %v717_v28 = vld [vmem:[#allocation7 + $0x6c8] sm:$0xff] }
 0x1d9   :  { %2121 = vmatprep.subr.bf16.mxu0 %v7520_v0  ;;  %2203 = vmatprep.subr.bf16.mxu1 %v7522_v1  ;;  %v7570_v0 = vcombine.high %v685_v56, %v689_v57  ;;  %v692_v1 = vld [vmem:[#allocation7 + $0x600] sm:$0xff] }
 0x1da   :  { %2151 = vmatprep.mubr.bf16.mxu0 %v8582_v29  ;;  %2233 = vmatprep.mubr.bf16.mxu1 %v8582_v29  ;;  %v7575_v14 = vcombine.low %v692_v1, %v696_v2  ;;  %v724_v35 = vld [vmem:[#allocation7 + $0x700] sm:$0xff] }
 0x1db   :  { %v740_v56 = vld [vmem:[#allocation7 + $0x780] sm:$0xff] }
 0x1dc   :  { %2122 = vmatpush1.bf16.msra.mxu0 %v7519_v7  ;;  %2204 = vmatpush1.bf16.msra.mxu1 %v7521_v8  ;;  %v7576_v7 = vcombine.high %v692_v1, %v696_v2  ;;  %v7578_v8 = vcombine.high %v693_v3, %v697_v4  ;;  %v744_v57 = vld [vmem:[#allocation7 + $0x7a0] sm:$0xff] }
 0x1dd   :  { %2123 = vmatprep.subr.bf16.mxu0 %v7528_v9  ;;  %2205 = vmatprep.subr.bf16.mxu1 %v7530_v10  ;;  %v700_v9 = vld [vmem:[#allocation7 + $0x640] sm:$0xff]  ;;  %v7624_v2 = vcombine.high %v740_v56, %v744_v57 }
 0x1de   :  { %v704_v10 = vld [vmem:[#allocation7 + $0x660] sm:$0xff] }
 0x1df   :  { %v7584_v16 = vcombine.high %v700_v9, %v704_v10  ;;  %v748_v4 = vld [vmem:[#allocation7 + $0x7c0] sm:$0xff] }
 0x1e0   :  { %2124 = vmatpush1.bf16.msra.mxu0 %v7527_v19  ;;  %2206 = vmatpush1.bf16.msra.mxu1 %v7529_v20  ;;  %v712_v19 = vld [vmem:[#allocation7 + $0x6a0] sm:$0xff]  ;;  %v709_v20 = vld [vmem:[#allocation7 + $0x688] sm:$0xff] }
 0x1e1   :  { %2125 = vmatprep.subr.bf16.mxu0 %v7536_v22  ;;  %2207 = vmatprep.subr.bf16.mxu1 %v7538_v23  ;;  %v7583_v22 = vcombine.low %v700_v9, %v704_v10  ;;  %v7585_v23 = vcombine.low %v701_v11, %v705_v13  ;;  %v7592_v24 = vcombine.high %v708_v18, %v712_v19 }
 0x1e2   :  { %v7594_v25 = vcombine.high %v709_v20, %v713_v21 }
 0x1e4   :  { %2126 = vmatpush1.bf16.msra.mxu0 %v7535_v30  ;;  %2208 = vmatpush1.bf16.msra.mxu1 %v7537_v31  ;;  %v721_v30 = vld [vmem:[#allocation7 + $0x6e8] sm:$0xff]  ;;  %v7591_v31 = vcombine.low %v708_v18, %v712_v19 }
 0x1e5   :  { %2127 = vmatprep.subr.bf16.mxu0 %v7544_v32  ;;  %2209 = vmatprep.subr.bf16.mxu1 %v7546_v33  ;;  %v7593_v32 = vcombine.low %v709_v20, %v713_v21  ;;  %v7600_v33 = vcombine.high %v716_v26, %v720_v27  ;;  %v7602_v34 = vcombine.high %v717_v28, %v721_v30 }
 0x1e8   :  { %2128 = vmatpush1.bf16.msra.mxu0 %v7543_v38  ;;  %2210 = vmatpush1.bf16.msra.mxu1 %v7545_v39  ;;  %v729_v38 = vld [vmem:[#allocation7 + $0x728] sm:$0xff]  ;;  %v7599_v39 = vcombine.low %v716_v26, %v720_v27 }
 0x1e9   :  { %2129 = vmatprep.subr.bf16.mxu0 %v7552_v40  ;;  %2211 = vmatprep.subr.bf16.mxu1 %v7554_v41  ;;  %v7601_v40 = vcombine.low %v717_v28, %v721_v30  ;;  %v7608_v41 = vcombine.high %v724_v35, %v728_v36  ;;  %v7610_v42 = vcombine.high %v725_v37, %v729_v38 }
 0x1ec   :  { %2130 = vmatpush1.bf16.msra.mxu0 %v7551_v50  ;;  %2212 = vmatpush1.bf16.msra.mxu1 %v7553_v51  ;;  %v737_v50 = vld [vmem:[#allocation7 + $0x768] sm:$0xff]  ;;  %v7607_v51 = vcombine.low %v724_v35, %v728_v36 }
 0x1ed   :  { %2131 = vmatprep.subr.bf16.mxu0 %v7560_v52  ;;  %2213 = vmatprep.subr.bf16.mxu1 %v7562_v53  ;;  %v7609_v52 = vcombine.low %v725_v37, %v729_v38  ;;  %v8587_v53 = vsub.s32 2, %v8553_v43  ;;  %v7618_v55 = vcombine.high %v733_v49, %v737_v50 }
 0x1ef   :  { %v241_v1 = vrot.slane %v8558_v45, %v8587_v53  ;;  %v506_v45 = vld [vmem:[#allocation7 + $0x30] sm:$0xff] }
 0x1f0   :  { %2132 = vmatpush1.bf16.msra.mxu0 %v7559_v58  ;;  %2214 = vmatpush1.bf16.msra.mxu1 %v7561_v59  ;;  %v741_v58 = vld [vmem:[#allocation7 + $0x788] sm:$0xff] }
 0x1f1   :  { %2133 = vmatprep.subr.bf16.mxu0 %v7568_v60  ;;  %2215 = vmatprep.subr.bf16.mxu1 %v7570_v0  ;;  %v745_v59 = vld [vmem:[#allocation7 + $0x7a8] sm:$0xff]  ;;  %v7615_v60 = vcombine.low %v732_v47, %v736_v48  ;;  %v7617_v0 = vcombine.low %v733_v49, %v737_v50  ;;  %v486_v10 = vadd.f32 %v8580_v12, %v241_v1  ;;  %v511_v12 = vld [vmem:[#allocation7 + $0x58] sm:$0xff] }
 0x1f2   :  { %v7626_v3 = vcombine.high %v741_v58, %v745_v59  ;;  %v7625_v9 = vcombine.low %v741_v58, %v745_v59  ;;  %v542_v59 = vld [vmem:[#allocation7 + $0x150] sm:$0xff]  ;;  %v547_v1 = vld [vmem:[#allocation7 + $0x178] sm:$0xff] }
 0x1f3   :  { %v494_v19 = vmax.f32 %v486_v10, 0.0 }
 0x1f4   :  { %2134 = vmatpush1.bf16.msra.mxu0 %v7567_v5  ;;  %2216 = vmatpush1.bf16.msra.mxu1 %v7569_v6  ;;  %v752_v5 = vld [vmem:[#allocation7 + $0x7e0] sm:$0xff]  ;;  %v749_v6 = vld [vmem:[#allocation7 + $0x7c8] sm:$0xff] }
 0x1f5   :  { %2135 = vmatprep.subr.bf16.mxu0 %v7576_v7  ;;  %2217 = vmatprep.subr.bf16.mxu1 %v7578_v8  ;;  %v753_v7 = vld [vmem:[#allocation7 + $0x7e8] sm:$0xff]  ;;  %v7623_v8 = vcombine.low %v740_v56, %v744_v57  ;;  %v7632_v11 = vcombine.high %v748_v4, %v752_v5  ;;  %v8592_v26 = vpack.c.bf16 %v494_v19, %v494_v19 }
 0x1f6   :  { %v7634_v13 = vcombine.high %v749_v6, %v753_v7  ;;  %v7633_v18 = vcombine.low %v749_v6, %v753_v7  ;;  %v550_v6 = vld [vmem:[#allocation7 + $0x190] sm:$0xff] }
 0x1f7   :  { %v554_v7 = vld [vmem:[#allocation7 + $0x1b0] sm:$0xff] }
 0x1f8   :  { %2136 = vmatpush1.bf16.msra.mxu0 %v7575_v14  ;;  %2218 = vmatpush1.bf16.msra.mxu1 %v7577_v15  ;;  %v502_v14 = vld [vmem:[#allocation7 + $0x10] sm:$0xff]  ;;  %v503_v15 = vld [vmem:[#allocation7 + $0x18] sm:$0xff] }
 0x1f9   :  { %2137 = vmatprep.subr.bf16.mxu0 %v7584_v16  ;;  %2219 = vmatprep.subr.bf16.mxu1 %v7586_v17  ;;  %v507_v16 = vld [vmem:[#allocation7 + $0x38] sm:$0xff]  ;;  %v7631_v17 = vcombine.low %v748_v4, %v752_v5  ;;  %v7388_v20 = vcombine.high %v502_v14, %v506_v45 }
 0x1fa   :  { %v7390_v21 = vcombine.high %v503_v15, %v507_v16  ;;  %v7389_v27 = vcombine.low %v503_v15, %v507_v16  ;;  %v562_v15 = vld [vmem:[#allocation7 + $0x1f0] sm:$0xff]  ;;  %v559_v16 = vld [vmem:[#allocation7 + $0x1d8] sm:$0xff] }
 0x1fc   :  { %2138 = vmatpush1.bf16.msra.mxu0 %v7583_v22  ;;  %2220 = vmatpush1.bf16.msra.mxu1 %v7585_v23  ;;  %v510_v22 = vld [vmem:[#allocation7 + $0x50] sm:$0xff] }
 0x1fd   :  { %2139 = vmatprep.subr.bf16.mxu0 %v7592_v24  ;;  %2221 = vmatprep.subr.bf16.mxu1 %v7594_v25  ;;  %v514_v23 = vld [vmem:[#allocation7 + $0x70] sm:$0xff]  ;;  %v515_v24 = vld [vmem:[#allocation7 + $0x78] sm:$0xff]  ;;  %v7387_v25 = vcombine.low %v502_v14, %v506_v45 }
 0x1fe   :  { %v7396_v28 = vcombine.high %v510_v22, %v514_v23  ;;  %v7398_v30 = vcombine.high %v511_v12, %v515_v24  ;;  %v7395_v35 = vcombine.low %v510_v22, %v514_v23  ;;  %v7397_v36 = vcombine.low %v511_v12, %v515_v24  ;;  %v558_v45 = vld [vmem:[#allocation7 + $0x1d0] sm:$0xff]  ;;  %v567_v12 = vld [vmem:[#allocation7 + $0x218] sm:$0xff] }
 0x1ff   :  { %v566_v22 = vld [vmem:[#allocation7 + $0x210] sm:$0xff]  ;;  %v571_v24 = vld [vmem:[#allocation7 + $0x238] sm:$0xff] }
 0x200   :  { %2140 = vmatpush1.bf16.msra.mxu0 %v7591_v31  ;;  %2222 = vmatpush1.bf16.msra.mxu1 %v7593_v32  ;;  %v518_v31 = vld [vmem:[#allocation7 + $0x90] sm:$0xff] }
 0x201   :  { %2141 = vmatprep.subr.bf16.mxu0 %v7600_v33  ;;  %2223 = vmatprep.subr.bf16.mxu1 %v7602_v34  ;;  %v522_v32 = vld [vmem:[#allocation7 + $0xb0] sm:$0xff]  ;;  %v519_v33 = vld [vmem:[#allocation7 + $0x98] sm:$0xff] }
 0x202   :  { %v523_v34 = vld [vmem:[#allocation7 + $0xb8] sm:$0xff]  ;;  %v7404_v37 = vcombine.high %v518_v31, %v522_v32  ;;  %v7403_v47 = vcombine.low %v518_v31, %v522_v32  ;;  %v570_v23 = vld [vmem:[#allocation7 + $0x230] sm:$0xff] }
 0x203   :  { %v7406_v38 = vcombine.high %v519_v33, %v523_v34  ;;  %v7405_v48 = vcombine.low %v519_v33, %v523_v34  ;;  %v574_v31 = vld [vmem:[#allocation7 + $0x250] sm:$0xff]  ;;  %v575_v33 = vld [vmem:[#allocation7 + $0x258] sm:$0xff] }
 0x204   :  { %2142 = vmatpush1.bf16.msra.mxu0 %v7599_v39  ;;  %2224 = vmatpush1.bf16.msra.mxu1 %v7601_v40  ;;  %v526_v39 = vld [vmem:[#allocation7 + $0xd0] sm:$0xff]  ;;  %v579_v34 = vld [vmem:[#allocation7 + $0x278] sm:$0xff] }
 0x205   :  { %2143 = vmatprep.subr.bf16.mxu0 %v7608_v41  ;;  %2225 = vmatprep.subr.bf16.mxu1 %v7610_v42  ;;  %v530_v40 = vld [vmem:[#allocation7 + $0xf0] sm:$0xff]  ;;  %v527_v41 = vld [vmem:[#allocation7 + $0xd8] sm:$0xff] }
 0x206   :  { %v531_v42 = vld [vmem:[#allocation7 + $0xf8] sm:$0xff]  ;;  %v7412_v49 = vcombine.high %v526_v39, %v530_v40  ;;  %v578_v32 = vld [vmem:[#allocation7 + $0x270] sm:$0xff] }
 0x207   :  { %v7414_v50 = vcombine.high %v527_v41, %v531_v42  ;;  %v7413_v56 = vcombine.low %v527_v41, %v531_v42  ;;  %v583_v41 = vld [vmem:[#allocation7 + $0x298] sm:$0xff] }
 0x208   :  { %2144 = vmatpush1.bf16.msra.mxu0 %v7607_v51  ;;  %2226 = vmatpush1.bf16.msra.mxu1 %v7609_v52  ;;  %v534_v51 = vld [vmem:[#allocation7 + $0x110] sm:$0xff]  ;;  %v587_v42 = vld [vmem:[#allocation7 + $0x2b8] sm:$0xff] }
 0x209   :  { %2145 = vmatprep.subr.bf16.mxu0 %v7616_v54  ;;  %2227 = vmatprep.subr.bf16.mxu1 %v7618_v55  ;;  %v538_v52 = vld [vmem:[#allocation7 + $0x130] sm:$0xff]  ;;  %v539_v54 = vld [vmem:[#allocation7 + $0x138] sm:$0xff]  ;;  %v7411_v55 = vcombine.low %v526_v39, %v530_v40 }
 0x20a   :  { %v7420_v57 = vcombine.high %v534_v51, %v538_v52  ;;  %v582_v39 = vld [vmem:[#allocation7 + $0x290] sm:$0xff] }
 0x20b   :  { %v586_v40 = vld [vmem:[#allocation7 + $0x2b0] sm:$0xff] }
 0x20c   :  { %2146 = vmatpush1.bf16.msra.mxu0 %v7615_v60  ;;  %2228 = vmatpush1.bf16.msra.mxu1 %v7617_v0  ;;  %v546_v60 = vld [vmem:[#allocation7 + $0x170] sm:$0xff]  ;;  %v543_v0 = vld [vmem:[#allocation7 + $0x158] sm:$0xff] }
 0x20d   :  { %2147 = vmatprep.subr.bf16.mxu0 %v7624_v2  ;;  %2229 = vmatprep.subr.bf16.mxu1 %v7626_v3  ;;  %v7419_v2 = vcombine.low %v534_v51, %v538_v52  ;;  %v7428_v4 = vcombine.high %v542_v59, %v546_v60  ;;  %v7430_v5 = vcombine.high %v543_v0, %v547_v1  ;;  %v590_v51 = vld [vmem:[#allocation7 + $0x2d0] sm:$0xff] }
 0x20e   :  { %v7427_v10 = vcombine.low %v542_v59, %v546_v60  ;;  %v594_v52 = vld [vmem:[#allocation7 + $0x2f0] sm:$0xff] }
 0x20f   :  { %v598_v59 = vld [vmem:[#allocation7 + $0x310] sm:$0xff] }
 0x210   :  { %2148 = vmatpush1.bf16.msra.mxu0 %v7623_v8  ;;  %2230 = vmatpush1.bf16.msra.mxu1 %v7625_v9  ;;  %v551_v8 = vld [vmem:[#allocation7 + $0x198] sm:$0xff]  ;;  %v602_v60 = vld [vmem:[#allocation7 + $0x330] sm:$0xff] }
 0x211   :  { %2149 = vmatprep.subr.bf16.mxu0 %v7632_v11  ;;  %2231 = vmatprep.subr.bf16.mxu1 %v7634_v13  ;;  %v555_v9 = vld [vmem:[#allocation7 + $0x1b8] sm:$0xff]  ;;  %v7429_v11 = vcombine.low %v543_v0, %v547_v1  ;;  %v7436_v13 = vcombine.high %v550_v6, %v554_v7 }
 0x212   :  { %v7438_v14 = vcombine.high %v551_v8, %v555_v9  ;;  %v7437_v19 = vcombine.low %v551_v8, %v555_v9  ;;  %v599_v0 = vld [vmem:[#allocation7 + $0x318] sm:$0xff] }
 0x213   :  { %v603_v1 = vld [vmem:[#allocation7 + $0x338] sm:$0xff] }
 0x214   :  { %2150 = vmatpush1.bf16.msra.mxu0 %v7631_v17  ;;  %2232 = vmatpush1.bf16.msra.mxu1 %v7633_v18  ;;  %v563_v17 = vld [vmem:[#allocation7 + $0x1f8] sm:$0xff]  ;;  %v7435_v18 = vcombine.low %v550_v6, %v554_v7  ;;  %v606_v6 = vld [vmem:[#allocation7 + $0x350] sm:$0xff] }
 0x215   :  { %2242 = vmatprep.subr.bf16.mxu0 %v7388_v20  ;;  %2324 = vmatprep.subr.bf16.mxu1 %v7390_v21  ;;  %v7444_v20 = vcombine.high %v558_v45, %v562_v15  ;;  %v7446_v21 = vcombine.high %v559_v16, %v563_v17  ;;  %v610_v7 = vld [vmem:[#allocation7 + $0x370] sm:$0xff]  ;;  %v607_v8 = vld [vmem:[#allocation7 + $0x358] sm:$0xff] }
 0x216   :  { %v611_v9 = vld [vmem:[#allocation7 + $0x378] sm:$0xff] }
 0x217   :  { %2152 = vmatmul.mubr.bf16.vlgmr.msra.gmra.mrb[4].mxu0 %v8592_v26  ;;  %2234 = vmatmul.mubr.bf16.vlgmr.msra.gmra.mrb[4].mxu1 %v8592_v26 }
 0x218   :  { %2243 = vmatpush1.bf16.msra.mxu0 %v7387_v25  ;;  %2274 = vmatprep.mubr.bf16.mxu0 %v8570_v62  ;;  %v7443_v25 = vcombine.low %v558_v45, %v562_v15  ;;  %v614_v45 = vld [vmem:[#allocation7 + $0x390] sm:$0xff] }
 0x219   :  { %2325 = vmatpush1.bf16.msra.mxu1 %v7389_v27  ;;  %2356 = vmatprep.mubr.bf16.mxu1 %v8570_v62  ;;  %v535_v62 = vld [vmem:[#allocation7 + $0x118] sm:$0xff]  ;;  %v7445_v27 = vcombine.low %v559_v16, %v563_v17  ;;  %v618_v15 = vld [vmem:[#allocation7 + $0x3b0] sm:$0xff] }
 0x21a   :  { %2244 = vmatprep.subr.bf16.mxu0 %v7396_v28  ;;  %2326 = vmatprep.subr.bf16.mxu1 %v7398_v30  ;;  %v7422_v58 = vcombine.high %v535_v62, %v539_v54  ;;  %v7421_v3 = vcombine.low %v535_v62, %v539_v54  ;;  %v7452_v28 = vcombine.high %v566_v22, %v570_v23  ;;  %v591_v62 = vld [vmem:[#allocation7 + $0x2d8] sm:$0xff] }
 0x21b   :  { %v7454_v30 = vcombine.high %v567_v12, %v571_v24  ;;  %v595_v54 = vld [vmem:[#allocation7 + $0x2f8] sm:$0xff] }
 0x21c   :  { %2245 = vmatpush1.bf16.msra.mxu0 %v7395_v35  ;;  %v7451_v35 = vcombine.low %v566_v22, %v570_v23  ;;  %v615_v16 = vld [vmem:[#allocation7 + $0x398] sm:$0xff]  ;;  %v622_v22 = vld [vmem:[#allocation7 + $0x3d0] sm:$0xff] }
 0x21d   :  { %2327 = vmatpush1.bf16.msra.mxu1 %v7397_v36  ;;  %2246 = vmatprep.subr.bf16.mxu0 %v7404_v37  ;;  %v7453_v36 = vcombine.low %v567_v12, %v571_v24  ;;  %v7460_v37 = vcombine.high %v574_v31, %v578_v32  ;;  %v619_v17 = vld [vmem:[#allocation7 + $0x3b8] sm:$0xff]  ;;  %v626_v23 = vld [vmem:[#allocation7 + $0x3f0] sm:$0xff] }
 0x21e   :  { %2328 = vmatprep.subr.bf16.mxu1 %v7406_v38  ;;  %v7462_v38 = vcombine.high %v575_v33, %v579_v34  ;;  %v623_v12 = vld [vmem:[#allocation7 + $0x3d8] sm:$0xff] }
 0x21f   :  { %v627_v24 = vld [vmem:[#allocation7 + $0x3f8] sm:$0xff] }
 0x220   :  { %2247 = vmatpush1.bf16.msra.mxu0 %v7403_v47  ;;  %v7459_v47 = vcombine.low %v574_v31, %v578_v32  ;;  %v630_v31 = vld [vmem:[#allocation7 + $0x410] sm:$0xff] }
 0x221   :  { %2329 = vmatpush1.bf16.msra.mxu1 %v7405_v48  ;;  %2248 = vmatprep.subr.bf16.mxu0 %v7412_v49  ;;  %v7461_v48 = vcombine.low %v575_v33, %v579_v34  ;;  %v7468_v49 = vcombine.high %v582_v39, %v586_v40  ;;  %v634_v32 = vld [vmem:[#allocation7 + $0x430] sm:$0xff]  ;;  %v631_v33 = vld [vmem:[#allocation7 + $0x418] sm:$0xff] }
 0x222   :  { %2330 = vmatprep.subr.bf16.mxu1 %v7414_v50  ;;  %v7470_v50 = vcombine.high %v583_v41, %v587_v42  ;;  %v635_v34 = vld [vmem:[#allocation7 + $0x438] sm:$0xff] }
 0x224   :  { %2249 = vmatpush1.bf16.msra.mxu0 %v7411_v55  ;;  %v7467_v55 = vcombine.low %v582_v39, %v586_v40  ;;  %v638_v39 = vld [vmem:[#allocation7 + $0x450] sm:$0xff] }
 0x225   :  { %2331 = vmatpush1.bf16.msra.mxu1 %v7413_v56  ;;  %2250 = vmatprep.subr.bf16.mxu0 %v7420_v57  ;;  %v7469_v56 = vcombine.low %v583_v41, %v587_v42  ;;  %v7476_v57 = vcombine.high %v590_v51, %v594_v52  ;;  %v642_v40 = vld [vmem:[#allocation7 + $0x470] sm:$0xff]  ;;  %v7515_v41 = vcombine.low %v630_v31, %v634_v32  ;;  %v639_v42 = vld [vmem:[#allocation7 + $0x458] sm:$0xff] }
 0x226   :  { %2332 = vmatprep.subr.bf16.mxu1 %v7422_v58  ;;  %v7478_v58 = vcombine.high %v591_v62, %v595_v54 }
 0x228   :  { %2251 = vmatpush1.bf16.msra.mxu0 %v7419_v2  ;;  %v7475_v2 = vcombine.low %v590_v51, %v594_v52  ;;  %v650_v51 = vld [vmem:[#allocation7 + $0x4b0] sm:$0xff] }
 0x229   :  { %2333 = vmatpush1.bf16.msra.mxu1 %v7421_v3  ;;  %2252 = vmatprep.subr.bf16.mxu0 %v7428_v4  ;;  %v7477_v3 = vcombine.low %v591_v62, %v595_v54  ;;  %v7484_v4 = vcombine.high %v598_v59, %v602_v60  ;;  %v647_v62 = vld [vmem:[#allocation7 + $0x498] sm:$0xff] }
 0x22a   :  { %2334 = vmatprep.subr.bf16.mxu1 %v7430_v5  ;;  %v7486_v5 = vcombine.high %v599_v0, %v603_v1  ;;  %v651_v54 = vld [vmem:[#allocation7 + $0x4b8] sm:$0xff] }
 0x22c   :  { %2253 = vmatpush1.bf16.msra.mxu0 %v7427_v10  ;;  %v7483_v10 = vcombine.low %v598_v59, %v602_v60  ;;  %v654_v59 = vld [vmem:[#allocation7 + $0x4d0] sm:$0xff] }
 0x22d   :  { %2335 = vmatpush1.bf16.msra.mxu1 %v7429_v11  ;;  %2254 = vmatprep.subr.bf16.mxu0 %v7436_v13  ;;  %v7485_v11 = vcombine.low %v599_v0, %v603_v1  ;;  %v7492_v13 = vcombine.high %v606_v6, %v610_v7  ;;  %v658_v60 = vld [vmem:[#allocation7 + $0x4f0] sm:$0xff]  ;;  %v655_v0 = vld [vmem:[#allocation7 + $0x4d8] sm:$0xff] }
 0x22e   :  { %2336 = vmatprep.subr.bf16.mxu1 %v7438_v14  ;;  %v7494_v14 = vcombine.high %v607_v8, %v611_v9  ;;  %v659_v1 = vld [vmem:[#allocation7 + $0x4f8] sm:$0xff] }
 0x230   :  { %2255 = vmatpush1.bf16.msra.mxu0 %v7435_v18  ;;  %v7491_v18 = vcombine.low %v606_v6, %v610_v7  ;;  %v666_v6 = vld [vmem:[#allocation7 + $0x530] sm:$0xff]  ;;  %v663_v7 = vld [vmem:[#allocation7 + $0x518] sm:$0xff] }
 0x231   :  { %2337 = vmatpush1.bf16.msra.mxu1 %v7437_v19  ;;  %2256 = vmatprep.subr.bf16.mxu0 %v7444_v20  ;;  %v7493_v19 = vcombine.low %v607_v8, %v611_v9  ;;  %v7500_v20 = vcombine.high %v614_v45, %v618_v15  ;;  %v667_v8 = vld [vmem:[#allocation7 + $0x538] sm:$0xff]  ;;  %v7541_v9 = vcombine.low %v655_v0, %v659_v1 }
 0x232   :  { %2338 = vmatprep.subr.bf16.mxu1 %v7446_v21  ;;  %v7502_v21 = vcombine.high %v615_v16, %v619_v17 }
 0x234   :  { %2257 = vmatpush1.bf16.msra.mxu0 %v7443_v25  ;;  %v7499_v25 = vcombine.low %v614_v45, %v618_v15  ;;  %v671_v45 = vld [vmem:[#allocation7 + $0x558] sm:$0xff] }
 0x235   :  { %2339 = vmatpush1.bf16.msra.mxu1 %v7445_v27  ;;  %2258 = vmatprep.subr.bf16.mxu0 %v7452_v28  ;;  %v7501_v27 = vcombine.low %v615_v16, %v619_v17  ;;  %v7508_v28 = vcombine.high %v622_v22, %v626_v23  ;;  %v675_v15 = vld [vmem:[#allocation7 + $0x578] sm:$0xff]  ;;  %v7549_v17 = vcombine.low %v663_v7, %v667_v8 }
 0x236   :  { %2340 = vmatprep.subr.bf16.mxu1 %v7454_v30  ;;  %v7510_v30 = vcombine.high %v623_v12, %v627_v24 }
 0x238   :  { %2259 = vmatpush1.bf16.msra.mxu0 %v7451_v35  ;;  %v7507_v35 = vcombine.low %v622_v22, %v626_v23  ;;  %v679_v22 = vld [vmem:[#allocation7 + $0x598] sm:$0xff] }
 0x239   :  { %2341 = vmatpush1.bf16.msra.mxu1 %v7453_v36  ;;  %2260 = vmatprep.subr.bf16.mxu0 %v7460_v37  ;;  %v7509_v36 = vcombine.low %v623_v12, %v627_v24  ;;  %v7516_v37 = vcombine.high %v630_v31, %v634_v32  ;;  %v683_v23 = vld [vmem:[#allocation7 + $0x5b8] sm:$0xff]  ;;  %v7557_v24 = vcombine.low %v671_v45, %v675_v15 }
 0x23a   :  { %2342 = vmatprep.subr.bf16.mxu1 %v7462_v38  ;;  %v7518_v38 = vcombine.high %v631_v33, %v635_v34  ;;  %v687_v31 = vld [vmem:[#allocation7 + $0x5d8] sm:$0xff] }
 0x23b   :  { %v691_v32 = vld [vmem:[#allocation7 + $0x5f8] sm:$0xff] }
 0x23c   :  { %2261 = vmatpush1.bf16.msra.mxu0 %v7459_v47  ;;  %v643_v47 = vld [vmem:[#allocation7 + $0x478] sm:$0xff] }
 0x23d   :  { %2343 = vmatpush1.bf16.msra.mxu1 %v7461_v48  ;;  %2262 = vmatprep.subr.bf16.mxu0 %v7468_v49  ;;  %v7517_v48 = vcombine.low %v631_v33, %v635_v34  ;;  %v7524_v49 = vcombine.high %v638_v39, %v642_v40  ;;  %v7526_v52 = vcombine.high %v639_v42, %v643_v47 }
 0x23e   :  { %2344 = vmatprep.subr.bf16.mxu1 %v7470_v50  ;;  %v646_v50 = vld [vmem:[#allocation7 + $0x490] sm:$0xff]  ;;  %v7565_v34 = vcombine.low %v679_v22, %v683_v23 }
 0x240   :  { %2263 = vmatpush1.bf16.msra.mxu0 %v7467_v55  ;;  %v7523_v55 = vcombine.low %v638_v39, %v642_v40  ;;  %v695_v39 = vld [vmem:[#allocation7 + $0x618] sm:$0xff] }
 0x241   :  { %2345 = vmatpush1.bf16.msra.mxu1 %v7469_v56  ;;  %2264 = vmatprep.subr.bf16.mxu0 %v7476_v57  ;;  %v7525_v56 = vcombine.low %v639_v42, %v643_v47  ;;  %v7532_v57 = vcombine.high %v646_v50, %v650_v51  ;;  %v699_v40 = vld [vmem:[#allocation7 + $0x638] sm:$0xff]  ;;  %v7573_v42 = vcombine.low %v687_v31, %v691_v32 }
 0x242   :  { %2346 = vmatprep.subr.bf16.mxu1 %v7478_v58  ;;  %v7534_v58 = vcombine.high %v647_v62, %v651_v54 }
 0x244   :  { %2265 = vmatpush1.bf16.msra.mxu0 %v7475_v2  ;;  %v7531_v2 = vcombine.low %v646_v50, %v650_v51  ;;  %v706_v50 = vld [vmem:[#allocation7 + $0x670] sm:$0xff]  ;;  %v703_v51 = vld [vmem:[#allocation7 + $0x658] sm:$0xff] }
 0x245   :  { %2347 = vmatpush1.bf16.msra.mxu1 %v7477_v3  ;;  %2266 = vmatprep.subr.bf16.mxu0 %v7484_v4  ;;  %v7540_v3 = vcombine.high %v654_v59, %v658_v60  ;;  %v7542_v4 = vcombine.high %v655_v0, %v659_v1 }
 0x246   :  { %2348 = vmatprep.subr.bf16.mxu1 %v7486_v5  ;;  %v662_v5 = vld [vmem:[#allocation7 + $0x510] sm:$0xff] }
 0x247   :  { %v7547_v16 = vcombine.low %v662_v5, %v666_v6 }
 0x248   :  { %2267 = vmatpush1.bf16.msra.mxu0 %v7483_v10  ;;  %v7548_v10 = vcombine.high %v662_v5, %v666_v6  ;;  %v719_v5 = vld [vmem:[#allocation7 + $0x6d8] sm:$0xff] }
 0x249   :  { %2349 = vmatpush1.bf16.msra.mxu1 %v7485_v11  ;;  %2268 = vmatprep.subr.bf16.mxu0 %v7492_v13  ;;  %v7550_v11 = vcombine.high %v663_v7, %v667_v8  ;;  %v670_v13 = vld [vmem:[#allocation7 + $0x550] sm:$0xff]  ;;  %v723_v6 = vld [vmem:[#allocation7 + $0x6f8] sm:$0xff] }
 0x24a   :  { %2350 = vmatprep.subr.bf16.mxu1 %v7494_v14  ;;  %v674_v14 = vld [vmem:[#allocation7 + $0x570] sm:$0xff] }
 0x24b   :  { %v7555_v12 = vcombine.low %v670_v13, %v674_v14 }
 0x24c   :  { %2269 = vmatpush1.bf16.msra.mxu0 %v7491_v18  ;;  %v7556_v18 = vcombine.high %v670_v13, %v674_v14  ;;  %v727_v13 = vld [vmem:[#allocation7 + $0x718] sm:$0xff] }
 0x24d   :  { %2351 = vmatpush1.bf16.msra.mxu1 %v7493_v19  ;;  %2270 = vmatprep.subr.bf16.mxu0 %v7500_v20  ;;  %v7558_v19 = vcombine.high %v671_v45, %v675_v15  ;;  %v678_v20 = vld [vmem:[#allocation7 + $0x590] sm:$0xff]  ;;  %v731_v14 = vld [vmem:[#allocation7 + $0x738] sm:$0xff]  ;;  %v7605_v15 = vcombine.low %v719_v5, %v723_v6 }
 0x24e   :  { %2352 = vmatprep.subr.bf16.mxu1 %v7502_v21  ;;  %v682_v21 = vld [vmem:[#allocation7 + $0x5b0] sm:$0xff] }
 0x24f   :  { %v7563_v33 = vcombine.low %v678_v20, %v682_v21 }
 0x250   :  { %2271 = vmatpush1.bf16.msra.mxu0 %v7499_v25  ;;  %v7564_v25 = vcombine.high %v678_v20, %v682_v21  ;;  %v735_v20 = vld [vmem:[#allocation7 + $0x758] sm:$0xff] }
 0x251   :  { %2353 = vmatpush1.bf16.msra.mxu1 %v7501_v27  ;;  %2272 = vmatprep.subr.bf16.mxu0 %v7508_v28  ;;  %v7566_v27 = vcombine.high %v679_v22, %v683_v23  ;;  %v686_v28 = vld [vmem:[#allocation7 + $0x5d0] sm:$0xff]  ;;  %v739_v21 = vld [vmem:[#allocation7 + $0x778] sm:$0xff]  ;;  %v7613_v23 = vcombine.low %v727_v13, %v731_v14 }
 0x252   :  { %2354 = vmatprep.subr.bf16.mxu1 %v7510_v30  ;;  %v690_v30 = vld [vmem:[#allocation7 + $0x5f0] sm:$0xff] }
 0x254   :  { %2273 = vmatpush1.bf16.msra.mxu0 %v7507_v35  ;;  %v7572_v35 = vcombine.high %v686_v28, %v690_v30 }
 0x255   :  { %2355 = vmatpush1.bf16.msra.mxu1 %v7509_v36  ;;  %2283 = vmatprep.subr.bf16.mxu0 %v7516_v37  ;;  %v7574_v36 = vcombine.high %v687_v31, %v691_v32  ;;  %v694_v37 = vld [vmem:[#allocation7 + $0x610] sm:$0xff]  ;;  %v7621_v32 = vcombine.low %v735_v20, %v739_v21 }
 0x256   :  { %2365 = vmatprep.subr.bf16.mxu1 %v7518_v38  ;;  %v698_v38 = vld [vmem:[#allocation7 + $0x630] sm:$0xff] }
 0x257   :  { %2275 = vmatmul.mubr.bf16.vlgmr.msra.gmra.mrb[8].mxu0 %v8572_v63  ;;  %v7580_v47 = vcombine.high %v694_v37, %v698_v38 }
 0x258   :  { %2357 = vmatmul.mubr.bf16.vlgmr.msra.gmra.mrb[8].mxu1 %v8572_v63  ;;  %2284 = vmatpush1.bf16.msra.mxu0 %v7515_v41  ;;  %v7533_v63 = vcombine.low %v647_v62, %v651_v54  ;;  %v7571_v41 = vcombine.low %v686_v28, %v690_v30  ;;  %v7579_v62 = vcombine.low %v694_v37, %v698_v38  ;;  %v743_v28 = vld [vmem:[#allocation7 + $0x798] sm:$0xff] }
 0x259   :  { %2315 = vmatprep.mubr.bf16.mxu0 %v8582_v29  ;;  %2366 = vmatpush1.bf16.msra.mxu1 %v7517_v48  ;;  %v7582_v48 = vcombine.high %v695_v39, %v699_v40  ;;  %v7581_v54 = vcombine.low %v695_v39, %v699_v40  ;;  %v747_v30 = vld [vmem:[#allocation7 + $0x7b8] sm:$0xff] }
 0x25a   :  { %2397 = vmatprep.mubr.bf16.mxu1 %v8582_v29  ;;  %2285 = vmatprep.subr.bf16.mxu0 %v7524_v49  ;;  %v7539_v29 = vcombine.low %v654_v59, %v658_v60  ;;  %v702_v49 = vld [vmem:[#allocation7 + $0x650] sm:$0xff]  ;;  %v711_v59 = vld [vmem:[#allocation7 + $0x698] sm:$0xff]  ;;  %v7629_v40 = vcombine.low %v743_v28, %v747_v30 }
 0x25b   :  { %2367 = vmatprep.subr.bf16.mxu1 %v7526_v52  ;;  %v707_v52 = vld [vmem:[#allocation7 + $0x678] sm:$0xff]  ;;  %v7587_v0 = vcombine.low %v702_v49, %v706_v50 }
 0x25c   :  { %2286 = vmatpush1.bf16.msra.mxu0 %v7523_v55  ;;  %v7588_v55 = vcombine.high %v702_v49, %v706_v50  ;;  %v715_v60 = vld [vmem:[#allocation7 + $0x6b8] sm:$0xff]  ;;  %v7589_v1 = vcombine.low %v703_v51, %v707_v52 }
 0x25d   :  { %2368 = vmatpush1.bf16.msra.mxu1 %v7525_v56  ;;  %2287 = vmatprep.subr.bf16.mxu0 %v7532_v57  ;;  %v7590_v56 = vcombine.high %v703_v51, %v707_v52  ;;  %v710_v57 = vld [vmem:[#allocation7 + $0x690] sm:$0xff]  ;;  %v7597_v8 = vcombine.low %v711_v59, %v715_v60  ;;  %v751_v37 = vld [vmem:[#allocation7 + $0x7d8] sm:$0xff]  ;;  %v2422_v52 = vld [vmem:[#allocation10] sm:$0xff] }
 0x25e   :  { %2369 = vmatprep.subr.bf16.mxu1 %v7534_v58  ;;  %v714_v58 = vld [vmem:[#allocation7 + $0x6b0] sm:$0xff]  ;;  %v755_v38 = vld [vmem:[#allocation7 + $0x7f8] sm:$0xff] }
 0x25f   :  { %v7595_v7 = vcombine.low %v710_v57, %v714_v58  ;;  %v7637_v50 = vcombine.low %v751_v37, %v755_v38 }
 0x260   :  { %2288 = vmatpush1.bf16.msra.mxu0 %v7531_v2  ;;  %v7596_v2 = vcombine.high %v710_v57, %v714_v58 }
 0x261   :  { %2370 = vmatpush1.bf16.msra.mxu1 %v7533_v63  ;;  %2289 = vmatprep.subr.bf16.mxu0 %v7540_v3  ;;  %v7598_v63 = vcombine.high %v711_v59, %v715_v60  ;;  %v718_v3 = vld [vmem:[#allocation7 + $0x6d0] sm:$0xff]  ;;  %v2441_v60 = vld [vmem:[#allocation10 + $0x98] sm:$0xff] }
 0x262   :  { %2371 = vmatprep.subr.bf16.mxu1 %v7542_v4  ;;  %v722_v4 = vld [vmem:[#allocation7 + $0x6f0] sm:$0xff] }
 0x263   :  { %v7603_v45 = vcombine.low %v718_v3, %v722_v4  ;;  %v2439_v59 = vld [vmem:[#allocation10 + $0x88] sm:$0xff] }
 0x264   :  { %2290 = vmatpush1.bf16.msra.mxu0 %v7539_v29  ;;  %v7604_v29 = vcombine.high %v718_v3, %v722_v4  ;;  %v2969_v3 = vunpack.c.l.s8.bf16 %v2441_v60  ;;  %v2440_v4 = vld [vmem:[#allocation10 + $0x90] sm:$0xff] }
 0x265   :  { %2372 = vmatpush1.bf16.msra.mxu1 %v7541_v9  ;;  %2291 = vmatprep.subr.bf16.mxu0 %v7548_v10  ;;  %v7606_v9 = vcombine.high %v719_v5, %v723_v6  ;;  %v726_v10 = vld [vmem:[#allocation7 + $0x710] sm:$0xff]  ;;  %v2968_v6 = vunpack.c.l.s8.bf16 %v2440_v4 }
 0x266   :  { %2373 = vmatprep.subr.bf16.mxu1 %v7550_v11  ;;  %v730_v11 = vld [vmem:[#allocation7 + $0x730] sm:$0xff] }
 0x267   :  { %v7611_v22 = vcombine.low %v726_v10, %v730_v11 }
 0x268   :  { %2292 = vmatpush1.bf16.msra.mxu0 %v7547_v16  ;;  %v7612_v16 = vcombine.high %v726_v10, %v730_v11  ;;  %v2984_v10 = vunpack.c.h.s8.bf16 %v2440_v4 }
 0x269   :  { %2374 = vmatpush1.bf16.msra.mxu1 %v7549_v17  ;;  %2293 = vmatprep.subr.bf16.mxu0 %v7556_v18  ;;  %v7614_v17 = vcombine.high %v727_v13, %v731_v14  ;;  %v734_v18 = vld [vmem:[#allocation7 + $0x750] sm:$0xff]  ;;  %v2454_v13 = vld [vmem:[#allocation10 + $0x100] sm:$0xff] }
 0x26a   :  { %2375 = vmatprep.subr.bf16.mxu1 %v7558_v19  ;;  %v738_v19 = vld [vmem:[#allocation7 + $0x770] sm:$0xff] }
 0x26b   :  { %v7619_v31 = vcombine.low %v734_v18, %v738_v19 }
 0x26c   :  { %2294 = vmatpush1.bf16.msra.mxu0 %v7555_v12  ;;  %v7620_v12 = vcombine.high %v734_v18, %v738_v19  ;;  %v2471_v19 = vld [vmem:[#allocation10 + $0x188] sm:$0xff] }
 0x26d   :  { %2376 = vmatpush1.bf16.msra.mxu1 %v7557_v24  ;;  %2295 = vmatprep.subr.bf16.mxu0 %v7564_v25  ;;  %v7622_v24 = vcombine.high %v735_v20, %v739_v21  ;;  %v742_v25 = vld [vmem:[#allocation7 + $0x790] sm:$0xff]  ;;  %v2473_v20 = vld [vmem:[#allocation10 + $0x198] sm:$0xff]  ;;  %v3014_v21 = vunpack.c.h.s8.bf16 %v2454_v13 }
 0x26e   :  { %2377 = vmatprep.subr.bf16.mxu1 %v7566_v27  ;;  %v746_v27 = vld [vmem:[#allocation7 + $0x7b0] sm:$0xff] }
 0x26f   :  { %v7627_v39 = vcombine.low %v742_v25, %v746_v27 }
 0x270   :  { %2296 = vmatpush1.bf16.msra.mxu0 %v7563_v33  ;;  %v7628_v33 = vcombine.high %v742_v25, %v746_v27  ;;  %v2472_v25 = vld [vmem:[#allocation10 + $0x190] sm:$0xff] }
 0x271   :  { %2378 = vmatpush1.bf16.msra.mxu1 %v7565_v34  ;;  %2297 = vmatprep.subr.bf16.mxu0 %v7572_v35  ;;  %v7630_v34 = vcombine.high %v743_v28, %v747_v30  ;;  %v750_v35 = vld [vmem:[#allocation7 + $0x7d0] sm:$0xff]  ;;  %v3032_v28 = vunpack.c.l.s8.bf16 %v2472_v25  ;;  %v3047_v30 = vunpack.c.h.s8.bf16 %v2471_v19 }
 0x272   :  { %2379 = vmatprep.subr.bf16.mxu1 %v7574_v36  ;;  %v754_v36 = vld [vmem:[#allocation7 + $0x7f0] sm:$0xff] }
 0x273   :  { %v7635_v49 = vcombine.low %v750_v35, %v754_v36 }
 0x274   :  { %2298 = vmatpush1.bf16.msra.mxu0 %v7571_v41  ;;  %v7636_v41 = vcombine.high %v750_v35, %v754_v36  ;;  %v3048_v35 = vunpack.c.h.s8.bf16 %v2472_v25  ;;  %v8604_v25 = vld [vmem:[#allocation8] sm:$0xff] }
 0x275   :  { %2380 = vmatpush1.bf16.msra.mxu1 %v7573_v42  ;;  %2299 = vmatprep.subr.bf16.mxu0 %v7580_v47  ;;  %v7638_v42 = vcombine.high %v751_v37, %v755_v38  ;;  %v2423_v47 = vld [vmem:[#allocation10 + $0x8] sm:$0xff]  ;;  %v2486_v37 = vld [vmem:[#allocation10 + $0x200] sm:$0xff] }
 0x276   :  { %2381 = vmatprep.subr.bf16.mxu1 %v7582_v48  ;;  %v2425_v48 = vld [vmem:[#allocation10 + $0x18] sm:$0xff]  ;;  %v2935_v51 = vunpack.c.l.s8.bf16 %v2423_v47  ;;  %v2951_v57 = vunpack.c.h.s8.bf16 %v2423_v47 }
 0x277   :  { %v2953_v58 = vunpack.c.h.s8.bf16 %v2425_v48 }
 0x278   :  { %2300 = vmatpush1.bf16.msra.mxu0 %v7579_v62  ;;  %v2937_v62 = vunpack.c.l.s8.bf16 %v2425_v48  ;;  %v2503_v48 = vld [vmem:[#allocation10 + $0x288] sm:$0xff] }
 0x279   :  { %2382 = vmatpush1.bf16.msra.mxu1 %v7581_v54  ;;  %2301 = vmatprep.subr.bf16.mxu0 %v7588_v55  ;;  %v2424_v54 = vld [vmem:[#allocation10 + $0x10] sm:$0xff]  ;;  %v2934_v55 = vunpack.c.l.s8.bf16 %v2422_v52 }
 0x27a   :  { %2383 = vmatprep.subr.bf16.mxu1 %v7590_v56  ;;  %v2936_v56 = vunpack.c.l.s8.bf16 %v2424_v54 }
 0x27c   :  { %2302 = vmatpush1.bf16.msra.mxu0 %v7587_v0  ;;  %v2950_v0 = vunpack.c.h.s8.bf16 %v2422_v52  ;;  %v3095_v52 = vunpack.c.l.s8.bf16 %v2503_v48 }
 0x27d   :  { %2384 = vmatpush1.bf16.msra.mxu1 %v7589_v1  ;;  %2303 = vmatprep.subr.bf16.mxu0 %v7596_v2  ;;  %v2952_v1 = vunpack.c.h.s8.bf16 %v2424_v54  ;;  %v2967_v2 = vunpack.c.l.s8.bf16 %v2439_v59 }
 0x27e   :  { %2385 = vmatprep.subr.bf16.mxu1 %v7598_v63  ;;  %v2438_v63 = vld [vmem:[#allocation10 + $0x80] sm:$0xff] }
 0x27f   :  { %v2966_v5 = vunpack.c.l.s8.bf16 %v2438_v63 }
 0x280   :  { %2304 = vmatpush1.bf16.msra.mxu0 %v7595_v7  ;;  %v2983_v7 = vunpack.c.h.s8.bf16 %v2439_v59 }
 0x281   :  { %2386 = vmatpush1.bf16.msra.mxu1 %v7597_v8  ;;  %2305 = vmatprep.subr.bf16.mxu0 %v7604_v29  ;;  %v2985_v8 = vunpack.c.h.s8.bf16 %v2441_v60  ;;  %v2455_v29 = vld [vmem:[#allocation10 + $0x108] sm:$0xff] }
 0x282   :  { %2387 = vmatprep.subr.bf16.mxu1 %v7606_v9  ;;  %v2982_v9 = vunpack.c.h.s8.bf16 %v2438_v63  ;;  %v2999_v11 = vunpack.c.l.s8.bf16 %v2455_v29  ;;  %v2519_v60 = vld [vmem:[#allocation10 + $0x308] sm:$0xff] }
 0x283   :  { %v3127_v63 = vunpack.c.l.s8.bf16 %v2519_v60 }
 0x284   :  { %2306 = vmatpush1.bf16.msra.mxu0 %v7603_v45  ;;  %v2456_v45 = vld [vmem:[#allocation10 + $0x110] sm:$0xff] }
 0x285   :  { %2388 = vmatpush1.bf16.msra.mxu1 %v7605_v15  ;;  %2307 = vmatprep.subr.bf16.mxu0 %v7612_v16  ;;  %v2998_v15 = vunpack.c.l.s8.bf16 %v2454_v13  ;;  %v3000_v16 = vunpack.c.l.s8.bf16 %v2456_v45 }
 0x286   :  { %2389 = vmatprep.subr.bf16.mxu1 %v7614_v17  ;;  %v3015_v17 = vunpack.c.h.s8.bf16 %v2455_v29 }
 0x288   :  { %2308 = vmatpush1.bf16.msra.mxu0 %v7611_v22  ;;  %v3016_v22 = vunpack.c.h.s8.bf16 %v2456_v45 }
 0x289   :  { %2390 = vmatpush1.bf16.msra.mxu1 %v7613_v23  ;;  %2309 = vmatprep.subr.bf16.mxu0 %v7620_v12  ;;  %v3031_v23 = vunpack.c.l.s8.bf16 %v2471_v19  ;;  %v2470_v12 = vld [vmem:[#allocation10 + $0x180] sm:$0xff] }
 0x28a   :  { %2391 = vmatprep.subr.bf16.mxu1 %v7622_v24  ;;  %v3033_v24 = vunpack.c.l.s8.bf16 %v2473_v20  ;;  %v3030_v27 = vunpack.c.l.s8.bf16 %v2470_v12 }
 0x28c   :  { %2310 = vmatpush1.bf16.msra.mxu0 %v7619_v31  ;;  %v3049_v31 = vunpack.c.h.s8.bf16 %v2473_v20  ;;  %v2551_v20 = vld [vmem:[#allocation10 + $0x408] sm:$0xff] }
 0x28d   :  { %2392 = vmatpush1.bf16.msra.mxu1 %v7621_v32  ;;  %2311 = vmatprep.subr.bf16.mxu0 %v7628_v33  ;;  %v2487_v32 = vld [vmem:[#allocation10 + $0x208] sm:$0xff]  ;;  %v2489_v33 = vld [vmem:[#allocation10 + $0x218] sm:$0xff] }
 0x28e   :  { %2393 = vmatprep.subr.bf16.mxu1 %v7630_v34  ;;  %v3046_v34 = vunpack.c.h.s8.bf16 %v2470_v12  ;;  %v3063_v36 = vunpack.c.l.s8.bf16 %v2487_v32  ;;  %v3065_v38 = vunpack.c.l.s8.bf16 %v2489_v33  ;;  %v3081_v47 = vunpack.c.h.s8.bf16 %v2489_v33 }
 0x28f   :  { %v3191_v12 = vunpack.c.l.s8.bf16 %v2551_v20 }
 0x290   :  { %2312 = vmatpush1.bf16.msra.mxu0 %v7627_v39  ;;  %v2488_v39 = vld [vmem:[#allocation10 + $0x210] sm:$0xff] }
 0x291   :  { %2394 = vmatpush1.bf16.msra.mxu1 %v7629_v40  ;;  %2313 = vmatprep.subr.bf16.mxu0 %v7636_v41  ;;  %v3062_v40 = vunpack.c.l.s8.bf16 %v2486_v37  ;;  %v3064_v41 = vunpack.c.l.s8.bf16 %v2488_v39 }
 0x292   :  { %2395 = vmatprep.subr.bf16.mxu1 %v7638_v42  ;;  %v3079_v42 = vunpack.c.h.s8.bf16 %v2487_v32 }
 0x294   :  { %2314 = vmatpush1.bf16.msra.mxu0 %v7635_v49  ;;  %v2505_v49 = vld [vmem:[#allocation10 + $0x298] sm:$0xff] }
 0x295   :  { %2396 = vmatpush1.bf16.msra.mxu1 %v7637_v50  ;;  %3958 = vmatprep.subr.bf16.mxu0 %v2935_v51  ;;  %v3078_v50 = vunpack.c.h.s8.bf16 %v2486_v37  ;;  %v3080_v51 = vunpack.c.h.s8.bf16 %v2488_v39  ;;  %v3097_v54 = vunpack.c.l.s8.bf16 %v2505_v49  ;;  %v3113_v59 = vunpack.c.h.s8.bf16 %v2505_v49 }
 0x296   :  { %4122 = vmatprep.subr.bf16.mxu1 %v2937_v62  ;;  %v2502_v62 = vld [vmem:[#allocation10 + $0x280] sm:$0xff] }
 0x297   :  { %2316 = vmatmul.mubr.bf16.vlgmr.msra.gmra.mrb[8].mxu0 %v8592_v26 }
 0x298   :  { %2398 = vmatmul.mubr.bf16.vlgmr.msra.gmra.mrb[8].mxu1 %v8592_v26  ;;  %3959 = vmatpush1.bf16.msra.mxu0 %v2934_v55  ;;  %v2457_v26 = vld [vmem:[#allocation10 + $0x118] sm:$0xff]  ;;  %v2504_v55 = vld [vmem:[#allocation10 + $0x290] sm:$0xff] }
 0x299   :  { %4123 = vmatpush1.bf16.msra.mxu1 %v2936_v56  ;;  %3960 = vmatprep.subr.bf16.mxu0 %v2951_v57  ;;  %v3001_v14 = vunpack.c.l.s8.bf16 %v2457_v26  ;;  %v3017_v18 = vunpack.c.h.s8.bf16 %v2457_v26  ;;  %v3094_v56 = vunpack.c.l.s8.bf16 %v2502_v62  ;;  %v3096_v57 = vunpack.c.l.s8.bf16 %v2504_v55  ;;  %v2535_v26 = vld [vmem:[#allocation10 + $0x388] sm:$0xff] }
 0x29a   :  { %4124 = vmatprep.subr.bf16.mxu1 %v2953_v58  ;;  %v3111_v58 = vunpack.c.h.s8.bf16 %v2503_v48  ;;  %v3159_v13 = vunpack.c.l.s8.bf16 %v2535_v26  ;;  %v2552_v48 = vld [vmem:[#allocation10 + $0x410] sm:$0xff] }
 0x29c   :  { %3961 = vmatpush1.bf16.msra.mxu0 %v2950_v0  ;;  %v2521_v0 = vld [vmem:[#allocation10 + $0x318] sm:$0xff] }
 0x29d   :  { %4125 = vmatpush1.bf16.msra.mxu1 %v2952_v1  ;;  %3962 = vmatprep.subr.bf16.mxu0 %v2967_v2  ;;  %v3110_v1 = vunpack.c.h.s8.bf16 %v2502_v62  ;;  %v3112_v2 = vunpack.c.h.s8.bf16 %v2504_v55  ;;  %v3129_v4 = vunpack.c.l.s8.bf16 %v2521_v0  ;;  %v3145_v29 = vunpack.c.h.s8.bf16 %v2521_v0 }
 0x29e   :  { %4126 = vmatprep.subr.bf16.mxu1 %v2969_v3  ;;  %v2518_v3 = vld [vmem:[#allocation10 + $0x300] sm:$0xff]  ;;  %v3192_v62 = vunpack.c.l.s8.bf16 %v2552_v48  ;;  %v3207_v55 = vunpack.c.h.s8.bf16 %v2551_v20  ;;  %v3208_v0 = vunpack.c.h.s8.bf16 %v2552_v48 }
 0x2a0   :  { %3963 = vmatpush1.bf16.msra.mxu0 %v2966_v5  ;;  %v2520_v5 = vld [vmem:[#allocation10 + $0x310] sm:$0xff] }
 0x2a1   :  { %4127 = vmatpush1.bf16.msra.mxu1 %v2968_v6  ;;  %3964 = vmatprep.subr.bf16.mxu0 %v2983_v7  ;;  %v3126_v6 = vunpack.c.l.s8.bf16 %v2518_v3  ;;  %v3128_v7 = vunpack.c.l.s8.bf16 %v2520_v5 }
 0x2a2   :  { %4128 = vmatprep.subr.bf16.mxu1 %v2985_v8  ;;  %v3143_v8 = vunpack.c.h.s8.bf16 %v2519_v60 }
 0x2a4   :  { %3965 = vmatpush1.bf16.msra.mxu0 %v2982_v9  ;;  %v2537_v9 = vld [vmem:[#allocation10 + $0x398] sm:$0xff] }
 0x2a5   :  { %4129 = vmatpush1.bf16.msra.mxu1 %v2984_v10  ;;  %3966 = vmatprep.subr.bf16.mxu0 %v2999_v11  ;;  %v3142_v10 = vunpack.c.h.s8.bf16 %v2518_v3  ;;  %v3144_v11 = vunpack.c.h.s8.bf16 %v2520_v5  ;;  %v3161_v45 = vunpack.c.l.s8.bf16 %v2537_v9  ;;  %v3177_v19 = vunpack.c.h.s8.bf16 %v2537_v9  ;;  %v2568_v3 = vld [vmem:[#allocation10 + $0x490] sm:$0xff] }
 0x2a6   :  { %4130 = vmatprep.subr.bf16.mxu1 %v3001_v14  ;;  %v2534_v14 = vld [vmem:[#allocation10 + $0x380] sm:$0xff]  ;;  %v3224_v5 = vunpack.c.l.s8.bf16 %v2568_v3  ;;  %v3240_v9 = vunpack.c.h.s8.bf16 %v2568_v3  ;;  %v2649_v3 = vld [vmem:[#allocation10 + $0x718] sm:$0xff] }
 0x2a8   :  { %3967 = vmatpush1.bf16.msra.mxu0 %v2998_v15  ;;  %v2536_v15 = vld [vmem:[#allocation10 + $0x390] sm:$0xff] }
 0x2a9   :  { %4131 = vmatpush1.bf16.msra.mxu1 %v3000_v16  ;;  %3968 = vmatprep.subr.bf16.mxu0 %v3015_v17  ;;  %v3158_v16 = vunpack.c.l.s8.bf16 %v2534_v14  ;;  %v3160_v17 = vunpack.c.l.s8.bf16 %v2536_v15 }
 0x2aa   :  { %4132 = vmatprep.subr.bf16.mxu1 %v3017_v18  ;;  %v3175_v18 = vunpack.c.h.s8.bf16 %v2535_v26 }
 0x2ac   :  { %3969 = vmatpush1.bf16.msra.mxu0 %v3014_v21  ;;  %v2553_v21 = vld [vmem:[#allocation10 + $0x418] sm:$0xff] }
 0x2ad   :  { %4133 = vmatpush1.bf16.msra.mxu1 %v3016_v22  ;;  %3970 = vmatprep.subr.bf16.mxu0 %v3031_v23  ;;  %v3174_v22 = vunpack.c.h.s8.bf16 %v2534_v14  ;;  %v3176_v23 = vunpack.c.h.s8.bf16 %v2536_v15  ;;  %v2584_v14 = vld [vmem:[#allocation10 + $0x510] sm:$0xff] }
 0x2ae   :  { %4134 = vmatprep.subr.bf16.mxu1 %v3033_v24  ;;  %v3193_v24 = vunpack.c.l.s8.bf16 %v2553_v21  ;;  %v3256_v15 = vunpack.c.l.s8.bf16 %v2584_v14 }
 0x2b0   :  { %3971 = vmatpush1.bf16.msra.mxu0 %v3030_v27  ;;  %v761_v27 = vrot.slane %v8604_v25, %v8556_v44 }
 0x2b1   :  { %4135 = vmatpush1.bf16.msra.mxu1 %v3032_v28  ;;  %3972 = vmatprep.subr.bf16.mxu0 %v3047_v30  ;;  %v765_v28 = vrot.slane %v8604_v25, %v8561_v46  ;;  %v773_v30 = vrot.slane %v8604_v25, %v8568_v61 }
 0x2b2   :  { %4136 = vmatprep.subr.bf16.mxu1 %v3049_v31 }
 0x2b4   :  { %3973 = vmatpush1.bf16.msra.mxu0 %v3046_v34 }
 0x2b5   :  { %4137 = vmatpush1.bf16.msra.mxu1 %v3048_v35  ;;  %3974 = vmatprep.subr.bf16.mxu0 %v3063_v36 }
 0x2b6   :  { %4138 = vmatprep.subr.bf16.mxu1 %v3065_v38 }
 0x2b8   :  { %3975 = vmatpush1.bf16.msra.mxu0 %v3062_v40 }
 0x2b9   :  { %4139 = vmatpush1.bf16.msra.mxu1 %v3064_v41  ;;  %3976 = vmatprep.subr.bf16.mxu0 %v3079_v42 }
 0x2ba   :  { %4140 = vmatprep.subr.bf16.mxu1 %v3081_v47  ;;  %v2550_v47 = vld [vmem:[#allocation10 + $0x400] sm:$0xff] }
 0x2bb   :  { %v3206_v60 = vunpack.c.h.s8.bf16 %v2550_v47 }
 0x2bc   :  { %3977 = vmatpush1.bf16.msra.mxu0 %v3078_v50 }
 0x2bd   :  { %4141 = vmatpush1.bf16.msra.mxu1 %v3080_v51  ;;  %3978 = vmatprep.subr.bf16.mxu0 %v3095_v52  ;;  %v3190_v52 = vunpack.c.l.s8.bf16 %v2550_v47 }
 0x2be   :  { %4142 = vmatprep.subr.bf16.mxu1 %v3097_v54 }
 0x2c0   :  { %3979 = vmatpush1.bf16.msra.mxu0 %v3094_v56  ;;  %v3209_v56 = vunpack.c.h.s8.bf16 %v2553_v21  ;;  %v3272_v21 = vunpack.c.h.s8.bf16 %v2584_v14  ;;  %v2665_v14 = vld [vmem:[#allocation10 + $0x798] sm:$0xff] }
 0x2c1   :  { %4143 = vmatpush1.bf16.msra.mxu1 %v3096_v57  ;;  %3980 = vmatprep.subr.bf16.mxu0 %v3111_v58  ;;  %v2567_v57 = vld [vmem:[#allocation10 + $0x488] sm:$0xff]  ;;  %v2569_v58 = vld [vmem:[#allocation10 + $0x498] sm:$0xff] }
 0x2c2   :  { %4144 = vmatprep.subr.bf16.mxu1 %v3113_v59 }
 0x2c4   :  { %3981 = vmatpush1.bf16.msra.mxu0 %v3110_v1  ;;  %v3223_v1 = vunpack.c.l.s8.bf16 %v2567_v57 }
 0x2c5   :  { %4145 = vmatpush1.bf16.msra.mxu1 %v3112_v2  ;;  %3982 = vmatprep.subr.bf16.mxu0 %v3127_v63  ;;  %v3225_v2 = vunpack.c.l.s8.bf16 %v2569_v58  ;;  %v2566_v63 = vld [vmem:[#allocation10 + $0x480] sm:$0xff] }
 0x2c6   :  { %4146 = vmatprep.subr.bf16.mxu1 %v3129_v4  ;;  %v3222_v4 = vunpack.c.l.s8.bf16 %v2566_v63  ;;  %v3238_v26 = vunpack.c.h.s8.bf16 %v2566_v63  ;;  %v2647_v63 = vld [vmem:[#allocation10 + $0x708] sm:$0xff] }
 0x2c8   :  { %3983 = vmatpush1.bf16.msra.mxu0 %v3126_v6  ;;  %v3239_v6 = vunpack.c.h.s8.bf16 %v2567_v57  ;;  %v2630_v57 = vld [vmem:[#allocation10 + $0x680] sm:$0xff] }
 0x2c9   :  { %4147 = vmatpush1.bf16.msra.mxu1 %v3128_v7  ;;  %3984 = vmatprep.subr.bf16.mxu0 %v3143_v8  ;;  %v3241_v7 = vunpack.c.h.s8.bf16 %v2569_v58  ;;  %v2583_v8 = vld [vmem:[#allocation10 + $0x508] sm:$0xff]  ;;  %v2632_v58 = vld [vmem:[#allocation10 + $0x690] sm:$0xff] }
 0x2ca   :  { %4148 = vmatprep.subr.bf16.mxu1 %v3145_v29  ;;  %v2585_v29 = vld [vmem:[#allocation10 + $0x518] sm:$0xff] }
 0x2cc   :  { %3985 = vmatpush1.bf16.msra.mxu0 %v3142_v10  ;;  %v3255_v10 = vunpack.c.l.s8.bf16 %v2583_v8 }
 0x2cd   :  { %4149 = vmatpush1.bf16.msra.mxu1 %v3144_v11  ;;  %3986 = vmatprep.subr.bf16.mxu0 %v3159_v13  ;;  %v3257_v11 = vunpack.c.l.s8.bf16 %v2585_v29  ;;  %v2582_v13 = vld [vmem:[#allocation10 + $0x500] sm:$0xff] }
 0x2ce   :  { %4150 = vmatprep.subr.bf16.mxu1 %v3161_v45  ;;  %v3254_v45 = vunpack.c.l.s8.bf16 %v2582_v13  ;;  %v3270_v20 = vunpack.c.h.s8.bf16 %v2582_v13  ;;  %v2663_v13 = vld [vmem:[#allocation10 + $0x788] sm:$0xff] }
 0x2d0   :  { %3987 = vmatpush1.bf16.msra.mxu0 %v3158_v16  ;;  %v3271_v16 = vunpack.c.h.s8.bf16 %v2583_v8  ;;  %v2646_v8 = vld [vmem:[#allocation10 + $0x700] sm:$0xff] }
 0x2d1   :  { %4151 = vmatpush1.bf16.msra.mxu1 %v3160_v17  ;;  %3988 = vmatprep.subr.bf16.mxu0 %v3175_v18  ;;  %v3273_v17 = vunpack.c.h.s8.bf16 %v2585_v29  ;;  %v2599_v18 = vld [vmem:[#allocation10 + $0x588] sm:$0xff]  ;;  %v2648_v29 = vld [vmem:[#allocation10 + $0x710] sm:$0xff] }
 0x2d2   :  { %4152 = vmatprep.subr.bf16.mxu1 %v3177_v19  ;;  %v2601_v19 = vld [vmem:[#allocation10 + $0x598] sm:$0xff] }
 0x2d4   :  { %3989 = vmatpush1.bf16.msra.mxu0 %v3174_v22  ;;  %v3287_v22 = vunpack.c.l.s8.bf16 %v2599_v18 }
 0x2d5   :  { %4153 = vmatpush1.bf16.msra.mxu1 %v3176_v23  ;;  %3999 = vmatprep.subr.bf16.mxu0 %v3191_v12  ;;  %v3289_v23 = vunpack.c.l.s8.bf16 %v2601_v19  ;;  %v2598_v12 = vld [vmem:[#allocation10 + $0x580] sm:$0xff] }
 0x2d6   :  { %4163 = vmatprep.subr.bf16.mxu1 %v3193_v24  ;;  %v2600_v24 = vld [vmem:[#allocation10 + $0x590] sm:$0xff] }
 0x2ea   :  { %v2153_v31 = vpop.f32.mrb[4].mxu0  ;;  %v8612_v32 = vpop.f32.mrb[4].mxu1 }
 0x2eb   :  { %v7716_v33 = vadd.f32 %v2153_v31, %v761_v27  ;;  %v2155_v34 = vpop.f32.mrb[5].mxu0  ;;  %v2237_v35 = vpop.f32.mrb[5].mxu1  ;;  %v3286_v27 = vunpack.c.l.s8.bf16 %v2598_v12  ;;  %v3305_v31 = vunpack.c.h.s8.bf16 %v2601_v19  ;;  %v2662_v19 = vld [vmem:[#allocation10 + $0x780] sm:$0xff] }
 0x2ec   :  { %v7717_v36 = vadd.f32 %v2155_v34, %v765_v28  ;;  %v7719_v37 = vadd.f32 %v2237_v35, %v773_v30  ;;  %v2157_v38 = vpop.f32.mrb[6].mxu0  ;;  %v2239_v39 = vpop.f32.mrb[6].mxu1  ;;  %v3288_v28 = vunpack.c.l.s8.bf16 %v2600_v24  ;;  %v3303_v30 = vunpack.c.h.s8.bf16 %v2599_v18  ;;  %v2617_v34 = vld [vmem:[#allocation10 + $0x618] sm:$0xff] }
 0x2ed   :  { %v2406_v40 = vmax.f32 %v7716_v33, 0.0  ;;  %v2158_v41 = vpop.f32.mrb[7].mxu0  ;;  %v2240_v42 = vpop.f32.mrb[7].mxu1  ;;  %v2615_v33 = vld [vmem:[#allocation10 + $0x608] sm:$0xff]  ;;  %v3302_v35 = vunpack.c.h.s8.bf16 %v2598_v12  ;;  %v3321_v38 = vunpack.c.l.s8.bf16 %v2617_v34  ;;  %v2614_v39 = vld [vmem:[#allocation10 + $0x600] sm:$0xff]  ;;  %v3337_v48 = vunpack.c.h.s8.bf16 %v2617_v34 }
 0x2ee   :  { %v2407_v49 = vmax.f32 %v7717_v36, 0.0  ;;  %v2409_v50 = vmax.f32 %v7719_v37, 0.0  ;;  %v3304_v36 = vunpack.c.h.s8.bf16 %v2600_v24  ;;  %v3319_v37 = vunpack.c.l.s8.bf16 %v2615_v33 }
 0x2ef   :  { %v8616_v54 = vpack.c.bf16 %v2406_v40, %v2406_v40  ;;  %v2616_v40 = vld [vmem:[#allocation10 + $0x610] sm:$0xff]  ;;  %v3318_v41 = vunpack.c.l.s8.bf16 %v2614_v39  ;;  %v3335_v47 = vunpack.c.h.s8.bf16 %v2615_v33  ;;  %v3417_v18 = vunpack.c.l.s8.bf16 %v2665_v14 }
 0x2f0   :  { %v8614_v51 = vpack.c.bf16 %v2407_v49, %v2407_v49  ;;  %v8620_v59 = vpack.c.bf16 %v2409_v50, %v2409_v50  ;;  %v3320_v42 = vunpack.c.l.s8.bf16 %v2616_v40  ;;  %v2631_v49 = vld [vmem:[#allocation10 + $0x688] sm:$0xff]  ;;  %v2633_v50 = vld [vmem:[#allocation10 + $0x698] sm:$0xff]  ;;  %v3431_v12 = vunpack.c.h.s8.bf16 %v2663_v13 }
 0x2f1   :  { %v3433_v24 = vunpack.c.h.s8.bf16 %v2665_v14 }
 0x2f2   :  { %3990 = vmatprep.mubr.bf16.mxu0 %v8614_v51  ;;  %4154 = vmatprep.mubr.bf16.mxu1 %v8614_v51 }
 0x2f3   :  { %3991 = vmatmul.mubr.bf16.vlgmr.msra.gmra.mrb[12].mxu0 %v8616_v54  ;;  %4155 = vmatmul.mubr.bf16.vlgmr.msra.gmra.mrb[12].mxu1 %v8616_v54 }
 0x2f4   :  { %4000 = vmatpush1.bf16.msra.mxu0 %v3190_v52  ;;  %4164 = vmatpush1.bf16.msra.mxu1 %v3192_v62  ;;  %v3334_v52 = vunpack.c.h.s8.bf16 %v2614_v39  ;;  %v3336_v62 = vunpack.c.h.s8.bf16 %v2616_v40 }
 0x2f5   :  { %4031 = vmatprep.mubr.bf16.mxu0 %v8620_v59  ;;  %4195 = vmatprep.mubr.bf16.mxu1 %v8620_v59 }
 0x2f6   :  { %4001 = vmatprep.subr.bf16.mxu0 %v3207_v55  ;;  %4165 = vmatprep.subr.bf16.mxu1 %v3209_v56  ;;  %v3351_v55 = vunpack.c.l.s8.bf16 %v2631_v49  ;;  %v3353_v56 = vunpack.c.l.s8.bf16 %v2633_v50 }
 0x2f8   :  { %4002 = vmatpush1.bf16.msra.mxu0 %v3206_v60  ;;  %4166 = vmatpush1.bf16.msra.mxu1 %v3208_v0  ;;  %v3350_v60 = vunpack.c.l.s8.bf16 %v2630_v57  ;;  %v3352_v0 = vunpack.c.l.s8.bf16 %v2632_v58 }
 0x2f9   :  { %4003 = vmatprep.subr.bf16.mxu0 %v3223_v1  ;;  %4167 = vmatprep.subr.bf16.mxu1 %v3225_v2  ;;  %v3367_v1 = vunpack.c.h.s8.bf16 %v2631_v49  ;;  %v3369_v2 = vunpack.c.h.s8.bf16 %v2633_v50 }
 0x2fc   :  { %4004 = vmatpush1.bf16.msra.mxu0 %v3222_v4  ;;  %4168 = vmatpush1.bf16.msra.mxu1 %v3224_v5  ;;  %v3366_v4 = vunpack.c.h.s8.bf16 %v2630_v57  ;;  %v3368_v5 = vunpack.c.h.s8.bf16 %v2632_v58 }
 0x2fd   :  { %4005 = vmatprep.subr.bf16.mxu0 %v3239_v6  ;;  %4169 = vmatprep.subr.bf16.mxu1 %v3241_v7  ;;  %v3383_v6 = vunpack.c.l.s8.bf16 %v2647_v63  ;;  %v3385_v7 = vunpack.c.l.s8.bf16 %v2649_v3 }
 0x300   :  { %4006 = vmatpush1.bf16.msra.mxu0 %v3238_v26  ;;  %4170 = vmatpush1.bf16.msra.mxu1 %v3240_v9  ;;  %v3382_v26 = vunpack.c.l.s8.bf16 %v2646_v8  ;;  %v3384_v9 = vunpack.c.l.s8.bf16 %v2648_v29 }
 0x301   :  { %4007 = vmatprep.subr.bf16.mxu0 %v3255_v10  ;;  %4171 = vmatprep.subr.bf16.mxu1 %v3257_v11  ;;  %v3399_v10 = vunpack.c.h.s8.bf16 %v2647_v63  ;;  %v3401_v11 = vunpack.c.h.s8.bf16 %v2649_v3 }
 0x304   :  { %4008 = vmatpush1.bf16.msra.mxu0 %v3254_v45  ;;  %4172 = vmatpush1.bf16.msra.mxu1 %v3256_v15  ;;  %v3398_v45 = vunpack.c.h.s8.bf16 %v2646_v8  ;;  %v3400_v15 = vunpack.c.h.s8.bf16 %v2648_v29 }
 0x305   :  { %4009 = vmatprep.subr.bf16.mxu0 %v3271_v16  ;;  %4173 = vmatprep.subr.bf16.mxu1 %v3273_v17  ;;  %v769_v16 = vrot.slane %v8604_v25, %v8587_v53  ;;  %v3415_v17 = vunpack.c.l.s8.bf16 %v2663_v13 }
 0x308   :  { %4010 = vmatpush1.bf16.msra.mxu0 %v3270_v20  ;;  %4174 = vmatpush1.bf16.msra.mxu1 %v3272_v21  ;;  %v2664_v20 = vld [vmem:[#allocation10 + $0x790] sm:$0xff]  ;;  %v3414_v21 = vunpack.c.l.s8.bf16 %v2662_v19 }
 0x309   :  { %4011 = vmatprep.subr.bf16.mxu0 %v3287_v22  ;;  %4175 = vmatprep.subr.bf16.mxu1 %v3289_v23  ;;  %v3416_v22 = vunpack.c.l.s8.bf16 %v2664_v20  ;;  %v7718_v23 = vadd.f32 %v8612_v32, %v769_v16  ;;  %v2728_v16 = vld [vmem:[#allocation10 + $0x990] sm:$0xff] }
 0x30b   :  { %v2408_v33 = vmax.f32 %v7718_v23, 0.0 }
 0x30c   :  { %4012 = vmatpush1.bf16.msra.mxu0 %v3286_v27  ;;  %4176 = vmatpush1.bf16.msra.mxu1 %v3288_v28  ;;  %v2679_v27 = vld [vmem:[#allocation10 + $0x808] sm:$0xff]  ;;  %v2681_v28 = vld [vmem:[#allocation10 + $0x818] sm:$0xff] }
 0x30d   :  { %4013 = vmatprep.subr.bf16.mxu0 %v3303_v30  ;;  %4177 = vmatprep.subr.bf16.mxu1 %v3305_v31  ;;  %v3430_v30 = vunpack.c.h.s8.bf16 %v2662_v19  ;;  %v3432_v31 = vunpack.c.h.s8.bf16 %v2664_v20  ;;  %v3447_v34 = vunpack.c.l.s8.bf16 %v2679_v27  ;;  %v8629_v39 = vpack.c.bf16 %v2408_v33, %v2408_v33 }
 0x30e   :  { %v3463_v40 = vunpack.c.h.s8.bf16 %v2679_v27 }
 0x310   :  { %4014 = vmatpush1.bf16.msra.mxu0 %v3302_v35  ;;  %4178 = vmatpush1.bf16.msra.mxu1 %v3304_v36  ;;  %v3449_v35 = vunpack.c.l.s8.bf16 %v2681_v28  ;;  %v2678_v36 = vld [vmem:[#allocation10 + $0x800] sm:$0xff] }
 0x311   :  { %4015 = vmatprep.subr.bf16.mxu0 %v3319_v37  ;;  %4179 = vmatprep.subr.bf16.mxu1 %v3321_v38  ;;  %v2680_v37 = vld [vmem:[#allocation10 + $0x810] sm:$0xff]  ;;  %v3446_v32 = vunpack.c.l.s8.bf16 %v2678_v36 }
 0x312   :  { %v3448_v38 = vunpack.c.l.s8.bf16 %v2680_v37  ;;  %v3464_v49 = vunpack.c.h.s8.bf16 %v2680_v37  ;;  %v2761_v37 = vld [vmem:[#allocation10 + $0xa98] sm:$0xff] }
 0x314   :  { %4016 = vmatpush1.bf16.msra.mxu0 %v3318_v41  ;;  %4180 = vmatpush1.bf16.msra.mxu1 %v3320_v42  ;;  %v3465_v41 = vunpack.c.h.s8.bf16 %v2681_v28  ;;  %v2695_v42 = vld [vmem:[#allocation10 + $0x888] sm:$0xff]  ;;  %v2742_v28 = vld [vmem:[#allocation10 + $0xa00] sm:$0xff] }
 0x315   :  { %4017 = vmatprep.subr.bf16.mxu0 %v3335_v47  ;;  %4181 = vmatprep.subr.bf16.mxu1 %v3337_v48  ;;  %v2697_v47 = vld [vmem:[#allocation10 + $0x898] sm:$0xff]  ;;  %v3462_v48 = vunpack.c.h.s8.bf16 %v2678_v36  ;;  %v3479_v50 = vunpack.c.l.s8.bf16 %v2695_v42  ;;  %v3495_v58 = vunpack.c.h.s8.bf16 %v2695_v42  ;;  %v2759_v36 = vld [vmem:[#allocation10 + $0xa88] sm:$0xff]  ;;  %v2758_v42 = vld [vmem:[#allocation10 + $0xa80] sm:$0xff] }
 0x318   :  { %4018 = vmatpush1.bf16.msra.mxu0 %v3334_v52  ;;  %4182 = vmatpush1.bf16.msra.mxu1 %v3336_v62  ;;  %v3481_v52 = vunpack.c.l.s8.bf16 %v2697_v47  ;;  %v2694_v62 = vld [vmem:[#allocation10 + $0x880] sm:$0xff] }
 0x319   :  { %4019 = vmatprep.subr.bf16.mxu0 %v3351_v55  ;;  %4183 = vmatprep.subr.bf16.mxu1 %v3353_v56  ;;  %v2696_v55 = vld [vmem:[#allocation10 + $0x890] sm:$0xff]  ;;  %v3478_v56 = vunpack.c.l.s8.bf16 %v2694_v62 }
 0x31a   :  { %v3480_v57 = vunpack.c.l.s8.bf16 %v2696_v55  ;;  %v3496_v63 = vunpack.c.h.s8.bf16 %v2696_v55  ;;  %v2777_v55 = vld [vmem:[#allocation10 + $0xb18] sm:$0xff] }
 0x31c   :  { %4020 = vmatpush1.bf16.msra.mxu0 %v3350_v60  ;;  %4184 = vmatpush1.bf16.msra.mxu1 %v3352_v0  ;;  %v3497_v60 = vunpack.c.h.s8.bf16 %v2697_v47  ;;  %v2711_v0 = vld [vmem:[#allocation10 + $0x908] sm:$0xff]  ;;  %v2760_v47 = vld [vmem:[#allocation10 + $0xa90] sm:$0xff] }
 0x31d   :  { %4021 = vmatprep.subr.bf16.mxu0 %v3367_v1  ;;  %4185 = vmatprep.subr.bf16.mxu1 %v3369_v2  ;;  %v2713_v1 = vld [vmem:[#allocation10 + $0x918] sm:$0xff]  ;;  %v3494_v2 = vunpack.c.h.s8.bf16 %v2694_v62  ;;  %v3511_v3 = vunpack.c.l.s8.bf16 %v2711_v0  ;;  %v3527_v29 = vunpack.c.h.s8.bf16 %v2711_v0  ;;  %v2775_v62 = vld [vmem:[#allocation10 + $0xb08] sm:$0xff]  ;;  %v2774_v0 = vld [vmem:[#allocation10 + $0xb00] sm:$0xff] }
 0x320   :  { %4022 = vmatpush1.bf16.msra.mxu0 %v3366_v4  ;;  %4186 = vmatpush1.bf16.msra.mxu1 %v3368_v5  ;;  %v3513_v4 = vunpack.c.l.s8.bf16 %v2713_v1  ;;  %v2710_v5 = vld [vmem:[#allocation10 + $0x900] sm:$0xff] }
 0x321   :  { %4023 = vmatprep.subr.bf16.mxu0 %v3383_v6  ;;  %4187 = vmatprep.subr.bf16.mxu1 %v3385_v7  ;;  %v2712_v6 = vld [vmem:[#allocation10 + $0x910] sm:$0xff]  ;;  %v3510_v7 = vunpack.c.l.s8.bf16 %v2710_v5 }
 0x322   :  { %v3512_v8 = vunpack.c.l.s8.bf16 %v2712_v6  ;;  %v3528_v13 = vunpack.c.h.s8.bf16 %v2712_v6  ;;  %v2793_v6 = vld [vmem:[#allocation10 + $0xb98] sm:$0xff] }
 0x324   :  { %4024 = vmatpush1.bf16.msra.mxu0 %v3382_v26  ;;  %4188 = vmatpush1.bf16.msra.mxu1 %v3384_v9  ;;  %v3529_v26 = vunpack.c.h.s8.bf16 %v2713_v1  ;;  %v2727_v9 = vld [vmem:[#allocation10 + $0x988] sm:$0xff]  ;;  %v2776_v1 = vld [vmem:[#allocation10 + $0xb10] sm:$0xff] }
 0x325   :  { %4025 = vmatprep.subr.bf16.mxu0 %v3399_v10  ;;  %4189 = vmatprep.subr.bf16.mxu1 %v3401_v11  ;;  %v2729_v10 = vld [vmem:[#allocation10 + $0x998] sm:$0xff]  ;;  %v3526_v11 = vunpack.c.h.s8.bf16 %v2710_v5  ;;  %v3543_v14 = vunpack.c.l.s8.bf16 %v2727_v9  ;;  %v3559_v19 = vunpack.c.h.s8.bf16 %v2727_v9  ;;  %v2791_v5 = vld [vmem:[#allocation10 + $0xb88] sm:$0xff] }
 0x326   :  { %v3561_v20 = vunpack.c.h.s8.bf16 %v2729_v10  ;;  %v3671_v9 = vunpack.c.l.s8.bf16 %v2791_v5 }
 0x328   :  { %4026 = vmatpush1.bf16.msra.mxu0 %v3398_v45  ;;  %4190 = vmatpush1.bf16.msra.mxu1 %v3400_v15  ;;  %v3545_v45 = vunpack.c.l.s8.bf16 %v2729_v10  ;;  %v2726_v15 = vld [vmem:[#allocation10 + $0x980] sm:$0xff]  ;;  %v3673_v10 = vunpack.c.l.s8.bf16 %v2793_v6 }
 0x329   :  { %4027 = vmatprep.subr.bf16.mxu0 %v3415_v17  ;;  %4191 = vmatprep.subr.bf16.mxu1 %v3417_v18  ;;  %v3542_v17 = vunpack.c.l.s8.bf16 %v2726_v15  ;;  %v3544_v18 = vunpack.c.l.s8.bf16 %v2728_v16  ;;  %v3558_v23 = vunpack.c.h.s8.bf16 %v2726_v15 }
 0x32c   :  { %4028 = vmatpush1.bf16.msra.mxu0 %v3414_v21  ;;  %4192 = vmatpush1.bf16.msra.mxu1 %v3416_v22  ;;  %v2743_v21 = vld [vmem:[#allocation10 + $0xa08] sm:$0xff]  ;;  %v2745_v22 = vld [vmem:[#allocation10 + $0xa18] sm:$0xff] }
 0x32d   :  { %4029 = vmatprep.subr.bf16.mxu0 %v3431_v12  ;;  %4193 = vmatprep.subr.bf16.mxu1 %v3433_v24  ;;  %v3560_v12 = vunpack.c.h.s8.bf16 %v2728_v16  ;;  %v3575_v24 = vunpack.c.l.s8.bf16 %v2743_v21  ;;  %v3577_v27 = vunpack.c.l.s8.bf16 %v2745_v22 }
 0x330   :  { %4030 = vmatpush1.bf16.msra.mxu0 %v3430_v30  ;;  %4194 = vmatpush1.bf16.msra.mxu1 %v3432_v31  ;;  %v2744_v30 = vld [vmem:[#allocation10 + $0xa10] sm:$0xff]  ;;  %v3574_v31 = vunpack.c.l.s8.bf16 %v2742_v28 }
 0x331   :  { %4040 = vmatprep.subr.bf16.mxu0 %v3447_v34  ;;  %4204 = vmatprep.subr.bf16.mxu1 %v3449_v35  ;;  %v3576_v33 = vunpack.c.l.s8.bf16 %v2744_v30  ;;  %v3591_v34 = vunpack.c.h.s8.bf16 %v2743_v21  ;;  %v3593_v35 = vunpack.c.h.s8.bf16 %v2745_v22  ;;  %v2807_v22 = vld [vmem:[#allocation10 + $0xc08] sm:$0xff] }
 0x333   :  { %4032 = vmatmul.mubr.bf16.vlgmr.msra.gmra.mrb[12].mxu0 %v8629_v39  ;;  %4196 = vmatmul.mubr.bf16.vlgmr.msra.gmra.mrb[12].mxu1 %v8629_v39 }
 0x334   :  { %4041 = vmatpush1.bf16.msra.mxu0 %v3446_v32  ;;  %4205 = vmatpush1.bf16.msra.mxu1 %v3448_v38  ;;  %v3590_v32 = vunpack.c.h.s8.bf16 %v2742_v28  ;;  %v3592_v38 = vunpack.c.h.s8.bf16 %v2744_v30 }
 0x335   :  { %4042 = vmatprep.subr.bf16.mxu0 %v3463_v40  ;;  %4206 = vmatprep.subr.bf16.mxu1 %v3465_v41  ;;  %v3607_v40 = vunpack.c.l.s8.bf16 %v2759_v36  ;;  %v3609_v41 = vunpack.c.l.s8.bf16 %v2761_v37 }
 0x338   :  { %4043 = vmatpush1.bf16.msra.mxu0 %v3462_v48  ;;  %4207 = vmatpush1.bf16.msra.mxu1 %v3464_v49  ;;  %v3606_v48 = vunpack.c.l.s8.bf16 %v2758_v42  ;;  %v3608_v49 = vunpack.c.l.s8.bf16 %v2760_v47 }
 0x339   :  { %4044 = vmatprep.subr.bf16.mxu0 %v3479_v50  ;;  %4208 = vmatprep.subr.bf16.mxu1 %v3481_v52  ;;  %v3623_v50 = vunpack.c.h.s8.bf16 %v2759_v36  ;;  %v3625_v52 = vunpack.c.h.s8.bf16 %v2761_v37 }
 0x33c   :  { %4045 = vmatpush1.bf16.msra.mxu0 %v3478_v56  ;;  %4209 = vmatpush1.bf16.msra.mxu1 %v3480_v57  ;;  %v3622_v56 = vunpack.c.h.s8.bf16 %v2758_v42  ;;  %v3624_v57 = vunpack.c.h.s8.bf16 %v2760_v47 }
 0x33d   :  { %4046 = vmatprep.subr.bf16.mxu0 %v3495_v58  ;;  %4210 = vmatprep.subr.bf16.mxu1 %v3497_v60  ;;  %v3639_v58 = vunpack.c.l.s8.bf16 %v2775_v62  ;;  %v3641_v60 = vunpack.c.l.s8.bf16 %v2777_v55 }
 0x340   :  { %4047 = vmatpush1.bf16.msra.mxu0 %v3494_v2  ;;  %4211 = vmatpush1.bf16.msra.mxu1 %v3496_v63  ;;  %v3638_v2 = vunpack.c.l.s8.bf16 %v2774_v0  ;;  %v3640_v63 = vunpack.c.l.s8.bf16 %v2776_v1 }
 0x341   :  { %4048 = vmatprep.subr.bf16.mxu0 %v3511_v3  ;;  %4212 = vmatprep.subr.bf16.mxu1 %v3513_v4  ;;  %v3655_v3 = vunpack.c.h.s8.bf16 %v2775_v62  ;;  %v3657_v4 = vunpack.c.h.s8.bf16 %v2777_v55  ;;  %v3719_v55 = vunpack.c.h.s8.bf16 %v2807_v22 }
 0x344   :  { %4049 = vmatpush1.bf16.msra.mxu0 %v3510_v7  ;;  %4213 = vmatpush1.bf16.msra.mxu1 %v3512_v8  ;;  %v8634_v7 = vsub.s32 4, %v8553_v43  ;;  %v3654_v8 = vunpack.c.h.s8.bf16 %v2774_v0 }
 0x345   :  { %4050 = vmatprep.subr.bf16.mxu0 %v3527_v29  ;;  %4214 = vmatprep.subr.bf16.mxu1 %v3529_v26  ;;  %v3656_v29 = vunpack.c.h.s8.bf16 %v2776_v1  ;;  %v8637_v26 = vsub.s32 5, %v8553_v43 }
 0x347   :  { %v781_v15 = vrot.slane %v8604_v25, %v8637_v26 }
 0x348   :  { %4051 = vmatpush1.bf16.msra.mxu0 %v3526_v11  ;;  %4215 = vmatpush1.bf16.msra.mxu1 %v3528_v13  ;;  %v8640_v11 = vsub.s32 7, %v8553_v43  ;;  %v2790_v13 = vld [vmem:[#allocation10 + $0xb80] sm:$0xff] }
 0x349   :  { %4052 = vmatprep.subr.bf16.mxu0 %v3543_v14  ;;  %4216 = vmatprep.subr.bf16.mxu1 %v3545_v45  ;;  %v2792_v14 = vld [vmem:[#allocation10 + $0xb90] sm:$0xff]  ;;  %v777_v45 = vrot.slane %v8604_v25, %v8634_v7  ;;  %v3670_v16 = vunpack.c.l.s8.bf16 %v2790_v13 }
 0x34c   :  { %4053 = vmatpush1.bf16.msra.mxu0 %v3542_v17  ;;  %4217 = vmatpush1.bf16.msra.mxu1 %v3544_v18  ;;  %v3672_v17 = vunpack.c.l.s8.bf16 %v2792_v14  ;;  %v789_v18 = vrot.slane %v8604_v25, %v8640_v11 }
 0x34d   :  { %4054 = vmatprep.subr.bf16.mxu0 %v3559_v19  ;;  %4218 = vmatprep.subr.bf16.mxu1 %v3561_v20  ;;  %v3687_v19 = vunpack.c.h.s8.bf16 %v2791_v5  ;;  %v3689_v20 = vunpack.c.h.s8.bf16 %v2793_v6 }
 0x350   :  { %4055 = vmatpush1.bf16.msra.mxu0 %v3558_v23  ;;  %4219 = vmatpush1.bf16.msra.mxu1 %v3560_v12  ;;  %v2809_v23 = vld [vmem:[#allocation10 + $0xc18] sm:$0xff] }
 0x351   :  { %4056 = vmatprep.subr.bf16.mxu0 %v3575_v24  ;;  %4220 = vmatprep.subr.bf16.mxu1 %v3577_v27 }
 0x354   :  { %4057 = vmatpush1.bf16.msra.mxu0 %v3574_v31  ;;  %4221 = vmatpush1.bf16.msra.mxu1 %v3576_v33  ;;  %v3686_v33 = vunpack.c.h.s8.bf16 %v2790_v13 }
 0x355   :  { %4058 = vmatprep.subr.bf16.mxu0 %v3591_v34  ;;  %4222 = vmatprep.subr.bf16.mxu1 %v3593_v35  ;;  %v3688_v34 = vunpack.c.h.s8.bf16 %v2792_v14 }
 0x358   :  { %4059 = vmatpush1.bf16.msra.mxu0 %v3590_v32  ;;  %4223 = vmatpush1.bf16.msra.mxu1 %v3592_v38  ;;  %v3703_v32 = vunpack.c.l.s8.bf16 %v2807_v22  ;;  %v3705_v38 = vunpack.c.l.s8.bf16 %v2809_v23  ;;  %v2855_v22 = vld [vmem:[#allocation10 + $0xd88] sm:$0xff] }
 0x359   :  { %4060 = vmatprep.subr.bf16.mxu0 %v3607_v40  ;;  %4224 = vmatprep.subr.bf16.mxu1 %v3609_v41  ;;  %v2806_v40 = vld [vmem:[#allocation10 + $0xc00] sm:$0xff]  ;;  %v2808_v41 = vld [vmem:[#allocation10 + $0xc10] sm:$0xff] }
 0x35a   :  { %v3718_v0 = vunpack.c.h.s8.bf16 %v2806_v40  ;;  %v3720_v1 = vunpack.c.h.s8.bf16 %v2808_v41 }
 0x35c   :  { %4061 = vmatpush1.bf16.msra.mxu0 %v3606_v48  ;;  %4225 = vmatpush1.bf16.msra.mxu1 %v3608_v49 }
 0x35d   :  { %4062 = vmatprep.subr.bf16.mxu0 %v3623_v50  ;;  %4226 = vmatprep.subr.bf16.mxu1 %v3625_v52  ;;  %v3702_v50 = vunpack.c.l.s8.bf16 %v2806_v40  ;;  %v3704_v52 = vunpack.c.l.s8.bf16 %v2808_v41 }
 0x360   :  { %4063 = vmatpush1.bf16.msra.mxu0 %v3622_v56  ;;  %4227 = vmatpush1.bf16.msra.mxu1 %v3624_v57  ;;  %v3721_v56 = vunpack.c.h.s8.bf16 %v2809_v23  ;;  %v2823_v57 = vld [vmem:[#allocation10 + $0xc88] sm:$0xff]  ;;  %v2857_v23 = vld [vmem:[#allocation10 + $0xd98] sm:$0xff] }
 0x361   :  { %4064 = vmatprep.subr.bf16.mxu0 %v3639_v58  ;;  %4228 = vmatprep.subr.bf16.mxu1 %v3641_v60  ;;  %v2825_v58 = vld [vmem:[#allocation10 + $0xc98] sm:$0xff] }
 0x364   :  { %4065 = vmatpush1.bf16.msra.mxu0 %v3638_v2  ;;  %4229 = vmatpush1.bf16.msra.mxu1 %v3640_v63  ;;  %v3735_v2 = vunpack.c.l.s8.bf16 %v2823_v57  ;;  %v3737_v63 = vunpack.c.l.s8.bf16 %v2825_v58 }
 0x365   :  { %4066 = vmatprep.subr.bf16.mxu0 %v3655_v3  ;;  %4230 = vmatprep.subr.bf16.mxu1 %v3657_v4  ;;  %v2822_v3 = vld [vmem:[#allocation10 + $0xc80] sm:$0xff]  ;;  %v2824_v4 = vld [vmem:[#allocation10 + $0xc90] sm:$0xff] }
 0x366   :  { %v3734_v5 = vunpack.c.l.s8.bf16 %v2822_v3  ;;  %v3736_v6 = vunpack.c.l.s8.bf16 %v2824_v4  ;;  %v3750_v13 = vunpack.c.h.s8.bf16 %v2822_v3  ;;  %v3752_v14 = vunpack.c.h.s8.bf16 %v2824_v4  ;;  %v2886_v3 = vld [vmem:[#allocation10 + $0xe80] sm:$0xff]  ;;  %v2888_v4 = vld [vmem:[#allocation10 + $0xe90] sm:$0xff] }
 0x368   :  { %4067 = vmatpush1.bf16.msra.mxu0 %v3654_v8  ;;  %4231 = vmatpush1.bf16.msra.mxu1 %v3656_v29  ;;  %v3751_v8 = vunpack.c.h.s8.bf16 %v2823_v57  ;;  %v3753_v29 = vunpack.c.h.s8.bf16 %v2825_v58  ;;  %v2887_v57 = vld [vmem:[#allocation10 + $0xe88] sm:$0xff]  ;;  %v2889_v58 = vld [vmem:[#allocation10 + $0xe98] sm:$0xff] }
 0x369   :  { %4068 = vmatprep.subr.bf16.mxu0 %v3671_v9  ;;  %4232 = vmatprep.subr.bf16.mxu1 %v3673_v10  ;;  %v2839_v9 = vld [vmem:[#allocation10 + $0xd08] sm:$0xff]  ;;  %v2841_v10 = vld [vmem:[#allocation10 + $0xd18] sm:$0xff] }
 0x36a   :  { %v2317_v21 = vpop.f32.mrb[8].mxu0 }
 0x36b   :  { %v7720_v12 = vadd.f32 %v2317_v21, %v777_v45  ;;  %v8648_v24 = vpop.f32.mrb[8].mxu1  ;;  %v2319_v27 = vpop.f32.mrb[9].mxu0  ;;  %v3767_v45 = vunpack.c.l.s8.bf16 %v2839_v9  ;;  %v3785_v21 = vunpack.c.h.s8.bf16 %v2841_v10 }
 0x36c   :  { %v7721_v28 = vadd.f32 %v2319_v27, %v781_v15  ;;  %v2401_v30 = vpop.f32.mrb[9].mxu1  ;;  %4069 = vmatpush1.bf16.msra.mxu0 %v3670_v16  ;;  %4233 = vmatpush1.bf16.msra.mxu1 %v3672_v17  ;;  %v2321_v31 = vpop.f32.mrb[10].mxu0  ;;  %v3769_v15 = vunpack.c.l.s8.bf16 %v2841_v10  ;;  %v2838_v16 = vld [vmem:[#allocation10 + $0xd00] sm:$0xff]  ;;  %v2840_v17 = vld [vmem:[#allocation10 + $0xd10] sm:$0xff]  ;;  %v2905_v10 = vld [vmem:[#allocation10 + $0xf18] sm:$0xff] }
 0x36d   :  { %v2410_v35 = vmax.f32 %v7720_v12, 0.0  ;;  %v7723_v36 = vadd.f32 %v2401_v30, %v789_v18  ;;  %v2403_v37 = vpop.f32.mrb[10].mxu1  ;;  %v2322_v25 = vpop.f32.mrb[11].mxu0  ;;  %4070 = vmatprep.subr.bf16.mxu0 %v3687_v19  ;;  %4234 = vmatprep.subr.bf16.mxu1 %v3689_v20  ;;  %v3766_v18 = vunpack.c.l.s8.bf16 %v2838_v16  ;;  %v3768_v19 = vunpack.c.l.s8.bf16 %v2840_v17  ;;  %v2854_v31 = vld [vmem:[#allocation10 + $0xd80] sm:$0xff] }
 0x36e   :  { %v2411_v42 = vmax.f32 %v7721_v28, 0.0  ;;  %v2404_v47 = vpop.f32.mrb[11].mxu1  ;;  %v3783_v20 = vunpack.c.h.s8.bf16 %v2839_v9  ;;  %v3782_v12 = vunpack.c.h.s8.bf16 %v2838_v16  ;;  %v3784_v27 = vunpack.c.h.s8.bf16 %v2840_v17  ;;  %v2871_v25 = vld [vmem:[#allocation10 + $0xe08] sm:$0xff]  ;;  %v2902_v16 = vld [vmem:[#allocation10 + $0xf00] sm:$0xff]  ;;  %v2904_v17 = vld [vmem:[#allocation10 + $0xf10] sm:$0xff] }
 0x36f   :  { %v2413_v48 = vmax.f32 %v7723_v36, 0.0  ;;  %v8652_v62 = vpack.c.bf16 %v2410_v35, %v2410_v35  ;;  %v3799_v28 = vunpack.c.l.s8.bf16 %v2855_v22  ;;  %v3801_v30 = vunpack.c.l.s8.bf16 %v2857_v23  ;;  %v2870_v47 = vld [vmem:[#allocation10 + $0xe00] sm:$0xff]  ;;  %v2903_v9 = vld [vmem:[#allocation10 + $0xf08] sm:$0xff] }
 0x370   :  { %v8650_v49 = vpack.c.bf16 %v2411_v42, %v2411_v42  ;;  %4071 = vmatpush1.bf16.msra.mxu0 %v3686_v33  ;;  %4235 = vmatpush1.bf16.msra.mxu1 %v3688_v34  ;;  %v2856_v33 = vld [vmem:[#allocation10 + $0xd90] sm:$0xff]  ;;  %v3798_v34 = vunpack.c.l.s8.bf16 %v2854_v31  ;;  %v3815_v36 = vunpack.c.h.s8.bf16 %v2855_v22  ;;  %v3817_v37 = vunpack.c.h.s8.bf16 %v2857_v23  ;;  %v2919_v23 = vld [vmem:[#allocation10 + $0xf88] sm:$0xff] }
 0x371   :  { %4081 = vmatprep.subr.bf16.mxu0 %v3703_v32  ;;  %4245 = vmatprep.subr.bf16.mxu1 %v3705_v38  ;;  %v8656_v60 = vpack.c.bf16 %v2413_v48, %v2413_v48  ;;  %v3800_v35 = vunpack.c.l.s8.bf16 %v2856_v33  ;;  %v2873_v32 = vld [vmem:[#allocation10 + $0xe18] sm:$0xff]  ;;  %v3814_v38 = vunpack.c.h.s8.bf16 %v2854_v31  ;;  %v3816_v40 = vunpack.c.h.s8.bf16 %v2856_v33  ;;  %v2872_v48 = vld [vmem:[#allocation10 + $0xe10] sm:$0xff] }
 0x372   :  { %4072 = vmatprep.mubr.bf16.mxu0 %v8650_v49  ;;  %4236 = vmatprep.mubr.bf16.mxu1 %v8650_v49  ;;  %v3831_v41 = vunpack.c.l.s8.bf16 %v2871_v25  ;;  %v3833_v42 = vunpack.c.l.s8.bf16 %v2873_v32  ;;  %v3913_v22 = vunpack.c.h.s8.bf16 %v2905_v10  ;;  %v3927_v33 = vunpack.c.l.s8.bf16 %v2919_v23 }
 0x373   :  { %4073 = vmatmul.mubr.bf16.vlgmr.msra.gmra.mrb[12].mxu0 %v8652_v62  ;;  %4237 = vmatmul.mubr.bf16.vlgmr.msra.gmra.mrb[12].mxu1 %v8652_v62 }
 0x374   :  { %4082 = vmatpush1.bf16.msra.mxu0 %v3702_v50  ;;  %4246 = vmatpush1.bf16.msra.mxu1 %v3704_v52  ;;  %v3830_v50 = vunpack.c.l.s8.bf16 %v2870_v47  ;;  %v3832_v52 = vunpack.c.l.s8.bf16 %v2872_v48 }
 0x375   :  { %4113 = vmatprep.mubr.bf16.mxu0 %v8656_v60  ;;  %4277 = vmatprep.mubr.bf16.mxu1 %v8656_v60 }
 0x376   :  { %4083 = vmatprep.subr.bf16.mxu0 %v3719_v55  ;;  %4247 = vmatprep.subr.bf16.mxu1 %v3721_v56  ;;  %v3847_v55 = vunpack.c.h.s8.bf16 %v2871_v25  ;;  %v3849_v56 = vunpack.c.h.s8.bf16 %v2873_v32  ;;  %v3943_v32 = vunpack.c.h.s8.bf16 %v2919_v23 }
 0x378   :  { %4084 = vmatpush1.bf16.msra.mxu0 %v3718_v0  ;;  %4248 = vmatpush1.bf16.msra.mxu1 %v3720_v1  ;;  %v3846_v0 = vunpack.c.h.s8.bf16 %v2870_v47  ;;  %v3848_v1 = vunpack.c.h.s8.bf16 %v2872_v48 }
 0x379   :  { %4085 = vmatprep.subr.bf16.mxu0 %v3735_v2  ;;  %4249 = vmatprep.subr.bf16.mxu1 %v3737_v63  ;;  %v3863_v2 = vunpack.c.l.s8.bf16 %v2887_v57  ;;  %v3865_v63 = vunpack.c.l.s8.bf16 %v2889_v58 }
 0x37c   :  { %4086 = vmatpush1.bf16.msra.mxu0 %v3734_v5  ;;  %4250 = vmatpush1.bf16.msra.mxu1 %v3736_v6  ;;  %v3862_v5 = vunpack.c.l.s8.bf16 %v2886_v3  ;;  %v3864_v6 = vunpack.c.l.s8.bf16 %v2888_v4 }
 0x37d   :  { %4087 = vmatprep.subr.bf16.mxu0 %v3751_v8  ;;  %4251 = vmatprep.subr.bf16.mxu1 %v3753_v29  ;;  %v3879_v8 = vunpack.c.h.s8.bf16 %v2887_v57  ;;  %v3881_v29 = vunpack.c.h.s8.bf16 %v2889_v58 }
 0x380   :  { %4088 = vmatpush1.bf16.msra.mxu0 %v3750_v13  ;;  %4252 = vmatpush1.bf16.msra.mxu1 %v3752_v14  ;;  %v3878_v13 = vunpack.c.h.s8.bf16 %v2886_v3  ;;  %v3880_v14 = vunpack.c.h.s8.bf16 %v2888_v4 }
 0x381   :  { %4089 = vmatprep.subr.bf16.mxu0 %v3767_v45  ;;  %4253 = vmatprep.subr.bf16.mxu1 %v3769_v15  ;;  %v3895_v45 = vunpack.c.l.s8.bf16 %v2903_v9  ;;  %v3897_v15 = vunpack.c.l.s8.bf16 %v2905_v10 }
 0x384   :  { %4090 = vmatpush1.bf16.msra.mxu0 %v3766_v18  ;;  %4254 = vmatpush1.bf16.msra.mxu1 %v3768_v19  ;;  %v3894_v18 = vunpack.c.l.s8.bf16 %v2902_v16  ;;  %v3896_v19 = vunpack.c.l.s8.bf16 %v2904_v17 }
 0x385   :  { %4091 = vmatprep.subr.bf16.mxu0 %v3783_v20  ;;  %4255 = vmatprep.subr.bf16.mxu1 %v3785_v21  ;;  %v8663_v20 = vsub.s32 6, %v8553_v43  ;;  %v3911_v21 = vunpack.c.h.s8.bf16 %v2903_v9  ;;  %v2920_v43 = vld [vmem:[#allocation10 + $0xf90] sm:$0xff] }
 0x386   :  { %v3944_v47 = vunpack.c.h.s8.bf16 %v2920_v43 }
 0x388   :  { %4092 = vmatpush1.bf16.msra.mxu0 %v3782_v12  ;;  %4256 = vmatpush1.bf16.msra.mxu1 %v3784_v27  ;;  %v2921_v12 = vld [vmem:[#allocation10 + $0xf98] sm:$0xff]  ;;  %v3910_v27 = vunpack.c.h.s8.bf16 %v2902_v16 }
 0x389   :  { %4093 = vmatprep.subr.bf16.mxu0 %v3799_v28  ;;  %4257 = vmatprep.subr.bf16.mxu1 %v3801_v30  ;;  %v3912_v28 = vunpack.c.h.s8.bf16 %v2904_v17  ;;  %v7994_v30 = vld [vmem:[#allocation8] sm:$0xff] }
 0x38a   :  { %v785_v31 = vrot.slane %v7994_v30, %v8663_v20  ;;  %v2475_v30 = vld [vmem:[#allocation10 + $0x1a8] sm:$0xff] }
 0x38c   :  { %4094 = vmatpush1.bf16.msra.mxu0 %v3798_v34  ;;  %4258 = vmatpush1.bf16.msra.mxu1 %v3800_v35  ;;  %v3929_v34 = vunpack.c.l.s8.bf16 %v2921_v12  ;;  %v2918_v35 = vld [vmem:[#allocation10 + $0xf80] sm:$0xff]  ;;  %v7722_v25 = vadd.f32 %v8648_v24, %v785_v31  ;;  %v2477_v31 = vld [vmem:[#allocation10 + $0x1b8] sm:$0xff] }
 0x38d   :  { %4095 = vmatprep.subr.bf16.mxu0 %v3815_v36  ;;  %4259 = vmatprep.subr.bf16.mxu1 %v3817_v37  ;;  %v3926_v36 = vunpack.c.l.s8.bf16 %v2918_v35  ;;  %v3928_v37 = vunpack.c.l.s8.bf16 %v2920_v43  ;;  %v2474_v43 = vld [vmem:[#allocation10 + $0x1a0] sm:$0xff] }
 0x38e   :  { %v2412_v48 = vmax.f32 %v7722_v25, 0.0  ;;  %v3034_v25 = vunpack.c.l.s8.bf16 %v2474_v43 }
 0x390   :  { %4096 = vmatpush1.bf16.msra.mxu0 %v3814_v38  ;;  %4260 = vmatpush1.bf16.msra.mxu1 %v3816_v40  ;;  %v3945_v38 = vunpack.c.h.s8.bf16 %v2921_v12  ;;  %v2427_v40 = vld [vmem:[#allocation10 + $0x28] sm:$0xff]  ;;  %v8667_v57 = vpack.c.bf16 %v2412_v48, %v2412_v48 }
 0x391   :  { %4097 = vmatprep.subr.bf16.mxu0 %v3831_v41  ;;  %4261 = vmatprep.subr.bf16.mxu1 %v3833_v42  ;;  %v2429_v41 = vld [vmem:[#allocation10 + $0x38] sm:$0xff]  ;;  %v3942_v42 = vunpack.c.h.s8.bf16 %v2918_v35  ;;  %v3035_v35 = vunpack.c.l.s8.bf16 %v2475_v30 }
 0x394   :  { %4098 = vmatpush1.bf16.msra.mxu0 %v3830_v50  ;;  %4262 = vmatpush1.bf16.msra.mxu1 %v3832_v52  ;;  %v2939_v50 = vunpack.c.l.s8.bf16 %v2427_v40  ;;  %v2941_v52 = vunpack.c.l.s8.bf16 %v2429_v41 }
 0x395   :  { %4099 = vmatprep.subr.bf16.mxu0 %v3847_v55  ;;  %4263 = vmatprep.subr.bf16.mxu1 %v3849_v56  ;;  %v2426_v55 = vld [vmem:[#allocation10 + $0x20] sm:$0xff]  ;;  %v2428_v56 = vld [vmem:[#allocation10 + $0x30] sm:$0xff] }
 0x396   :  { %v2938_v24 = vunpack.c.l.s8.bf16 %v2426_v55  ;;  %v2940_v58 = vunpack.c.l.s8.bf16 %v2428_v56  ;;  %v2954_v3 = vunpack.c.h.s8.bf16 %v2426_v55  ;;  %v2956_v4 = vunpack.c.h.s8.bf16 %v2428_v56  ;;  %v2492_v56 = vld [vmem:[#allocation10 + $0x230] sm:$0xff] }
 0x398   :  { %4100 = vmatpush1.bf16.msra.mxu0 %v3846_v0  ;;  %4264 = vmatpush1.bf16.msra.mxu1 %v3848_v1  ;;  %v2955_v0 = vunpack.c.h.s8.bf16 %v2427_v40  ;;  %v2957_v1 = vunpack.c.h.s8.bf16 %v2429_v41  ;;  %v3053_v40 = vunpack.c.h.s8.bf16 %v2477_v31  ;;  %v2491_v41 = vld [vmem:[#allocation10 + $0x228] sm:$0xff] }
 0x399   :  { %4101 = vmatprep.subr.bf16.mxu0 %v3863_v2  ;;  %4265 = vmatprep.subr.bf16.mxu1 %v3865_v63  ;;  %v2443_v2 = vld [vmem:[#allocation10 + $0xa8] sm:$0xff]  ;;  %v2445_v63 = vld [vmem:[#allocation10 + $0xb8] sm:$0xff] }
 0x39c   :  { %4102 = vmatpush1.bf16.msra.mxu0 %v3862_v5  ;;  %4266 = vmatpush1.bf16.msra.mxu1 %v3864_v6  ;;  %v2971_v5 = vunpack.c.l.s8.bf16 %v2443_v2  ;;  %v2442_v6 = vld [vmem:[#allocation10 + $0xa0] sm:$0xff] }
 0x39d   :  { %4103 = vmatprep.subr.bf16.mxu0 %v3879_v8  ;;  %4267 = vmatprep.subr.bf16.mxu1 %v3881_v29  ;;  %v2973_v8 = vunpack.c.l.s8.bf16 %v2445_v63  ;;  %v2444_v29 = vld [vmem:[#allocation10 + $0xb0] sm:$0xff]  ;;  %v2970_v9 = vunpack.c.l.s8.bf16 %v2442_v6  ;;  %v2986_v16 = vunpack.c.h.s8.bf16 %v2442_v6  ;;  %v2506_v6 = vld [vmem:[#allocation10 + $0x2a0] sm:$0xff] }
 0x39e   :  { %v2972_v10 = vunpack.c.l.s8.bf16 %v2444_v29  ;;  %v2988_v17 = vunpack.c.h.s8.bf16 %v2444_v29  ;;  %v2508_v29 = vld [vmem:[#allocation10 + $0x2b0] sm:$0xff] }
 0x3a0   :  { %4104 = vmatpush1.bf16.msra.mxu0 %v3878_v13  ;;  %4268 = vmatpush1.bf16.msra.mxu1 %v3880_v14  ;;  %v2987_v13 = vunpack.c.h.s8.bf16 %v2443_v2  ;;  %v2989_v14 = vunpack.c.h.s8.bf16 %v2445_v63  ;;  %v2507_v2 = vld [vmem:[#allocation10 + $0x2a8] sm:$0xff]  ;;  %v2509_v63 = vld [vmem:[#allocation10 + $0x2b8] sm:$0xff] }
 0x3a1   :  { %4105 = vmatprep.subr.bf16.mxu0 %v3895_v45  ;;  %4269 = vmatprep.subr.bf16.mxu1 %v3897_v15  ;;  %v2459_v45 = vld [vmem:[#allocation10 + $0x128] sm:$0xff]  ;;  %v2461_v15 = vld [vmem:[#allocation10 + $0x138] sm:$0xff] }
 0x3a4   :  { %4106 = vmatpush1.bf16.msra.mxu0 %v3894_v18  ;;  %4270 = vmatpush1.bf16.msra.mxu1 %v3896_v19  ;;  %v3003_v18 = vunpack.c.l.s8.bf16 %v2459_v45  ;;  %v2458_v19 = vld [vmem:[#allocation10 + $0x120] sm:$0xff] }
 0x3a5   :  { %4107 = vmatprep.subr.bf16.mxu0 %v3911_v21  ;;  %4271 = vmatprep.subr.bf16.mxu1 %v3913_v22  ;;  %v3005_v21 = vunpack.c.l.s8.bf16 %v2461_v15  ;;  %v2460_v22 = vld [vmem:[#allocation10 + $0x130] sm:$0xff]  ;;  %v3002_v23 = vunpack.c.l.s8.bf16 %v2458_v19 }
 0x3a6   :  { %v3004_v12 = vunpack.c.l.s8.bf16 %v2460_v22 }
 0x3a8   :  { %4108 = vmatpush1.bf16.msra.mxu0 %v3910_v27  ;;  %4272 = vmatpush1.bf16.msra.mxu1 %v3912_v28  ;;  %v3019_v27 = vunpack.c.h.s8.bf16 %v2459_v45  ;;  %v3021_v28 = vunpack.c.h.s8.bf16 %v2461_v15  ;;  %v2523_v45 = vld [vmem:[#allocation10 + $0x328] sm:$0xff]  ;;  %v2525_v15 = vld [vmem:[#allocation10 + $0x338] sm:$0xff] }
 0x3a9   :  { %4109 = vmatprep.subr.bf16.mxu0 %v3927_v33  ;;  %4273 = vmatprep.subr.bf16.mxu1 %v3929_v34  ;;  %v3018_v33 = vunpack.c.h.s8.bf16 %v2458_v19  ;;  %v3020_v34 = vunpack.c.h.s8.bf16 %v2460_v22  ;;  %v2522_v19 = vld [vmem:[#allocation10 + $0x320] sm:$0xff]  ;;  %v2524_v22 = vld [vmem:[#allocation10 + $0x330] sm:$0xff] }
 0x3ac   :  { %4110 = vmatpush1.bf16.msra.mxu0 %v3926_v36  ;;  %4274 = vmatpush1.bf16.msra.mxu1 %v3928_v37  ;;  %v3037_v36 = vunpack.c.l.s8.bf16 %v2477_v31  ;;  %v2476_v37 = vld [vmem:[#allocation10 + $0x1b0] sm:$0xff]  ;;  %v2541_v31 = vld [vmem:[#allocation10 + $0x3b8] sm:$0xff] }
 0x3ad   :  { %4111 = vmatprep.subr.bf16.mxu0 %v3943_v32  ;;  %4275 = vmatprep.subr.bf16.mxu1 %v3945_v38  ;;  %v3036_v32 = vunpack.c.l.s8.bf16 %v2476_v37  ;;  %v3051_v38 = vunpack.c.h.s8.bf16 %v2475_v30  ;;  %v3052_v48 = vunpack.c.h.s8.bf16 %v2476_v37  ;;  %v2539_v30 = vld [vmem:[#allocation10 + $0x3a8] sm:$0xff]  ;;  %v2540_v37 = vld [vmem:[#allocation10 + $0x3b0] sm:$0xff] }
 0x3b0   :  { %4112 = vmatpush1.bf16.msra.mxu0 %v3942_v42  ;;  %4276 = vmatpush1.bf16.msra.mxu1 %v3944_v47  ;;  %v2493_v42 = vld [vmem:[#allocation10 + $0x238] sm:$0xff]  ;;  %v3050_v47 = vunpack.c.h.s8.bf16 %v2474_v43  ;;  %v2538_v43 = vld [vmem:[#allocation10 + $0x3a0] sm:$0xff] }
 0x3b1   :  { %4286 = vmatprep.subr.bf16.mxu0 %v2939_v50  ;;  %4450 = vmatprep.subr.bf16.mxu1 %v2941_v52  ;;  %v3067_v50 = vunpack.c.l.s8.bf16 %v2491_v41  ;;  %v2490_v52 = vld [vmem:[#allocation10 + $0x220] sm:$0xff]  ;;  %v3069_v55 = vunpack.c.l.s8.bf16 %v2493_v42 }
 0x3b3   :  { %4114 = vmatmul.mubr.bf16.vlgmr.msra.gmra.mrb[12].mxu0 %v8667_v57  ;;  %4278 = vmatmul.mubr.bf16.vlgmr.msra.gmra.mrb[12].mxu1 %v8667_v57 }
 0x3b4   :  { %4287 = vmatpush1.bf16.msra.mxu0 %v2938_v24  ;;  %4318 = vmatprep.mubr.bf16.mxu0 %v8614_v51  ;;  %v3066_v24 = vunpack.c.l.s8.bf16 %v2490_v52 }
 0x3b5   :  { %4451 = vmatpush1.bf16.msra.mxu1 %v2940_v58  ;;  %4482 = vmatprep.mubr.bf16.mxu1 %v8614_v51  ;;  %v3068_v58 = vunpack.c.l.s8.bf16 %v2492_v56 }
 0x3b6   :  { %4288 = vmatprep.subr.bf16.mxu0 %v2955_v0  ;;  %4452 = vmatprep.subr.bf16.mxu1 %v2957_v1  ;;  %v3083_v0 = vunpack.c.h.s8.bf16 %v2491_v41  ;;  %v3085_v1 = vunpack.c.h.s8.bf16 %v2493_v42  ;;  %v2555_v41 = vld [vmem:[#allocation10 + $0x428] sm:$0xff]  ;;  %v2557_v42 = vld [vmem:[#allocation10 + $0x438] sm:$0xff] }
 0x3b8   :  { %4289 = vmatpush1.bf16.msra.mxu0 %v2954_v3  ;;  %v3082_v3 = vunpack.c.h.s8.bf16 %v2490_v52  ;;  %v2554_v52 = vld [vmem:[#allocation10 + $0x420] sm:$0xff] }
 0x3b9   :  { %4453 = vmatpush1.bf16.msra.mxu1 %v2956_v4  ;;  %4290 = vmatprep.subr.bf16.mxu0 %v2971_v5  ;;  %v3084_v4 = vunpack.c.h.s8.bf16 %v2492_v56  ;;  %v3099_v5 = vunpack.c.l.s8.bf16 %v2507_v2  ;;  %v2556_v56 = vld [vmem:[#allocation10 + $0x430] sm:$0xff] }
 0x3ba   :  { %4454 = vmatprep.subr.bf16.mxu1 %v2973_v8  ;;  %v3101_v8 = vunpack.c.l.s8.bf16 %v2509_v63 }
 0x3bc   :  { %4291 = vmatpush1.bf16.msra.mxu0 %v2970_v9  ;;  %v3098_v9 = vunpack.c.l.s8.bf16 %v2506_v6 }
 0x3bd   :  { %4455 = vmatpush1.bf16.msra.mxu1 %v2972_v10  ;;  %4292 = vmatprep.subr.bf16.mxu0 %v2987_v13  ;;  %v3100_v10 = vunpack.c.l.s8.bf16 %v2508_v29  ;;  %v3115_v13 = vunpack.c.h.s8.bf16 %v2507_v2  ;;  %v3213_v2 = vunpack.c.h.s8.bf16 %v2557_v42 }
 0x3be   :  { %4456 = vmatprep.subr.bf16.mxu1 %v2989_v14  ;;  %v3117_v14 = vunpack.c.h.s8.bf16 %v2509_v63  ;;  %v2573_v63 = vld [vmem:[#allocation10 + $0x4b8] sm:$0xff] }
 0x3c0   :  { %4293 = vmatpush1.bf16.msra.mxu0 %v2986_v16  ;;  %v3114_v16 = vunpack.c.h.s8.bf16 %v2506_v6  ;;  %v2570_v6 = vld [vmem:[#allocation10 + $0x4a0] sm:$0xff] }
 0x3c1   :  { %4457 = vmatpush1.bf16.msra.mxu1 %v2988_v17  ;;  %4294 = vmatprep.subr.bf16.mxu0 %v3003_v18  ;;  %v3116_v17 = vunpack.c.h.s8.bf16 %v2508_v29  ;;  %v3131_v18 = vunpack.c.l.s8.bf16 %v2523_v45  ;;  %v2572_v29 = vld [vmem:[#allocation10 + $0x4b0] sm:$0xff] }
 0x3c2   :  { %4458 = vmatprep.subr.bf16.mxu1 %v3005_v21  ;;  %v3133_v21 = vunpack.c.l.s8.bf16 %v2525_v15 }
 0x3c4   :  { %4295 = vmatpush1.bf16.msra.mxu0 %v3002_v23  ;;  %v3130_v23 = vunpack.c.l.s8.bf16 %v2522_v19 }
 0x3c5   :  { %4459 = vmatpush1.bf16.msra.mxu1 %v3004_v12  ;;  %4296 = vmatprep.subr.bf16.mxu0 %v3019_v27  ;;  %v3132_v12 = vunpack.c.l.s8.bf16 %v2524_v22  ;;  %v3147_v27 = vunpack.c.h.s8.bf16 %v2523_v45  ;;  %v2587_v45 = vld [vmem:[#allocation10 + $0x528] sm:$0xff] }
 0x3c6   :  { %4460 = vmatprep.subr.bf16.mxu1 %v3021_v28  ;;  %v3149_v28 = vunpack.c.h.s8.bf16 %v2525_v15  ;;  %v2589_v15 = vld [vmem:[#allocation10 + $0x538] sm:$0xff] }
 0x3c8   :  { %4297 = vmatpush1.bf16.msra.mxu0 %v3018_v33  ;;  %v3146_v33 = vunpack.c.h.s8.bf16 %v2522_v19  ;;  %v2586_v19 = vld [vmem:[#allocation10 + $0x520] sm:$0xff] }
 0x3c9   :  { %4461 = vmatpush1.bf16.msra.mxu1 %v3020_v34  ;;  %4298 = vmatprep.subr.bf16.mxu0 %v3035_v35  ;;  %v3148_v34 = vunpack.c.h.s8.bf16 %v2524_v22  ;;  %v3163_v35 = vunpack.c.l.s8.bf16 %v2539_v30  ;;  %v2588_v22 = vld [vmem:[#allocation10 + $0x530] sm:$0xff] }
 0x3ca   :  { %4462 = vmatprep.subr.bf16.mxu1 %v3037_v36  ;;  %v3165_v36 = vunpack.c.l.s8.bf16 %v2541_v31 }
 0x3cc   :  { %4299 = vmatpush1.bf16.msra.mxu0 %v3034_v25  ;;  %v3162_v25 = vunpack.c.l.s8.bf16 %v2538_v43 }
 0x3cd   :  { %4463 = vmatpush1.bf16.msra.mxu1 %v3036_v32  ;;  %4300 = vmatprep.subr.bf16.mxu0 %v3051_v38  ;;  %v3164_v32 = vunpack.c.l.s8.bf16 %v2540_v37  ;;  %v3179_v38 = vunpack.c.h.s8.bf16 %v2539_v30  ;;  %v2603_v30 = vld [vmem:[#allocation10 + $0x5a8] sm:$0xff] }
 0x3ce   :  { %4464 = vmatprep.subr.bf16.mxu1 %v3053_v40  ;;  %v3181_v40 = vunpack.c.h.s8.bf16 %v2541_v31  ;;  %v2605_v31 = vld [vmem:[#allocation10 + $0x5b8] sm:$0xff] }
 0x3d0   :  { %4301 = vmatpush1.bf16.msra.mxu0 %v3050_v47  ;;  %v3178_v47 = vunpack.c.h.s8.bf16 %v2538_v43  ;;  %v2602_v43 = vld [vmem:[#allocation10 + $0x5a0] sm:$0xff] }
 0x3d1   :  { %4465 = vmatpush1.bf16.msra.mxu1 %v3052_v48  ;;  %4302 = vmatprep.subr.bf16.mxu0 %v3067_v50  ;;  %v3180_v48 = vunpack.c.h.s8.bf16 %v2540_v37  ;;  %v3195_v50 = vunpack.c.l.s8.bf16 %v2555_v41  ;;  %v2604_v37 = vld [vmem:[#allocation10 + $0x5b0] sm:$0xff] }
 0x3d2   :  { %4466 = vmatprep.subr.bf16.mxu1 %v3069_v55  ;;  %v3197_v55 = vunpack.c.l.s8.bf16 %v2557_v42  ;;  %v2621_v42 = vld [vmem:[#allocation10 + $0x638] sm:$0xff] }
 0x3d4   :  { %4303 = vmatpush1.bf16.msra.mxu0 %v3066_v24  ;;  %v3194_v24 = vunpack.c.l.s8.bf16 %v2554_v52 }
 0x3d5   :  { %4467 = vmatpush1.bf16.msra.mxu1 %v3068_v58  ;;  %4304 = vmatprep.subr.bf16.mxu0 %v3083_v0  ;;  %v3196_v58 = vunpack.c.l.s8.bf16 %v2556_v56  ;;  %v3211_v0 = vunpack.c.h.s8.bf16 %v2555_v41  ;;  %v2619_v41 = vld [vmem:[#allocation10 + $0x628] sm:$0xff] }
 0x3d6   :  { %4468 = vmatprep.subr.bf16.mxu1 %v3085_v1  ;;  %v2571_v1 = vld [vmem:[#allocation10 + $0x4a8] sm:$0xff] }
 0x3d8   :  { %4305 = vmatpush1.bf16.msra.mxu0 %v3082_v3  ;;  %v3210_v3 = vunpack.c.h.s8.bf16 %v2554_v52  ;;  %v2618_v52 = vld [vmem:[#allocation10 + $0x620] sm:$0xff] }
 0x3d9   :  { %4469 = vmatpush1.bf16.msra.mxu1 %v3084_v4  ;;  %4306 = vmatprep.subr.bf16.mxu0 %v3099_v5  ;;  %v3212_v4 = vunpack.c.h.s8.bf16 %v2556_v56  ;;  %v3227_v5 = vunpack.c.l.s8.bf16 %v2571_v1  ;;  %v2620_v56 = vld [vmem:[#allocation10 + $0x630] sm:$0xff] }
 0x3da   :  { %4470 = vmatprep.subr.bf16.mxu1 %v3101_v8  ;;  %v3229_v8 = vunpack.c.l.s8.bf16 %v2573_v63 }
 0x3dc   :  { %4307 = vmatpush1.bf16.msra.mxu0 %v3098_v9  ;;  %v3226_v9 = vunpack.c.l.s8.bf16 %v2570_v6 }
 0x3dd   :  { %4471 = vmatpush1.bf16.msra.mxu1 %v3100_v10  ;;  %4308 = vmatprep.subr.bf16.mxu0 %v3115_v13  ;;  %v3228_v10 = vunpack.c.l.s8.bf16 %v2572_v29  ;;  %v3243_v13 = vunpack.c.h.s8.bf16 %v2571_v1  ;;  %v3341_v1 = vunpack.c.h.s8.bf16 %v2621_v42 }
 0x3de   :  { %4472 = vmatprep.subr.bf16.mxu1 %v3117_v14  ;;  %v3245_v14 = vunpack.c.h.s8.bf16 %v2573_v63  ;;  %v2637_v63 = vld [vmem:[#allocation10 + $0x6b8] sm:$0xff] }
 0x3e0   :  { %4309 = vmatpush1.bf16.msra.mxu0 %v3114_v16  ;;  %v3242_v16 = vunpack.c.h.s8.bf16 %v2570_v6  ;;  %v2634_v6 = vld [vmem:[#allocation10 + $0x6a0] sm:$0xff] }
 0x3e1   :  { %4473 = vmatpush1.bf16.msra.mxu1 %v3116_v17  ;;  %4310 = vmatprep.subr.bf16.mxu0 %v3131_v18  ;;  %v3244_v17 = vunpack.c.h.s8.bf16 %v2572_v29  ;;  %v3259_v18 = vunpack.c.l.s8.bf16 %v2587_v45  ;;  %v2636_v29 = vld [vmem:[#allocation10 + $0x6b0] sm:$0xff] }
 0x3e2   :  { %4474 = vmatprep.subr.bf16.mxu1 %v3133_v21  ;;  %v3261_v21 = vunpack.c.l.s8.bf16 %v2589_v15 }
 0x3e4   :  { %4311 = vmatpush1.bf16.msra.mxu0 %v3130_v23  ;;  %v3258_v23 = vunpack.c.l.s8.bf16 %v2586_v19 }
 0x3e5   :  { %4475 = vmatpush1.bf16.msra.mxu1 %v3132_v12  ;;  %4312 = vmatprep.subr.bf16.mxu0 %v3147_v27  ;;  %v3260_v12 = vunpack.c.l.s8.bf16 %v2588_v22  ;;  %v3275_v27 = vunpack.c.h.s8.bf16 %v2587_v45  ;;  %v2651_v45 = vld [vmem:[#allocation10 + $0x728] sm:$0xff] }
 0x3e6   :  { %4476 = vmatprep.subr.bf16.mxu1 %v3149_v28  ;;  %v3277_v28 = vunpack.c.h.s8.bf16 %v2589_v15  ;;  %v2653_v15 = vld [vmem:[#allocation10 + $0x738] sm:$0xff] }
 0x3e8   :  { %4313 = vmatpush1.bf16.msra.mxu0 %v3146_v33  ;;  %v3274_v33 = vunpack.c.h.s8.bf16 %v2586_v19  ;;  %v2650_v19 = vld [vmem:[#allocation10 + $0x720] sm:$0xff] }
 0x3e9   :  { %4477 = vmatpush1.bf16.msra.mxu1 %v3148_v34  ;;  %4314 = vmatprep.subr.bf16.mxu0 %v3163_v35  ;;  %v3276_v34 = vunpack.c.h.s8.bf16 %v2588_v22  ;;  %v3291_v35 = vunpack.c.l.s8.bf16 %v2603_v30  ;;  %v2652_v22 = vld [vmem:[#allocation10 + $0x730] sm:$0xff] }
 0x3ea   :  { %4478 = vmatprep.subr.bf16.mxu1 %v3165_v36  ;;  %v3293_v36 = vunpack.c.l.s8.bf16 %v2605_v31 }
 0x3ec   :  { %4315 = vmatpush1.bf16.msra.mxu0 %v3162_v25  ;;  %v3290_v25 = vunpack.c.l.s8.bf16 %v2602_v43 }
 0x3ed   :  { %4479 = vmatpush1.bf16.msra.mxu1 %v3164_v32  ;;  %4316 = vmatprep.subr.bf16.mxu0 %v3179_v38  ;;  %v3292_v32 = vunpack.c.l.s8.bf16 %v2604_v37  ;;  %v3307_v38 = vunpack.c.h.s8.bf16 %v2603_v30  ;;  %v2667_v30 = vld [vmem:[#allocation10 + $0x7a8] sm:$0xff] }
 0x3ee   :  { %4480 = vmatprep.subr.bf16.mxu1 %v3181_v40  ;;  %v3309_v40 = vunpack.c.h.s8.bf16 %v2605_v31  ;;  %v2669_v31 = vld [vmem:[#allocation10 + $0x7b8] sm:$0xff] }
 0x3f0   :  { %4317 = vmatpush1.bf16.msra.mxu0 %v3178_v47  ;;  %v3306_v47 = vunpack.c.h.s8.bf16 %v2602_v43  ;;  %v2666_v43 = vld [vmem:[#allocation10 + $0x7a0] sm:$0xff] }
 0x3f1   :  { %4481 = vmatpush1.bf16.msra.mxu1 %v3180_v48  ;;  %4327 = vmatprep.subr.bf16.mxu0 %v3195_v50  ;;  %v3308_v48 = vunpack.c.h.s8.bf16 %v2604_v37  ;;  %v3323_v50 = vunpack.c.l.s8.bf16 %v2619_v41  ;;  %v2668_v37 = vld [vmem:[#allocation10 + $0x7b0] sm:$0xff] }
 0x3f2   :  { %4491 = vmatprep.subr.bf16.mxu1 %v3197_v55  ;;  %v3325_v55 = vunpack.c.l.s8.bf16 %v2621_v42  ;;  %v2685_v42 = vld [vmem:[#allocation10 + $0x838] sm:$0xff] }
 0x3f3   :  { %4319 = vmatmul.mubr.bf16.vlgmr.msra.gmra.mrb[16].mxu0 %v8616_v54 }
 0x3f4   :  { %4483 = vmatmul.mubr.bf16.vlgmr.msra.gmra.mrb[16].mxu1 %v8616_v54  ;;  %4328 = vmatpush1.bf16.msra.mxu0 %v3194_v24  ;;  %v3322_v24 = vunpack.c.l.s8.bf16 %v2618_v52 }
 0x3f5   :  { %4359 = vmatprep.mubr.bf16.mxu0 %v8620_v59  ;;  %4492 = vmatpush1.bf16.msra.mxu1 %v3196_v58  ;;  %v3324_v58 = vunpack.c.l.s8.bf16 %v2620_v56 }
 0x3f6   :  { %4523 = vmatprep.mubr.bf16.mxu1 %v8620_v59  ;;  %4329 = vmatprep.subr.bf16.mxu0 %v3211_v0  ;;  %v3339_v0 = vunpack.c.h.s8.bf16 %v2619_v41  ;;  %v2683_v41 = vld [vmem:[#allocation10 + $0x828] sm:$0xff] }
 0x3f7   :  { %4493 = vmatprep.subr.bf16.mxu1 %v3213_v2  ;;  %v2635_v2 = vld [vmem:[#allocation10 + $0x6a8] sm:$0xff] }
 0x3f8   :  { %4330 = vmatpush1.bf16.msra.mxu0 %v3210_v3  ;;  %v3338_v3 = vunpack.c.h.s8.bf16 %v2618_v52  ;;  %v2682_v52 = vld [vmem:[#allocation10 + $0x820] sm:$0xff] }
 0x3f9   :  { %4494 = vmatpush1.bf16.msra.mxu1 %v3212_v4  ;;  %4331 = vmatprep.subr.bf16.mxu0 %v3227_v5  ;;  %v3340_v4 = vunpack.c.h.s8.bf16 %v2620_v56  ;;  %v3355_v5 = vunpack.c.l.s8.bf16 %v2635_v2  ;;  %v2684_v56 = vld [vmem:[#allocation10 + $0x830] sm:$0xff] }
 0x3fa   :  { %4495 = vmatprep.subr.bf16.mxu1 %v3229_v8  ;;  %v3357_v8 = vunpack.c.l.s8.bf16 %v2637_v63 }
 0x3fc   :  { %4332 = vmatpush1.bf16.msra.mxu0 %v3226_v9  ;;  %v3354_v9 = vunpack.c.l.s8.bf16 %v2634_v6 }
 0x3fd   :  { %4496 = vmatpush1.bf16.msra.mxu1 %v3228_v10  ;;  %4333 = vmatprep.subr.bf16.mxu0 %v3243_v13  ;;  %v3356_v10 = vunpack.c.l.s8.bf16 %v2636_v29  ;;  %v3371_v13 = vunpack.c.h.s8.bf16 %v2635_v2  ;;  %v3469_v2 = vunpack.c.h.s8.bf16 %v2685_v42 }
 0x3fe   :  { %4497 = vmatprep.subr.bf16.mxu1 %v3245_v14  ;;  %v3373_v14 = vunpack.c.h.s8.bf16 %v2637_v63  ;;  %v2701_v63 = vld [vmem:[#allocation10 + $0x8b8] sm:$0xff] }
 0x400   :  { %4334 = vmatpush1.bf16.msra.mxu0 %v3242_v16  ;;  %v3370_v16 = vunpack.c.h.s8.bf16 %v2634_v6  ;;  %v2698_v6 = vld [vmem:[#allocation10 + $0x8a0] sm:$0xff] }
 0x401   :  { %4498 = vmatpush1.bf16.msra.mxu1 %v3244_v17  ;;  %4335 = vmatprep.subr.bf16.mxu0 %v3259_v18  ;;  %v3372_v17 = vunpack.c.h.s8.bf16 %v2636_v29  ;;  %v3387_v18 = vunpack.c.l.s8.bf16 %v2651_v45  ;;  %v2700_v29 = vld [vmem:[#allocation10 + $0x8b0] sm:$0xff] }
 0x402   :  { %4499 = vmatprep.subr.bf16.mxu1 %v3261_v21  ;;  %v3389_v21 = vunpack.c.l.s8.bf16 %v2653_v15 }
 0x404   :  { %4336 = vmatpush1.bf16.msra.mxu0 %v3258_v23  ;;  %v3386_v23 = vunpack.c.l.s8.bf16 %v2650_v19 }
 0x405   :  { %4500 = vmatpush1.bf16.msra.mxu1 %v3260_v12  ;;  %4337 = vmatprep.subr.bf16.mxu0 %v3275_v27  ;;  %v3388_v12 = vunpack.c.l.s8.bf16 %v2652_v22  ;;  %v3403_v27 = vunpack.c.h.s8.bf16 %v2651_v45  ;;  %v2715_v45 = vld [vmem:[#allocation10 + $0x928] sm:$0xff] }
 0x406   :  { %4501 = vmatprep.subr.bf16.mxu1 %v3277_v28  ;;  %v3405_v28 = vunpack.c.h.s8.bf16 %v2653_v15  ;;  %v2717_v15 = vld [vmem:[#allocation10 + $0x938] sm:$0xff] }
 0x408   :  { %4338 = vmatpush1.bf16.msra.mxu0 %v3274_v33  ;;  %v3402_v33 = vunpack.c.h.s8.bf16 %v2650_v19  ;;  %v2714_v19 = vld [vmem:[#allocation10 + $0x920] sm:$0xff] }
 0x409   :  { %4502 = vmatpush1.bf16.msra.mxu1 %v3276_v34  ;;  %4339 = vmatprep.subr.bf16.mxu0 %v3291_v35  ;;  %v3404_v34 = vunpack.c.h.s8.bf16 %v2652_v22  ;;  %v3419_v35 = vunpack.c.l.s8.bf16 %v2667_v30  ;;  %v2716_v22 = vld [vmem:[#allocation10 + $0x930] sm:$0xff] }
 0x40a   :  { %4503 = vmatprep.subr.bf16.mxu1 %v3293_v36  ;;  %v3421_v36 = vunpack.c.l.s8.bf16 %v2669_v31 }
 0x40c   :  { %4340 = vmatpush1.bf16.msra.mxu0 %v3290_v25  ;;  %v3418_v25 = vunpack.c.l.s8.bf16 %v2666_v43 }
 0x40d   :  { %4504 = vmatpush1.bf16.msra.mxu1 %v3292_v32  ;;  %4341 = vmatprep.subr.bf16.mxu0 %v3307_v38  ;;  %v3420_v32 = vunpack.c.l.s8.bf16 %v2668_v37  ;;  %v3435_v38 = vunpack.c.h.s8.bf16 %v2667_v30  ;;  %v2731_v30 = vld [vmem:[#allocation10 + $0x9a8] sm:$0xff] }
 0x40e   :  { %4505 = vmatprep.subr.bf16.mxu1 %v3309_v40  ;;  %v3437_v40 = vunpack.c.h.s8.bf16 %v2669_v31  ;;  %v2733_v31 = vld [vmem:[#allocation10 + $0x9b8] sm:$0xff] }
 0x410   :  { %4342 = vmatpush1.bf16.msra.mxu0 %v3306_v47  ;;  %v3434_v47 = vunpack.c.h.s8.bf16 %v2666_v43  ;;  %v2730_v43 = vld [vmem:[#allocation10 + $0x9a0] sm:$0xff] }
 0x411   :  { %4506 = vmatpush1.bf16.msra.mxu1 %v3308_v48  ;;  %4343 = vmatprep.subr.bf16.mxu0 %v3323_v50  ;;  %v3436_v48 = vunpack.c.h.s8.bf16 %v2668_v37  ;;  %v3451_v50 = vunpack.c.l.s8.bf16 %v2683_v41  ;;  %v2732_v37 = vld [vmem:[#allocation10 + $0x9b0] sm:$0xff] }
 0x412   :  { %4507 = vmatprep.subr.bf16.mxu1 %v3325_v55  ;;  %v3453_v55 = vunpack.c.l.s8.bf16 %v2685_v42  ;;  %v2749_v42 = vld [vmem:[#allocation10 + $0xa38] sm:$0xff] }
 0x414   :  { %4344 = vmatpush1.bf16.msra.mxu0 %v3322_v24  ;;  %v3450_v24 = vunpack.c.l.s8.bf16 %v2682_v52 }
 0x415   :  { %4508 = vmatpush1.bf16.msra.mxu1 %v3324_v58  ;;  %4345 = vmatprep.subr.bf16.mxu0 %v3339_v0  ;;  %v3452_v58 = vunpack.c.l.s8.bf16 %v2684_v56  ;;  %v3467_v0 = vunpack.c.h.s8.bf16 %v2683_v41  ;;  %v2747_v41 = vld [vmem:[#allocation10 + $0xa28] sm:$0xff] }
 0x416   :  { %4509 = vmatprep.subr.bf16.mxu1 %v3341_v1  ;;  %v2699_v1 = vld [vmem:[#allocation10 + $0x8a8] sm:$0xff] }
 0x418   :  { %4346 = vmatpush1.bf16.msra.mxu0 %v3338_v3  ;;  %v3466_v3 = vunpack.c.h.s8.bf16 %v2682_v52  ;;  %v2746_v52 = vld [vmem:[#allocation10 + $0xa20] sm:$0xff] }
 0x419   :  { %4510 = vmatpush1.bf16.msra.mxu1 %v3340_v4  ;;  %4347 = vmatprep.subr.bf16.mxu0 %v3355_v5  ;;  %v3468_v4 = vunpack.c.h.s8.bf16 %v2684_v56  ;;  %v3483_v5 = vunpack.c.l.s8.bf16 %v2699_v1  ;;  %v2748_v56 = vld [vmem:[#allocation10 + $0xa30] sm:$0xff] }
 0x41a   :  { %4511 = vmatprep.subr.bf16.mxu1 %v3357_v8  ;;  %v3485_v8 = vunpack.c.l.s8.bf16 %v2701_v63 }
 0x41c   :  { %4348 = vmatpush1.bf16.msra.mxu0 %v3354_v9  ;;  %v3482_v9 = vunpack.c.l.s8.bf16 %v2698_v6 }
 0x41d   :  { %4512 = vmatpush1.bf16.msra.mxu1 %v3356_v10  ;;  %4349 = vmatprep.subr.bf16.mxu0 %v3371_v13  ;;  %v3484_v10 = vunpack.c.l.s8.bf16 %v2700_v29  ;;  %v3499_v13 = vunpack.c.h.s8.bf16 %v2699_v1  ;;  %v3597_v1 = vunpack.c.h.s8.bf16 %v2749_v42 }
 0x41e   :  { %4513 = vmatprep.subr.bf16.mxu1 %v3373_v14  ;;  %v3501_v14 = vunpack.c.h.s8.bf16 %v2701_v63  ;;  %v2765_v63 = vld [vmem:[#allocation10 + $0xab8] sm:$0xff] }
 0x420   :  { %4350 = vmatpush1.bf16.msra.mxu0 %v3370_v16  ;;  %v3498_v16 = vunpack.c.h.s8.bf16 %v2698_v6  ;;  %v2762_v6 = vld [vmem:[#allocation10 + $0xaa0] sm:$0xff] }
 0x421   :  { %4514 = vmatpush1.bf16.msra.mxu1 %v3372_v17  ;;  %4351 = vmatprep.subr.bf16.mxu0 %v3387_v18  ;;  %v3500_v17 = vunpack.c.h.s8.bf16 %v2700_v29  ;;  %v3515_v18 = vunpack.c.l.s8.bf16 %v2715_v45  ;;  %v2764_v29 = vld [vmem:[#allocation10 + $0xab0] sm:$0xff] }
 0x422   :  { %4515 = vmatprep.subr.bf16.mxu1 %v3389_v21  ;;  %v3517_v21 = vunpack.c.l.s8.bf16 %v2717_v15 }
 0x424   :  { %4352 = vmatpush1.bf16.msra.mxu0 %v3386_v23  ;;  %v3514_v23 = vunpack.c.l.s8.bf16 %v2714_v19 }
 0x425   :  { %4516 = vmatpush1.bf16.msra.mxu1 %v3388_v12  ;;  %4353 = vmatprep.subr.bf16.mxu0 %v3403_v27  ;;  %v3516_v12 = vunpack.c.l.s8.bf16 %v2716_v22  ;;  %v3531_v27 = vunpack.c.h.s8.bf16 %v2715_v45  ;;  %v2779_v45 = vld [vmem:[#allocation10 + $0xb28] sm:$0xff] }
 0x426   :  { %4517 = vmatprep.subr.bf16.mxu1 %v3405_v28  ;;  %v3533_v28 = vunpack.c.h.s8.bf16 %v2717_v15  ;;  %v2781_v15 = vld [vmem:[#allocation10 + $0xb38] sm:$0xff] }
 0x428   :  { %4354 = vmatpush1.bf16.msra.mxu0 %v3402_v33  ;;  %v3530_v33 = vunpack.c.h.s8.bf16 %v2714_v19  ;;  %v2778_v19 = vld [vmem:[#allocation10 + $0xb20] sm:$0xff] }
 0x429   :  { %4518 = vmatpush1.bf16.msra.mxu1 %v3404_v34  ;;  %4355 = vmatprep.subr.bf16.mxu0 %v3419_v35  ;;  %v3532_v34 = vunpack.c.h.s8.bf16 %v2716_v22  ;;  %v3547_v35 = vunpack.c.l.s8.bf16 %v2731_v30  ;;  %v2780_v22 = vld [vmem:[#allocation10 + $0xb30] sm:$0xff] }
 0x42a   :  { %4519 = vmatprep.subr.bf16.mxu1 %v3421_v36  ;;  %v3549_v36 = vunpack.c.l.s8.bf16 %v2733_v31 }
 0x42c   :  { %4356 = vmatpush1.bf16.msra.mxu0 %v3418_v25  ;;  %v3546_v25 = vunpack.c.l.s8.bf16 %v2730_v43 }
 0x42d   :  { %4520 = vmatpush1.bf16.msra.mxu1 %v3420_v32  ;;  %4357 = vmatprep.subr.bf16.mxu0 %v3435_v38  ;;  %v3548_v32 = vunpack.c.l.s8.bf16 %v2732_v37  ;;  %v3563_v38 = vunpack.c.h.s8.bf16 %v2731_v30  ;;  %v2795_v30 = vld [vmem:[#allocation10 + $0xba8] sm:$0xff] }
 0x42e   :  { %4521 = vmatprep.subr.bf16.mxu1 %v3437_v40  ;;  %v3565_v40 = vunpack.c.h.s8.bf16 %v2733_v31  ;;  %v2797_v31 = vld [vmem:[#allocation10 + $0xbb8] sm:$0xff] }
 0x430   :  { %4358 = vmatpush1.bf16.msra.mxu0 %v3434_v47  ;;  %v3562_v47 = vunpack.c.h.s8.bf16 %v2730_v43  ;;  %v2794_v43 = vld [vmem:[#allocation10 + $0xba0] sm:$0xff] }
 0x431   :  { %4522 = vmatpush1.bf16.msra.mxu1 %v3436_v48  ;;  %4368 = vmatprep.subr.bf16.mxu0 %v3451_v50  ;;  %v3564_v48 = vunpack.c.h.s8.bf16 %v2732_v37  ;;  %v3579_v50 = vunpack.c.l.s8.bf16 %v2747_v41  ;;  %v2796_v37 = vld [vmem:[#allocation10 + $0xbb0] sm:$0xff] }
 0x432   :  { %4532 = vmatprep.subr.bf16.mxu1 %v3453_v55  ;;  %v3581_v55 = vunpack.c.l.s8.bf16 %v2749_v42  ;;  %v2813_v42 = vld [vmem:[#allocation10 + $0xc38] sm:$0xff] }
 0x433   :  { %4360 = vmatmul.mubr.bf16.vlgmr.msra.gmra.mrb[16].mxu0 %v8629_v39 }
 0x434   :  { %4524 = vmatmul.mubr.bf16.vlgmr.msra.gmra.mrb[16].mxu1 %v8629_v39  ;;  %4369 = vmatpush1.bf16.msra.mxu0 %v3450_v24  ;;  %v3578_v24 = vunpack.c.l.s8.bf16 %v2746_v52 }
 0x435   :  { %4400 = vmatprep.mubr.bf16.mxu0 %v8650_v49  ;;  %4533 = vmatpush1.bf16.msra.mxu1 %v3452_v58  ;;  %v3580_v58 = vunpack.c.l.s8.bf16 %v2748_v56 }
 0x436   :  { %4564 = vmatprep.mubr.bf16.mxu1 %v8650_v49  ;;  %4370 = vmatprep.subr.bf16.mxu0 %v3467_v0  ;;  %v3595_v0 = vunpack.c.h.s8.bf16 %v2747_v41  ;;  %v2811_v41 = vld [vmem:[#allocation10 + $0xc28] sm:$0xff] }
 0x437   :  { %4534 = vmatprep.subr.bf16.mxu1 %v3469_v2  ;;  %v2763_v2 = vld [vmem:[#allocation10 + $0xaa8] sm:$0xff] }
 0x438   :  { %4371 = vmatpush1.bf16.msra.mxu0 %v3466_v3  ;;  %v3594_v3 = vunpack.c.h.s8.bf16 %v2746_v52  ;;  %v2810_v52 = vld [vmem:[#allocation10 + $0xc20] sm:$0xff] }
 0x439   :  { %4535 = vmatpush1.bf16.msra.mxu1 %v3468_v4  ;;  %4372 = vmatprep.subr.bf16.mxu0 %v3483_v5  ;;  %v3596_v4 = vunpack.c.h.s8.bf16 %v2748_v56  ;;  %v3611_v5 = vunpack.c.l.s8.bf16 %v2763_v2  ;;  %v2812_v56 = vld [vmem:[#allocation10 + $0xc30] sm:$0xff] }
 0x43a   :  { %4536 = vmatprep.subr.bf16.mxu1 %v3485_v8  ;;  %v3613_v8 = vunpack.c.l.s8.bf16 %v2765_v63 }
 0x43c   :  { %4373 = vmatpush1.bf16.msra.mxu0 %v3482_v9  ;;  %v3610_v9 = vunpack.c.l.s8.bf16 %v2762_v6 }
 0x43d   :  { %4537 = vmatpush1.bf16.msra.mxu1 %v3484_v10  ;;  %4374 = vmatprep.subr.bf16.mxu0 %v3499_v13  ;;  %v3612_v10 = vunpack.c.l.s8.bf16 %v2764_v29  ;;  %v3627_v13 = vunpack.c.h.s8.bf16 %v2763_v2  ;;  %v3725_v2 = vunpack.c.h.s8.bf16 %v2813_v42 }
 0x43e   :  { %4538 = vmatprep.subr.bf16.mxu1 %v3501_v14  ;;  %v3629_v14 = vunpack.c.h.s8.bf16 %v2765_v63  ;;  %v2829_v63 = vld [vmem:[#allocation10 + $0xcb8] sm:$0xff] }
 0x440   :  { %4375 = vmatpush1.bf16.msra.mxu0 %v3498_v16  ;;  %v3626_v16 = vunpack.c.h.s8.bf16 %v2762_v6  ;;  %v2826_v6 = vld [vmem:[#allocation10 + $0xca0] sm:$0xff] }
 0x441   :  { %4539 = vmatpush1.bf16.msra.mxu1 %v3500_v17  ;;  %4376 = vmatprep.subr.bf16.mxu0 %v3515_v18  ;;  %v3628_v17 = vunpack.c.h.s8.bf16 %v2764_v29  ;;  %v3643_v18 = vunpack.c.l.s8.bf16 %v2779_v45  ;;  %v2828_v29 = vld [vmem:[#allocation10 + $0xcb0] sm:$0xff] }
 0x442   :  { %4540 = vmatprep.subr.bf16.mxu1 %v3517_v21  ;;  %v3645_v21 = vunpack.c.l.s8.bf16 %v2781_v15 }
 0x444   :  { %4377 = vmatpush1.bf16.msra.mxu0 %v3514_v23  ;;  %v3642_v23 = vunpack.c.l.s8.bf16 %v2778_v19 }
 0x445   :  { %4541 = vmatpush1.bf16.msra.mxu1 %v3516_v12  ;;  %4378 = vmatprep.subr.bf16.mxu0 %v3531_v27  ;;  %v3644_v12 = vunpack.c.l.s8.bf16 %v2780_v22  ;;  %v3659_v27 = vunpack.c.h.s8.bf16 %v2779_v45  ;;  %v2843_v45 = vld [vmem:[#allocation10 + $0xd28] sm:$0xff] }
 0x446   :  { %4542 = vmatprep.subr.bf16.mxu1 %v3533_v28  ;;  %v3661_v28 = vunpack.c.h.s8.bf16 %v2781_v15  ;;  %v2845_v15 = vld [vmem:[#allocation10 + $0xd38] sm:$0xff] }
 0x448   :  { %4379 = vmatpush1.bf16.msra.mxu0 %v3530_v33  ;;  %v3658_v33 = vunpack.c.h.s8.bf16 %v2778_v19  ;;  %v2842_v19 = vld [vmem:[#allocation10 + $0xd20] sm:$0xff] }
 0x449   :  { %4543 = vmatpush1.bf16.msra.mxu1 %v3532_v34  ;;  %4380 = vmatprep.subr.bf16.mxu0 %v3547_v35  ;;  %v3660_v34 = vunpack.c.h.s8.bf16 %v2780_v22  ;;  %v3675_v35 = vunpack.c.l.s8.bf16 %v2795_v30  ;;  %v2844_v22 = vld [vmem:[#allocation10 + $0xd30] sm:$0xff] }
 0x44a   :  { %4544 = vmatprep.subr.bf16.mxu1 %v3549_v36  ;;  %v3677_v36 = vunpack.c.l.s8.bf16 %v2797_v31 }
 0x44c   :  { %4381 = vmatpush1.bf16.msra.mxu0 %v3546_v25  ;;  %v3674_v25 = vunpack.c.l.s8.bf16 %v2794_v43 }
 0x44d   :  { %4545 = vmatpush1.bf16.msra.mxu1 %v3548_v32  ;;  %4382 = vmatprep.subr.bf16.mxu0 %v3563_v38  ;;  %v3676_v32 = vunpack.c.l.s8.bf16 %v2796_v37  ;;  %v3691_v38 = vunpack.c.h.s8.bf16 %v2795_v30  ;;  %v2859_v30 = vld [vmem:[#allocation10 + $0xda8] sm:$0xff] }
 0x44e   :  { %4546 = vmatprep.subr.bf16.mxu1 %v3565_v40  ;;  %v3693_v40 = vunpack.c.h.s8.bf16 %v2797_v31  ;;  %v2861_v31 = vld [vmem:[#allocation10 + $0xdb8] sm:$0xff] }
 0x450   :  { %4383 = vmatpush1.bf16.msra.mxu0 %v3562_v47  ;;  %v3690_v47 = vunpack.c.h.s8.bf16 %v2794_v43  ;;  %v2858_v43 = vld [vmem:[#allocation10 + $0xda0] sm:$0xff] }
 0x451   :  { %4547 = vmatpush1.bf16.msra.mxu1 %v3564_v48  ;;  %4384 = vmatprep.subr.bf16.mxu0 %v3579_v50  ;;  %v3692_v48 = vunpack.c.h.s8.bf16 %v2796_v37  ;;  %v3707_v50 = vunpack.c.l.s8.bf16 %v2811_v41 }
 0x452   :  { %4548 = vmatprep.subr.bf16.mxu1 %v3581_v55  ;;  %v3709_v55 = vunpack.c.l.s8.bf16 %v2813_v42 }
 0x454   :  { %4385 = vmatpush1.bf16.msra.mxu0 %v3578_v24  ;;  %v3706_v24 = vunpack.c.l.s8.bf16 %v2810_v52 }
 0x455   :  { %4549 = vmatpush1.bf16.msra.mxu1 %v3580_v58  ;;  %4386 = vmatprep.subr.bf16.mxu0 %v3595_v0  ;;  %v3708_v58 = vunpack.c.l.s8.bf16 %v2812_v56  ;;  %v3723_v0 = vunpack.c.h.s8.bf16 %v2811_v41 }
 0x456   :  { %4550 = vmatprep.subr.bf16.mxu1 %v3597_v1  ;;  %v2827_v1 = vld [vmem:[#allocation10 + $0xca8] sm:$0xff] }
 0x458   :  { %4387 = vmatpush1.bf16.msra.mxu0 %v3594_v3  ;;  %v3722_v3 = vunpack.c.h.s8.bf16 %v2810_v52 }
 0x459   :  { %4551 = vmatpush1.bf16.msra.mxu1 %v3596_v4  ;;  %4388 = vmatprep.subr.bf16.mxu0 %v3611_v5  ;;  %v3724_v4 = vunpack.c.h.s8.bf16 %v2812_v56  ;;  %v3739_v5 = vunpack.c.l.s8.bf16 %v2827_v1  ;;  %v3821_v56 = vunpack.c.h.s8.bf16 %v2861_v31 }
 0x45a   :  { %4552 = vmatprep.subr.bf16.mxu1 %v3613_v8  ;;  %v3741_v8 = vunpack.c.l.s8.bf16 %v2829_v63 }
 0x45c   :  { %4389 = vmatpush1.bf16.msra.mxu0 %v3610_v9  ;;  %v3738_v9 = vunpack.c.l.s8.bf16 %v2826_v6 }
 0x45d   :  { %4553 = vmatpush1.bf16.msra.mxu1 %v3612_v10  ;;  %4390 = vmatprep.subr.bf16.mxu0 %v3627_v13  ;;  %v3740_v10 = vunpack.c.l.s8.bf16 %v2828_v29  ;;  %v3755_v13 = vunpack.c.h.s8.bf16 %v2827_v1 }
 0x45e   :  { %4554 = vmatprep.subr.bf16.mxu1 %v3629_v14  ;;  %v3757_v14 = vunpack.c.h.s8.bf16 %v2829_v63  ;;  %v2874_v63 = vld [vmem:[#allocation10 + $0xe20] sm:$0xff] }
 0x460   :  { %4391 = vmatpush1.bf16.msra.mxu0 %v3626_v16  ;;  %v3754_v16 = vunpack.c.h.s8.bf16 %v2826_v6 }
 0x461   :  { %4555 = vmatpush1.bf16.msra.mxu1 %v3628_v17  ;;  %4392 = vmatprep.subr.bf16.mxu0 %v3643_v18  ;;  %v3756_v17 = vunpack.c.h.s8.bf16 %v2828_v29  ;;  %v3771_v18 = vunpack.c.l.s8.bf16 %v2843_v45 }
 0x462   :  { %4556 = vmatprep.subr.bf16.mxu1 %v3645_v21  ;;  %v3773_v21 = vunpack.c.l.s8.bf16 %v2845_v15 }
 0x464   :  { %4393 = vmatpush1.bf16.msra.mxu0 %v3642_v23  ;;  %v3770_v23 = vunpack.c.l.s8.bf16 %v2842_v19 }
 0x465   :  { %4557 = vmatpush1.bf16.msra.mxu1 %v3644_v12  ;;  %4394 = vmatprep.subr.bf16.mxu0 %v3659_v27  ;;  %v3772_v12 = vunpack.c.l.s8.bf16 %v2844_v22  ;;  %v3787_v27 = vunpack.c.h.s8.bf16 %v2843_v45 }
 0x466   :  { %4558 = vmatprep.subr.bf16.mxu1 %v3661_v28  ;;  %v3789_v28 = vunpack.c.h.s8.bf16 %v2845_v15  ;;  %v2890_v15 = vld [vmem:[#allocation10 + $0xea0] sm:$0xff] }
 0x468   :  { %4395 = vmatpush1.bf16.msra.mxu0 %v3658_v33  ;;  %v3786_v33 = vunpack.c.h.s8.bf16 %v2842_v19 }
 0x469   :  { %4559 = vmatpush1.bf16.msra.mxu1 %v3660_v34  ;;  %4396 = vmatprep.subr.bf16.mxu0 %v3675_v35  ;;  %v3788_v34 = vunpack.c.h.s8.bf16 %v2844_v22  ;;  %v3803_v35 = vunpack.c.l.s8.bf16 %v2859_v30 }
 0x46a   :  { %4560 = vmatprep.subr.bf16.mxu1 %v3677_v36 }
 0x46c   :  { %4397 = vmatpush1.bf16.msra.mxu0 %v3674_v25  ;;  %v3805_v25 = vunpack.c.l.s8.bf16 %v2861_v31  ;;  %v2906_v31 = vld [vmem:[#allocation10 + $0xf20] sm:$0xff] }
 0x46d   :  { %4561 = vmatpush1.bf16.msra.mxu1 %v3676_v32  ;;  %4398 = vmatprep.subr.bf16.mxu0 %v3691_v38  ;;  %v2860_v32 = vld [vmem:[#allocation10 + $0xdb0] sm:$0xff] }
 0x46e   :  { %4562 = vmatprep.subr.bf16.mxu1 %v3693_v40  ;;  %v3804_v52 = vunpack.c.l.s8.bf16 %v2860_v32  ;;  %v3820_v1 = vunpack.c.h.s8.bf16 %v2860_v32 }
 0x470   :  { %4399 = vmatpush1.bf16.msra.mxu0 %v3690_v47  ;;  %v3802_v47 = vunpack.c.l.s8.bf16 %v2858_v43 }
 0x471   :  { %4563 = vmatpush1.bf16.msra.mxu1 %v3692_v48  ;;  %4409 = vmatprep.subr.bf16.mxu0 %v3707_v50 }
 0x472   :  { %4573 = vmatprep.subr.bf16.mxu1 %v3709_v55  ;;  %v3819_v55 = vunpack.c.h.s8.bf16 %v2859_v30 }
 0x473   :  { %4401 = vmatmul.mubr.bf16.vlgmr.msra.gmra.mrb[16].mxu0 %v8652_v62 }
 0x474   :  { %4565 = vmatmul.mubr.bf16.vlgmr.msra.gmra.mrb[16].mxu1 %v8652_v62  ;;  %4410 = vmatpush1.bf16.msra.mxu0 %v3706_v24  ;;  %v2875_v24 = vld [vmem:[#allocation10 + $0xe28] sm:$0xff] }
 0x475   :  { %4441 = vmatprep.mubr.bf16.mxu0 %v8656_v60  ;;  %4574 = vmatpush1.bf16.msra.mxu1 %v3708_v58  ;;  %v2877_v58 = vld [vmem:[#allocation10 + $0xe38] sm:$0xff] }
 0x476   :  { %4605 = vmatprep.mubr.bf16.mxu1 %v8656_v60  ;;  %4411 = vmatprep.subr.bf16.mxu0 %v3723_v0  ;;  %v3818_v0 = vunpack.c.h.s8.bf16 %v2858_v43  ;;  %v3853_v29 = vunpack.c.h.s8.bf16 %v2877_v58 }
 0x477   :  { %4575 = vmatprep.subr.bf16.mxu1 %v3725_v2  ;;  %v3835_v2 = vunpack.c.l.s8.bf16 %v2875_v24 }
 0x478   :  { %4412 = vmatpush1.bf16.msra.mxu0 %v3722_v3  ;;  %v3837_v3 = vunpack.c.l.s8.bf16 %v2877_v58 }
 0x479   :  { %4576 = vmatpush1.bf16.msra.mxu1 %v3724_v4  ;;  %4413 = vmatprep.subr.bf16.mxu0 %v3739_v5  ;;  %v2876_v4 = vld [vmem:[#allocation10 + $0xe30] sm:$0xff]  ;;  %v3834_v5 = vunpack.c.l.s8.bf16 %v2874_v63 }
 0x47a   :  { %4577 = vmatprep.subr.bf16.mxu1 %v3741_v8  ;;  %v3836_v6 = vunpack.c.l.s8.bf16 %v2876_v4  ;;  %v3851_v8 = vunpack.c.h.s8.bf16 %v2875_v24 }
 0x47c   :  { %4414 = vmatpush1.bf16.msra.mxu0 %v3738_v9  ;;  %v2891_v9 = vld [vmem:[#allocation10 + $0xea8] sm:$0xff] }
 0x47d   :  { %4578 = vmatpush1.bf16.msra.mxu1 %v3740_v10  ;;  %4415 = vmatprep.subr.bf16.mxu0 %v3755_v13  ;;  %v2893_v10 = vld [vmem:[#allocation10 + $0xeb8] sm:$0xff]  ;;  %v3850_v13 = vunpack.c.h.s8.bf16 %v2874_v63  ;;  %v3867_v45 = vunpack.c.l.s8.bf16 %v2891_v9 }
 0x47e   :  { %4579 = vmatprep.subr.bf16.mxu1 %v3757_v14  ;;  %v3852_v14 = vunpack.c.h.s8.bf16 %v2876_v4  ;;  %v3885_v22 = vunpack.c.h.s8.bf16 %v2893_v10  ;;  %v2433_v63 = vld [vmem:[#allocation10 + $0x58] sm:$0xff] }
 0x480   :  { %4416 = vmatpush1.bf16.msra.mxu0 %v3754_v16  ;;  %v3869_v16 = vunpack.c.l.s8.bf16 %v2893_v10 }
 0x481   :  { %4580 = vmatpush1.bf16.msra.mxu1 %v3756_v17  ;;  %4417 = vmatprep.subr.bf16.mxu0 %v3771_v18  ;;  %v2892_v17 = vld [vmem:[#allocation10 + $0xeb0] sm:$0xff]  ;;  %v3866_v18 = vunpack.c.l.s8.bf16 %v2890_v15 }
 0x482   :  { %4581 = vmatprep.subr.bf16.mxu1 %v3773_v21  ;;  %v3868_v19 = vunpack.c.l.s8.bf16 %v2892_v17  ;;  %v3883_v21 = vunpack.c.h.s8.bf16 %v2891_v9 }
 0x484   :  { %4418 = vmatpush1.bf16.msra.mxu0 %v3770_v23  ;;  %v2907_v23 = vld [vmem:[#allocation10 + $0xf28] sm:$0xff] }
 0x485   :  { %4582 = vmatpush1.bf16.msra.mxu1 %v3772_v12  ;;  %4419 = vmatprep.subr.bf16.mxu0 %v3787_v27  ;;  %v2909_v12 = vld [vmem:[#allocation10 + $0xf38] sm:$0xff]  ;;  %v3882_v27 = vunpack.c.h.s8.bf16 %v2890_v15  ;;  %v3899_v30 = vunpack.c.l.s8.bf16 %v2907_v23 }
 0x486   :  { %v8685_v36 = vpop.f32.mrb[12].mxu0  ;;  %v8687_v37 = vpop.f32.mrb[12].mxu1  ;;  %4583 = vmatprep.subr.bf16.mxu1 %v3789_v28  ;;  %v3884_v28 = vunpack.c.h.s8.bf16 %v2892_v17  ;;  %v3917_v32 = vunpack.c.h.s8.bf16 %v2909_v12  ;;  %v2449_v15 = vld [vmem:[#allocation10 + $0xd8] sm:$0xff] }
 0x487   :  { %v8689_v38 = vpop.f32.mrb[13].mxu0  ;;  %v8691_v40 = vpop.f32.mrb[13].mxu1 }
 0x488   :  { %v4119_v41 = vpop.f32.mrb[14].mxu0  ;;  %v4283_v42 = vpop.f32.mrb[14].mxu1  ;;  %4420 = vmatpush1.bf16.msra.mxu0 %v3786_v33  ;;  %v3901_v33 = vunpack.c.l.s8.bf16 %v2909_v12 }
 0x489   :  { %4584 = vmatpush1.bf16.msra.mxu1 %v3788_v34  ;;  %v4120_v48 = vpop.f32.mrb[15].mxu0  ;;  %v4284_v50 = vpop.f32.mrb[15].mxu1  ;;  %4421 = vmatprep.subr.bf16.mxu0 %v3803_v35  ;;  %v2908_v34 = vld [vmem:[#allocation10 + $0xf30] sm:$0xff]  ;;  %v3898_v35 = vunpack.c.l.s8.bf16 %v2906_v31  ;;  %v2923_v41 = vld [vmem:[#allocation10 + $0xfa8] sm:$0xff]  ;;  %v2925_v42 = vld [vmem:[#allocation10 + $0xfb8] sm:$0xff] }
 0x48a   :  { %4585 = vmatprep.subr.bf16.mxu1 %v3805_v25  ;;  %v3900_v43 = vunpack.c.l.s8.bf16 %v2908_v34  ;;  %v3915_v25 = vunpack.c.h.s8.bf16 %v2907_v23  ;;  %v3916_v48 = vunpack.c.h.s8.bf16 %v2908_v34  ;;  %v3931_v50 = vunpack.c.l.s8.bf16 %v2923_v41 }
 0x48c   :  { %4422 = vmatpush1.bf16.msra.mxu0 %v3802_v47  ;;  %v3914_v47 = vunpack.c.h.s8.bf16 %v2906_v31  ;;  %v2465_v31 = vld [vmem:[#allocation10 + $0x158] sm:$0xff] }
 0x48d   :  { %4586 = vmatpush1.bf16.msra.mxu1 %v3804_v52  ;;  %4423 = vmatprep.subr.bf16.mxu0 %v3819_v55  ;;  %v2922_v52 = vld [vmem:[#allocation10 + $0xfa0] sm:$0xff]  ;;  %v3933_v55 = vunpack.c.l.s8.bf16 %v2925_v42 }
 0x48e   :  { %4587 = vmatprep.subr.bf16.mxu1 %v3821_v56  ;;  %v2924_v56 = vld [vmem:[#allocation10 + $0xfb0] sm:$0xff]  ;;  %v3930_v24 = vunpack.c.l.s8.bf16 %v2922_v52 }
 0x48f   :  { %v3932_v58 = vunpack.c.l.s8.bf16 %v2924_v56  ;;  %v3948_v4 = vunpack.c.h.s8.bf16 %v2924_v56 }
 0x490   :  { %4424 = vmatpush1.bf16.msra.mxu0 %v3818_v0  ;;  %v3947_v0 = vunpack.c.h.s8.bf16 %v2923_v41 }
 0x491   :  { %4588 = vmatpush1.bf16.msra.mxu1 %v3820_v1  ;;  %4425 = vmatprep.subr.bf16.mxu0 %v3835_v2  ;;  %v3949_v1 = vunpack.c.h.s8.bf16 %v2925_v42  ;;  %v2431_v2 = vld [vmem:[#allocation10 + $0x48] sm:$0xff] }
 0x492   :  { %4589 = vmatprep.subr.bf16.mxu1 %v3837_v3  ;;  %v3946_v3 = vunpack.c.h.s8.bf16 %v2922_v52  ;;  %v2481_v52 = vld [vmem:[#allocation10 + $0x1d8] sm:$0xff] }
 0x494   :  { %4426 = vmatpush1.bf16.msra.mxu0 %v3834_v5  ;;  %v2943_v5 = vunpack.c.l.s8.bf16 %v2431_v2 }
 0x495   :  { %4590 = vmatpush1.bf16.msra.mxu1 %v3836_v6  ;;  %4427 = vmatprep.subr.bf16.mxu0 %v3851_v8  ;;  %v2430_v6 = vld [vmem:[#allocation10 + $0x40] sm:$0xff]  ;;  %v2945_v8 = vunpack.c.l.s8.bf16 %v2433_v63 }
 0x496   :  { %4591 = vmatprep.subr.bf16.mxu1 %v3853_v29  ;;  %v2432_v29 = vld [vmem:[#allocation10 + $0x50] sm:$0xff]  ;;  %v2942_v9 = vunpack.c.l.s8.bf16 %v2430_v6 }
 0x497   :  { %v2944_v10 = vunpack.c.l.s8.bf16 %v2432_v29  ;;  %v2960_v17 = vunpack.c.h.s8.bf16 %v2432_v29 }
 0x498   :  { %4428 = vmatpush1.bf16.msra.mxu0 %v3850_v13  ;;  %v2959_v13 = vunpack.c.h.s8.bf16 %v2431_v2 }
 0x499   :  { %4592 = vmatpush1.bf16.msra.mxu1 %v3852_v14  ;;  %4429 = vmatprep.subr.bf16.mxu0 %v3867_v45  ;;  %v2447_v14 = vld [vmem:[#allocation10 + $0xc8] sm:$0xff]  ;;  %v2961_v45 = vunpack.c.h.s8.bf16 %v2433_v63 }
 0x49a   :  { %4593 = vmatprep.subr.bf16.mxu1 %v3869_v16  ;;  %v2958_v16 = vunpack.c.h.s8.bf16 %v2430_v6  ;;  %v2497_v6 = vld [vmem:[#allocation10 + $0x258] sm:$0xff] }
 0x49c   :  { %4430 = vmatpush1.bf16.msra.mxu0 %v3866_v18  ;;  %v2975_v18 = vunpack.c.l.s8.bf16 %v2447_v14 }
 0x49d   :  { %4594 = vmatpush1.bf16.msra.mxu1 %v3868_v19  ;;  %4431 = vmatprep.subr.bf16.mxu0 %v3883_v21  ;;  %v2446_v19 = vld [vmem:[#allocation10 + $0xc0] sm:$0xff]  ;;  %v2977_v21 = vunpack.c.l.s8.bf16 %v2449_v15 }
 0x49e   :  { %4595 = vmatprep.subr.bf16.mxu1 %v3885_v22  ;;  %v2448_v22 = vld [vmem:[#allocation10 + $0xd0] sm:$0xff]  ;;  %v2974_v23 = vunpack.c.l.s8.bf16 %v2446_v19 }
 0x49f   :  { %v2976_v12 = vunpack.c.l.s8.bf16 %v2448_v22  ;;  %v2992_v34 = vunpack.c.h.s8.bf16 %v2448_v22 }
 0x4a0   :  { %4432 = vmatpush1.bf16.msra.mxu0 %v3882_v27  ;;  %v2991_v27 = vunpack.c.h.s8.bf16 %v2447_v14  ;;  %v2496_v14 = vld [vmem:[#allocation10 + $0x250] sm:$0xff] }
 0x4a1   :  { %4596 = vmatpush1.bf16.msra.mxu1 %v3884_v28  ;;  %4433 = vmatprep.subr.bf16.mxu0 %v3899_v30  ;;  %v2993_v28 = vunpack.c.h.s8.bf16 %v2449_v15  ;;  %v2463_v30 = vld [vmem:[#allocation10 + $0x148] sm:$0xff]  ;;  %v3072_v15 = vunpack.c.l.s8.bf16 %v2496_v14  ;;  %v3088_v22 = vunpack.c.h.s8.bf16 %v2496_v14 }
 0x4a2   :  { %4597 = vmatprep.subr.bf16.mxu1 %v3901_v33  ;;  %v2990_v33 = vunpack.c.h.s8.bf16 %v2446_v19  ;;  %v2513_v19 = vld [vmem:[#allocation10 + $0x2d8] sm:$0xff] }
 0x4a4   :  { %4434 = vmatpush1.bf16.msra.mxu0 %v3898_v35  ;;  %v3007_v35 = vunpack.c.l.s8.bf16 %v2463_v30 }
 0x4a5   :  { %4598 = vmatpush1.bf16.msra.mxu1 %v3900_v43  ;;  %4435 = vmatprep.subr.bf16.mxu0 %v3915_v25  ;;  %v2462_v43 = vld [vmem:[#allocation10 + $0x140] sm:$0xff]  ;;  %v3009_v25 = vunpack.c.l.s8.bf16 %v2465_v31 }
 0x4a6   :  { %4599 = vmatprep.subr.bf16.mxu1 %v3917_v32  ;;  %v2464_v32 = vld [vmem:[#allocation10 + $0x150] sm:$0xff]  ;;  %v3006_v41 = vunpack.c.l.s8.bf16 %v2462_v43 }
 0x4a7   :  { %v3008_v42 = vunpack.c.l.s8.bf16 %v2464_v32  ;;  %v3024_v56 = vunpack.c.h.s8.bf16 %v2464_v32 }
 0x4a8   :  { %4436 = vmatpush1.bf16.msra.mxu0 %v3914_v47  ;;  %v3023_v47 = vunpack.c.h.s8.bf16 %v2463_v30 }
 0x4a9   :  { %4600 = vmatpush1.bf16.msra.mxu1 %v3916_v48  ;;  %4437 = vmatprep.subr.bf16.mxu0 %v3931_v50  ;;  %v3025_v48 = vunpack.c.h.s8.bf16 %v2465_v31  ;;  %v2479_v50 = vld [vmem:[#allocation10 + $0x1c8] sm:$0xff] }
 0x4aa   :  { %4601 = vmatprep.subr.bf16.mxu1 %v3933_v55  ;;  %v3022_v55 = vunpack.c.h.s8.bf16 %v2462_v43  ;;  %v2529_v43 = vld [vmem:[#allocation10 + $0x358] sm:$0xff] }
 0x4ac   :  { %4438 = vmatpush1.bf16.msra.mxu0 %v3930_v24  ;;  %v3039_v24 = vunpack.c.l.s8.bf16 %v2479_v50 }
 0x4ad   :  { %4602 = vmatpush1.bf16.msra.mxu1 %v3932_v58  ;;  %4439 = vmatprep.subr.bf16.mxu0 %v3947_v0  ;;  %v2478_v58 = vld [vmem:[#allocation10 + $0x1c0] sm:$0xff]  ;;  %v3041_v0 = vunpack.c.l.s8.bf16 %v2481_v52 }
 0x4ae   :  { %4603 = vmatprep.subr.bf16.mxu1 %v3949_v1  ;;  %v2480_v1 = vld [vmem:[#allocation10 + $0x1d0] sm:$0xff]  ;;  %v3038_v2 = vunpack.c.l.s8.bf16 %v2478_v58 }
 0x4af   :  { %v3040_v63 = vunpack.c.l.s8.bf16 %v2480_v1  ;;  %v3056_v29 = vunpack.c.h.s8.bf16 %v2480_v1 }
 0x4b0   :  { %4440 = vmatpush1.bf16.msra.mxu0 %v3946_v3  ;;  %v3055_v3 = vunpack.c.h.s8.bf16 %v2479_v50 }
 0x4b1   :  { %4604 = vmatpush1.bf16.msra.mxu1 %v3948_v4  ;;  %4614 = vmatprep.subr.bf16.mxu0 %v2943_v5  ;;  %v3057_v4 = vunpack.c.h.s8.bf16 %v2481_v52  ;;  %v2495_v5 = vld [vmem:[#allocation10 + $0x248] sm:$0xff] }
 0x4b2   :  { %4778 = vmatprep.subr.bf16.mxu1 %v2945_v8  ;;  %v3054_v8 = vunpack.c.h.s8.bf16 %v2478_v58  ;;  %v2545_v58 = vld [vmem:[#allocation10 + $0x3d8] sm:$0xff] }
 0x4b3   :  { %4442 = vmatmul.mubr.bf16.vlgmr.msra.gmra.mrb[16].mxu0 %v8667_v57 }
 0x4b4   :  { %4606 = vmatmul.mubr.bf16.vlgmr.msra.gmra.mrb[16].mxu1 %v8667_v57  ;;  %4615 = vmatpush1.bf16.msra.mxu0 %v2942_v9  ;;  %v3071_v9 = vunpack.c.l.s8.bf16 %v2495_v5 }
 0x4b5   :  { %4646 = vmatprep.mubr.bf16.mxu0 %v8614_v51  ;;  %4779 = vmatpush1.bf16.msra.mxu1 %v2944_v10  ;;  %v2494_v10 = vld [vmem:[#allocation10 + $0x240] sm:$0xff] }
 0x4b6   :  { %4810 = vmatprep.mubr.bf16.mxu1 %v8614_v51  ;;  %4616 = vmatprep.subr.bf16.mxu0 %v2959_v13  ;;  %v3073_v13 = vunpack.c.l.s8.bf16 %v2497_v6 }
 0x4b7   :  { %4780 = vmatprep.subr.bf16.mxu1 %v2961_v45  ;;  %v3070_v45 = vunpack.c.l.s8.bf16 %v2494_v10 }
 0x4b8   :  { %4617 = vmatpush1.bf16.msra.mxu0 %v2958_v16  ;;  %v3087_v16 = vunpack.c.h.s8.bf16 %v2495_v5 }
 0x4b9   :  { %4781 = vmatpush1.bf16.msra.mxu1 %v2960_v17  ;;  %4618 = vmatprep.subr.bf16.mxu0 %v2975_v18  ;;  %v3089_v17 = vunpack.c.h.s8.bf16 %v2497_v6  ;;  %v2511_v18 = vld [vmem:[#allocation10 + $0x2c8] sm:$0xff] }
 0x4ba   :  { %4782 = vmatprep.subr.bf16.mxu1 %v2977_v21  ;;  %v3086_v21 = vunpack.c.h.s8.bf16 %v2494_v10  ;;  %v2561_v10 = vld [vmem:[#allocation10 + $0x458] sm:$0xff] }
 0x4bc   :  { %4619 = vmatpush1.bf16.msra.mxu0 %v2974_v23  ;;  %v3103_v23 = vunpack.c.l.s8.bf16 %v2511_v18 }
 0x4bd   :  { %4783 = vmatpush1.bf16.msra.mxu1 %v2976_v12  ;;  %4620 = vmatprep.subr.bf16.mxu0 %v2991_v27  ;;  %v2510_v12 = vld [vmem:[#allocation10 + $0x2c0] sm:$0xff]  ;;  %v3105_v27 = vunpack.c.l.s8.bf16 %v2513_v19 }
 0x4be   :  { %4784 = vmatprep.subr.bf16.mxu1 %v2993_v28  ;;  %v2512_v28 = vld [vmem:[#allocation10 + $0x2d0] sm:$0xff]  ;;  %v3102_v30 = vunpack.c.l.s8.bf16 %v2510_v12 }
 0x4bf   :  { %v3104_v31 = vunpack.c.l.s8.bf16 %v2512_v28  ;;  %v3120_v32 = vunpack.c.h.s8.bf16 %v2512_v28 }
 0x4c0   :  { %4621 = vmatpush1.bf16.msra.mxu0 %v2990_v33  ;;  %v3119_v33 = vunpack.c.h.s8.bf16 %v2511_v18 }
 0x4c1   :  { %4785 = vmatpush1.bf16.msra.mxu1 %v2992_v34  ;;  %4622 = vmatprep.subr.bf16.mxu0 %v3007_v35  ;;  %v3121_v34 = vunpack.c.h.s8.bf16 %v2513_v19  ;;  %v2527_v35 = vld [vmem:[#allocation10 + $0x348] sm:$0xff] }
 0x4c2   :  { %4786 = vmatprep.subr.bf16.mxu1 %v3009_v25  ;;  %v3118_v25 = vunpack.c.h.s8.bf16 %v2510_v12  ;;  %v2577_v12 = vld [vmem:[#allocation10 + $0x4d8] sm:$0xff] }
 0x4c4   :  { %4623 = vmatpush1.bf16.msra.mxu0 %v3006_v41  ;;  %v3135_v41 = vunpack.c.l.s8.bf16 %v2527_v35 }
 0x4c5   :  { %4787 = vmatpush1.bf16.msra.mxu1 %v3008_v42  ;;  %4624 = vmatprep.subr.bf16.mxu0 %v3023_v47  ;;  %v2526_v42 = vld [vmem:[#allocation10 + $0x340] sm:$0xff]  ;;  %v3137_v47 = vunpack.c.l.s8.bf16 %v2529_v43 }
 0x4c6   :  { %4788 = vmatprep.subr.bf16.mxu1 %v3025_v48  ;;  %v2528_v48 = vld [vmem:[#allocation10 + $0x350] sm:$0xff]  ;;  %v3134_v50 = vunpack.c.l.s8.bf16 %v2526_v42 }
 0x4c7   :  { %v3136_v52 = vunpack.c.l.s8.bf16 %v2528_v48  ;;  %v3152_v1 = vunpack.c.h.s8.bf16 %v2528_v48 }
 0x4c8   :  { %4625 = vmatpush1.bf16.msra.mxu0 %v3022_v55  ;;  %v3151_v55 = vunpack.c.h.s8.bf16 %v2527_v35 }
 0x4c9   :  { %4789 = vmatpush1.bf16.msra.mxu1 %v3024_v56  ;;  %4626 = vmatprep.subr.bf16.mxu0 %v3039_v24  ;;  %v3153_v56 = vunpack.c.h.s8.bf16 %v2529_v43  ;;  %v2543_v24 = vld [vmem:[#allocation10 + $0x3c8] sm:$0xff] }
 0x4ca   :  { %4790 = vmatprep.subr.bf16.mxu1 %v3041_v0  ;;  %v3150_v0 = vunpack.c.h.s8.bf16 %v2526_v42  ;;  %v2593_v42 = vld [vmem:[#allocation10 + $0x558] sm:$0xff] }
 0x4cc   :  { %4627 = vmatpush1.bf16.msra.mxu0 %v3038_v2  ;;  %v3167_v2 = vunpack.c.l.s8.bf16 %v2543_v24 }
 0x4cd   :  { %4791 = vmatpush1.bf16.msra.mxu1 %v3040_v63  ;;  %4628 = vmatprep.subr.bf16.mxu0 %v3055_v3  ;;  %v2542_v63 = vld [vmem:[#allocation10 + $0x3c0] sm:$0xff]  ;;  %v3169_v3 = vunpack.c.l.s8.bf16 %v2545_v58 }
 0x4ce   :  { %4792 = vmatprep.subr.bf16.mxu1 %v3057_v4  ;;  %v2544_v4 = vld [vmem:[#allocation10 + $0x3d0] sm:$0xff]  ;;  %v3166_v5 = vunpack.c.l.s8.bf16 %v2542_v63 }
 0x4cf   :  { %v3168_v6 = vunpack.c.l.s8.bf16 %v2544_v4  ;;  %v3184_v14 = vunpack.c.h.s8.bf16 %v2544_v4 }
 0x4d0   :  { %4629 = vmatpush1.bf16.msra.mxu0 %v3054_v8  ;;  %v3183_v8 = vunpack.c.h.s8.bf16 %v2543_v24 }
 0x4d1   :  { %4793 = vmatpush1.bf16.msra.mxu1 %v3056_v29  ;;  %4630 = vmatprep.subr.bf16.mxu0 %v3071_v9  ;;  %v3185_v29 = vunpack.c.h.s8.bf16 %v2545_v58  ;;  %v2559_v9 = vld [vmem:[#allocation10 + $0x448] sm:$0xff] }
 0x4d2   :  { %4794 = vmatprep.subr.bf16.mxu1 %v3073_v13  ;;  %v3182_v13 = vunpack.c.h.s8.bf16 %v2542_v63  ;;  %v2609_v63 = vld [vmem:[#allocation10 + $0x5d8] sm:$0xff] }
 0x4d4   :  { %4631 = vmatpush1.bf16.msra.mxu0 %v3070_v45  ;;  %v3199_v45 = vunpack.c.l.s8.bf16 %v2559_v9 }
 0x4d5   :  { %4795 = vmatpush1.bf16.msra.mxu1 %v3072_v15  ;;  %4632 = vmatprep.subr.bf16.mxu0 %v3087_v16  ;;  %v2558_v15 = vld [vmem:[#allocation10 + $0x440] sm:$0xff]  ;;  %v3201_v16 = vunpack.c.l.s8.bf16 %v2561_v10 }
 0x4d6   :  { %4796 = vmatprep.subr.bf16.mxu1 %v3089_v17  ;;  %v2560_v17 = vld [vmem:[#allocation10 + $0x450] sm:$0xff]  ;;  %v3198_v18 = vunpack.c.l.s8.bf16 %v2558_v15 }
 0x4d7   :  { %v3200_v19 = vunpack.c.l.s8.bf16 %v2560_v17  ;;  %v3216_v28 = vunpack.c.h.s8.bf16 %v2560_v17 }
 0x4d8   :  { %4633 = vmatpush1.bf16.msra.mxu0 %v3086_v21  ;;  %v3215_v21 = vunpack.c.h.s8.bf16 %v2559_v9 }
 0x4d9   :  { %4797 = vmatpush1.bf16.msra.mxu1 %v3088_v22  ;;  %4634 = vmatprep.subr.bf16.mxu0 %v3103_v23  ;;  %v2575_v22 = vld [vmem:[#allocation10 + $0x4c8] sm:$0xff]  ;;  %v3217_v23 = vunpack.c.h.s8.bf16 %v2561_v10 }
 0x4da   :  { %4798 = vmatprep.subr.bf16.mxu1 %v3105_v27  ;;  %v3214_v27 = vunpack.c.h.s8.bf16 %v2558_v15  ;;  %v2625_v15 = vld [vmem:[#allocation10 + $0x658] sm:$0xff] }
 0x4dc   :  { %4635 = vmatpush1.bf16.msra.mxu0 %v3102_v30  ;;  %v3231_v30 = vunpack.c.l.s8.bf16 %v2575_v22 }
 0x4dd   :  { %4799 = vmatpush1.bf16.msra.mxu1 %v3104_v31  ;;  %4636 = vmatprep.subr.bf16.mxu0 %v3119_v33  ;;  %v2574_v31 = vld [vmem:[#allocation10 + $0x4c0] sm:$0xff]  ;;  %v3233_v33 = vunpack.c.l.s8.bf16 %v2577_v12 }
 0x4de   :  { %4800 = vmatprep.subr.bf16.mxu1 %v3121_v34  ;;  %v2576_v34 = vld [vmem:[#allocation10 + $0x4d0] sm:$0xff]  ;;  %v3230_v35 = vunpack.c.l.s8.bf16 %v2574_v31 }
 0x4df   :  { %v3232_v43 = vunpack.c.l.s8.bf16 %v2576_v34  ;;  %v3248_v48 = vunpack.c.h.s8.bf16 %v2576_v34 }
 0x4e0   :  { %4637 = vmatpush1.bf16.msra.mxu0 %v3118_v25  ;;  %v3247_v25 = vunpack.c.h.s8.bf16 %v2575_v22  ;;  %v2624_v22 = vld [vmem:[#allocation10 + $0x650] sm:$0xff] }
 0x4e1   :  { %4801 = vmatpush1.bf16.msra.mxu1 %v3120_v32  ;;  %4638 = vmatprep.subr.bf16.mxu0 %v3135_v41  ;;  %v3249_v32 = vunpack.c.h.s8.bf16 %v2577_v12  ;;  %v2591_v41 = vld [vmem:[#allocation10 + $0x548] sm:$0xff]  ;;  %v3328_v12 = vunpack.c.l.s8.bf16 %v2624_v22  ;;  %v3344_v34 = vunpack.c.h.s8.bf16 %v2624_v22 }
 0x4e2   :  { %4802 = vmatprep.subr.bf16.mxu1 %v3137_v47  ;;  %v3246_v47 = vunpack.c.h.s8.bf16 %v2574_v31  ;;  %v2641_v31 = vld [vmem:[#allocation10 + $0x6d8] sm:$0xff] }
 0x4e4   :  { %4639 = vmatpush1.bf16.msra.mxu0 %v3134_v50  ;;  %v3263_v50 = vunpack.c.l.s8.bf16 %v2591_v41 }
 0x4e5   :  { %4803 = vmatpush1.bf16.msra.mxu1 %v3136_v52  ;;  %4640 = vmatprep.subr.bf16.mxu0 %v3151_v55  ;;  %v2590_v52 = vld [vmem:[#allocation10 + $0x540] sm:$0xff]  ;;  %v3265_v55 = vunpack.c.l.s8.bf16 %v2593_v42 }
 0x4e6   :  { %4804 = vmatprep.subr.bf16.mxu1 %v3153_v56  ;;  %v2592_v56 = vld [vmem:[#allocation10 + $0x550] sm:$0xff]  ;;  %v3262_v24 = vunpack.c.l.s8.bf16 %v2590_v52 }
 0x4e7   :  { %v3264_v58 = vunpack.c.l.s8.bf16 %v2592_v56  ;;  %v3280_v4 = vunpack.c.h.s8.bf16 %v2592_v56 }
 0x4e8   :  { %4641 = vmatpush1.bf16.msra.mxu0 %v3150_v0  ;;  %v3279_v0 = vunpack.c.h.s8.bf16 %v2591_v41 }
 0x4e9   :  { %4805 = vmatpush1.bf16.msra.mxu1 %v3152_v1  ;;  %4642 = vmatprep.subr.bf16.mxu0 %v3167_v2  ;;  %v3281_v1 = vunpack.c.h.s8.bf16 %v2593_v42  ;;  %v2607_v2 = vld [vmem:[#allocation10 + $0x5c8] sm:$0xff] }
 0x4ea   :  { %4806 = vmatprep.subr.bf16.mxu1 %v3169_v3  ;;  %v3278_v3 = vunpack.c.h.s8.bf16 %v2590_v52  ;;  %v2657_v52 = vld [vmem:[#allocation10 + $0x758] sm:$0xff] }
 0x4ec   :  { %4643 = vmatpush1.bf16.msra.mxu0 %v3166_v5  ;;  %v3295_v5 = vunpack.c.l.s8.bf16 %v2607_v2 }
 0x4ed   :  { %4807 = vmatpush1.bf16.msra.mxu1 %v3168_v6  ;;  %4644 = vmatprep.subr.bf16.mxu0 %v3183_v8  ;;  %v2606_v6 = vld [vmem:[#allocation10 + $0x5c0] sm:$0xff]  ;;  %v3297_v8 = vunpack.c.l.s8.bf16 %v2609_v63 }
 0x4ee   :  { %4808 = vmatprep.subr.bf16.mxu1 %v3185_v29  ;;  %v2608_v29 = vld [vmem:[#allocation10 + $0x5d0] sm:$0xff]  ;;  %v3294_v9 = vunpack.c.l.s8.bf16 %v2606_v6 }
 0x4ef   :  { %v3296_v10 = vunpack.c.l.s8.bf16 %v2608_v29  ;;  %v3312_v17 = vunpack.c.h.s8.bf16 %v2608_v29 }
 0x4f0   :  { %4645 = vmatpush1.bf16.msra.mxu0 %v3182_v13  ;;  %v3311_v13 = vunpack.c.h.s8.bf16 %v2607_v2 }
 0x4f1   :  { %4809 = vmatpush1.bf16.msra.mxu1 %v3184_v14  ;;  %4655 = vmatprep.subr.bf16.mxu0 %v3199_v45  ;;  %v3313_v14 = vunpack.c.h.s8.bf16 %v2609_v63  ;;  %v2623_v45 = vld [vmem:[#allocation10 + $0x648] sm:$0xff] }
 0x4f2   :  { %4819 = vmatprep.subr.bf16.mxu1 %v3201_v16  ;;  %v3310_v16 = vunpack.c.h.s8.bf16 %v2606_v6  ;;  %v2673_v6 = vld [vmem:[#allocation10 + $0x7d8] sm:$0xff] }
 0x4f3   :  { %4647 = vmatmul.mubr.bf16.vlgmr.msra.gmra.mrb[20].mxu0 %v8616_v54 }
 0x4f4   :  { %4811 = vmatmul.mubr.bf16.vlgmr.msra.gmra.mrb[20].mxu1 %v8616_v54  ;;  %4656 = vmatpush1.bf16.msra.mxu0 %v3198_v18  ;;  %v3327_v18 = vunpack.c.l.s8.bf16 %v2623_v45 }
 0x4f5   :  { %4687 = vmatprep.mubr.bf16.mxu0 %v8620_v59  ;;  %4820 = vmatpush1.bf16.msra.mxu1 %v3200_v19  ;;  %v2622_v19 = vld [vmem:[#allocation10 + $0x640] sm:$0xff] }
 0x4f6   :  { %4851 = vmatprep.mubr.bf16.mxu1 %v8620_v59  ;;  %4657 = vmatprep.subr.bf16.mxu0 %v3215_v21  ;;  %v3329_v21 = vunpack.c.l.s8.bf16 %v2625_v15 }
 0x4f7   :  { %4821 = vmatprep.subr.bf16.mxu1 %v3217_v23  ;;  %v3326_v23 = vunpack.c.l.s8.bf16 %v2622_v19 }
 0x4f8   :  { %4658 = vmatpush1.bf16.msra.mxu0 %v3214_v27  ;;  %v3343_v27 = vunpack.c.h.s8.bf16 %v2623_v45 }
 0x4f9   :  { %4822 = vmatpush1.bf16.msra.mxu1 %v3216_v28  ;;  %4659 = vmatprep.subr.bf16.mxu0 %v3231_v30  ;;  %v3345_v28 = vunpack.c.h.s8.bf16 %v2625_v15  ;;  %v2639_v30 = vld [vmem:[#allocation10 + $0x6c8] sm:$0xff] }
 0x4fa   :  { %4823 = vmatprep.subr.bf16.mxu1 %v3233_v33  ;;  %v3342_v33 = vunpack.c.h.s8.bf16 %v2622_v19  ;;  %v2689_v19 = vld [vmem:[#allocation10 + $0x858] sm:$0xff] }
 0x4fc   :  { %4660 = vmatpush1.bf16.msra.mxu0 %v3230_v35  ;;  %v3359_v35 = vunpack.c.l.s8.bf16 %v2639_v30 }
 0x4fd   :  { %4824 = vmatpush1.bf16.msra.mxu1 %v3232_v43  ;;  %4661 = vmatprep.subr.bf16.mxu0 %v3247_v25  ;;  %v2638_v43 = vld [vmem:[#allocation10 + $0x6c0] sm:$0xff]  ;;  %v3361_v25 = vunpack.c.l.s8.bf16 %v2641_v31 }
 0x4fe   :  { %4825 = vmatprep.subr.bf16.mxu1 %v3249_v32  ;;  %v2640_v32 = vld [vmem:[#allocation10 + $0x6d0] sm:$0xff]  ;;  %v3358_v41 = vunpack.c.l.s8.bf16 %v2638_v43 }
 0x4ff   :  { %v3360_v42 = vunpack.c.l.s8.bf16 %v2640_v32  ;;  %v3376_v56 = vunpack.c.h.s8.bf16 %v2640_v32 }
 0x500   :  { %4662 = vmatpush1.bf16.msra.mxu0 %v3246_v47  ;;  %v3375_v47 = vunpack.c.h.s8.bf16 %v2639_v30 }
 0x501   :  { %4826 = vmatpush1.bf16.msra.mxu1 %v3248_v48  ;;  %4663 = vmatprep.subr.bf16.mxu0 %v3263_v50  ;;  %v3377_v48 = vunpack.c.h.s8.bf16 %v2641_v31  ;;  %v2655_v50 = vld [vmem:[#allocation10 + $0x748] sm:$0xff] }
 0x502   :  { %4827 = vmatprep.subr.bf16.mxu1 %v3265_v55  ;;  %v3374_v55 = vunpack.c.h.s8.bf16 %v2638_v43  ;;  %v2705_v43 = vld [vmem:[#allocation10 + $0x8d8] sm:$0xff] }
 0x504   :  { %4664 = vmatpush1.bf16.msra.mxu0 %v3262_v24  ;;  %v3391_v24 = vunpack.c.l.s8.bf16 %v2655_v50 }
 0x505   :  { %4828 = vmatpush1.bf16.msra.mxu1 %v3264_v58  ;;  %4665 = vmatprep.subr.bf16.mxu0 %v3279_v0  ;;  %v2654_v58 = vld [vmem:[#allocation10 + $0x740] sm:$0xff]  ;;  %v3393_v0 = vunpack.c.l.s8.bf16 %v2657_v52 }
 0x506   :  { %4829 = vmatprep.subr.bf16.mxu1 %v3281_v1  ;;  %v2656_v1 = vld [vmem:[#allocation10 + $0x750] sm:$0xff]  ;;  %v3390_v2 = vunpack.c.l.s8.bf16 %v2654_v58 }
 0x507   :  { %v3392_v63 = vunpack.c.l.s8.bf16 %v2656_v1  ;;  %v3408_v29 = vunpack.c.h.s8.bf16 %v2656_v1 }
 0x508   :  { %4666 = vmatpush1.bf16.msra.mxu0 %v3278_v3  ;;  %v3407_v3 = vunpack.c.h.s8.bf16 %v2655_v50 }
 0x509   :  { %4830 = vmatpush1.bf16.msra.mxu1 %v3280_v4  ;;  %4667 = vmatprep.subr.bf16.mxu0 %v3295_v5  ;;  %v3409_v4 = vunpack.c.h.s8.bf16 %v2657_v52  ;;  %v2671_v5 = vld [vmem:[#allocation10 + $0x7c8] sm:$0xff] }
 0x50a   :  { %4831 = vmatprep.subr.bf16.mxu1 %v3297_v8  ;;  %v3406_v8 = vunpack.c.h.s8.bf16 %v2654_v58  ;;  %v2721_v58 = vld [vmem:[#allocation10 + $0x958] sm:$0xff] }
 0x50c   :  { %4668 = vmatpush1.bf16.msra.mxu0 %v3294_v9  ;;  %v3423_v9 = vunpack.c.l.s8.bf16 %v2671_v5 }
 0x50d   :  { %4832 = vmatpush1.bf16.msra.mxu1 %v3296_v10  ;;  %4669 = vmatprep.subr.bf16.mxu0 %v3311_v13  ;;  %v2670_v10 = vld [vmem:[#allocation10 + $0x7c0] sm:$0xff]  ;;  %v3425_v13 = vunpack.c.l.s8.bf16 %v2673_v6 }
 0x50e   :  { %4833 = vmatprep.subr.bf16.mxu1 %v3313_v14  ;;  %v2672_v14 = vld [vmem:[#allocation10 + $0x7d0] sm:$0xff]  ;;  %v3422_v45 = vunpack.c.l.s8.bf16 %v2670_v10 }
 0x50f   :  { %v3424_v15 = vunpack.c.l.s8.bf16 %v2672_v14  ;;  %v3440_v22 = vunpack.c.h.s8.bf16 %v2672_v14 }
 0x510   :  { %4670 = vmatpush1.bf16.msra.mxu0 %v3310_v16  ;;  %v3439_v16 = vunpack.c.h.s8.bf16 %v2671_v5 }
 0x511   :  { %4834 = vmatpush1.bf16.msra.mxu1 %v3312_v17  ;;  %4671 = vmatprep.subr.bf16.mxu0 %v3327_v18  ;;  %v3441_v17 = vunpack.c.h.s8.bf16 %v2673_v6  ;;  %v2687_v18 = vld [vmem:[#allocation10 + $0x848] sm:$0xff] }
 0x512   :  { %4835 = vmatprep.subr.bf16.mxu1 %v3329_v21  ;;  %v3438_v21 = vunpack.c.h.s8.bf16 %v2670_v10  ;;  %v2737_v10 = vld [vmem:[#allocation10 + $0x9d8] sm:$0xff] }
 0x514   :  { %4672 = vmatpush1.bf16.msra.mxu0 %v3326_v23  ;;  %v3455_v23 = vunpack.c.l.s8.bf16 %v2687_v18 }
 0x515   :  { %4836 = vmatpush1.bf16.msra.mxu1 %v3328_v12  ;;  %4673 = vmatprep.subr.bf16.mxu0 %v3343_v27  ;;  %v2686_v12 = vld [vmem:[#allocation10 + $0x840] sm:$0xff]  ;;  %v3457_v27 = vunpack.c.l.s8.bf16 %v2689_v19 }
 0x516   :  { %4837 = vmatprep.subr.bf16.mxu1 %v3345_v28  ;;  %v2688_v28 = vld [vmem:[#allocation10 + $0x850] sm:$0xff]  ;;  %v3454_v30 = vunpack.c.l.s8.bf16 %v2686_v12 }
 0x517   :  { %v3456_v31 = vunpack.c.l.s8.bf16 %v2688_v28  ;;  %v3472_v32 = vunpack.c.h.s8.bf16 %v2688_v28 }
 0x518   :  { %4674 = vmatpush1.bf16.msra.mxu0 %v3342_v33  ;;  %v3471_v33 = vunpack.c.h.s8.bf16 %v2687_v18 }
 0x519   :  { %4838 = vmatpush1.bf16.msra.mxu1 %v3344_v34  ;;  %4675 = vmatprep.subr.bf16.mxu0 %v3359_v35  ;;  %v2703_v34 = vld [vmem:[#allocation10 + $0x8c8] sm:$0xff]  ;;  %v3473_v35 = vunpack.c.h.s8.bf16 %v2689_v19 }
 0x51a   :  { %4839 = vmatprep.subr.bf16.mxu1 %v3361_v25  ;;  %v3470_v25 = vunpack.c.h.s8.bf16 %v2686_v12  ;;  %v2753_v12 = vld [vmem:[#allocation10 + $0xa58] sm:$0xff] }
 0x51c   :  { %4676 = vmatpush1.bf16.msra.mxu0 %v3358_v41  ;;  %v3487_v41 = vunpack.c.l.s8.bf16 %v2703_v34 }
 0x51d   :  { %4840 = vmatpush1.bf16.msra.mxu1 %v3360_v42  ;;  %4677 = vmatprep.subr.bf16.mxu0 %v3375_v47  ;;  %v2702_v42 = vld [vmem:[#allocation10 + $0x8c0] sm:$0xff]  ;;  %v3489_v47 = vunpack.c.l.s8.bf16 %v2705_v43 }
 0x51e   :  { %4841 = vmatprep.subr.bf16.mxu1 %v3377_v48  ;;  %v2704_v48 = vld [vmem:[#allocation10 + $0x8d0] sm:$0xff]  ;;  %v3486_v50 = vunpack.c.l.s8.bf16 %v2702_v42 }
 0x51f   :  { %v3488_v52 = vunpack.c.l.s8.bf16 %v2704_v48  ;;  %v3504_v1 = vunpack.c.h.s8.bf16 %v2704_v48 }
 0x520   :  { %4678 = vmatpush1.bf16.msra.mxu0 %v3374_v55  ;;  %v3503_v55 = vunpack.c.h.s8.bf16 %v2703_v34  ;;  %v2752_v34 = vld [vmem:[#allocation10 + $0xa50] sm:$0xff] }
 0x521   :  { %4842 = vmatpush1.bf16.msra.mxu1 %v3376_v56  ;;  %4679 = vmatprep.subr.bf16.mxu0 %v3391_v24  ;;  %v3505_v56 = vunpack.c.h.s8.bf16 %v2705_v43  ;;  %v2719_v24 = vld [vmem:[#allocation10 + $0x948] sm:$0xff]  ;;  %v3584_v43 = vunpack.c.l.s8.bf16 %v2752_v34  ;;  %v3600_v48 = vunpack.c.h.s8.bf16 %v2752_v34 }
 0x522   :  { %4843 = vmatprep.subr.bf16.mxu1 %v3393_v0  ;;  %v3502_v0 = vunpack.c.h.s8.bf16 %v2702_v42  ;;  %v2769_v42 = vld [vmem:[#allocation10 + $0xad8] sm:$0xff] }
 0x524   :  { %4680 = vmatpush1.bf16.msra.mxu0 %v3390_v2  ;;  %v3519_v2 = vunpack.c.l.s8.bf16 %v2719_v24 }
 0x525   :  { %4844 = vmatpush1.bf16.msra.mxu1 %v3392_v63  ;;  %4681 = vmatprep.subr.bf16.mxu0 %v3407_v3  ;;  %v2718_v63 = vld [vmem:[#allocation10 + $0x940] sm:$0xff]  ;;  %v3521_v3 = vunpack.c.l.s8.bf16 %v2721_v58 }
 0x526   :  { %4845 = vmatprep.subr.bf16.mxu1 %v3409_v4  ;;  %v2720_v4 = vld [vmem:[#allocation10 + $0x950] sm:$0xff]  ;;  %v3518_v5 = vunpack.c.l.s8.bf16 %v2718_v63 }
 0x527   :  { %v3520_v6 = vunpack.c.l.s8.bf16 %v2720_v4  ;;  %v3536_v14 = vunpack.c.h.s8.bf16 %v2720_v4 }
 0x528   :  { %4682 = vmatpush1.bf16.msra.mxu0 %v3406_v8  ;;  %v3535_v8 = vunpack.c.h.s8.bf16 %v2719_v24 }
 0x529   :  { %4846 = vmatpush1.bf16.msra.mxu1 %v3408_v29  ;;  %4683 = vmatprep.subr.bf16.mxu0 %v3423_v9  ;;  %v3537_v29 = vunpack.c.h.s8.bf16 %v2721_v58  ;;  %v2735_v9 = vld [vmem:[#allocation10 + $0x9c8] sm:$0xff] }
 0x52a   :  { %4847 = vmatprep.subr.bf16.mxu1 %v3425_v13  ;;  %v3534_v13 = vunpack.c.h.s8.bf16 %v2718_v63  ;;  %v2785_v63 = vld [vmem:[#allocation10 + $0xb58] sm:$0xff] }
 0x52c   :  { %4684 = vmatpush1.bf16.msra.mxu0 %v3422_v45  ;;  %v3551_v45 = vunpack.c.l.s8.bf16 %v2735_v9 }
 0x52d   :  { %4848 = vmatpush1.bf16.msra.mxu1 %v3424_v15  ;;  %4685 = vmatprep.subr.bf16.mxu0 %v3439_v16  ;;  %v2734_v15 = vld [vmem:[#allocation10 + $0x9c0] sm:$0xff]  ;;  %v3553_v16 = vunpack.c.l.s8.bf16 %v2737_v10 }
 0x52e   :  { %4849 = vmatprep.subr.bf16.mxu1 %v3441_v17  ;;  %v2736_v17 = vld [vmem:[#allocation10 + $0x9d0] sm:$0xff]  ;;  %v3550_v18 = vunpack.c.l.s8.bf16 %v2734_v15 }
 0x52f   :  { %v3552_v19 = vunpack.c.l.s8.bf16 %v2736_v17  ;;  %v3568_v28 = vunpack.c.h.s8.bf16 %v2736_v17 }
 0x530   :  { %4686 = vmatpush1.bf16.msra.mxu0 %v3438_v21  ;;  %v3567_v21 = vunpack.c.h.s8.bf16 %v2735_v9 }
 0x531   :  { %4850 = vmatpush1.bf16.msra.mxu1 %v3440_v22  ;;  %4696 = vmatprep.subr.bf16.mxu0 %v3455_v23  ;;  %v3569_v22 = vunpack.c.h.s8.bf16 %v2737_v10  ;;  %v2751_v23 = vld [vmem:[#allocation10 + $0xa48] sm:$0xff] }
 0x532   :  { %4860 = vmatprep.subr.bf16.mxu1 %v3457_v27  ;;  %v3566_v27 = vunpack.c.h.s8.bf16 %v2734_v15  ;;  %v2801_v15 = vld [vmem:[#allocation10 + $0xbd8] sm:$0xff] }
 0x533   :  { %4688 = vmatmul.mubr.bf16.vlgmr.msra.gmra.mrb[20].mxu0 %v8629_v39 }
 0x534   :  { %4852 = vmatmul.mubr.bf16.vlgmr.msra.gmra.mrb[20].mxu1 %v8629_v39  ;;  %4697 = vmatpush1.bf16.msra.mxu0 %v3454_v30  ;;  %v3583_v30 = vunpack.c.l.s8.bf16 %v2751_v23 }
 0x535   :  { %4728 = vmatprep.mubr.bf16.mxu0 %v8650_v49  ;;  %4861 = vmatpush1.bf16.msra.mxu1 %v3456_v31  ;;  %v2750_v31 = vld [vmem:[#allocation10 + $0xa40] sm:$0xff] }
 0x536   :  { %4892 = vmatprep.mubr.bf16.mxu1 %v8650_v49  ;;  %4698 = vmatprep.subr.bf16.mxu0 %v3471_v33  ;;  %v3585_v33 = vunpack.c.l.s8.bf16 %v2753_v12 }
 0x537   :  { %4862 = vmatprep.subr.bf16.mxu1 %v3473_v35  ;;  %v3582_v35 = vunpack.c.l.s8.bf16 %v2750_v31 }
 0x538   :  { %4699 = vmatpush1.bf16.msra.mxu0 %v3470_v25  ;;  %v3599_v25 = vunpack.c.h.s8.bf16 %v2751_v23 }
 0x539   :  { %4863 = vmatpush1.bf16.msra.mxu1 %v3472_v32  ;;  %4700 = vmatprep.subr.bf16.mxu0 %v3487_v41  ;;  %v3601_v32 = vunpack.c.h.s8.bf16 %v2753_v12  ;;  %v2767_v41 = vld [vmem:[#allocation10 + $0xac8] sm:$0xff] }
 0x53a   :  { %4864 = vmatprep.subr.bf16.mxu1 %v3489_v47  ;;  %v3598_v47 = vunpack.c.h.s8.bf16 %v2750_v31  ;;  %v2817_v31 = vld [vmem:[#allocation10 + $0xc58] sm:$0xff] }
 0x53c   :  { %4701 = vmatpush1.bf16.msra.mxu0 %v3486_v50  ;;  %v3615_v50 = vunpack.c.l.s8.bf16 %v2767_v41 }
 0x53d   :  { %4865 = vmatpush1.bf16.msra.mxu1 %v3488_v52  ;;  %4702 = vmatprep.subr.bf16.mxu0 %v3503_v55  ;;  %v2766_v52 = vld [vmem:[#allocation10 + $0xac0] sm:$0xff]  ;;  %v3617_v55 = vunpack.c.l.s8.bf16 %v2769_v42 }
 0x53e   :  { %4866 = vmatprep.subr.bf16.mxu1 %v3505_v56  ;;  %v2768_v56 = vld [vmem:[#allocation10 + $0xad0] sm:$0xff]  ;;  %v3614_v24 = vunpack.c.l.s8.bf16 %v2766_v52 }
 0x53f   :  { %v3616_v58 = vunpack.c.l.s8.bf16 %v2768_v56  ;;  %v3632_v4 = vunpack.c.h.s8.bf16 %v2768_v56 }
 0x540   :  { %4703 = vmatpush1.bf16.msra.mxu0 %v3502_v0  ;;  %v3631_v0 = vunpack.c.h.s8.bf16 %v2767_v41 }
 0x541   :  { %4867 = vmatpush1.bf16.msra.mxu1 %v3504_v1  ;;  %4704 = vmatprep.subr.bf16.mxu0 %v3519_v2  ;;  %v3633_v1 = vunpack.c.h.s8.bf16 %v2769_v42  ;;  %v2783_v2 = vld [vmem:[#allocation10 + $0xb48] sm:$0xff] }
 0x542   :  { %4868 = vmatprep.subr.bf16.mxu1 %v3521_v3  ;;  %v3630_v3 = vunpack.c.h.s8.bf16 %v2766_v52  ;;  %v2833_v52 = vld [vmem:[#allocation10 + $0xcd8] sm:$0xff] }
 0x544   :  { %4705 = vmatpush1.bf16.msra.mxu0 %v3518_v5  ;;  %v3647_v5 = vunpack.c.l.s8.bf16 %v2783_v2 }
 0x545   :  { %4869 = vmatpush1.bf16.msra.mxu1 %v3520_v6  ;;  %4706 = vmatprep.subr.bf16.mxu0 %v3535_v8  ;;  %v2782_v6 = vld [vmem:[#allocation10 + $0xb40] sm:$0xff]  ;;  %v3649_v8 = vunpack.c.l.s8.bf16 %v2785_v63 }
 0x546   :  { %4870 = vmatprep.subr.bf16.mxu1 %v3537_v29  ;;  %v2784_v29 = vld [vmem:[#allocation10 + $0xb50] sm:$0xff]  ;;  %v3646_v9 = vunpack.c.l.s8.bf16 %v2782_v6 }
 0x547   :  { %v3648_v10 = vunpack.c.l.s8.bf16 %v2784_v29  ;;  %v3664_v17 = vunpack.c.h.s8.bf16 %v2784_v29 }
 0x548   :  { %4707 = vmatpush1.bf16.msra.mxu0 %v3534_v13  ;;  %v3663_v13 = vunpack.c.h.s8.bf16 %v2783_v2 }
 0x549   :  { %4871 = vmatpush1.bf16.msra.mxu1 %v3536_v14  ;;  %4708 = vmatprep.subr.bf16.mxu0 %v3551_v45  ;;  %v3665_v14 = vunpack.c.h.s8.bf16 %v2785_v63  ;;  %v2799_v45 = vld [vmem:[#allocation10 + $0xbc8] sm:$0xff] }
 0x54a   :  { %4872 = vmatprep.subr.bf16.mxu1 %v3553_v16  ;;  %v3662_v16 = vunpack.c.h.s8.bf16 %v2782_v6  ;;  %v2849_v6 = vld [vmem:[#allocation10 + $0xd58] sm:$0xff] }
 0x54c   :  { %4709 = vmatpush1.bf16.msra.mxu0 %v3550_v18  ;;  %v3679_v18 = vunpack.c.l.s8.bf16 %v2799_v45 }
 0x54d   :  { %4873 = vmatpush1.bf16.msra.mxu1 %v3552_v19  ;;  %4710 = vmatprep.subr.bf16.mxu0 %v3567_v21  ;;  %v2798_v19 = vld [vmem:[#allocation10 + $0xbc0] sm:$0xff]  ;;  %v3681_v21 = vunpack.c.l.s8.bf16 %v2801_v15 }
 0x54e   :  { %4874 = vmatprep.subr.bf16.mxu1 %v3569_v22  ;;  %v2800_v22 = vld [vmem:[#allocation10 + $0xbd0] sm:$0xff]  ;;  %v3678_v23 = vunpack.c.l.s8.bf16 %v2798_v19 }
 0x54f   :  { %v3680_v12 = vunpack.c.l.s8.bf16 %v2800_v22  ;;  %v3696_v34 = vunpack.c.h.s8.bf16 %v2800_v22 }
 0x550   :  { %4711 = vmatpush1.bf16.msra.mxu0 %v3566_v27  ;;  %v3695_v27 = vunpack.c.h.s8.bf16 %v2799_v45 }
 0x551   :  { %4875 = vmatpush1.bf16.msra.mxu1 %v3568_v28  ;;  %4712 = vmatprep.subr.bf16.mxu0 %v3583_v30  ;;  %v3697_v28 = vunpack.c.h.s8.bf16 %v2801_v15  ;;  %v2815_v30 = vld [vmem:[#allocation10 + $0xc48] sm:$0xff] }
 0x552   :  { %4876 = vmatprep.subr.bf16.mxu1 %v3585_v33  ;;  %v3694_v33 = vunpack.c.h.s8.bf16 %v2798_v19  ;;  %v2865_v19 = vld [vmem:[#allocation10 + $0xdd8] sm:$0xff] }
 0x554   :  { %4713 = vmatpush1.bf16.msra.mxu0 %v3582_v35  ;;  %v3711_v35 = vunpack.c.l.s8.bf16 %v2815_v30 }
 0x555   :  { %4877 = vmatpush1.bf16.msra.mxu1 %v3584_v43  ;;  %4714 = vmatprep.subr.bf16.mxu0 %v3599_v25  ;;  %v2814_v43 = vld [vmem:[#allocation10 + $0xc40] sm:$0xff]  ;;  %v3713_v25 = vunpack.c.l.s8.bf16 %v2817_v31 }
 0x556   :  { %4878 = vmatprep.subr.bf16.mxu1 %v3601_v32  ;;  %v2816_v32 = vld [vmem:[#allocation10 + $0xc50] sm:$0xff]  ;;  %v3710_v41 = vunpack.c.l.s8.bf16 %v2814_v43 }
 0x557   :  { %v3712_v42 = vunpack.c.l.s8.bf16 %v2816_v32  ;;  %v3728_v56 = vunpack.c.h.s8.bf16 %v2816_v32 }
 0x558   :  { %4715 = vmatpush1.bf16.msra.mxu0 %v3598_v47  ;;  %v3727_v47 = vunpack.c.h.s8.bf16 %v2815_v30  ;;  %v2864_v30 = vld [vmem:[#allocation10 + $0xdd0] sm:$0xff] }
 0x559   :  { %4879 = vmatpush1.bf16.msra.mxu1 %v3600_v48  ;;  %4716 = vmatprep.subr.bf16.mxu0 %v3615_v50  ;;  %v2831_v48 = vld [vmem:[#allocation10 + $0xcc8] sm:$0xff]  ;;  %v3729_v50 = vunpack.c.h.s8.bf16 %v2817_v31 }
 0x55a   :  { %4880 = vmatprep.subr.bf16.mxu1 %v3617_v55  ;;  %v3726_v55 = vunpack.c.h.s8.bf16 %v2814_v43 }
 0x55c   :  { %4717 = vmatpush1.bf16.msra.mxu0 %v3614_v24  ;;  %v3743_v24 = vunpack.c.l.s8.bf16 %v2831_v48 }
 0x55d   :  { %4881 = vmatpush1.bf16.msra.mxu1 %v3616_v58  ;;  %4718 = vmatprep.subr.bf16.mxu0 %v3631_v0  ;;  %v2830_v58 = vld [vmem:[#allocation10 + $0xcc0] sm:$0xff]  ;;  %v3745_v0 = vunpack.c.l.s8.bf16 %v2833_v52 }
 0x55e   :  { %4882 = vmatprep.subr.bf16.mxu1 %v3633_v1  ;;  %v2832_v1 = vld [vmem:[#allocation10 + $0xcd0] sm:$0xff]  ;;  %v3742_v2 = vunpack.c.l.s8.bf16 %v2830_v58 }
 0x55f   :  { %v3744_v63 = vunpack.c.l.s8.bf16 %v2832_v1  ;;  %v3760_v29 = vunpack.c.h.s8.bf16 %v2832_v1  ;;  %v2880_v1 = vld [vmem:[#allocation10 + $0xe50] sm:$0xff] }
 0x560   :  { %4719 = vmatpush1.bf16.msra.mxu0 %v3630_v3  ;;  %v3759_v3 = vunpack.c.h.s8.bf16 %v2831_v48  ;;  %v3825_v48 = vunpack.c.h.s8.bf16 %v2865_v19 }
 0x561   :  { %4883 = vmatpush1.bf16.msra.mxu1 %v3632_v4  ;;  %4720 = vmatprep.subr.bf16.mxu0 %v3647_v5  ;;  %v3761_v4 = vunpack.c.h.s8.bf16 %v2833_v52  ;;  %v2847_v5 = vld [vmem:[#allocation10 + $0xd48] sm:$0xff]  ;;  %v2881_v52 = vld [vmem:[#allocation10 + $0xe58] sm:$0xff] }
 0x562   :  { %4884 = vmatprep.subr.bf16.mxu1 %v3649_v8  ;;  %v3758_v8 = vunpack.c.h.s8.bf16 %v2830_v58  ;;  %v2878_v58 = vld [vmem:[#allocation10 + $0xe40] sm:$0xff] }
 0x564   :  { %4721 = vmatpush1.bf16.msra.mxu0 %v3646_v9  ;;  %v3775_v9 = vunpack.c.l.s8.bf16 %v2847_v5 }
 0x565   :  { %4885 = vmatpush1.bf16.msra.mxu1 %v3648_v10  ;;  %4722 = vmatprep.subr.bf16.mxu0 %v3663_v13  ;;  %v2846_v10 = vld [vmem:[#allocation10 + $0xd40] sm:$0xff]  ;;  %v3777_v13 = vunpack.c.l.s8.bf16 %v2849_v6 }
 0x566   :  { %4886 = vmatprep.subr.bf16.mxu1 %v3665_v14  ;;  %v2848_v14 = vld [vmem:[#allocation10 + $0xd50] sm:$0xff]  ;;  %v3774_v45 = vunpack.c.l.s8.bf16 %v2846_v10 }
 0x567   :  { %v3776_v15 = vunpack.c.l.s8.bf16 %v2848_v14  ;;  %v3792_v22 = vunpack.c.h.s8.bf16 %v2848_v14  ;;  %v2896_v14 = vld [vmem:[#allocation10 + $0xed0] sm:$0xff] }
 0x568   :  { %4723 = vmatpush1.bf16.msra.mxu0 %v3662_v16  ;;  %v3791_v16 = vunpack.c.h.s8.bf16 %v2847_v5  ;;  %v2895_v5 = vld [vmem:[#allocation10 + $0xec8] sm:$0xff] }
 0x569   :  { %4887 = vmatpush1.bf16.msra.mxu1 %v3664_v17  ;;  %4724 = vmatprep.subr.bf16.mxu0 %v3679_v18  ;;  %v3793_v17 = vunpack.c.h.s8.bf16 %v2849_v6  ;;  %v2863_v18 = vld [vmem:[#allocation10 + $0xdc8] sm:$0xff]  ;;  %v2897_v6 = vld [vmem:[#allocation10 + $0xed8] sm:$0xff] }
 0x56a   :  { %4888 = vmatprep.subr.bf16.mxu1 %v3681_v21  ;;  %v3790_v21 = vunpack.c.h.s8.bf16 %v2846_v10  ;;  %v2894_v10 = vld [vmem:[#allocation10 + $0xec0] sm:$0xff] }
 0x56c   :  { %4725 = vmatpush1.bf16.msra.mxu0 %v3678_v23  ;;  %v3807_v23 = vunpack.c.l.s8.bf16 %v2863_v18 }
 0x56d   :  { %4889 = vmatpush1.bf16.msra.mxu1 %v3680_v12  ;;  %4726 = vmatprep.subr.bf16.mxu0 %v3695_v27  ;;  %v2862_v12 = vld [vmem:[#allocation10 + $0xdc0] sm:$0xff] }
 0x56e   :  { %4890 = vmatprep.subr.bf16.mxu1 %v3697_v28  ;;  %v3809_v28 = vunpack.c.l.s8.bf16 %v2865_v19  ;;  %v3806_v43 = vunpack.c.l.s8.bf16 %v2862_v12  ;;  %v2913_v19 = vld [vmem:[#allocation10 + $0xf58] sm:$0xff] }
 0x570   :  { %4727 = vmatpush1.bf16.msra.mxu0 %v3694_v33 }
 0x571   :  { %4891 = vmatpush1.bf16.msra.mxu1 %v3696_v34  ;;  %4737 = vmatprep.subr.bf16.mxu0 %v3711_v35 }
 0x572   :  { %4901 = vmatprep.subr.bf16.mxu1 %v3713_v25 }
 0x573   :  { %4729 = vmatmul.mubr.bf16.vlgmr.msra.gmra.mrb[20].mxu0 %v8652_v62 }
 0x574   :  { %4893 = vmatmul.mubr.bf16.vlgmr.msra.gmra.mrb[20].mxu1 %v8652_v62  ;;  %4738 = vmatpush1.bf16.msra.mxu0 %v3710_v41  ;;  %v3808_v41 = vunpack.c.l.s8.bf16 %v2864_v30 }
 0x575   :  { %4769 = vmatprep.mubr.bf16.mxu0 %v8656_v60  ;;  %4902 = vmatpush1.bf16.msra.mxu1 %v3712_v42  ;;  %v3823_v42 = vunpack.c.h.s8.bf16 %v2863_v18  ;;  %v2911_v18 = vld [vmem:[#allocation10 + $0xf48] sm:$0xff] }
 0x576   :  { %4933 = vmatprep.mubr.bf16.mxu1 %v8656_v60  ;;  %4739 = vmatprep.subr.bf16.mxu0 %v3727_v47 }
 0x577   :  { %4903 = vmatprep.subr.bf16.mxu1 %v3729_v50  ;;  %v2879_v50 = vld [vmem:[#allocation10 + $0xe48] sm:$0xff] }
 0x578   :  { %4740 = vmatpush1.bf16.msra.mxu0 %v3726_v55  ;;  %v3822_v55 = vunpack.c.h.s8.bf16 %v2862_v12  ;;  %v2910_v12 = vld [vmem:[#allocation10 + $0xf40] sm:$0xff] }
 0x579   :  { %4904 = vmatpush1.bf16.msra.mxu1 %v3728_v56  ;;  %4741 = vmatprep.subr.bf16.mxu0 %v3743_v24  ;;  %v3824_v56 = vunpack.c.h.s8.bf16 %v2864_v30  ;;  %v3839_v24 = vunpack.c.l.s8.bf16 %v2879_v50  ;;  %v2912_v30 = vld [vmem:[#allocation10 + $0xf50] sm:$0xff] }
 0x57a   :  { %4905 = vmatprep.subr.bf16.mxu1 %v3745_v0  ;;  %v3841_v0 = vunpack.c.l.s8.bf16 %v2881_v52 }
 0x57c   :  { %4742 = vmatpush1.bf16.msra.mxu0 %v3742_v2  ;;  %v3838_v2 = vunpack.c.l.s8.bf16 %v2878_v58 }
 0x57d   :  { %4906 = vmatpush1.bf16.msra.mxu1 %v3744_v63  ;;  %4743 = vmatprep.subr.bf16.mxu0 %v3759_v3  ;;  %v3840_v63 = vunpack.c.l.s8.bf16 %v2880_v1  ;;  %v3855_v3 = vunpack.c.h.s8.bf16 %v2879_v50 }
 0x57e   :  { %4907 = vmatprep.subr.bf16.mxu1 %v3761_v4  ;;  %v3857_v4 = vunpack.c.h.s8.bf16 %v2881_v52  ;;  %v2926_v52 = vld [vmem:[#allocation10 + $0xfc0] sm:$0xff] }
 0x580   :  { %4744 = vmatpush1.bf16.msra.mxu0 %v3758_v8  ;;  %v3854_v8 = vunpack.c.h.s8.bf16 %v2878_v58 }
 0x581   :  { %4908 = vmatpush1.bf16.msra.mxu1 %v3760_v29  ;;  %4745 = vmatprep.subr.bf16.mxu0 %v3775_v9  ;;  %v3856_v29 = vunpack.c.h.s8.bf16 %v2880_v1  ;;  %v3871_v9 = vunpack.c.l.s8.bf16 %v2895_v5 }
 0x582   :  { %4909 = vmatprep.subr.bf16.mxu1 %v3777_v13  ;;  %v3873_v13 = vunpack.c.l.s8.bf16 %v2897_v6 }
 0x584   :  { %4746 = vmatpush1.bf16.msra.mxu0 %v3774_v45  ;;  %v3870_v45 = vunpack.c.l.s8.bf16 %v2894_v10 }
 0x585   :  { %4910 = vmatpush1.bf16.msra.mxu1 %v3776_v15  ;;  %4747 = vmatprep.subr.bf16.mxu0 %v3791_v16  ;;  %v3872_v15 = vunpack.c.l.s8.bf16 %v2896_v14  ;;  %v3887_v16 = vunpack.c.h.s8.bf16 %v2895_v5 }
 0x586   :  { %v8709_v27 = vpop.f32.mrb[16].mxu0  ;;  %4911 = vmatprep.subr.bf16.mxu1 %v3793_v17  ;;  %v3889_v17 = vunpack.c.h.s8.bf16 %v2897_v6  ;;  %v2434_v6 = vld [vmem:[#allocation10 + $0x60] sm:$0xff] }
 0x587   :  { %v8711_v31 = vpop.f32.mrb[16].mxu1  ;;  %v8713_v33 = vpop.f32.mrb[17].mxu0 }
 0x588   :  { %v8715_v34 = vpop.f32.mrb[17].mxu1  ;;  %v4447_v35 = vpop.f32.mrb[18].mxu0  ;;  %4748 = vmatpush1.bf16.msra.mxu0 %v3790_v21  ;;  %v3886_v21 = vunpack.c.h.s8.bf16 %v2894_v10 }
 0x589   :  { %v4611_v25 = vpop.f32.mrb[18].mxu1  ;;  %4912 = vmatpush1.bf16.msra.mxu1 %v3792_v22  ;;  %v4448_v32 = vpop.f32.mrb[19].mxu0  ;;  %4749 = vmatprep.subr.bf16.mxu0 %v3807_v23  ;;  %v3888_v22 = vunpack.c.h.s8.bf16 %v2896_v14  ;;  %v3903_v23 = vunpack.c.l.s8.bf16 %v2911_v18  ;;  %v3902_v35 = vunpack.c.l.s8.bf16 %v2910_v12  ;;  %v2451_v14 = vld [vmem:[#allocation10 + $0xe8] sm:$0xff] }
 0x58a   :  { %v4612_v47 = vpop.f32.mrb[19].mxu1  ;;  %4913 = vmatprep.subr.bf16.mxu1 %v3809_v28  ;;  %v3905_v28 = vunpack.c.l.s8.bf16 %v2913_v19  ;;  %v3919_v25 = vunpack.c.h.s8.bf16 %v2911_v18  ;;  %v3921_v32 = vunpack.c.h.s8.bf16 %v2913_v19  ;;  %v2979_v18 = vunpack.c.l.s8.bf16 %v2451_v14  ;;  %v2450_v19 = vld [vmem:[#allocation10 + $0xe0] sm:$0xff] }
 0x58b   :  { %v3918_v47 = vunpack.c.h.s8.bf16 %v2910_v12 }
 0x58c   :  { %4750 = vmatpush1.bf16.msra.mxu0 %v3806_v43  ;;  %v3904_v43 = vunpack.c.l.s8.bf16 %v2912_v30 }
 0x58d   :  { %4914 = vmatpush1.bf16.msra.mxu1 %v3808_v41  ;;  %4751 = vmatprep.subr.bf16.mxu0 %v3823_v42  ;;  %v2927_v41 = vld [vmem:[#allocation10 + $0xfc8] sm:$0xff]  ;;  %v2929_v42 = vld [vmem:[#allocation10 + $0xfd8] sm:$0xff] }
 0x58e   :  { %4915 = vmatprep.subr.bf16.mxu1 %v3825_v48  ;;  %v3920_v48 = vunpack.c.h.s8.bf16 %v2912_v30  ;;  %v3935_v50 = vunpack.c.l.s8.bf16 %v2927_v41  ;;  %v3953_v1 = vunpack.c.h.s8.bf16 %v2929_v42 }
 0x590   :  { %4752 = vmatpush1.bf16.msra.mxu0 %v3822_v55  ;;  %v3937_v55 = vunpack.c.l.s8.bf16 %v2929_v42 }
 0x591   :  { %4916 = vmatpush1.bf16.msra.mxu1 %v3824_v56  ;;  %4753 = vmatprep.subr.bf16.mxu0 %v3839_v24  ;;  %v2928_v56 = vld [vmem:[#allocation10 + $0xfd0] sm:$0xff]  ;;  %v3934_v24 = vunpack.c.l.s8.bf16 %v2926_v52 }
 0x592   :  { %4917 = vmatprep.subr.bf16.mxu1 %v3841_v0  ;;  %v3936_v58 = vunpack.c.l.s8.bf16 %v2928_v56  ;;  %v3951_v0 = vunpack.c.h.s8.bf16 %v2927_v41  ;;  %v2466_v41 = vld [vmem:[#allocation10 + $0x160] sm:$0xff] }
 0x594   :  { %4754 = vmatpush1.bf16.msra.mxu0 %v3838_v2  ;;  %v2435_v2 = vld [vmem:[#allocation10 + $0x68] sm:$0xff] }
 0x595   :  { %4918 = vmatpush1.bf16.msra.mxu1 %v3840_v63  ;;  %4755 = vmatprep.subr.bf16.mxu0 %v3855_v3  ;;  %v2437_v63 = vld [vmem:[#allocation10 + $0x78] sm:$0xff]  ;;  %v3950_v3 = vunpack.c.h.s8.bf16 %v2926_v52  ;;  %v2947_v5 = vunpack.c.l.s8.bf16 %v2435_v2 }
 0x596   :  { %4919 = vmatprep.subr.bf16.mxu1 %v3857_v4  ;;  %v3952_v4 = vunpack.c.h.s8.bf16 %v2928_v56  ;;  %v2483_v56 = vld [vmem:[#allocation10 + $0x1e8] sm:$0xff] }
 0x598   :  { %4756 = vmatpush1.bf16.msra.mxu0 %v3854_v8  ;;  %v2949_v8 = vunpack.c.l.s8.bf16 %v2437_v63 }
 0x599   :  { %4920 = vmatpush1.bf16.msra.mxu1 %v3856_v29  ;;  %4757 = vmatprep.subr.bf16.mxu0 %v3871_v9  ;;  %v2436_v29 = vld [vmem:[#allocation10 + $0x70] sm:$0xff]  ;;  %v2946_v9 = vunpack.c.l.s8.bf16 %v2434_v6 }
 0x59a   :  { %4921 = vmatprep.subr.bf16.mxu1 %v3873_v13  ;;  %v2948_v10 = vunpack.c.l.s8.bf16 %v2436_v29  ;;  %v2963_v13 = vunpack.c.h.s8.bf16 %v2435_v2  ;;  %v2482_v2 = vld [vmem:[#allocation10 + $0x1e0] sm:$0xff] }
 0x59c   :  { %4758 = vmatpush1.bf16.msra.mxu0 %v3870_v45  ;;  %v2965_v45 = vunpack.c.h.s8.bf16 %v2437_v63 }
 0x59d   :  { %4922 = vmatpush1.bf16.msra.mxu1 %v3872_v15  ;;  %4759 = vmatprep.subr.bf16.mxu0 %v3887_v16  ;;  %v2453_v15 = vld [vmem:[#allocation10 + $0xf8] sm:$0xff]  ;;  %v2962_v16 = vunpack.c.h.s8.bf16 %v2434_v6  ;;  %v3059_v6 = vunpack.c.h.s8.bf16 %v2483_v56 }
 0x59e   :  { %4923 = vmatprep.subr.bf16.mxu1 %v3889_v17  ;;  %v2964_v17 = vunpack.c.h.s8.bf16 %v2436_v29  ;;  %v2997_v30 = vunpack.c.h.s8.bf16 %v2453_v15  ;;  %v2499_v29 = vld [vmem:[#allocation10 + $0x268] sm:$0xff] }
 0x5a0   :  { %4760 = vmatpush1.bf16.msra.mxu0 %v3886_v21  ;;  %v2981_v21 = vunpack.c.l.s8.bf16 %v2453_v15 }
 0x5a1   :  { %4924 = vmatpush1.bf16.msra.mxu1 %v3888_v22  ;;  %4761 = vmatprep.subr.bf16.mxu0 %v3903_v23  ;;  %v2452_v22 = vld [vmem:[#allocation10 + $0xf0] sm:$0xff]  ;;  %v2978_v23 = vunpack.c.l.s8.bf16 %v2450_v19 }
 0x5a2   :  { %4925 = vmatprep.subr.bf16.mxu1 %v3905_v28  ;;  %v2980_v12 = vunpack.c.l.s8.bf16 %v2452_v22  ;;  %v2995_v28 = vunpack.c.h.s8.bf16 %v2451_v14  ;;  %v3075_v14 = vunpack.c.l.s8.bf16 %v2499_v29 }
 0x5a4   :  { %4762 = vmatpush1.bf16.msra.mxu0 %v3902_v35  ;;  %v2467_v35 = vld [vmem:[#allocation10 + $0x168] sm:$0xff] }
 0x5a5   :  { %4926 = vmatpush1.bf16.msra.mxu1 %v3904_v43  ;;  %4763 = vmatprep.subr.bf16.mxu0 %v3919_v25  ;;  %v2469_v43 = vld [vmem:[#allocation10 + $0x178] sm:$0xff]  ;;  %v2994_v25 = vunpack.c.h.s8.bf16 %v2450_v19  ;;  %v3027_v52 = vunpack.c.h.s8.bf16 %v2467_v35  ;;  %v3091_v19 = vunpack.c.h.s8.bf16 %v2499_v29  ;;  %v2546_v29 = vld [vmem:[#allocation10 + $0x3e0] sm:$0xff] }
 0x5a6   :  { %4927 = vmatprep.subr.bf16.mxu1 %v3921_v32  ;;  %v2996_v32 = vunpack.c.h.s8.bf16 %v2452_v22  ;;  %v3013_v42 = vunpack.c.l.s8.bf16 %v2469_v43  ;;  %v2515_v22 = vld [vmem:[#allocation10 + $0x2e8] sm:$0xff] }
 0x5a8   :  { %4764 = vmatpush1.bf16.msra.mxu0 %v3918_v47  ;;  %v2468_v47 = vld [vmem:[#allocation10 + $0x170] sm:$0xff] }
 0x5a9   :  { %4928 = vmatpush1.bf16.msra.mxu1 %v3920_v48  ;;  %4765 = vmatprep.subr.bf16.mxu0 %v3935_v50  ;;  %v3010_v48 = vunpack.c.l.s8.bf16 %v2466_v41  ;;  %v3012_v50 = vunpack.c.l.s8.bf16 %v2468_v47 }
 0x5aa   :  { %4929 = vmatprep.subr.bf16.mxu1 %v3937_v55  ;;  %v3029_v55 = vunpack.c.h.s8.bf16 %v2469_v43 }
 0x5ac   :  { %4766 = vmatpush1.bf16.msra.mxu0 %v3934_v24  ;;  %v2485_v24 = vld [vmem:[#allocation10 + $0x1f8] sm:$0xff] }
 0x5ad   :  { %4930 = vmatpush1.bf16.msra.mxu1 %v3936_v58  ;;  %4767 = vmatprep.subr.bf16.mxu0 %v3951_v0  ;;  %v3026_v58 = vunpack.c.h.s8.bf16 %v2466_v41  ;;  %v3028_v0 = vunpack.c.h.s8.bf16 %v2468_v47  ;;  %v3045_v63 = vunpack.c.l.s8.bf16 %v2485_v24  ;;  %v3123_v41 = vunpack.c.h.s8.bf16 %v2515_v22  ;;  %v2531_v47 = vld [vmem:[#allocation10 + $0x368] sm:$0xff] }
 0x5ae   :  { %4931 = vmatprep.subr.bf16.mxu1 %v3953_v1  ;;  %v3043_v1 = vunpack.c.l.s8.bf16 %v2483_v56  ;;  %v2530_v56 = vld [vmem:[#allocation10 + $0x360] sm:$0xff] }
 0x5b0   :  { %4768 = vmatpush1.bf16.msra.mxu0 %v3950_v3  ;;  %v2484_v3 = vld [vmem:[#allocation10 + $0x1f0] sm:$0xff] }
 0x5b1   :  { %4932 = vmatpush1.bf16.msra.mxu1 %v3952_v4  ;;  %4942 = vmatprep.subr.bf16.mxu0 %v2947_v5  ;;  %v3042_v4 = vunpack.c.l.s8.bf16 %v2482_v2  ;;  %v3044_v5 = vunpack.c.l.s8.bf16 %v2484_v3 }
 0x5b2   :  { %5106 = vmatprep.subr.bf16.mxu1 %v2949_v8  ;;  %v3061_v8 = vunpack.c.h.s8.bf16 %v2485_v24 }
 0x5b3   :  { %4770 = vmatmul.mubr.bf16.vlgmr.msra.gmra.mrb[20].mxu0 %v8667_v57 }
 0x5b4   :  { %4934 = vmatmul.mubr.bf16.vlgmr.msra.gmra.mrb[20].mxu1 %v8667_v57  ;;  %4943 = vmatpush1.bf16.msra.mxu0 %v2946_v9  ;;  %v2501_v9 = vld [vmem:[#allocation10 + $0x278] sm:$0xff] }
 0x5b5   :  { %4974 = vmatprep.mubr.bf16.mxu0 %v8614_v51  ;;  %5107 = vmatpush1.bf16.msra.mxu1 %v2948_v10  ;;  %v3058_v10 = vunpack.c.h.s8.bf16 %v2482_v2  ;;  %v3077_v15 = vunpack.c.l.s8.bf16 %v2501_v9  ;;  %v3155_v2 = vunpack.c.h.s8.bf16 %v2531_v47 }
 0x5b6   :  { %5138 = vmatprep.mubr.bf16.mxu1 %v8614_v51  ;;  %4944 = vmatprep.subr.bf16.mxu0 %v2963_v13  ;;  %v3011_v51 = vunpack.c.l.s8.bf16 %v2467_v35  ;;  %v3060_v13 = vunpack.c.h.s8.bf16 %v2484_v3  ;;  %v2514_v35 = vld [vmem:[#allocation10 + $0x2e0] sm:$0xff]  ;;  %v2547_v3 = vld [vmem:[#allocation10 + $0x3e8] sm:$0xff] }
 0x5b7   :  { %5108 = vmatprep.subr.bf16.mxu1 %v2965_v45  ;;  %v2498_v45 = vld [vmem:[#allocation10 + $0x260] sm:$0xff] }
 0x5b8   :  { %4945 = vmatpush1.bf16.msra.mxu0 %v2962_v16  ;;  %v2500_v16 = vld [vmem:[#allocation10 + $0x270] sm:$0xff] }
 0x5b9   :  { %5109 = vmatpush1.bf16.msra.mxu1 %v2964_v17  ;;  %4946 = vmatprep.subr.bf16.mxu0 %v2979_v18  ;;  %v3074_v17 = vunpack.c.l.s8.bf16 %v2498_v45  ;;  %v3076_v18 = vunpack.c.l.s8.bf16 %v2500_v16 }
 0x5ba   :  { %5110 = vmatprep.subr.bf16.mxu1 %v2981_v21  ;;  %v3093_v21 = vunpack.c.h.s8.bf16 %v2501_v9 }
 0x5bc   :  { %4947 = vmatpush1.bf16.msra.mxu0 %v2978_v23  ;;  %v2517_v23 = vld [vmem:[#allocation10 + $0x2f8] sm:$0xff] }
 0x5bd   :  { %5111 = vmatpush1.bf16.msra.mxu1 %v2980_v12  ;;  %4948 = vmatprep.subr.bf16.mxu0 %v2995_v28  ;;  %v3090_v12 = vunpack.c.h.s8.bf16 %v2498_v45  ;;  %v3092_v28 = vunpack.c.h.s8.bf16 %v2500_v16  ;;  %v3109_v43 = vunpack.c.l.s8.bf16 %v2517_v23  ;;  %v3187_v45 = vunpack.c.h.s8.bf16 %v2547_v3  ;;  %v2563_v16 = vld [vmem:[#allocation10 + $0x468] sm:$0xff] }
 0x5be   :  { %5112 = vmatprep.subr.bf16.mxu1 %v2997_v30  ;;  %v3107_v30 = vunpack.c.l.s8.bf16 %v2515_v22  ;;  %v2562_v22 = vld [vmem:[#allocation10 + $0x460] sm:$0xff] }
 0x5c0   :  { %4949 = vmatpush1.bf16.msra.mxu0 %v2994_v25  ;;  %v2516_v25 = vld [vmem:[#allocation10 + $0x2f0] sm:$0xff] }
 0x5c1   :  { %5113 = vmatpush1.bf16.msra.mxu1 %v2996_v32  ;;  %4950 = vmatprep.subr.bf16.mxu0 %v3011_v51  ;;  %v3106_v32 = vunpack.c.l.s8.bf16 %v2514_v35  ;;  %v3108_v51 = vunpack.c.l.s8.bf16 %v2516_v25 }
 0x5c2   :  { %5114 = vmatprep.subr.bf16.mxu1 %v3013_v42  ;;  %v3125_v42 = vunpack.c.h.s8.bf16 %v2517_v23 }
 0x5c4   :  { %4951 = vmatpush1.bf16.msra.mxu0 %v3010_v48  ;;  %v2533_v48 = vld [vmem:[#allocation10 + $0x378] sm:$0xff] }
 0x5c5   :  { %5115 = vmatpush1.bf16.msra.mxu1 %v3012_v50  ;;  %4952 = vmatprep.subr.bf16.mxu0 %v3027_v52  ;;  %v3122_v50 = vunpack.c.h.s8.bf16 %v2514_v35  ;;  %v3124_v52 = vunpack.c.h.s8.bf16 %v2516_v25  ;;  %v3141_v24 = vunpack.c.l.s8.bf16 %v2533_v48  ;;  %v3219_v35 = vunpack.c.h.s8.bf16 %v2563_v16 }
 0x5c6   :  { %5116 = vmatprep.subr.bf16.mxu1 %v3029_v55  ;;  %v3139_v55 = vunpack.c.l.s8.bf16 %v2531_v47  ;;  %v2578_v47 = vld [vmem:[#allocation10 + $0x4e0] sm:$0xff] }
 0x5c8   :  { %4953 = vmatpush1.bf16.msra.mxu0 %v3026_v58  ;;  %v2532_v58 = vld [vmem:[#allocation10 + $0x370] sm:$0xff] }
 0x5c9   :  { %5117 = vmatpush1.bf16.msra.mxu1 %v3028_v0  ;;  %4954 = vmatprep.subr.bf16.mxu0 %v3043_v1  ;;  %v3138_v0 = vunpack.c.l.s8.bf16 %v2530_v56  ;;  %v3140_v1 = vunpack.c.l.s8.bf16 %v2532_v58 }
 0x5ca   :  { %5118 = vmatprep.subr.bf16.mxu1 %v3045_v63  ;;  %v3157_v63 = vunpack.c.h.s8.bf16 %v2533_v48 }
 0x5cc   :  { %4955 = vmatpush1.bf16.msra.mxu0 %v3042_v4  ;;  %v2549_v4 = vld [vmem:[#allocation10 + $0x3f8] sm:$0xff] }
 0x5cd   :  { %5119 = vmatpush1.bf16.msra.mxu1 %v3044_v5  ;;  %4956 = vmatprep.subr.bf16.mxu0 %v3059_v6  ;;  %v3154_v5 = vunpack.c.h.s8.bf16 %v2530_v56  ;;  %v3156_v6 = vunpack.c.h.s8.bf16 %v2532_v58  ;;  %v3173_v9 = vunpack.c.l.s8.bf16 %v2549_v4  ;;  %v2597_v58 = vld [vmem:[#allocation10 + $0x578] sm:$0xff] }
 0x5ce   :  { %5120 = vmatprep.subr.bf16.mxu1 %v3061_v8  ;;  %v3171_v8 = vunpack.c.l.s8.bf16 %v2547_v3  ;;  %v2596_v3 = vld [vmem:[#allocation10 + $0x570] sm:$0xff] }
 0x5d0   :  { %4957 = vmatpush1.bf16.msra.mxu0 %v3058_v10  ;;  %v2548_v10 = vld [vmem:[#allocation10 + $0x3f0] sm:$0xff] }
 0x5d1   :  { %5121 = vmatpush1.bf16.msra.mxu1 %v3060_v13  ;;  %4958 = vmatprep.subr.bf16.mxu0 %v3075_v14  ;;  %v3170_v13 = vunpack.c.l.s8.bf16 %v2546_v29  ;;  %v3172_v14 = vunpack.c.l.s8.bf16 %v2548_v10 }
 0x5d2   :  { %5122 = vmatprep.subr.bf16.mxu1 %v3077_v15  ;;  %v3189_v15 = vunpack.c.h.s8.bf16 %v2549_v4 }
 0x5d4   :  { %4959 = vmatpush1.bf16.msra.mxu0 %v3074_v17  ;;  %v2565_v17 = vld [vmem:[#allocation10 + $0x478] sm:$0xff] }
 0x5d5   :  { %5123 = vmatpush1.bf16.msra.mxu1 %v3076_v18  ;;  %4960 = vmatprep.subr.bf16.mxu0 %v3091_v19  ;;  %v3186_v18 = vunpack.c.h.s8.bf16 %v2546_v29  ;;  %v3188_v19 = vunpack.c.h.s8.bf16 %v2548_v10  ;;  %v3205_v23 = vunpack.c.l.s8.bf16 %v2565_v17  ;;  %v3221_v25 = vunpack.c.h.s8.bf16 %v2565_v17  ;;  %v2611_v29 = vld [vmem:[#allocation10 + $0x5e8] sm:$0xff] }
 0x5d6   :  { %5124 = vmatprep.subr.bf16.mxu1 %v3093_v21  ;;  %v3203_v21 = vunpack.c.l.s8.bf16 %v2563_v16  ;;  %v2612_v16 = vld [vmem:[#allocation10 + $0x5f0] sm:$0xff] }
 0x5d8   :  { %4961 = vmatpush1.bf16.msra.mxu0 %v3090_v12  ;;  %v2564_v12 = vld [vmem:[#allocation10 + $0x470] sm:$0xff] }
 0x5d9   :  { %5125 = vmatpush1.bf16.msra.mxu1 %v3092_v28  ;;  %4962 = vmatprep.subr.bf16.mxu0 %v3107_v30  ;;  %v3202_v28 = vunpack.c.l.s8.bf16 %v2562_v22  ;;  %v3204_v30 = vunpack.c.l.s8.bf16 %v2564_v12 }
 0x5da   :  { %5126 = vmatprep.subr.bf16.mxu1 %v3109_v43  ;;  %v2579_v43 = vld [vmem:[#allocation10 + $0x4e8] sm:$0xff] }
 0x5dc   :  { %4963 = vmatpush1.bf16.msra.mxu0 %v3106_v32  ;;  %v2581_v32 = vld [vmem:[#allocation10 + $0x4f8] sm:$0xff] }
 0x5dd   :  { %5127 = vmatpush1.bf16.msra.mxu1 %v3108_v51  ;;  %4964 = vmatprep.subr.bf16.mxu0 %v3123_v41  ;;  %v3218_v51 = vunpack.c.h.s8.bf16 %v2562_v22  ;;  %v3220_v41 = vunpack.c.h.s8.bf16 %v2564_v12  ;;  %v3237_v48 = vunpack.c.l.s8.bf16 %v2581_v32  ;;  %v3253_v56 = vunpack.c.h.s8.bf16 %v2581_v32  ;;  %v2627_v22 = vld [vmem:[#allocation10 + $0x668] sm:$0xff] }
 0x5de   :  { %5128 = vmatprep.subr.bf16.mxu1 %v3125_v42  ;;  %v3235_v42 = vunpack.c.l.s8.bf16 %v2579_v43 }
 0x5e0   :  { %4965 = vmatpush1.bf16.msra.mxu0 %v3122_v50  ;;  %v2580_v50 = vld [vmem:[#allocation10 + $0x4f0] sm:$0xff] }
 0x5e1   :  { %5129 = vmatpush1.bf16.msra.mxu1 %v3124_v52  ;;  %4966 = vmatprep.subr.bf16.mxu0 %v3139_v55  ;;  %v3234_v52 = vunpack.c.l.s8.bf16 %v2578_v47  ;;  %v3236_v55 = vunpack.c.l.s8.bf16 %v2580_v50 }
 0x5e2   :  { %5130 = vmatprep.subr.bf16.mxu1 %v3141_v24  ;;  %v2595_v24 = vld [vmem:[#allocation10 + $0x568] sm:$0xff] }
 0x5e4   :  { %4967 = vmatpush1.bf16.msra.mxu0 %v3138_v0  ;;  %v3250_v0 = vunpack.c.h.s8.bf16 %v2578_v47  ;;  %v2643_v47 = vld [vmem:[#allocation10 + $0x6e8] sm:$0xff] }
 0x5e5   :  { %5131 = vmatpush1.bf16.msra.mxu1 %v3140_v1  ;;  %4968 = vmatprep.subr.bf16.mxu0 %v3155_v2  ;;  %v3252_v1 = vunpack.c.h.s8.bf16 %v2580_v50  ;;  %v2594_v2 = vld [vmem:[#allocation10 + $0x560] sm:$0xff] }
 0x5e6   :  { %5132 = vmatprep.subr.bf16.mxu1 %v3157_v63  ;;  %v3269_v63 = vunpack.c.l.s8.bf16 %v2597_v58  ;;  %v3266_v4 = vunpack.c.l.s8.bf16 %v2594_v2  ;;  %v3282_v10 = vunpack.c.h.s8.bf16 %v2594_v2  ;;  %v2659_v2 = vld [vmem:[#allocation10 + $0x768] sm:$0xff] }
 0x5e8   :  { %4969 = vmatpush1.bf16.msra.mxu0 %v3154_v5  ;;  %v3268_v5 = vunpack.c.l.s8.bf16 %v2596_v3 }
 0x5e9   :  { %5133 = vmatpush1.bf16.msra.mxu1 %v3156_v6  ;;  %4970 = vmatprep.subr.bf16.mxu0 %v3171_v8  ;;  %v3283_v6 = vunpack.c.h.s8.bf16 %v2595_v24  ;;  %v3285_v8 = vunpack.c.h.s8.bf16 %v2597_v58 }
 0x5ea   :  { %5134 = vmatprep.subr.bf16.mxu1 %v3173_v9  ;;  %v2613_v9 = vld [vmem:[#allocation10 + $0x5f8] sm:$0xff] }
 0x5ec   :  { %4971 = vmatpush1.bf16.msra.mxu0 %v3170_v13  ;;  %v3284_v13 = vunpack.c.h.s8.bf16 %v2596_v3 }
 0x5ed   :  { %5135 = vmatpush1.bf16.msra.mxu1 %v3172_v14  ;;  %4972 = vmatprep.subr.bf16.mxu0 %v3187_v45  ;;  %v3299_v14 = vunpack.c.l.s8.bf16 %v2611_v29  ;;  %v2610_v45 = vld [vmem:[#allocation10 + $0x5e0] sm:$0xff] }
 0x5ee   :  { %5136 = vmatprep.subr.bf16.mxu1 %v3189_v15  ;;  %v3301_v15 = vunpack.c.l.s8.bf16 %v2613_v9  ;;  %v3298_v17 = vunpack.c.l.s8.bf16 %v2610_v45  ;;  %v3314_v12 = vunpack.c.h.s8.bf16 %v2610_v45  ;;  %v2675_v45 = vld [vmem:[#allocation10 + $0x7e8] sm:$0xff] }
 0x5f0   :  { %4973 = vmatpush1.bf16.msra.mxu0 %v3186_v18  ;;  %v3300_v18 = vunpack.c.l.s8.bf16 %v2612_v16 }
 0x5f1   :  { %5137 = vmatpush1.bf16.msra.mxu1 %v3188_v19  ;;  %4983 = vmatprep.subr.bf16.mxu0 %v3203_v21  ;;  %v3315_v19 = vunpack.c.h.s8.bf16 %v2611_v29  ;;  %v3317_v21 = vunpack.c.h.s8.bf16 %v2613_v9  ;;  %v2660_v29 = vld [vmem:[#allocation10 + $0x770] sm:$0xff] }
 0x5f2   :  { %5147 = vmatprep.subr.bf16.mxu1 %v3205_v23  ;;  %v2629_v23 = vld [vmem:[#allocation10 + $0x678] sm:$0xff] }
 0x5f3   :  { %4975 = vmatmul.mubr.bf16.vlgmr.msra.gmra.mrb[24].mxu0 %v8616_v54 }
 0x5f4   :  { %5139 = vmatmul.mubr.bf16.vlgmr.msra.gmra.mrb[24].mxu1 %v8616_v54  ;;  %4984 = vmatpush1.bf16.msra.mxu0 %v3202_v28  ;;  %v3251_v54 = vunpack.c.h.s8.bf16 %v2579_v43  ;;  %v3316_v28 = vunpack.c.h.s8.bf16 %v2612_v16  ;;  %v3333_v43 = vunpack.c.l.s8.bf16 %v2629_v23 }
 0x5f5   :  { %5015 = vmatprep.mubr.bf16.mxu0 %v8620_v59  ;;  %5148 = vmatpush1.bf16.msra.mxu1 %v3204_v30  ;;  %v3331_v30 = vunpack.c.l.s8.bf16 %v2627_v22 }
 0x5f6   :  { %5179 = vmatprep.mubr.bf16.mxu1 %v8620_v59  ;;  %4985 = vmatprep.subr.bf16.mxu0 %v3219_v35  ;;  %v3267_v59 = vunpack.c.l.s8.bf16 %v2595_v24  ;;  %v2626_v35 = vld [vmem:[#allocation10 + $0x660] sm:$0xff]  ;;  %v2644_v24 = vld [vmem:[#allocation10 + $0x6f0] sm:$0xff] }
 0x5f7   :  { %5149 = vmatprep.subr.bf16.mxu1 %v3221_v25  ;;  %v2628_v25 = vld [vmem:[#allocation10 + $0x670] sm:$0xff]  ;;  %v3330_v32 = vunpack.c.l.s8.bf16 %v2626_v35  ;;  %v3346_v50 = vunpack.c.h.s8.bf16 %v2626_v35  ;;  %v2691_v35 = vld [vmem:[#allocation10 + $0x868] sm:$0xff] }
 0x5f8   :  { %4986 = vmatpush1.bf16.msra.mxu0 %v3218_v51  ;;  %v3332_v51 = vunpack.c.l.s8.bf16 %v2628_v25 }
 0x5f9   :  { %5150 = vmatpush1.bf16.msra.mxu1 %v3220_v41  ;;  %4987 = vmatprep.subr.bf16.mxu0 %v3235_v42  ;;  %v3347_v41 = vunpack.c.h.s8.bf16 %v2627_v22  ;;  %v3349_v42 = vunpack.c.h.s8.bf16 %v2629_v23  ;;  %v2676_v22 = vld [vmem:[#allocation10 + $0x7f0] sm:$0xff] }
 0x5fa   :  { %5151 = vmatprep.subr.bf16.mxu1 %v3237_v48  ;;  %v2645_v48 = vld [vmem:[#allocation10 + $0x6f8] sm:$0xff] }
 0x5fc   :  { %4988 = vmatpush1.bf16.msra.mxu0 %v3234_v52  ;;  %v3348_v52 = vunpack.c.h.s8.bf16 %v2628_v25 }
 0x5fd   :  { %5152 = vmatpush1.bf16.msra.mxu1 %v3236_v55  ;;  %4989 = vmatprep.subr.bf16.mxu0 %v3251_v54  ;;  %v3363_v55 = vunpack.c.l.s8.bf16 %v2643_v47  ;;  %v2642_v54 = vld [vmem:[#allocation10 + $0x6e0] sm:$0xff] }
 0x5fe   :  { %5153 = vmatprep.subr.bf16.mxu1 %v3253_v56  ;;  %v3365_v56 = vunpack.c.l.s8.bf16 %v2645_v48  ;;  %v3362_v58 = vunpack.c.l.s8.bf16 %v2642_v54  ;;  %v3378_v3 = vunpack.c.h.s8.bf16 %v2642_v54 }
 0x600   :  { %4990 = vmatpush1.bf16.msra.mxu0 %v3250_v0  ;;  %v3364_v0 = vunpack.c.l.s8.bf16 %v2644_v24 }
 0x601   :  { %5154 = vmatpush1.bf16.msra.mxu1 %v3252_v1  ;;  %4991 = vmatprep.subr.bf16.mxu0 %v3267_v59  ;;  %v3379_v1 = vunpack.c.h.s8.bf16 %v2643_v47  ;;  %v3381_v59 = vunpack.c.h.s8.bf16 %v2645_v48  ;;  %v2692_v47 = vld [vmem:[#allocation10 + $0x870] sm:$0xff] }
 0x602   :  { %5155 = vmatprep.subr.bf16.mxu1 %v3269_v63  ;;  %v2661_v63 = vld [vmem:[#allocation10 + $0x778] sm:$0xff] }
 0x604   :  { %4992 = vmatpush1.bf16.msra.mxu0 %v3266_v4  ;;  %v3380_v4 = vunpack.c.h.s8.bf16 %v2644_v24 }
 0x605   :  { %5156 = vmatpush1.bf16.msra.mxu1 %v3268_v5  ;;  %4993 = vmatprep.subr.bf16.mxu0 %v3283_v6  ;;  %v3395_v5 = vunpack.c.l.s8.bf16 %v2659_v2  ;;  %v2658_v6 = vld [vmem:[#allocation10 + $0x760] sm:$0xff] }
 0x606   :  { %5157 = vmatprep.subr.bf16.mxu1 %v3285_v8  ;;  %v3397_v8 = vunpack.c.l.s8.bf16 %v2661_v63  ;;  %v3394_v9 = vunpack.c.l.s8.bf16 %v2658_v6  ;;  %v3410_v16 = vunpack.c.h.s8.bf16 %v2658_v6  ;;  %v2725_v6 = vld [vmem:[#allocation10 + $0x978] sm:$0xff] }
 0x608   :  { %4994 = vmatpush1.bf16.msra.mxu0 %v3282_v10  ;;  %v3396_v10 = vunpack.c.l.s8.bf16 %v2660_v29 }
 0x609   :  { %5158 = vmatpush1.bf16.msra.mxu1 %v3284_v13  ;;  %4995 = vmatprep.subr.bf16.mxu0 %v3299_v14  ;;  %v3411_v13 = vunpack.c.h.s8.bf16 %v2659_v2  ;;  %v3413_v14 = vunpack.c.h.s8.bf16 %v2661_v63  ;;  %v2708_v2 = vld [vmem:[#allocation10 + $0x8f0] sm:$0xff] }
 0x60a   :  { %5159 = vmatprep.subr.bf16.mxu1 %v3301_v15  ;;  %v2677_v15 = vld [vmem:[#allocation10 + $0x7f8] sm:$0xff] }
 0x60c   :  { %4996 = vmatpush1.bf16.msra.mxu0 %v3298_v17  ;;  %v3412_v17 = vunpack.c.h.s8.bf16 %v2660_v29  ;;  %v3508_v29 = vunpack.c.h.s8.bf16 %v2708_v2 }
 0x60d   :  { %5160 = vmatpush1.bf16.msra.mxu1 %v3300_v18  ;;  %4997 = vmatprep.subr.bf16.mxu0 %v3315_v19  ;;  %v3427_v18 = vunpack.c.l.s8.bf16 %v2675_v45  ;;  %v2674_v19 = vld [vmem:[#allocation10 + $0x7e0] sm:$0xff] }
 0x60e   :  { %5161 = vmatprep.subr.bf16.mxu1 %v3317_v21  ;;  %v3429_v21 = vunpack.c.l.s8.bf16 %v2677_v15  ;;  %v3426_v23 = vunpack.c.l.s8.bf16 %v2674_v19  ;;  %v3442_v25 = vunpack.c.h.s8.bf16 %v2674_v19 }
 0x610   :  { %4998 = vmatpush1.bf16.msra.mxu0 %v3314_v12  ;;  %v3428_v12 = vunpack.c.l.s8.bf16 %v2676_v22 }
 0x611   :  { %5162 = vmatpush1.bf16.msra.mxu1 %v3316_v28  ;;  %4999 = vmatprep.subr.bf16.mxu0 %v3331_v30  ;;  %v3443_v28 = vunpack.c.h.s8.bf16 %v2675_v45  ;;  %v3445_v30 = vunpack.c.h.s8.bf16 %v2677_v15 }
 0x612   :  { %5163 = vmatprep.subr.bf16.mxu1 %v3333_v43  ;;  %v2693_v43 = vld [vmem:[#allocation10 + $0x878] sm:$0xff] }
 0x613   :  { %v3477_v54 = vunpack.c.h.s8.bf16 %v2693_v43 }
 0x614   :  { %5000 = vmatpush1.bf16.msra.mxu0 %v3330_v32  ;;  %v3444_v32 = vunpack.c.h.s8.bf16 %v2676_v22 }
 0x615   :  { %5164 = vmatpush1.bf16.msra.mxu1 %v3332_v51  ;;  %5001 = vmatprep.subr.bf16.mxu0 %v3347_v41  ;;  %v3459_v51 = vunpack.c.l.s8.bf16 %v2691_v35  ;;  %v2690_v41 = vld [vmem:[#allocation10 + $0x860] sm:$0xff] }
 0x616   :  { %5165 = vmatprep.subr.bf16.mxu1 %v3349_v42  ;;  %v3461_v42 = vunpack.c.l.s8.bf16 %v2693_v43  ;;  %v3458_v48 = vunpack.c.l.s8.bf16 %v2690_v41  ;;  %v3474_v24 = vunpack.c.h.s8.bf16 %v2690_v41 }
 0x618   :  { %5002 = vmatpush1.bf16.msra.mxu0 %v3346_v50  ;;  %v3460_v50 = vunpack.c.l.s8.bf16 %v2692_v47 }
 0x619   :  { %5166 = vmatpush1.bf16.msra.mxu1 %v3348_v52  ;;  %5003 = vmatprep.subr.bf16.mxu0 %v3363_v55  ;;  %v3475_v52 = vunpack.c.h.s8.bf16 %v2691_v35  ;;  %v2707_v55 = vld [vmem:[#allocation10 + $0x8e8] sm:$0xff] }
 0x61a   :  { %5167 = vmatprep.subr.bf16.mxu1 %v3365_v56  ;;  %v2709_v56 = vld [vmem:[#allocation10 + $0x8f8] sm:$0xff] }
 0x61c   :  { %5004 = vmatpush1.bf16.msra.mxu0 %v3362_v58  ;;  %v3476_v58 = vunpack.c.h.s8.bf16 %v2692_v47 }
 0x61d   :  { %5168 = vmatpush1.bf16.msra.mxu1 %v3364_v0  ;;  %5005 = vmatprep.subr.bf16.mxu0 %v3379_v1  ;;  %v3491_v0 = vunpack.c.l.s8.bf16 %v2707_v55  ;;  %v2706_v1 = vld [vmem:[#allocation10 + $0x8e0] sm:$0xff] }
 0x61e   :  { %5169 = vmatprep.subr.bf16.mxu1 %v3381_v59  ;;  %v3493_v59 = vunpack.c.l.s8.bf16 %v2709_v56  ;;  %v3490_v63 = vunpack.c.l.s8.bf16 %v2706_v1 }
 0x620   :  { %5006 = vmatpush1.bf16.msra.mxu0 %v3378_v3  ;;  %v3492_v3 = vunpack.c.l.s8.bf16 %v2708_v2 }
 0x621   :  { %5170 = vmatpush1.bf16.msra.mxu1 %v3380_v4  ;;  %5007 = vmatprep.subr.bf16.mxu0 %v3395_v5  ;;  %v3509_v4 = vunpack.c.h.s8.bf16 %v2709_v56  ;;  %v2723_v5 = vld [vmem:[#allocation10 + $0x968] sm:$0xff] }
 0x622   :  { %5171 = vmatprep.subr.bf16.mxu1 %v3397_v8  ;;  %v3506_v8 = vunpack.c.h.s8.bf16 %v2706_v1  ;;  %v3539_v15 = vunpack.c.h.s8.bf16 %v2723_v5 }
 0x624   :  { %5008 = vmatpush1.bf16.msra.mxu0 %v3394_v9  ;;  %v2722_v9 = vld [vmem:[#allocation10 + $0x960] sm:$0xff] }
 0x625   :  { %5172 = vmatpush1.bf16.msra.mxu1 %v3396_v10  ;;  %5009 = vmatprep.subr.bf16.mxu0 %v3411_v13  ;;  %v3525_v10 = vunpack.c.l.s8.bf16 %v2725_v6  ;;  %v2724_v13 = vld [vmem:[#allocation10 + $0x970] sm:$0xff]  ;;  %v3538_v19 = vunpack.c.h.s8.bf16 %v2722_v9 }
 0x626   :  { %5173 = vmatprep.subr.bf16.mxu1 %v3413_v14  ;;  %v3522_v14 = vunpack.c.l.s8.bf16 %v2722_v9  ;;  %v3524_v45 = vunpack.c.l.s8.bf16 %v2724_v13 }
 0x628   :  { %5010 = vmatpush1.bf16.msra.mxu0 %v3410_v16  ;;  %v3541_v16 = vunpack.c.h.s8.bf16 %v2725_v6 }
 0x629   :  { %5174 = vmatpush1.bf16.msra.mxu1 %v3412_v17  ;;  %5011 = vmatprep.subr.bf16.mxu0 %v3427_v18  ;;  %v2739_v17 = vld [vmem:[#allocation10 + $0x9e8] sm:$0xff]  ;;  %v2741_v18 = vld [vmem:[#allocation10 + $0x9f8] sm:$0xff] }
 0x62a   :  { %5175 = vmatprep.subr.bf16.mxu1 %v3429_v21  ;;  %v3540_v21 = vunpack.c.h.s8.bf16 %v2724_v13  ;;  %v3555_v22 = vunpack.c.l.s8.bf16 %v2739_v17  ;;  %v3571_v43 = vunpack.c.h.s8.bf16 %v2739_v17 }
 0x62c   :  { %5012 = vmatpush1.bf16.msra.mxu0 %v3426_v23  ;;  %v2738_v23 = vld [vmem:[#allocation10 + $0x9e0] sm:$0xff] }
 0x62d   :  { %5176 = vmatpush1.bf16.msra.mxu1 %v3428_v12  ;;  %5013 = vmatprep.subr.bf16.mxu0 %v3443_v28  ;;  %v3557_v12 = vunpack.c.l.s8.bf16 %v2741_v18  ;;  %v2740_v28 = vld [vmem:[#allocation10 + $0x9f0] sm:$0xff]  ;;  %v3570_v41 = vunpack.c.h.s8.bf16 %v2738_v23 }
 0x62e   :  { %5177 = vmatprep.subr.bf16.mxu1 %v3445_v30  ;;  %v3554_v30 = vunpack.c.l.s8.bf16 %v2738_v23  ;;  %v3556_v35 = vunpack.c.l.s8.bf16 %v2740_v28 }
 0x630   :  { %5014 = vmatpush1.bf16.msra.mxu0 %v3442_v25  ;;  %v3573_v25 = vunpack.c.h.s8.bf16 %v2741_v18 }
 0x631   :  { %5178 = vmatpush1.bf16.msra.mxu1 %v3444_v32  ;;  %5024 = vmatprep.subr.bf16.mxu0 %v3459_v51  ;;  %v2755_v32 = vld [vmem:[#allocation10 + $0xa68] sm:$0xff]  ;;  %v2757_v51 = vld [vmem:[#allocation10 + $0xa78] sm:$0xff] }
 0x632   :  { %5188 = vmatprep.subr.bf16.mxu1 %v3461_v42  ;;  %v3572_v42 = vunpack.c.h.s8.bf16 %v2740_v28  ;;  %v3587_v47 = vunpack.c.l.s8.bf16 %v2755_v32  ;;  %v3603_v56 = vunpack.c.h.s8.bf16 %v2755_v32 }
 0x633   :  { %5016 = vmatmul.mubr.bf16.vlgmr.msra.gmra.mrb[24].mxu0 %v8629_v39 }
 0x634   :  { %5180 = vmatmul.mubr.bf16.vlgmr.msra.gmra.mrb[24].mxu1 %v8629_v39  ;;  %5025 = vmatpush1.bf16.msra.mxu0 %v3458_v48  ;;  %v3507_v39 = vunpack.c.h.s8.bf16 %v2707_v55  ;;  %v2754_v48 = vld [vmem:[#allocation10 + $0xa60] sm:$0xff] }
 0x635   :  { %5056 = vmatprep.mubr.bf16.mxu0 %v8650_v49  ;;  %5189 = vmatpush1.bf16.msra.mxu1 %v3460_v50  ;;  %v3589_v50 = vunpack.c.l.s8.bf16 %v2757_v51  ;;  %v3586_v55 = vunpack.c.l.s8.bf16 %v2754_v48  ;;  %v3602_v1 = vunpack.c.h.s8.bf16 %v2754_v48 }
 0x636   :  { %5220 = vmatprep.mubr.bf16.mxu1 %v8650_v49  ;;  %5026 = vmatprep.subr.bf16.mxu0 %v3475_v52  ;;  %v3523_v49 = vunpack.c.l.s8.bf16 %v2723_v5  ;;  %v2756_v52 = vld [vmem:[#allocation10 + $0xa70] sm:$0xff] }
 0x637   :  { %5190 = vmatprep.subr.bf16.mxu1 %v3477_v54  ;;  %v3588_v54 = vunpack.c.l.s8.bf16 %v2756_v52 }
 0x638   :  { %5027 = vmatpush1.bf16.msra.mxu0 %v3474_v24  ;;  %v3605_v24 = vunpack.c.h.s8.bf16 %v2757_v51 }
 0x639   :  { %5191 = vmatpush1.bf16.msra.mxu1 %v3476_v58  ;;  %5028 = vmatprep.subr.bf16.mxu0 %v3491_v0  ;;  %v2771_v58 = vld [vmem:[#allocation10 + $0xae8] sm:$0xff]  ;;  %v2773_v0 = vld [vmem:[#allocation10 + $0xaf8] sm:$0xff] }
 0x63a   :  { %5192 = vmatprep.subr.bf16.mxu1 %v3493_v59  ;;  %v3604_v59 = vunpack.c.h.s8.bf16 %v2756_v52  ;;  %v3619_v2 = vunpack.c.l.s8.bf16 %v2771_v58  ;;  %v3635_v6 = vunpack.c.h.s8.bf16 %v2771_v58 }
 0x63c   :  { %5029 = vmatpush1.bf16.msra.mxu0 %v3490_v63  ;;  %v2770_v63 = vld [vmem:[#allocation10 + $0xae0] sm:$0xff] }
 0x63d   :  { %5193 = vmatpush1.bf16.msra.mxu1 %v3492_v3  ;;  %5030 = vmatprep.subr.bf16.mxu0 %v3507_v39  ;;  %v3621_v3 = vunpack.c.l.s8.bf16 %v2773_v0  ;;  %v2772_v39 = vld [vmem:[#allocation10 + $0xaf0] sm:$0xff]  ;;  %v3634_v9 = vunpack.c.h.s8.bf16 %v2770_v63 }
 0x63e   :  { %5194 = vmatprep.subr.bf16.mxu1 %v3509_v4  ;;  %v3618_v4 = vunpack.c.l.s8.bf16 %v2770_v63  ;;  %v3620_v5 = vunpack.c.l.s8.bf16 %v2772_v39 }
 0x640   :  { %5031 = vmatpush1.bf16.msra.mxu0 %v3506_v8  ;;  %v3637_v8 = vunpack.c.h.s8.bf16 %v2773_v0 }
 0x641   :  { %5195 = vmatpush1.bf16.msra.mxu1 %v3508_v29  ;;  %5032 = vmatprep.subr.bf16.mxu0 %v3523_v49  ;;  %v2787_v29 = vld [vmem:[#allocation10 + $0xb68] sm:$0xff]  ;;  %v2789_v49 = vld [vmem:[#allocation10 + $0xb78] sm:$0xff] }
 0x642   :  { %5196 = vmatprep.subr.bf16.mxu1 %v3525_v10  ;;  %v3636_v10 = vunpack.c.h.s8.bf16 %v2772_v39  ;;  %v3651_v13 = vunpack.c.l.s8.bf16 %v2787_v29  ;;  %v3667_v18 = vunpack.c.h.s8.bf16 %v2787_v29 }
 0x644   :  { %5033 = vmatpush1.bf16.msra.mxu0 %v3522_v14  ;;  %v2786_v14 = vld [vmem:[#allocation10 + $0xb60] sm:$0xff] }
 0x645   :  { %5197 = vmatpush1.bf16.msra.mxu1 %v3524_v45  ;;  %5034 = vmatprep.subr.bf16.mxu0 %v3539_v15  ;;  %v3653_v45 = vunpack.c.l.s8.bf16 %v2789_v49  ;;  %v2788_v15 = vld [vmem:[#allocation10 + $0xb70] sm:$0xff]  ;;  %v3666_v23 = vunpack.c.h.s8.bf16 %v2786_v14 }
 0x646   :  { %5198 = vmatprep.subr.bf16.mxu1 %v3541_v16  ;;  %v3650_v16 = vunpack.c.l.s8.bf16 %v2786_v14  ;;  %v3652_v17 = vunpack.c.l.s8.bf16 %v2788_v15 }
 0x648   :  { %5035 = vmatpush1.bf16.msra.mxu0 %v3538_v19  ;;  %v3669_v19 = vunpack.c.h.s8.bf16 %v2789_v49 }
 0x649   :  { %5199 = vmatpush1.bf16.msra.mxu1 %v3540_v21  ;;  %5036 = vmatprep.subr.bf16.mxu0 %v3555_v22  ;;  %v2803_v21 = vld [vmem:[#allocation10 + $0xbe8] sm:$0xff]  ;;  %v2805_v22 = vld [vmem:[#allocation10 + $0xbf8] sm:$0xff] }
 0x64a   :  { %5200 = vmatprep.subr.bf16.mxu1 %v3557_v12  ;;  %v3668_v12 = vunpack.c.h.s8.bf16 %v2788_v15  ;;  %v3683_v28 = vunpack.c.l.s8.bf16 %v2803_v21  ;;  %v3699_v51 = vunpack.c.h.s8.bf16 %v2803_v21 }
 0x64c   :  { %5037 = vmatpush1.bf16.msra.mxu0 %v3554_v30  ;;  %v2802_v30 = vld [vmem:[#allocation10 + $0xbe0] sm:$0xff] }
 0x64d   :  { %5201 = vmatpush1.bf16.msra.mxu1 %v3556_v35  ;;  %5038 = vmatprep.subr.bf16.mxu0 %v3571_v43  ;;  %v3685_v35 = vunpack.c.l.s8.bf16 %v2805_v22  ;;  %v2804_v43 = vld [vmem:[#allocation10 + $0xbf0] sm:$0xff]  ;;  %v3698_v48 = vunpack.c.h.s8.bf16 %v2802_v30 }
 0x64e   :  { %5202 = vmatprep.subr.bf16.mxu1 %v3573_v25  ;;  %v3682_v25 = vunpack.c.l.s8.bf16 %v2802_v30  ;;  %v3684_v32 = vunpack.c.l.s8.bf16 %v2804_v43 }
 0x650   :  { %5039 = vmatpush1.bf16.msra.mxu0 %v3570_v41  ;;  %v3701_v41 = vunpack.c.h.s8.bf16 %v2805_v22  ;;  %v2867_v22 = vld [vmem:[#allocation10 + $0xde8] sm:$0xff] }
 0x651   :  { %5203 = vmatpush1.bf16.msra.mxu1 %v3572_v42  ;;  %5040 = vmatprep.subr.bf16.mxu0 %v3587_v47  ;;  %v2819_v42 = vld [vmem:[#allocation10 + $0xc68] sm:$0xff]  ;;  %v2821_v47 = vld [vmem:[#allocation10 + $0xc78] sm:$0xff]  ;;  %v3811_v30 = vunpack.c.l.s8.bf16 %v2867_v22 }
 0x652   :  { %5204 = vmatprep.subr.bf16.mxu1 %v3589_v50  ;;  %v3700_v50 = vunpack.c.h.s8.bf16 %v2804_v43  ;;  %v3715_v52 = vunpack.c.l.s8.bf16 %v2819_v42  ;;  %v3731_v0 = vunpack.c.h.s8.bf16 %v2819_v42 }
 0x654   :  { %5041 = vmatpush1.bf16.msra.mxu0 %v3586_v55  ;;  %v2818_v55 = vld [vmem:[#allocation10 + $0xc60] sm:$0xff] }
 0x655   :  { %5205 = vmatpush1.bf16.msra.mxu1 %v3588_v54  ;;  %5042 = vmatprep.subr.bf16.mxu0 %v3603_v56  ;;  %v3717_v54 = vunpack.c.l.s8.bf16 %v2821_v47  ;;  %v2820_v56 = vld [vmem:[#allocation10 + $0xc70] sm:$0xff]  ;;  %v3730_v63 = vunpack.c.h.s8.bf16 %v2818_v55 }
 0x656   :  { %5206 = vmatprep.subr.bf16.mxu1 %v3605_v24  ;;  %v3714_v24 = vunpack.c.l.s8.bf16 %v2818_v55  ;;  %v3716_v58 = vunpack.c.l.s8.bf16 %v2820_v56 }
 0x658   :  { %5043 = vmatpush1.bf16.msra.mxu0 %v3602_v1  ;;  %v2835_v1 = vld [vmem:[#allocation10 + $0xce8] sm:$0xff] }
 0x659   :  { %5207 = vmatpush1.bf16.msra.mxu1 %v3604_v59  ;;  %5044 = vmatprep.subr.bf16.mxu0 %v3619_v2  ;;  %v3733_v59 = vunpack.c.h.s8.bf16 %v2821_v47  ;;  %v2837_v2 = vld [vmem:[#allocation10 + $0xcf8] sm:$0xff]  ;;  %v3747_v39 = vunpack.c.l.s8.bf16 %v2835_v1 }
 0x65a   :  { %5208 = vmatprep.subr.bf16.mxu1 %v3621_v3  ;;  %v3732_v3 = vunpack.c.h.s8.bf16 %v2820_v56  ;;  %v3765_v49 = vunpack.c.h.s8.bf16 %v2837_v2 }
 0x65c   :  { %5045 = vmatpush1.bf16.msra.mxu0 %v3618_v4  ;;  %v2834_v4 = vld [vmem:[#allocation10 + $0xce0] sm:$0xff] }
 0x65d   :  { %5209 = vmatpush1.bf16.msra.mxu1 %v3620_v5  ;;  %5046 = vmatprep.subr.bf16.mxu0 %v3635_v6  ;;  %v3749_v5 = vunpack.c.l.s8.bf16 %v2837_v2  ;;  %v2836_v6 = vld [vmem:[#allocation10 + $0xcf0] sm:$0xff] }
 0x65e   :  { %5210 = vmatprep.subr.bf16.mxu1 %v3637_v8  ;;  %v3746_v8 = vunpack.c.l.s8.bf16 %v2834_v4  ;;  %v3748_v29 = vunpack.c.l.s8.bf16 %v2836_v6  ;;  %v3764_v14 = vunpack.c.h.s8.bf16 %v2836_v6 }
 0x660   :  { %5047 = vmatpush1.bf16.msra.mxu0 %v3634_v9  ;;  %v2851_v9 = vld [vmem:[#allocation10 + $0xd68] sm:$0xff] }
 0x661   :  { %5211 = vmatpush1.bf16.msra.mxu1 %v3636_v10  ;;  %5048 = vmatprep.subr.bf16.mxu0 %v3651_v13  ;;  %v2853_v10 = vld [vmem:[#allocation10 + $0xd78] sm:$0xff]  ;;  %v3762_v13 = vunpack.c.h.s8.bf16 %v2834_v4 }
 0x662   :  { %5212 = vmatprep.subr.bf16.mxu1 %v3653_v45  ;;  %v2850_v45 = vld [vmem:[#allocation10 + $0xd60] sm:$0xff]  ;;  %v3781_v15 = vunpack.c.l.s8.bf16 %v2853_v10  ;;  %v3797_v21 = vunpack.c.h.s8.bf16 %v2853_v10 }
 0x664   :  { %5049 = vmatpush1.bf16.msra.mxu0 %v3650_v16  ;;  %v2852_v16 = vld [vmem:[#allocation10 + $0xd70] sm:$0xff] }
 0x665   :  { %5213 = vmatpush1.bf16.msra.mxu1 %v3652_v17  ;;  %5050 = vmatprep.subr.bf16.mxu0 %v3667_v18  ;;  %v3778_v17 = vunpack.c.l.s8.bf16 %v2850_v45  ;;  %v3780_v18 = vunpack.c.l.s8.bf16 %v2852_v16 }
 0x666   :  { %5214 = vmatprep.subr.bf16.mxu1 %v3669_v19  ;;  %v3795_v19 = vunpack.c.h.s8.bf16 %v2851_v9 }
 0x668   :  { %5051 = vmatpush1.bf16.msra.mxu0 %v3666_v23  ;;  %v2869_v23 = vld [vmem:[#allocation10 + $0xdf8] sm:$0xff] }
 0x669   :  { %5215 = vmatpush1.bf16.msra.mxu1 %v3668_v12  ;;  %5052 = vmatprep.subr.bf16.mxu0 %v3683_v28  ;;  %v3794_v12 = vunpack.c.h.s8.bf16 %v2850_v45  ;;  %v3796_v28 = vunpack.c.h.s8.bf16 %v2852_v16 }
 0x66a   :  { %5216 = vmatprep.subr.bf16.mxu1 %v3685_v35  ;;  %v2866_v35 = vld [vmem:[#allocation10 + $0xde0] sm:$0xff] }
 0x66c   :  { %5053 = vmatpush1.bf16.msra.mxu0 %v3682_v25  ;;  %v3813_v25 = vunpack.c.l.s8.bf16 %v2869_v23 }
 0x66d   :  { %5217 = vmatpush1.bf16.msra.mxu1 %v3684_v32  ;;  %5054 = vmatprep.subr.bf16.mxu0 %v3699_v51  ;;  %v2868_v32 = vld [vmem:[#allocation10 + $0xdf0] sm:$0xff] }
 0x66e   :  { %5218 = vmatprep.subr.bf16.mxu1 %v3701_v41  ;;  %v3812_v55 = vunpack.c.l.s8.bf16 %v2868_v32 }
 0x670   :  { %5055 = vmatpush1.bf16.msra.mxu0 %v3698_v48  ;;  %v3810_v48 = vunpack.c.l.s8.bf16 %v2866_v35 }
 0x671   :  { %5219 = vmatpush1.bf16.msra.mxu1 %v3700_v50  ;;  %5065 = vmatprep.subr.bf16.mxu0 %v3715_v52 }
 0x672   :  { %5229 = vmatprep.subr.bf16.mxu1 %v3717_v54  ;;  %v3827_v54 = vunpack.c.h.s8.bf16 %v2867_v22 }
 0x673   :  { %5057 = vmatmul.mubr.bf16.vlgmr.msra.gmra.mrb[24].mxu0 %v8652_v62 }
 0x674   :  { %5221 = vmatmul.mubr.bf16.vlgmr.msra.gmra.mrb[24].mxu1 %v8652_v62  ;;  %5066 = vmatpush1.bf16.msra.mxu0 %v3714_v24  ;;  %v3763_v62 = vunpack.c.h.s8.bf16 %v2835_v1  ;;  %v3829_v24 = vunpack.c.h.s8.bf16 %v2869_v23  ;;  %v3826_v1 = vunpack.c.h.s8.bf16 %v2866_v35  ;;  %v8741_v35 = vld [vmem:[#allocation11] sm:$0xff] }
 0x675   :  { %5097 = vmatprep.mubr.bf16.mxu0 %v8656_v60  ;;  %5230 = vmatpush1.bf16.msra.mxu1 %v3716_v58  ;;  %v2883_v58 = vld [vmem:[#allocation10 + $0xe68] sm:$0xff] }
 0x676   :  { %5261 = vmatprep.mubr.bf16.mxu1 %v8656_v60  ;;  %5067 = vmatprep.subr.bf16.mxu0 %v3731_v0  ;;  %v3779_v60 = vunpack.c.l.s8.bf16 %v2851_v9  ;;  %v2885_v0 = vld [vmem:[#allocation10 + $0xe78] sm:$0xff]  ;;  %v3843_v2 = vunpack.c.l.s8.bf16 %v2883_v58  ;;  %v3859_v6 = vunpack.c.h.s8.bf16 %v2883_v58 }
 0x677   :  { %5231 = vmatprep.subr.bf16.mxu1 %v3733_v59  ;;  %v3828_v59 = vunpack.c.h.s8.bf16 %v2868_v32 }
 0x678   :  { %5068 = vmatpush1.bf16.msra.mxu0 %v3730_v63  ;;  %v2882_v63 = vld [vmem:[#allocation10 + $0xe60] sm:$0xff] }
 0x679   :  { %5232 = vmatpush1.bf16.msra.mxu1 %v3732_v3  ;;  %5069 = vmatprep.subr.bf16.mxu0 %v3747_v39  ;;  %v3845_v3 = vunpack.c.l.s8.bf16 %v2885_v0  ;;  %v2884_v39 = vld [vmem:[#allocation10 + $0xe70] sm:$0xff]  ;;  %v3842_v4 = vunpack.c.l.s8.bf16 %v2882_v63 }
 0x67a   :  { %5233 = vmatprep.subr.bf16.mxu1 %v3749_v5  ;;  %v3844_v5 = vunpack.c.l.s8.bf16 %v2884_v39  ;;  %v3860_v9 = vunpack.c.h.s8.bf16 %v2884_v39 }
 0x67c   :  { %5070 = vmatpush1.bf16.msra.mxu0 %v3746_v8  ;;  %v3861_v8 = vunpack.c.h.s8.bf16 %v2885_v0  ;;  %v2930_v0 = vld [vmem:[#allocation10 + $0xfe0] sm:$0xff] }
 0x67d   :  { %5234 = vmatpush1.bf16.msra.mxu1 %v3748_v29  ;;  %5071 = vmatprep.subr.bf16.mxu0 %v3763_v62  ;;  %v2899_v29 = vld [vmem:[#allocation10 + $0xee8] sm:$0xff]  ;;  %v2901_v62 = vld [vmem:[#allocation10 + $0xef8] sm:$0xff] }
 0x67e   :  { %5235 = vmatprep.subr.bf16.mxu1 %v3765_v49  ;;  %v3858_v49 = vunpack.c.h.s8.bf16 %v2882_v63  ;;  %v3875_v10 = vunpack.c.l.s8.bf16 %v2899_v29  ;;  %v3891_v16 = vunpack.c.h.s8.bf16 %v2899_v29  ;;  %v5505_v29 = vld [vmem:[#allocation14 + $0x18] sm:$0xff] }
 0x680   :  { %5072 = vmatpush1.bf16.msra.mxu0 %v3762_v13  ;;  %v2898_v13 = vld [vmem:[#allocation10 + $0xee0] sm:$0xff] }
 0x681   :  { %5236 = vmatpush1.bf16.msra.mxu1 %v3764_v14  ;;  %5073 = vmatprep.subr.bf16.mxu0 %v3779_v60  ;;  %v3877_v14 = vunpack.c.l.s8.bf16 %v2901_v62  ;;  %v2900_v60 = vld [vmem:[#allocation10 + $0xef0] sm:$0xff]  ;;  %v3874_v45 = vunpack.c.l.s8.bf16 %v2898_v13 }
 0x682   :  { %5237 = vmatprep.subr.bf16.mxu1 %v3781_v15  ;;  %v3876_v15 = vunpack.c.l.s8.bf16 %v2900_v60  ;;  %v3892_v22 = vunpack.c.h.s8.bf16 %v2900_v60 }
 0x684   :  { %5074 = vmatpush1.bf16.msra.mxu0 %v3778_v17  ;;  %v3893_v17 = vunpack.c.h.s8.bf16 %v2901_v62  ;;  %v3954_v62 = vunpack.c.h.s8.bf16 %v2930_v0 }
 0x685   :  { %5238 = vmatpush1.bf16.msra.mxu1 %v3780_v18  ;;  %5075 = vmatprep.subr.bf16.mxu0 %v3795_v19  ;;  %v2915_v18 = vld [vmem:[#allocation10 + $0xf68] sm:$0xff]  ;;  %v2917_v19 = vld [vmem:[#allocation10 + $0xf78] sm:$0xff] }
 0x686   :  { %v8733_v43 = vpop.f32.mrb[20].mxu0  ;;  %5239 = vmatprep.subr.bf16.mxu1 %v3797_v21  ;;  %v3890_v21 = vunpack.c.h.s8.bf16 %v2898_v13  ;;  %v3907_v23 = vunpack.c.l.s8.bf16 %v2915_v18  ;;  %v5504_v13 = vld [vmem:[#allocation14 + $0x10] sm:$0xff] }
 0x687   :  { %v8735_v51 = vpop.f32.mrb[20].mxu1  ;;  %v8737_v41 = vpop.f32.mrb[21].mxu0 }
 0x688   :  { %v8739_v42 = vpop.f32.mrb[21].mxu1  ;;  %v4775_v47 = vpop.f32.mrb[22].mxu0  ;;  %5076 = vmatpush1.bf16.msra.mxu0 %v3794_v12  ;;  %v2914_v12 = vld [vmem:[#allocation10 + $0xf60] sm:$0xff] }
 0x689   :  { %v4939_v50 = vpop.f32.mrb[22].mxu1  ;;  %5240 = vmatpush1.bf16.msra.mxu1 %v3796_v28  ;;  %v4776_v52 = vpop.f32.mrb[23].mxu0  ;;  %5077 = vmatprep.subr.bf16.mxu0 %v3811_v30  ;;  %v3909_v28 = vunpack.c.l.s8.bf16 %v2917_v19  ;;  %v2916_v30 = vld [vmem:[#allocation10 + $0xf70] sm:$0xff]  ;;  %v3923_v47 = vunpack.c.h.s8.bf16 %v2915_v18  ;;  %v5765_v18 = vunpack.c.h.s8.bf16 %v5505_v29 }
 0x68a   :  { %v4940_v56 = vpop.f32.mrb[23].mxu1  ;;  %5241 = vmatprep.subr.bf16.mxu1 %v3813_v25  ;;  %v3906_v25 = vunpack.c.l.s8.bf16 %v2914_v12  ;;  %v3908_v32 = vunpack.c.l.s8.bf16 %v2916_v30  ;;  %v2931_v50 = vld [vmem:[#allocation10 + $0xfe8] sm:$0xff]  ;;  %v5281_v52 = vrot.slane %v8741_v35, %v8561_v46 }
 0x68b   :  { %v3922_v56 = vunpack.c.h.s8.bf16 %v2914_v12  ;;  %v3939_v58 = vunpack.c.l.s8.bf16 %v2931_v50  ;;  %v5506_v12 = vld [vmem:[#allocation14 + $0x20] sm:$0xff] }
 0x68c   :  { %5078 = vmatpush1.bf16.msra.mxu0 %v3810_v48  ;;  %v3925_v48 = vunpack.c.h.s8.bf16 %v2917_v19  ;;  %v5509_v19 = vld [vmem:[#allocation14 + $0x38] sm:$0xff] }
 0x68d   :  { %5242 = vmatpush1.bf16.msra.mxu1 %v3812_v55  ;;  %5079 = vmatprep.subr.bf16.mxu0 %v3827_v54  ;;  %v2933_v55 = vld [vmem:[#allocation10 + $0xff8] sm:$0xff]  ;;  %v8745_v54 = vld [vmem:[#allocation13] sm:$0xff] }
 0x68e   :  { %5243 = vmatprep.subr.bf16.mxu1 %v3829_v24  ;;  %v3924_v24 = vunpack.c.h.s8.bf16 %v2916_v30  ;;  %v5381_v63 = vrot.slane %v8745_v54, %v8561_v46  ;;  %v5508_v30 = vld [vmem:[#allocation14 + $0x30] sm:$0xff] }
 0x690   :  { %5080 = vmatpush1.bf16.msra.mxu0 %v3826_v1  ;;  %v3941_v1 = vunpack.c.l.s8.bf16 %v2933_v55 }
 0x691   :  { %5244 = vmatpush1.bf16.msra.mxu1 %v3828_v59  ;;  %5081 = vmatprep.subr.bf16.mxu0 %v3843_v2  ;;  %v2932_v59 = vld [vmem:[#allocation10 + $0xff0] sm:$0xff]  ;;  %v5355_v2 = vmul.f32 %v5281_v52, %v8689_v38  ;;  %v5770_v52 = vunpack.c.h.s8.bf16 %v5506_v12 }
 0x692   :  { %5245 = vmatprep.subr.bf16.mxu1 %v3845_v3  ;;  %v3938_v3 = vunpack.c.l.s8.bf16 %v2930_v0  ;;  %v3940_v39 = vunpack.c.l.s8.bf16 %v2932_v59  ;;  %v5512_v0 = vld [vmem:[#allocation14 + $0x50] sm:$0xff] }
 0x694   :  { %5082 = vmatpush1.bf16.msra.mxu0 %v3842_v4  ;;  %v3955_v4 = vunpack.c.h.s8.bf16 %v2931_v50  ;;  %v5513_v50 = vld [vmem:[#allocation14 + $0x58] sm:$0xff] }
 0x695   :  { %5246 = vmatpush1.bf16.msra.mxu1 %v3844_v5  ;;  %5083 = vmatprep.subr.bf16.mxu0 %v3859_v6  ;;  %v3957_v5 = vunpack.c.h.s8.bf16 %v2933_v55  ;;  %v5503_v6 = vld [vmem:[#allocation14 + $0x8] sm:$0xff]  ;;  %v5772_v55 = vunpack.c.h.s8.bf16 %v5508_v30 }
 0x696   :  { %5247 = vmatprep.subr.bf16.mxu1 %v3861_v8  ;;  %v5455_v8 = vadd.f32 %v5381_v63, %v5355_v2  ;;  %v5759_v38 = vunpack.c.l.s8.bf16 %v5503_v6  ;;  %v5781_v63 = vunpack.c.h.s8.bf16 %v5513_v50 }
 0x698   :  { %5084 = vmatpush1.bf16.msra.mxu0 %v3858_v49  ;;  %v3956_v49 = vunpack.c.h.s8.bf16 %v2932_v59  ;;  %v5776_v59 = vunpack.c.l.s8.bf16 %v5512_v0 }
 0x699   :  { %5248 = vmatpush1.bf16.msra.mxu1 %v3860_v9  ;;  %5085 = vmatprep.subr.bf16.mxu0 %v3875_v10  ;;  %v5502_v9 = vld [vmem:[#allocation14] sm:$0xff]  ;;  %v5761_v10 = vunpack.c.l.s8.bf16 %v5505_v29 }
 0x69a   :  { %5249 = vmatprep.subr.bf16.mxu1 %v3877_v14  ;;  %v5471_v14 = vmax.f32 %v5455_v8, 0.0  ;;  %v5758_v60 = vunpack.c.l.s8.bf16 %v5502_v9  ;;  %v5514_v8 = vld [vmem:[#allocation14 + $0x60] sm:$0xff] }
 0x69c   :  { %5086 = vmatpush1.bf16.msra.mxu0 %v3874_v45  ;;  %v5760_v45 = vunpack.c.l.s8.bf16 %v5504_v13 }
 0x69d   :  { %5250 = vmatpush1.bf16.msra.mxu1 %v3876_v15  ;;  %5087 = vmatprep.subr.bf16.mxu0 %v3891_v16  ;;  %v5763_v15 = vunpack.c.h.s8.bf16 %v5503_v6  ;;  %v5507_v16 = vld [vmem:[#allocation14 + $0x28] sm:$0xff] }
 0x69e   :  { %5251 = vmatprep.subr.bf16.mxu1 %v3893_v17  ;;  %v5487_v17 = vpack.c.bf16 %v5471_v14, %v5471_v14  ;;  %v5521_v14 = vld [vmem:[#allocation14 + $0x98] sm:$0xff] }
 0x6a0   :  { %5088 = vmatpush1.bf16.msra.mxu0 %v3890_v21  ;;  %v5762_v21 = vunpack.c.h.s8.bf16 %v5502_v9 }
 0x6a1   :  { %5252 = vmatpush1.bf16.msra.mxu1 %v3892_v22  ;;  %5089 = vmatprep.subr.bf16.mxu0 %v3907_v23  ;;  %v5764_v22 = vunpack.c.h.s8.bf16 %v5504_v13  ;;  %v5767_v23 = vunpack.c.l.s8.bf16 %v5507_v16  ;;  %v5519_v13 = vld [vmem:[#allocation14 + $0x88] sm:$0xff] }
 0x6a2   :  { %5253 = vmatprep.subr.bf16.mxu1 %v3909_v28  ;;  %v5769_v28 = vunpack.c.l.s8.bf16 %v5509_v19 }
 0x6a4   :  { %5090 = vmatpush1.bf16.msra.mxu0 %v3906_v25  ;;  %v5766_v25 = vunpack.c.l.s8.bf16 %v5506_v12  ;;  %v5523_v12 = vld [vmem:[#allocation14 + $0xa8] sm:$0xff] }
 0x6a5   :  { %5254 = vmatpush1.bf16.msra.mxu1 %v3908_v32  ;;  %5091 = vmatprep.subr.bf16.mxu0 %v3923_v47  ;;  %v5768_v32 = vunpack.c.l.s8.bf16 %v5508_v30  ;;  %v5771_v47 = vunpack.c.h.s8.bf16 %v5507_v16  ;;  %v5518_v16 = vld [vmem:[#allocation14 + $0x80] sm:$0xff] }
 0x6a6   :  { %5255 = vmatprep.subr.bf16.mxu1 %v3925_v48  ;;  %v5511_v48 = vld [vmem:[#allocation14 + $0x48] sm:$0xff]  ;;  %v5794_v30 = vunpack.c.h.s8.bf16 %v5518_v16 }
 0x6a7   :  { %v5779_v2 = vunpack.c.h.s8.bf16 %v5511_v48 }
 0x6a8   :  { %5092 = vmatpush1.bf16.msra.mxu0 %v3922_v56  ;;  %v5775_v56 = vunpack.c.l.s8.bf16 %v5511_v48  ;;  %v5524_v48 = vld [vmem:[#allocation14 + $0xb0] sm:$0xff] }
 0x6a9   :  { %5256 = vmatpush1.bf16.msra.mxu1 %v3924_v24  ;;  %5093 = vmatprep.subr.bf16.mxu0 %v3939_v58  ;;  %v5510_v24 = vld [vmem:[#allocation14 + $0x40] sm:$0xff]  ;;  %v5777_v58 = vunpack.c.l.s8.bf16 %v5513_v50 }
 0x6aa   :  { %5257 = vmatprep.subr.bf16.mxu1 %v3941_v1  ;;  %v5774_v1 = vunpack.c.l.s8.bf16 %v5510_v24 }
 0x6ac   :  { %5094 = vmatpush1.bf16.msra.mxu0 %v3938_v3  ;;  %v5515_v3 = vld [vmem:[#allocation14 + $0x68] sm:$0xff] }
 0x6ad   :  { %5258 = vmatpush1.bf16.msra.mxu1 %v3940_v39  ;;  %5095 = vmatprep.subr.bf16.mxu0 %v3955_v4  ;;  %v5517_v39 = vld [vmem:[#allocation14 + $0x78] sm:$0xff]  ;;  %v5778_v4 = vunpack.c.h.s8.bf16 %v5510_v24  ;;  %v5783_v6 = vunpack.c.l.s8.bf16 %v5515_v3  ;;  %v5787_v9 = vunpack.c.h.s8.bf16 %v5515_v3  ;;  %v5527_v24 = vld [vmem:[#allocation14 + $0xc8] sm:$0xff]  ;;  %v5528_v3 = vld [vmem:[#allocation14 + $0xd0] sm:$0xff] }
 0x6ae   :  { %5259 = vmatprep.subr.bf16.mxu1 %v3957_v5  ;;  %v5780_v5 = vunpack.c.h.s8.bf16 %v5512_v0  ;;  %v5785_v29 = vunpack.c.l.s8.bf16 %v5517_v39 }
 0x6b0   :  { %5096 = vmatpush1.bf16.msra.mxu0 %v3954_v62  ;;  %v5516_v62 = vld [vmem:[#allocation14 + $0x70] sm:$0xff] }
 0x6b1   :  { %5260 = vmatpush1.bf16.msra.mxu1 %v3956_v49  ;;  %6270 = vmatprep.subr.bf16.mxu0 %v5759_v38  ;;  %v5782_v49 = vunpack.c.l.s8.bf16 %v5514_v8  ;;  %v5784_v38 = vunpack.c.l.s8.bf16 %v5516_v62 }
 0x6b2   :  { %6598 = vmatprep.subr.bf16.mxu1 %v5761_v10  ;;  %v5789_v10 = vunpack.c.h.s8.bf16 %v5517_v39 }
 0x6b3   :  { %5098 = vmatmul.mubr.bf16.vlgmr.msra.gmra.mrb[24].mxu0 %v8667_v57 }
 0x6b4   :  { %5262 = vmatmul.mubr.bf16.vlgmr.msra.gmra.mrb[24].mxu1 %v8667_v57  ;;  %6271 = vmatpush1.bf16.msra.mxu0 %v5758_v60  ;;  %v5773_v57 = vunpack.c.h.s8.bf16 %v5509_v19  ;;  %v5786_v60 = vunpack.c.h.s8.bf16 %v5514_v8  ;;  %v5790_v19 = vunpack.c.l.s8.bf16 %v5518_v16 }
 0x6b5   :  { %6302 = vmatprep.mubr.bf16.mxu0 %v5487_v17  ;;  %6599 = vmatpush1.bf16.msra.mxu1 %v5760_v45  ;;  %v5788_v45 = vunpack.c.h.s8.bf16 %v5516_v62  ;;  %v5289_v62 = vrot.slane %v8741_v35, %v8568_v61 }
 0x6b6   :  { %6630 = vmatprep.mubr.bf16.mxu1 %v5487_v17  ;;  %6272 = vmatprep.subr.bf16.mxu0 %v5763_v15  ;;  %v5791_v15 = vunpack.c.l.s8.bf16 %v5519_v13  ;;  %v5793_v17 = vunpack.c.l.s8.bf16 %v5521_v14 }
 0x6b7   :  { %6600 = vmatprep.subr.bf16.mxu1 %v5765_v18  ;;  %v5520_v18 = vld [vmem:[#allocation14 + $0x90] sm:$0xff]  ;;  %v5357_v16 = vmul.f32 %v5289_v62, %v8691_v40 }
 0x6b8   :  { %6273 = vmatpush1.bf16.msra.mxu0 %v5762_v21  ;;  %v5792_v21 = vunpack.c.l.s8.bf16 %v5520_v18 }
 0x6b9   :  { %6601 = vmatpush1.bf16.msra.mxu1 %v5764_v22  ;;  %6274 = vmatprep.subr.bf16.mxu0 %v5767_v23  ;;  %v5795_v22 = vunpack.c.h.s8.bf16 %v5519_v13  ;;  %v5797_v23 = vunpack.c.h.s8.bf16 %v5521_v14  ;;  %v5812_v13 = vunpack.c.h.s8.bf16 %v5528_v3 }
 0x6ba   :  { %6602 = vmatprep.subr.bf16.mxu1 %v5769_v28  ;;  %v5525_v28 = vld [vmem:[#allocation14 + $0xb8] sm:$0xff] }
 0x6bc   :  { %6275 = vmatpush1.bf16.msra.mxu0 %v5766_v25  ;;  %v5796_v25 = vunpack.c.h.s8.bf16 %v5520_v18 }
 0x6bd   :  { %6603 = vmatpush1.bf16.msra.mxu1 %v5768_v32  ;;  %6276 = vmatprep.subr.bf16.mxu0 %v5771_v47  ;;  %v5799_v32 = vunpack.c.l.s8.bf16 %v5523_v12  ;;  %v5522_v47 = vld [vmem:[#allocation14 + $0xa0] sm:$0xff] }
 0x6be   :  { %6604 = vmatprep.subr.bf16.mxu1 %v5773_v57  ;;  %v5801_v57 = vunpack.c.l.s8.bf16 %v5525_v28  ;;  %v5798_v50 = vunpack.c.l.s8.bf16 %v5522_v47  ;;  %v5802_v0 = vunpack.c.h.s8.bf16 %v5522_v47  ;;  %v5534_v47 = vld [vmem:[#allocation14 + $0x100] sm:$0xff] }
 0x6c0   :  { %6277 = vmatpush1.bf16.msra.mxu0 %v5770_v52  ;;  %v5800_v52 = vunpack.c.l.s8.bf16 %v5524_v48 }
 0x6c1   :  { %6605 = vmatpush1.bf16.msra.mxu1 %v5772_v55  ;;  %6278 = vmatprep.subr.bf16.mxu0 %v5775_v56  ;;  %v5803_v55 = vunpack.c.h.s8.bf16 %v5523_v12  ;;  %v5805_v56 = vunpack.c.h.s8.bf16 %v5525_v28  ;;  %v5537_v28 = vld [vmem:[#allocation14 + $0x118] sm:$0xff] }
 0x6c2   :  { %6606 = vmatprep.subr.bf16.mxu1 %v5777_v58  ;;  %v5529_v58 = vld [vmem:[#allocation14 + $0xd8] sm:$0xff] }
 0x6c3   :  { %v5813_v8 = vunpack.c.h.s8.bf16 %v5529_v58 }
 0x6c4   :  { %6279 = vmatpush1.bf16.msra.mxu0 %v5774_v1  ;;  %v5804_v1 = vunpack.c.h.s8.bf16 %v5524_v48  ;;  %v5536_v48 = vld [vmem:[#allocation14 + $0x110] sm:$0xff] }
 0x6c5   :  { %6607 = vmatpush1.bf16.msra.mxu1 %v5776_v59  ;;  %6280 = vmatprep.subr.bf16.mxu0 %v5779_v2  ;;  %v5807_v59 = vunpack.c.l.s8.bf16 %v5527_v24  ;;  %v5526_v2 = vld [vmem:[#allocation14 + $0xc0] sm:$0xff] }
 0x6c6   :  { %6608 = vmatprep.subr.bf16.mxu1 %v5781_v63  ;;  %v5809_v63 = vunpack.c.l.s8.bf16 %v5529_v58  ;;  %v5806_v39 = vunpack.c.l.s8.bf16 %v5526_v2  ;;  %v5539_v58 = vld [vmem:[#allocation14 + $0x128] sm:$0xff] }
 0x6c8   :  { %6281 = vmatpush1.bf16.msra.mxu0 %v5778_v4  ;;  %v5277_v4 = vrot.slane %v8741_v35, %v8556_v44 }
 0x6c9   :  { %6609 = vmatpush1.bf16.msra.mxu1 %v5780_v5  ;;  %6282 = vmatprep.subr.bf16.mxu0 %v5783_v6  ;;  %v5808_v5 = vunpack.c.l.s8.bf16 %v5528_v3  ;;  %v5811_v6 = vunpack.c.h.s8.bf16 %v5527_v24  ;;  %v5831_v3 = vunpack.c.l.s8.bf16 %v5539_v58 }
 0x6ca   :  { %6610 = vmatprep.subr.bf16.mxu1 %v5785_v29  ;;  %v5531_v29 = vld [vmem:[#allocation14 + $0xe8] sm:$0xff] }
 0x6cb   :  { %v5815_v14 = vunpack.c.l.s8.bf16 %v5531_v29 }
 0x6cc   :  { %6283 = vmatpush1.bf16.msra.mxu0 %v5782_v49  ;;  %v5533_v49 = vld [vmem:[#allocation14 + $0xf8] sm:$0xff] }
 0x6cd   :  { %6611 = vmatpush1.bf16.msra.mxu1 %v5784_v38  ;;  %6284 = vmatprep.subr.bf16.mxu0 %v5787_v9  ;;  %v5810_v38 = vunpack.c.h.s8.bf16 %v5526_v2  ;;  %v5354_v9 = vmul.f32 %v5277_v4, %v8685_v36  ;;  %v5826_v2 = vunpack.c.h.s8.bf16 %v5534_v47 }
 0x6ce   :  { %6612 = vmatprep.subr.bf16.mxu1 %v5789_v10  ;;  %v5377_v10 = vrot.slane %v8745_v54, %v8556_v44 }
 0x6d0   :  { %6285 = vmatpush1.bf16.msra.mxu0 %v5786_v60  ;;  %v5530_v60 = vld [vmem:[#allocation14 + $0xe0] sm:$0xff] }
 0x6d1   :  { %6613 = vmatpush1.bf16.msra.mxu1 %v5788_v45  ;;  %6286 = vmatprep.subr.bf16.mxu0 %v5791_v15  ;;  %v5817_v45 = vunpack.c.l.s8.bf16 %v5533_v49  ;;  %v5532_v15 = vld [vmem:[#allocation14 + $0xf0] sm:$0xff]  ;;  %v5814_v18 = vunpack.c.l.s8.bf16 %v5530_v60 }
 0x6d2   :  { %6614 = vmatprep.subr.bf16.mxu1 %v5793_v17  ;;  %v5389_v17 = vrot.slane %v8745_v54, %v8568_v61  ;;  %v5816_v36 = vunpack.c.l.s8.bf16 %v5532_v15  ;;  %v5820_v40 = vunpack.c.h.s8.bf16 %v5532_v15 }
 0x6d4   :  { %6287 = vmatpush1.bf16.msra.mxu0 %v5790_v19  ;;  %v5454_v19 = vadd.f32 %v5377_v10, %v5354_v9  ;;  %v5457_v12 = vadd.f32 %v5389_v17, %v5357_v16 }
 0x6d5   :  { %6615 = vmatpush1.bf16.msra.mxu1 %v5792_v21  ;;  %6288 = vmatprep.subr.bf16.mxu0 %v5795_v22  ;;  %v5819_v21 = vunpack.c.h.s8.bf16 %v5531_v29  ;;  %v5821_v22 = vunpack.c.h.s8.bf16 %v5533_v49  ;;  %v5835_v29 = vunpack.c.h.s8.bf16 %v5539_v58  ;;  %v5543_v49 = vld [vmem:[#allocation14 + $0x148] sm:$0xff]  ;;  %v5552_v58 = vld [vmem:[#allocation14 + $0x190] sm:$0xff] }
 0x6d6   :  { %6616 = vmatprep.subr.bf16.mxu1 %v5797_v23  ;;  %v5535_v23 = vld [vmem:[#allocation14 + $0x108] sm:$0xff]  ;;  %v5843_v17 = vunpack.c.h.s8.bf16 %v5543_v49 }
 0x6d7   :  { %v5827_v24 = vunpack.c.h.s8.bf16 %v5535_v23 }
 0x6d8   :  { %6289 = vmatpush1.bf16.msra.mxu0 %v5794_v30  ;;  %v5818_v30 = vunpack.c.h.s8.bf16 %v5530_v60 }
 0x6d9   :  { %6617 = vmatpush1.bf16.msra.mxu1 %v5796_v25  ;;  %6290 = vmatprep.subr.bf16.mxu0 %v5799_v32  ;;  %v5470_v25 = vmax.f32 %v5454_v19, 0.0  ;;  %v5823_v32 = vunpack.c.l.s8.bf16 %v5535_v23  ;;  %v5547_v19 = vld [vmem:[#allocation14 + $0x168] sm:$0xff] }
 0x6da   :  { %6618 = vmatprep.subr.bf16.mxu1 %v5801_v57  ;;  %v5825_v57 = vunpack.c.l.s8.bf16 %v5537_v28  ;;  %v5847_v23 = vunpack.c.l.s8.bf16 %v5547_v19 }
 0x6dc   :  { %6291 = vmatpush1.bf16.msra.mxu0 %v5798_v50  ;;  %v5473_v50 = vmax.f32 %v5457_v12, 0.0  ;;  %v5546_v12 = vld [vmem:[#allocation14 + $0x160] sm:$0xff] }
 0x6dd   :  { %6619 = vmatpush1.bf16.msra.mxu1 %v5800_v52  ;;  %6292 = vmatprep.subr.bf16.mxu0 %v5803_v55  ;;  %v5822_v52 = vunpack.c.l.s8.bf16 %v5534_v47  ;;  %v5486_v55 = vpack.c.bf16 %v5470_v25, %v5470_v25  ;;  %v5846_v25 = vunpack.c.l.s8.bf16 %v5546_v12 }
 0x6de   :  { %6620 = vmatprep.subr.bf16.mxu1 %v5805_v56  ;;  %v5824_v56 = vunpack.c.l.s8.bf16 %v5536_v48 }
 0x6e0   :  { %6293 = vmatpush1.bf16.msra.mxu0 %v5802_v0  ;;  %v5489_v0 = vpack.c.bf16 %v5473_v50, %v5473_v50  ;;  %v5850_v50 = vunpack.c.h.s8.bf16 %v5546_v12  ;;  %v5297_v12 = vrot.slane %v8741_v35, %v8637_v26 }
 0x6e1   :  { %6621 = vmatpush1.bf16.msra.mxu1 %v5804_v1  ;;  %6294 = vmatprep.subr.bf16.mxu0 %v5807_v59  ;;  %v5829_v1 = vunpack.c.h.s8.bf16 %v5537_v28  ;;  %v5541_v59 = vld [vmem:[#allocation14 + $0x138] sm:$0xff] }
 0x6e2   :  { %6622 = vmatprep.subr.bf16.mxu1 %v5809_v63  ;;  %v5828_v63 = vunpack.c.h.s8.bf16 %v5536_v48  ;;  %v5833_v4 = vunpack.c.l.s8.bf16 %v5541_v59  ;;  %v5837_v62 = vunpack.c.h.s8.bf16 %v5541_v59  ;;  %v5553_v48 = vld [vmem:[#allocation14 + $0x198] sm:$0xff] }
 0x6e4   :  { %6295 = vmatpush1.bf16.msra.mxu0 %v5806_v39  ;;  %v5538_v39 = vld [vmem:[#allocation14 + $0x120] sm:$0xff] }
 0x6e5   :  { %6623 = vmatpush1.bf16.msra.mxu1 %v5808_v5  ;;  %6296 = vmatprep.subr.bf16.mxu0 %v5811_v6  ;;  %v5540_v5 = vld [vmem:[#allocation14 + $0x130] sm:$0xff]  ;;  %v5830_v6 = vunpack.c.l.s8.bf16 %v5538_v39  ;;  %v5834_v9 = vunpack.c.h.s8.bf16 %v5538_v39 }
 0x6e6   :  { %6624 = vmatprep.subr.bf16.mxu1 %v5813_v8  ;;  %v5832_v8 = vunpack.c.l.s8.bf16 %v5540_v5  ;;  %v5836_v10 = vunpack.c.h.s8.bf16 %v5540_v5 }
 0x6e8   :  { %6297 = vmatpush1.bf16.msra.mxu0 %v5810_v38  ;;  %v5545_v38 = vld [vmem:[#allocation14 + $0x158] sm:$0xff] }
 0x6e9   :  { %6625 = vmatpush1.bf16.msra.mxu1 %v5812_v13  ;;  %6298 = vmatprep.subr.bf16.mxu0 %v5815_v14  ;;  %v5839_v13 = vunpack.c.l.s8.bf16 %v5543_v49  ;;  %v5542_v14 = vld [vmem:[#allocation14 + $0x140] sm:$0xff]  ;;  %v5841_v60 = vunpack.c.l.s8.bf16 %v5545_v38 }
 0x6ea   :  { %6626 = vmatprep.subr.bf16.mxu1 %v5817_v45  ;;  %v5544_v45 = vld [vmem:[#allocation14 + $0x150] sm:$0xff]  ;;  %v5838_v15 = vunpack.c.l.s8.bf16 %v5542_v14 }
 0x6eb   :  { %v5840_v16 = vunpack.c.l.s8.bf16 %v5544_v45 }
 0x6ec   :  { %6299 = vmatpush1.bf16.msra.mxu0 %v5814_v18  ;;  %v5845_v18 = vunpack.c.h.s8.bf16 %v5545_v38 }
 0x6ed   :  { %6627 = vmatpush1.bf16.msra.mxu1 %v5816_v36  ;;  %6300 = vmatprep.subr.bf16.mxu0 %v5819_v21  ;;  %v5549_v36 = vld [vmem:[#allocation14 + $0x178] sm:$0xff]  ;;  %v5842_v21 = vunpack.c.h.s8.bf16 %v5542_v14 }
 0x6ee   :  { %6628 = vmatprep.subr.bf16.mxu1 %v5821_v22  ;;  %v5844_v22 = vunpack.c.h.s8.bf16 %v5544_v45  ;;  %v5849_v28 = vunpack.c.l.s8.bf16 %v5549_v36  ;;  %v5853_v47 = vunpack.c.h.s8.bf16 %v5549_v36 }
 0x6f0   :  { %6301 = vmatpush1.bf16.msra.mxu0 %v5818_v30  ;;  %v5548_v30 = vld [vmem:[#allocation14 + $0x170] sm:$0xff] }
 0x6f1   :  { %6629 = vmatpush1.bf16.msra.mxu1 %v5820_v40  ;;  %6311 = vmatprep.subr.bf16.mxu0 %v5823_v32  ;;  %v5848_v40 = vunpack.c.l.s8.bf16 %v5548_v30  ;;  %v5851_v32 = vunpack.c.h.s8.bf16 %v5547_v19  ;;  %v5285_v19 = vrot.slane %v8741_v35, %v8587_v53  ;;  %v5397_v35 = vrot.slane %v8745_v54, %v8637_v26 }
 0x6f2   :  { %6639 = vmatprep.subr.bf16.mxu1 %v5825_v57  ;;  %v5551_v57 = vld [vmem:[#allocation14 + $0x188] sm:$0xff] }
 0x6f3   :  { %6303 = vmatmul.mubr.bf16.vlgmr.msra.gmra.mrb[28].mxu0 %v5486_v55  ;;  %v5859_v59 = vunpack.c.h.s8.bf16 %v5551_v57 }
 0x6f4   :  { %6631 = vmatmul.mubr.bf16.vlgmr.msra.gmra.mrb[28].mxu1 %v5486_v55  ;;  %6312 = vmatpush1.bf16.msra.mxu0 %v5822_v52  ;;  %v5852_v52 = vunpack.c.h.s8.bf16 %v5548_v30  ;;  %v5855_v55 = vunpack.c.l.s8.bf16 %v5551_v57  ;;  %v5562_v57 = vld [vmem:[#allocation14 + $0x1e0] sm:$0xff] }
 0x6f5   :  { %6343 = vmatprep.mubr.bf16.mxu0 %v5489_v0  ;;  %6640 = vmatpush1.bf16.msra.mxu1 %v5824_v56  ;;  %v5550_v56 = vld [vmem:[#allocation14 + $0x180] sm:$0xff] }
 0x6f6   :  { %6671 = vmatprep.mubr.bf16.mxu1 %v5489_v0  ;;  %6313 = vmatprep.subr.bf16.mxu0 %v5827_v24  ;;  %v5857_v24 = vunpack.c.l.s8.bf16 %v5553_v48  ;;  %v5854_v0 = vunpack.c.l.s8.bf16 %v5550_v56  ;;  %v5858_v39 = vunpack.c.h.s8.bf16 %v5550_v56 }
 0x6f7   :  { %6641 = vmatprep.subr.bf16.mxu1 %v5829_v1  ;;  %v5856_v1 = vunpack.c.l.s8.bf16 %v5552_v58 }
 0x6f8   :  { %6314 = vmatpush1.bf16.msra.mxu0 %v5826_v2  ;;  %v5861_v2 = vunpack.c.h.s8.bf16 %v5553_v48 }
 0x6f9   :  { %6642 = vmatpush1.bf16.msra.mxu1 %v5828_v63  ;;  %6315 = vmatprep.subr.bf16.mxu0 %v5831_v3  ;;  %v5555_v63 = vld [vmem:[#allocation14 + $0x1a8] sm:$0xff]  ;;  %v5557_v3 = vld [vmem:[#allocation14 + $0x1b8] sm:$0xff] }
 0x6fa   :  { %6643 = vmatprep.subr.bf16.mxu1 %v5833_v4  ;;  %v5860_v4 = vunpack.c.h.s8.bf16 %v5552_v58  ;;  %v5863_v5 = vunpack.c.l.s8.bf16 %v5555_v63  ;;  %v5867_v38 = vunpack.c.h.s8.bf16 %v5555_v63 }
 0x6fc   :  { %6316 = vmatpush1.bf16.msra.mxu0 %v5830_v6  ;;  %v5554_v6 = vld [vmem:[#allocation14 + $0x1a0] sm:$0xff] }
 0x6fd   :  { %6644 = vmatpush1.bf16.msra.mxu1 %v5832_v8  ;;  %6317 = vmatprep.subr.bf16.mxu0 %v5835_v29  ;;  %v5865_v8 = vunpack.c.l.s8.bf16 %v5557_v3  ;;  %v5556_v29 = vld [vmem:[#allocation14 + $0x1b0] sm:$0xff]  ;;  %v5866_v14 = vunpack.c.h.s8.bf16 %v5554_v6 }
 0x6fe   :  { %6645 = vmatprep.subr.bf16.mxu1 %v5837_v62  ;;  %v5862_v62 = vunpack.c.l.s8.bf16 %v5554_v6  ;;  %v5864_v49 = vunpack.c.l.s8.bf16 %v5556_v29 }
 0x700   :  { %6318 = vmatpush1.bf16.msra.mxu0 %v5834_v9  ;;  %v5869_v9 = vunpack.c.h.s8.bf16 %v5557_v3 }
 0x701   :  { %6646 = vmatpush1.bf16.msra.mxu1 %v5836_v10  ;;  %6319 = vmatprep.subr.bf16.mxu0 %v5839_v13  ;;  %v5559_v10 = vld [vmem:[#allocation14 + $0x1c8] sm:$0xff]  ;;  %v5561_v13 = vld [vmem:[#allocation14 + $0x1d8] sm:$0xff] }
 0x702   :  { %6647 = vmatprep.subr.bf16.mxu1 %v5841_v60  ;;  %v5868_v60 = vunpack.c.h.s8.bf16 %v5556_v29  ;;  %v5871_v45 = vunpack.c.l.s8.bf16 %v5559_v10 }
 0x704   :  { %6320 = vmatpush1.bf16.msra.mxu0 %v5838_v15  ;;  %v5558_v15 = vld [vmem:[#allocation14 + $0x1c0] sm:$0xff] }
 0x705   :  { %6648 = vmatpush1.bf16.msra.mxu1 %v5840_v16  ;;  %6321 = vmatprep.subr.bf16.mxu0 %v5843_v17  ;;  %v5873_v16 = vunpack.c.l.s8.bf16 %v5561_v13  ;;  %v5560_v17 = vld [vmem:[#allocation14 + $0x1d0] sm:$0xff]  ;;  %v5874_v30 = vunpack.c.h.s8.bf16 %v5558_v15 }
 0x706   :  { %6649 = vmatprep.subr.bf16.mxu1 %v5845_v18  ;;  %v5870_v18 = vunpack.c.l.s8.bf16 %v5558_v15  ;;  %v5872_v36 = vunpack.c.l.s8.bf16 %v5560_v17 }
 0x708   :  { %6322 = vmatpush1.bf16.msra.mxu0 %v5842_v21  ;;  %v5875_v21 = vunpack.c.h.s8.bf16 %v5559_v10  ;;  %v5573_v10 = vld [vmem:[#allocation14 + $0x238] sm:$0xff] }
 0x709   :  { %6650 = vmatpush1.bf16.msra.mxu1 %v5844_v22  ;;  %6323 = vmatprep.subr.bf16.mxu0 %v5847_v23  ;;  %v5877_v22 = vunpack.c.h.s8.bf16 %v5561_v13  ;;  %v5563_v23 = vld [vmem:[#allocation14 + $0x1e8] sm:$0xff]  ;;  %v5897_v15 = vunpack.c.l.s8.bf16 %v5573_v10 }
 0x70a   :  { %6651 = vmatprep.subr.bf16.mxu1 %v5849_v28  ;;  %v5565_v28 = vld [vmem:[#allocation14 + $0x1f8] sm:$0xff] }
 0x70b   :  { %v5881_v48 = vunpack.c.l.s8.bf16 %v5565_v28  ;;  %v5885_v58 = vunpack.c.h.s8.bf16 %v5565_v28 }
 0x70c   :  { %6324 = vmatpush1.bf16.msra.mxu0 %v5846_v25  ;;  %v5356_v25 = vmul.f32 %v5285_v19, %v8687_v37 }
 0x70d   :  { %6652 = vmatpush1.bf16.msra.mxu1 %v5848_v40  ;;  %6325 = vmatprep.subr.bf16.mxu0 %v5851_v32  ;;  %v5385_v40 = vrot.slane %v8745_v54, %v8587_v53  ;;  %v5876_v32 = vunpack.c.h.s8.bf16 %v5560_v17  ;;  %v5566_v54 = vld [vmem:[#allocation14 + $0x200] sm:$0xff] }
 0x70e   :  { %6653 = vmatprep.subr.bf16.mxu1 %v5853_v47  ;;  %v5879_v47 = vunpack.c.l.s8.bf16 %v5563_v23  ;;  %v5886_v6 = vunpack.c.l.s8.bf16 %v5566_v54  ;;  %v5890_v13 = vunpack.c.h.s8.bf16 %v5566_v54 }
 0x70f   :  { %v5456_v56 = vadd.f32 %v5385_v40, %v5356_v25  ;;  %v5576_v40 = vld [vmem:[#allocation14 + $0x250] sm:$0xff] }
 0x710   :  { %6326 = vmatpush1.bf16.msra.mxu0 %v5850_v50  ;;  %v5564_v50 = vld [vmem:[#allocation14 + $0x1f0] sm:$0xff] }
 0x711   :  { %6654 = vmatpush1.bf16.msra.mxu1 %v5852_v52  ;;  %6327 = vmatprep.subr.bf16.mxu0 %v5855_v55  ;;  %v5359_v52 = vmul.f32 %v5297_v12, %v8713_v33  ;;  %v5878_v55 = vunpack.c.l.s8.bf16 %v5562_v57  ;;  %v5880_v37 = vunpack.c.l.s8.bf16 %v5564_v50  ;;  %v5472_v63 = vmax.f32 %v5456_v56, 0.0 }
 0x712   :  { %6655 = vmatprep.subr.bf16.mxu1 %v5857_v24  ;;  %v5883_v24 = vunpack.c.h.s8.bf16 %v5563_v23  ;;  %v5884_v33 = vunpack.c.h.s8.bf16 %v5564_v50  ;;  %v5579_v50 = vld [vmem:[#allocation14 + $0x268] sm:$0xff] }
 0x713   :  { %v5911_v56 = vunpack.c.l.s8.bf16 %v5579_v50 }
 0x714   :  { %6328 = vmatpush1.bf16.msra.mxu0 %v5854_v0  ;;  %v5567_v0 = vld [vmem:[#allocation14 + $0x208] sm:$0xff] }
 0x715   :  { %6656 = vmatpush1.bf16.msra.mxu1 %v5856_v1  ;;  %6329 = vmatprep.subr.bf16.mxu0 %v5859_v59  ;;  %v5459_v1 = vadd.f32 %v5397_v35, %v5359_v52  ;;  %v5569_v59 = vld [vmem:[#allocation14 + $0x218] sm:$0xff]  ;;  %v5887_v3 = vunpack.c.l.s8.bf16 %v5567_v0 }
 0x716   :  { %6657 = vmatprep.subr.bf16.mxu1 %v5861_v2  ;;  %v5882_v2 = vunpack.c.h.s8.bf16 %v5562_v57  ;;  %v5581_v52 = vld [vmem:[#allocation14 + $0x278] sm:$0xff] }
 0x718   :  { %6330 = vmatpush1.bf16.msra.mxu0 %v5858_v39  ;;  %v5889_v39 = vunpack.c.l.s8.bf16 %v5569_v59 }
 0x719   :  { %6658 = vmatpush1.bf16.msra.mxu1 %v5860_v4  ;;  %6331 = vmatprep.subr.bf16.mxu0 %v5863_v5  ;;  %v5568_v4 = vld [vmem:[#allocation14 + $0x210] sm:$0xff]  ;;  %v5475_v5 = vmax.f32 %v5459_v1, 0.0 }
 0x71a   :  { %6659 = vmatprep.subr.bf16.mxu1 %v5865_v8  ;;  %v5488_v8 = vpack.c.bf16 %v5472_v63, %v5472_v63  ;;  %v5888_v29 = vunpack.c.l.s8.bf16 %v5568_v4  ;;  %v5583_v63 = vld [vmem:[#allocation14 + $0x288] sm:$0xff] }
 0x71c   :  { %6332 = vmatpush1.bf16.msra.mxu0 %v5862_v62  ;;  %v5891_v62 = vunpack.c.h.s8.bf16 %v5567_v0 }
 0x71d   :  { %6660 = vmatpush1.bf16.msra.mxu1 %v5864_v49  ;;  %6333 = vmatprep.subr.bf16.mxu0 %v5867_v38  ;;  %v5571_v49 = vld [vmem:[#allocation14 + $0x228] sm:$0xff]  ;;  %v5491_v38 = vpack.c.bf16 %v5475_v5, %v5475_v5 }
 0x71e   :  { %6661 = vmatprep.subr.bf16.mxu1 %v5869_v9  ;;  %v5893_v9 = vunpack.c.h.s8.bf16 %v5569_v59  ;;  %v5899_v19 = vunpack.c.h.s8.bf16 %v5571_v49  ;;  %v5915_v59 = vunpack.c.h.s8.bf16 %v5579_v50 }
 0x720   :  { %6334 = vmatpush1.bf16.msra.mxu0 %v5866_v14  ;;  %v5892_v14 = vunpack.c.h.s8.bf16 %v5568_v4  ;;  %v5582_v4 = vld [vmem:[#allocation14 + $0x280] sm:$0xff] }
 0x721   :  { %6662 = vmatpush1.bf16.msra.mxu1 %v5868_v60  ;;  %6335 = vmatprep.subr.bf16.mxu0 %v5871_v45  ;;  %v5895_v60 = vunpack.c.l.s8.bf16 %v5571_v49  ;;  %v5570_v45 = vld [vmem:[#allocation14 + $0x220] sm:$0xff] }
 0x722   :  { %6663 = vmatprep.subr.bf16.mxu1 %v5873_v16  ;;  %v5572_v16 = vld [vmem:[#allocation14 + $0x230] sm:$0xff]  ;;  %v5894_v17 = vunpack.c.l.s8.bf16 %v5570_v45  ;;  %v5898_v23 = vunpack.c.h.s8.bf16 %v5570_v45 }
 0x723   :  { %v5900_v12 = vunpack.c.h.s8.bf16 %v5572_v16 }
 0x724   :  { %6336 = vmatpush1.bf16.msra.mxu0 %v5870_v18  ;;  %v5896_v18 = vunpack.c.l.s8.bf16 %v5572_v16 }
 0x725   :  { %6664 = vmatpush1.bf16.msra.mxu1 %v5872_v36  ;;  %6337 = vmatprep.subr.bf16.mxu0 %v5875_v21  ;;  %v5901_v36 = vunpack.c.h.s8.bf16 %v5573_v10  ;;  %v5575_v21 = vld [vmem:[#allocation14 + $0x248] sm:$0xff]  ;;  %v5922_v10 = vunpack.c.h.s8.bf16 %v5582_v4 }
 0x726   :  { %6665 = vmatprep.subr.bf16.mxu1 %v5877_v22  ;;  %v5577_v22 = vld [vmem:[#allocation14 + $0x258] sm:$0xff]  ;;  %v5903_v28 = vunpack.c.l.s8.bf16 %v5575_v21  ;;  %v5907_v57 = vunpack.c.h.s8.bf16 %v5575_v21 }
 0x727   :  { %v5905_v25 = vunpack.c.l.s8.bf16 %v5577_v22  ;;  %v5593_v21 = vld [vmem:[#allocation14 + $0x2d8] sm:$0xff] }
 0x728   :  { %6338 = vmatpush1.bf16.msra.mxu0 %v5874_v30  ;;  %v5574_v30 = vld [vmem:[#allocation14 + $0x240] sm:$0xff]  ;;  %v5941_v50 = vunpack.c.h.s8.bf16 %v5593_v21 }
 0x729   :  { %6666 = vmatpush1.bf16.msra.mxu1 %v5876_v32  ;;  %6339 = vmatprep.subr.bf16.mxu0 %v5879_v47  ;;  %v5902_v32 = vunpack.c.l.s8.bf16 %v5574_v30  ;;  %v5904_v47 = vunpack.c.l.s8.bf16 %v5576_v40  ;;  %v5906_v35 = vunpack.c.h.s8.bf16 %v5574_v30  ;;  %v5937_v30 = vunpack.c.l.s8.bf16 %v5593_v21 }
 0x72a   :  { %6667 = vmatprep.subr.bf16.mxu1 %v5881_v48  ;;  %v5909_v48 = vunpack.c.h.s8.bf16 %v5577_v22 }
 0x72c   :  { %6340 = vmatpush1.bf16.msra.mxu0 %v5878_v55  ;;  %v5908_v55 = vunpack.c.h.s8.bf16 %v5576_v40 }
 0x72d   :  { %6668 = vmatpush1.bf16.msra.mxu1 %v5880_v37  ;;  %6341 = vmatprep.subr.bf16.mxu0 %v5883_v24  ;;  %v5578_v37 = vld [vmem:[#allocation14 + $0x260] sm:$0xff]  ;;  %v5913_v24 = vunpack.c.l.s8.bf16 %v5581_v52 }
 0x72e   :  { %6669 = vmatprep.subr.bf16.mxu1 %v5885_v58  ;;  %v5580_v58 = vld [vmem:[#allocation14 + $0x270] sm:$0xff]  ;;  %v5910_v0 = vunpack.c.l.s8.bf16 %v5578_v37 }
 0x72f   :  { %v5912_v1 = vunpack.c.l.s8.bf16 %v5580_v58  ;;  %v5916_v54 = vunpack.c.h.s8.bf16 %v5580_v58 }
 0x730   :  { %6342 = vmatpush1.bf16.msra.mxu0 %v5882_v2  ;;  %v5917_v2 = vunpack.c.h.s8.bf16 %v5581_v52  ;;  %v5595_v52 = vld [vmem:[#allocation14 + $0x2e8] sm:$0xff] }
 0x731   :  { %6670 = vmatpush1.bf16.msra.mxu1 %v5884_v33  ;;  %6352 = vmatprep.subr.bf16.mxu0 %v5887_v3  ;;  %v5585_v33 = vld [vmem:[#allocation14 + $0x298] sm:$0xff]  ;;  %v5914_v3 = vunpack.c.h.s8.bf16 %v5578_v37 }
 0x732   :  { %6680 = vmatprep.subr.bf16.mxu1 %v5889_v39  ;;  %v5919_v39 = vunpack.c.l.s8.bf16 %v5583_v63  ;;  %v5921_v5 = vunpack.c.l.s8.bf16 %v5585_v33  ;;  %v5925_v49 = vunpack.c.h.s8.bf16 %v5585_v33 }
 0x733   :  { %6344 = vmatmul.mubr.bf16.vlgmr.msra.gmra.mrb[28].mxu0 %v5488_v8 }
 0x734   :  { %6672 = vmatmul.mubr.bf16.vlgmr.msra.gmra.mrb[28].mxu1 %v5488_v8  ;;  %6353 = vmatpush1.bf16.msra.mxu0 %v5886_v6  ;;  %v5584_v6 = vld [vmem:[#allocation14 + $0x290] sm:$0xff]  ;;  %v5918_v8 = vunpack.c.l.s8.bf16 %v5582_v4  ;;  %v5947_v4 = vunpack.c.h.s8.bf16 %v5595_v52 }
 0x735   :  { %6384 = vmatprep.mubr.bf16.mxu0 %v5491_v38  ;;  %6681 = vmatpush1.bf16.msra.mxu1 %v5888_v29  ;;  %v5920_v29 = vunpack.c.l.s8.bf16 %v5584_v6 }
 0x736   :  { %6712 = vmatprep.mubr.bf16.mxu1 %v5491_v38  ;;  %6354 = vmatprep.subr.bf16.mxu0 %v5891_v62  ;;  %v5923_v62 = vunpack.c.h.s8.bf16 %v5583_v63  ;;  %v5587_v38 = vld [vmem:[#allocation14 + $0x2a8] sm:$0xff]  ;;  %v5596_v63 = vld [vmem:[#allocation14 + $0x2f0] sm:$0xff] }
 0x737   :  { %6682 = vmatprep.subr.bf16.mxu1 %v5893_v9  ;;  %v5589_v9 = vld [vmem:[#allocation14 + $0x2b8] sm:$0xff] }
 0x738   :  { %6355 = vmatpush1.bf16.msra.mxu0 %v5890_v13  ;;  %v5924_v13 = vunpack.c.h.s8.bf16 %v5584_v6  ;;  %v5929_v45 = vunpack.c.l.s8.bf16 %v5589_v9  ;;  %v5599_v6 = vld [vmem:[#allocation14 + $0x308] sm:$0xff] }
 0x739   :  { %6683 = vmatpush1.bf16.msra.mxu1 %v5892_v14  ;;  %6356 = vmatprep.subr.bf16.mxu0 %v5895_v60  ;;  %v5927_v14 = vunpack.c.l.s8.bf16 %v5587_v38  ;;  %v5586_v60 = vld [vmem:[#allocation14 + $0x2a0] sm:$0xff] }
 0x73a   :  { %6684 = vmatprep.subr.bf16.mxu1 %v5897_v15  ;;  %v5588_v15 = vld [vmem:[#allocation14 + $0x2b0] sm:$0xff]  ;;  %v5926_v16 = vunpack.c.l.s8.bf16 %v5586_v60  ;;  %v5930_v22 = vunpack.c.h.s8.bf16 %v5586_v60 }
 0x73c   :  { %6357 = vmatpush1.bf16.msra.mxu0 %v5894_v17  ;;  %v5928_v17 = vunpack.c.l.s8.bf16 %v5588_v15 }
 0x73d   :  { %6685 = vmatpush1.bf16.msra.mxu1 %v5896_v18  ;;  %6358 = vmatprep.subr.bf16.mxu0 %v5899_v19  ;;  %v5931_v18 = vunpack.c.h.s8.bf16 %v5587_v38  ;;  %v5933_v19 = vunpack.c.h.s8.bf16 %v5589_v9  ;;  %v5951_v38 = vunpack.c.l.s8.bf16 %v5599_v6  ;;  %v5598_v9 = vld [vmem:[#allocation14 + $0x300] sm:$0xff] }
 0x73e   :  { %6686 = vmatprep.subr.bf16.mxu1 %v5901_v36  ;;  %v5591_v36 = vld [vmem:[#allocation14 + $0x2c8] sm:$0xff]  ;;  %v5950_v60 = vunpack.c.l.s8.bf16 %v5598_v9  ;;  %v5954_v21 = vunpack.c.h.s8.bf16 %v5598_v9 }
 0x740   :  { %6359 = vmatpush1.bf16.msra.mxu0 %v5898_v23  ;;  %v5932_v23 = vunpack.c.h.s8.bf16 %v5588_v15 }
 0x741   :  { %6687 = vmatpush1.bf16.msra.mxu1 %v5900_v12  ;;  %6360 = vmatprep.subr.bf16.mxu0 %v5903_v28  ;;  %v5935_v12 = vunpack.c.l.s8.bf16 %v5591_v36  ;;  %v5590_v28 = vld [vmem:[#allocation14 + $0x2c0] sm:$0xff] }
 0x742   :  { %6688 = vmatprep.subr.bf16.mxu1 %v5905_v25  ;;  %v5592_v25 = vld [vmem:[#allocation14 + $0x2d0] sm:$0xff]  ;;  %v5934_v40 = vunpack.c.l.s8.bf16 %v5590_v28 }
 0x744   :  { %6361 = vmatpush1.bf16.msra.mxu0 %v5902_v32  ;;  %v8772_v32 = vld [vmem:[#allocation11] sm:$0xff] }
 0x745   :  { %6689 = vmatpush1.bf16.msra.mxu1 %v5904_v47  ;;  %6362 = vmatprep.subr.bf16.mxu0 %v5907_v57  ;;  %v5293_v47 = vrot.slane %v8772_v32, %v8634_v7  ;;  %v5936_v57 = vunpack.c.l.s8.bf16 %v5592_v25 }
 0x746   :  { %6690 = vmatprep.subr.bf16.mxu1 %v5909_v48  ;;  %v5939_v48 = vunpack.c.h.s8.bf16 %v5591_v36  ;;  %v5605_v36 = vld [vmem:[#allocation14 + $0x338] sm:$0xff] }
 0x747   :  { %v5358_v37 = vmul.f32 %v5293_v47, %v8709_v27 }
 0x748   :  { %6363 = vmatpush1.bf16.msra.mxu0 %v5906_v35  ;;  %v5305_v35 = vrot.slane %v8772_v32, %v8640_v11 }
 0x749   :  { %6691 = vmatpush1.bf16.msra.mxu1 %v5908_v55  ;;  %6364 = vmatprep.subr.bf16.mxu0 %v5911_v56  ;;  %v5597_v55 = vld [vmem:[#allocation14 + $0x2f8] sm:$0xff]  ;;  %v5938_v56 = vunpack.c.h.s8.bf16 %v5590_v28  ;;  %v5961_v28 = vunpack.c.l.s8.bf16 %v5605_v36 }
 0x74a   :  { %6692 = vmatprep.subr.bf16.mxu1 %v5913_v24  ;;  %v8779_v24 = vld [vmem:[#allocation13] sm:$0xff]  ;;  %v5361_v33 = vmul.f32 %v5305_v35, %v8715_v34  ;;  %v5948_v34 = vunpack.c.h.s8.bf16 %v5596_v63 }
 0x74b   :  { %v5393_v58 = vrot.slane %v8779_v24, %v8634_v7 }
 0x74c   :  { %6365 = vmatpush1.bf16.msra.mxu0 %v5910_v0  ;;  %v5940_v0 = vunpack.c.h.s8.bf16 %v5592_v25 }
 0x74d   :  { %6693 = vmatpush1.bf16.msra.mxu1 %v5912_v1  ;;  %6366 = vmatprep.subr.bf16.mxu0 %v5915_v59  ;;  %v5943_v1 = vunpack.c.l.s8.bf16 %v5595_v52  ;;  %v5594_v59 = vld [vmem:[#allocation14 + $0x2e0] sm:$0xff] }
 0x74e   :  { %6694 = vmatprep.subr.bf16.mxu1 %v5917_v2  ;;  %v5945_v2 = vunpack.c.l.s8.bf16 %v5597_v55  ;;  %v5942_v27 = vunpack.c.l.s8.bf16 %v5594_v59 }
 0x750   :  { %6367 = vmatpush1.bf16.msra.mxu0 %v5914_v3  ;;  %v5405_v3 = vrot.slane %v8779_v24, %v8640_v11 }
 0x751   :  { %6695 = vmatpush1.bf16.msra.mxu1 %v5916_v54  ;;  %6368 = vmatprep.subr.bf16.mxu0 %v5919_v39  ;;  %v5458_v54 = vadd.f32 %v5393_v58, %v5358_v37  ;;  %v5944_v39 = vunpack.c.l.s8.bf16 %v5596_v63  ;;  %v5608_v58 = vld [vmem:[#allocation14 + $0x350] sm:$0xff]  ;;  %v5611_v63 = vld [vmem:[#allocation14 + $0x368] sm:$0xff] }
 0x752   :  { %6696 = vmatprep.subr.bf16.mxu1 %v5921_v5  ;;  %v5949_v5 = vunpack.c.h.s8.bf16 %v5597_v55 }
 0x754   :  { %6369 = vmatpush1.bf16.msra.mxu0 %v5918_v8  ;;  %v5461_v8 = vadd.f32 %v5405_v3, %v5361_v33  ;;  %v5613_v33 = vld [vmem:[#allocation14 + $0x378] sm:$0xff] }
 0x755   :  { %6697 = vmatpush1.bf16.msra.mxu1 %v5920_v29  ;;  %6370 = vmatprep.subr.bf16.mxu0 %v5923_v62  ;;  %v5601_v29 = vld [vmem:[#allocation14 + $0x318] sm:$0xff]  ;;  %v5946_v62 = vunpack.c.h.s8.bf16 %v5594_v59 }
 0x756   :  { %6698 = vmatprep.subr.bf16.mxu1 %v5925_v49  ;;  %v5474_v49 = vmax.f32 %v5458_v54, 0.0  ;;  %v5975_v54 = vunpack.c.l.s8.bf16 %v5611_v63 }
 0x758   :  { %6371 = vmatpush1.bf16.msra.mxu0 %v5922_v10  ;;  %v5953_v10 = vunpack.c.l.s8.bf16 %v5601_v29 }
 0x759   :  { %6699 = vmatpush1.bf16.msra.mxu1 %v5924_v13  ;;  %6372 = vmatprep.subr.bf16.mxu0 %v5927_v14  ;;  %v5600_v13 = vld [vmem:[#allocation14 + $0x310] sm:$0xff]  ;;  %v5477_v14 = vmax.f32 %v5461_v8, 0.0 }
 0x75a   :  { %6700 = vmatprep.subr.bf16.mxu1 %v5929_v45  ;;  %v5490_v45 = vpack.c.bf16 %v5474_v49, %v5474_v49  ;;  %v5952_v15 = vunpack.c.l.s8.bf16 %v5600_v13 }
 0x75c   :  { %6373 = vmatpush1.bf16.msra.mxu0 %v5926_v16  ;;  %v5955_v16 = vunpack.c.h.s8.bf16 %v5599_v6  ;;  %v5612_v6 = vld [vmem:[#allocation14 + $0x370] sm:$0xff] }
 0x75d   :  { %6701 = vmatpush1.bf16.msra.mxu1 %v5928_v17  ;;  %6374 = vmatprep.subr.bf16.mxu0 %v5931_v18  ;;  %v5603_v17 = vld [vmem:[#allocation14 + $0x328] sm:$0xff]  ;;  %v5493_v18 = vpack.c.bf16 %v5477_v14, %v5477_v14 }
 0x75e   :  { %6702 = vmatprep.subr.bf16.mxu1 %v5933_v19  ;;  %v5957_v19 = vunpack.c.h.s8.bf16 %v5601_v29  ;;  %v5963_v47 = vunpack.c.h.s8.bf16 %v5603_v17 }
 0x760   :  { %6375 = vmatpush1.bf16.msra.mxu0 %v5930_v22  ;;  %v5956_v22 = vunpack.c.h.s8.bf16 %v5600_v13  ;;  %v5979_v13 = vunpack.c.h.s8.bf16 %v5611_v63  ;;  %v5622_v63 = vld [vmem:[#allocation14 + $0x3c0] sm:$0xff] }
 0x761   :  { %6703 = vmatpush1.bf16.msra.mxu1 %v5932_v23  ;;  %6376 = vmatprep.subr.bf16.mxu0 %v5935_v12  ;;  %v5959_v23 = vunpack.c.l.s8.bf16 %v5603_v17  ;;  %v5602_v12 = vld [vmem:[#allocation14 + $0x320] sm:$0xff]  ;;  %v5980_v17 = vunpack.c.h.s8.bf16 %v5612_v6 }
 0x762   :  { %6704 = vmatprep.subr.bf16.mxu1 %v5937_v30  ;;  %v5604_v30 = vld [vmem:[#allocation14 + $0x330] sm:$0xff]  ;;  %v5958_v25 = vunpack.c.l.s8.bf16 %v5602_v12  ;;  %v5962_v52 = vunpack.c.h.s8.bf16 %v5602_v12 }
 0x763   :  { %v5964_v35 = vunpack.c.h.s8.bf16 %v5604_v30 }
 0x764   :  { %6377 = vmatpush1.bf16.msra.mxu0 %v5934_v40  ;;  %v5960_v40 = vunpack.c.l.s8.bf16 %v5604_v30  ;;  %v5619_v30 = vld [vmem:[#allocation14 + $0x3a8] sm:$0xff] }
 0x765   :  { %6705 = vmatpush1.bf16.msra.mxu1 %v5936_v57  ;;  %6378 = vmatprep.subr.bf16.mxu0 %v5939_v48  ;;  %v5965_v57 = vunpack.c.h.s8.bf16 %v5605_v36  ;;  %v5607_v48 = vld [vmem:[#allocation14 + $0x348] sm:$0xff] }
 0x766   :  { %6706 = vmatprep.subr.bf16.mxu1 %v5941_v50  ;;  %v5609_v50 = vld [vmem:[#allocation14 + $0x358] sm:$0xff]  ;;  %v5967_v55 = vunpack.c.l.s8.bf16 %v5607_v48  ;;  %v5971_v59 = vunpack.c.h.s8.bf16 %v5607_v48  ;;  %v5618_v48 = vld [vmem:[#allocation14 + $0x3a0] sm:$0xff] }
 0x767   :  { %v5969_v37 = vunpack.c.l.s8.bf16 %v5609_v50 }
 0x768   :  { %6379 = vmatpush1.bf16.msra.mxu0 %v5938_v56  ;;  %v5606_v56 = vld [vmem:[#allocation14 + $0x340] sm:$0xff] }
 0x769   :  { %6707 = vmatpush1.bf16.msra.mxu1 %v5940_v0  ;;  %6380 = vmatprep.subr.bf16.mxu0 %v5943_v1  ;;  %v5966_v0 = vunpack.c.l.s8.bf16 %v5606_v56  ;;  %v5968_v1 = vunpack.c.l.s8.bf16 %v5608_v58  ;;  %v5970_v3 = vunpack.c.h.s8.bf16 %v5606_v56  ;;  %v5995_v56 = vunpack.c.h.s8.bf16 %v5619_v30 }
 0x76a   :  { %6708 = vmatprep.subr.bf16.mxu1 %v5945_v2  ;;  %v5973_v2 = vunpack.c.h.s8.bf16 %v5609_v50 }
 0x76c   :  { %6381 = vmatpush1.bf16.msra.mxu0 %v5942_v27  ;;  %v5972_v27 = vunpack.c.h.s8.bf16 %v5608_v58  ;;  %v5623_v58 = vld [vmem:[#allocation14 + $0x3c8] sm:$0xff] }
 0x76d   :  { %6709 = vmatpush1.bf16.msra.mxu1 %v5944_v39  ;;  %6382 = vmatprep.subr.bf16.mxu0 %v5947_v4  ;;  %v5610_v39 = vld [vmem:[#allocation14 + $0x360] sm:$0xff] }
 0x76e   :  { %6710 = vmatprep.subr.bf16.mxu1 %v5949_v5  ;;  %v5977_v5 = vunpack.c.l.s8.bf16 %v5613_v33 }
 0x770   :  { %6383 = vmatpush1.bf16.msra.mxu0 %v5946_v62 }
 0x771   :  { %6711 = vmatpush1.bf16.msra.mxu1 %v5948_v34  ;;  %6393 = vmatprep.subr.bf16.mxu0 %v5951_v38  ;;  %v5974_v34 = vunpack.c.l.s8.bf16 %v5610_v39 }
 0x772   :  { %6721 = vmatprep.subr.bf16.mxu1 %v5953_v10  ;;  %v5976_v10 = vunpack.c.l.s8.bf16 %v5612_v6  ;;  %v6003_v6 = vunpack.c.h.s8.bf16 %v5623_v58 }
 0x773   :  { %6385 = vmatmul.mubr.bf16.vlgmr.msra.gmra.mrb[28].mxu0 %v5490_v45 }
 0x774   :  { %6713 = vmatmul.mubr.bf16.vlgmr.msra.gmra.mrb[28].mxu1 %v5490_v45  ;;  %6394 = vmatpush1.bf16.msra.mxu0 %v5950_v60  ;;  %v5981_v60 = vunpack.c.h.s8.bf16 %v5613_v33  ;;  %v5615_v45 = vld [vmem:[#allocation14 + $0x388] sm:$0xff] }
 0x775   :  { %6425 = vmatprep.mubr.bf16.mxu0 %v5493_v18  ;;  %6722 = vmatpush1.bf16.msra.mxu1 %v5952_v15  ;;  %v5617_v15 = vld [vmem:[#allocation14 + $0x398] sm:$0xff]  ;;  %v5987_v12 = vunpack.c.h.s8.bf16 %v5615_v45 }
 0x776   :  { %6753 = vmatprep.mubr.bf16.mxu1 %v5493_v18  ;;  %6395 = vmatprep.subr.bf16.mxu0 %v5955_v16  ;;  %v5978_v16 = vunpack.c.h.s8.bf16 %v5610_v39  ;;  %v5983_v18 = vunpack.c.l.s8.bf16 %v5615_v45  ;;  %v5985_v36 = vunpack.c.l.s8.bf16 %v5617_v15  ;;  %v5301_v39 = vrot.slane %v8772_v32, %v8663_v20 }
 0x777   :  { %6723 = vmatprep.subr.bf16.mxu1 %v5957_v19  ;;  %v5614_v19 = vld [vmem:[#allocation14 + $0x380] sm:$0xff]  ;;  %v5401_v32 = vrot.slane %v8779_v24, %v8663_v20 }
 0x778   :  { %6396 = vmatpush1.bf16.msra.mxu0 %v5954_v21  ;;  %v5616_v21 = vld [vmem:[#allocation14 + $0x390] sm:$0xff] }
 0x779   :  { %6724 = vmatpush1.bf16.msra.mxu1 %v5956_v22  ;;  %6397 = vmatprep.subr.bf16.mxu0 %v5959_v23  ;;  %v5982_v22 = vunpack.c.l.s8.bf16 %v5614_v19  ;;  %v5984_v23 = vunpack.c.l.s8.bf16 %v5616_v21 }
 0x77a   :  { %6725 = vmatprep.subr.bf16.mxu1 %v5961_v28  ;;  %v5989_v28 = vunpack.c.h.s8.bf16 %v5617_v15  ;;  %v5626_v15 = vld [vmem:[#allocation14 + $0x3e0] sm:$0xff] }
 0x77c   :  { %6398 = vmatpush1.bf16.msra.mxu0 %v5958_v25  ;;  %v5621_v25 = vld [vmem:[#allocation14 + $0x3b8] sm:$0xff] }
 0x77d   :  { %6726 = vmatpush1.bf16.msra.mxu1 %v5960_v40  ;;  %6399 = vmatprep.subr.bf16.mxu0 %v5963_v47  ;;  %v5986_v40 = vunpack.c.h.s8.bf16 %v5614_v19  ;;  %v5988_v47 = vunpack.c.h.s8.bf16 %v5616_v21  ;;  %v5993_v50 = vunpack.c.l.s8.bf16 %v5621_v25 }
 0x77e   :  { %6727 = vmatprep.subr.bf16.mxu1 %v5965_v57  ;;  %v5991_v57 = vunpack.c.l.s8.bf16 %v5619_v30  ;;  %v6010_v30 = vunpack.c.h.s8.bf16 %v5626_v15 }
 0x780   :  { %6400 = vmatpush1.bf16.msra.mxu0 %v5962_v52  ;;  %v5620_v52 = vld [vmem:[#allocation14 + $0x3b0] sm:$0xff] }
 0x781   :  { %6728 = vmatpush1.bf16.msra.mxu1 %v5964_v35  ;;  %6401 = vmatprep.subr.bf16.mxu0 %v5967_v55  ;;  %v5990_v35 = vunpack.c.l.s8.bf16 %v5618_v48  ;;  %v5992_v55 = vunpack.c.l.s8.bf16 %v5620_v52 }
 0x782   :  { %6729 = vmatprep.subr.bf16.mxu1 %v5969_v37  ;;  %v5997_v37 = vunpack.c.h.s8.bf16 %v5621_v25 }
 0x784   :  { %6402 = vmatpush1.bf16.msra.mxu0 %v5966_v0  ;;  %v5625_v0 = vld [vmem:[#allocation14 + $0x3d8] sm:$0xff] }
 0x785   :  { %6730 = vmatpush1.bf16.msra.mxu1 %v5968_v1  ;;  %6403 = vmatprep.subr.bf16.mxu0 %v5971_v59  ;;  %v5994_v1 = vunpack.c.h.s8.bf16 %v5618_v48  ;;  %v5996_v59 = vunpack.c.h.s8.bf16 %v5620_v52  ;;  %v6001_v33 = vunpack.c.l.s8.bf16 %v5625_v0  ;;  %v5632_v48 = vld [vmem:[#allocation14 + $0x410] sm:$0xff] }
 0x786   :  { %v8786_v4 = vpop.f32.mrb[24].mxu0  ;;  %6731 = vmatprep.subr.bf16.mxu1 %v5973_v2  ;;  %v5999_v2 = vunpack.c.l.s8.bf16 %v5623_v58 }
 0x787   :  { %v8788_v8 = vpop.f32.mrb[24].mxu1  ;;  %v8790_v29 = vpop.f32.mrb[25].mxu0 }
 0x788   :  { %v8792_v62 = vpop.f32.mrb[25].mxu1  ;;  %v5103_v49 = vpop.f32.mrb[26].mxu0  ;;  %6404 = vmatpush1.bf16.msra.mxu0 %v5970_v3  ;;  %v5624_v3 = vld [vmem:[#allocation14 + $0x3d0] sm:$0xff] }
 0x789   :  { %v5267_v38 = vpop.f32.mrb[26].mxu1  ;;  %6732 = vmatpush1.bf16.msra.mxu1 %v5972_v27  ;;  %v5104_v9 = vpop.f32.mrb[27].mxu0  ;;  %6405 = vmatprep.subr.bf16.mxu0 %v5975_v54  ;;  %v8794_v27 = vld [vmem:[#allocation11 + $0x8] sm:$0xff]  ;;  %v5998_v54 = vunpack.c.l.s8.bf16 %v5622_v63  ;;  %v6005_v49 = vunpack.c.h.s8.bf16 %v5625_v0 }
 0x78a   :  { %v5268_v14 = vpop.f32.mrb[27].mxu1  ;;  %6733 = vmatprep.subr.bf16.mxu1 %v5977_v5  ;;  %v6000_v5 = vunpack.c.l.s8.bf16 %v5624_v3  ;;  %v5313_v38 = vrot.slane %v8794_v27, %v8561_v46  ;;  %v5629_v9 = vld [vmem:[#allocation14 + $0x3f8] sm:$0xff] }
 0x78b   :  { %v5360_v14 = vmul.f32 %v5301_v39, %v8711_v31 }
 0x78c   :  { %6406 = vmatpush1.bf16.msra.mxu0 %v5974_v34  ;;  %v5627_v34 = vld [vmem:[#allocation14 + $0x3e8] sm:$0xff] }
 0x78d   :  { %6734 = vmatpush1.bf16.msra.mxu1 %v5976_v10  ;;  %6407 = vmatprep.subr.bf16.mxu0 %v5979_v13  ;;  %v8800_v10 = vld [vmem:[#allocation13 + $0x8] sm:$0xff]  ;;  %v6002_v13 = vunpack.c.h.s8.bf16 %v5622_v63  ;;  %v6007_v45 = vunpack.c.l.s8.bf16 %v5627_v34  ;;  %v5460_v21 = vadd.f32 %v5401_v32, %v5360_v14  ;;  %v6011_v24 = vunpack.c.h.s8.bf16 %v5627_v34  ;;  %v5639_v34 = vld [vmem:[#allocation14 + $0x448] sm:$0xff]  ;;  %v5638_v32 = vld [vmem:[#allocation14 + $0x440] sm:$0xff] }
 0x78e   :  { %6735 = vmatprep.subr.bf16.mxu1 %v5981_v60  ;;  %v6004_v60 = vunpack.c.h.s8.bf16 %v5624_v3  ;;  %v5413_v19 = vrot.slane %v8800_v10, %v8561_v46  ;;  %v6031_v14 = vunpack.c.l.s8.bf16 %v5639_v34 }
 0x78f   :  { %v5476_v25 = vmax.f32 %v5460_v21, 0.0  ;;  %v6034_v21 = vunpack.c.h.s8.bf16 %v5638_v32 }
 0x790   :  { %6408 = vmatpush1.bf16.msra.mxu0 %v5978_v16  ;;  %v6009_v16 = vunpack.c.l.s8.bf16 %v5629_v9 }
 0x791   :  { %6736 = vmatpush1.bf16.msra.mxu1 %v5980_v17  ;;  %6409 = vmatprep.subr.bf16.mxu0 %v5983_v18  ;;  %v5628_v17 = vld [vmem:[#allocation14 + $0x3f0] sm:$0xff]  ;;  %v5363_v18 = vmul.f32 %v5313_v38, %v8737_v41  ;;  %v5641_v38 = vld [vmem:[#allocation14 + $0x458] sm:$0xff] }
 0x792   :  { %6737 = vmatprep.subr.bf16.mxu1 %v5985_v36  ;;  %v6006_v36 = vunpack.c.l.s8.bf16 %v5626_v15  ;;  %v6008_v31 = vunpack.c.l.s8.bf16 %v5628_v17  ;;  %v6012_v41 = vunpack.c.h.s8.bf16 %v5628_v17  ;;  %v6030_v15 = vunpack.c.l.s8.bf16 %v5638_v32 }
 0x793   :  { %v6035_v17 = vunpack.c.h.s8.bf16 %v5639_v34 }
 0x794   :  { %6410 = vmatpush1.bf16.msra.mxu0 %v5982_v22  ;;  %v6013_v22 = vunpack.c.h.s8.bf16 %v5629_v9 }
 0x795   :  { %6738 = vmatpush1.bf16.msra.mxu1 %v5984_v23  ;;  %6411 = vmatprep.subr.bf16.mxu0 %v5987_v12  ;;  %v5631_v23 = vld [vmem:[#allocation14 + $0x408] sm:$0xff]  ;;  %v5463_v12 = vadd.f32 %v5413_v19, %v5363_v18  ;;  %v6037_v18 = vunpack.c.h.s8.bf16 %v5641_v38 }
 0x796   :  { %6739 = vmatprep.subr.bf16.mxu1 %v5989_v28  ;;  %v5633_v28 = vld [vmem:[#allocation14 + $0x418] sm:$0xff]  ;;  %v5643_v19 = vld [vmem:[#allocation14 + $0x468] sm:$0xff] }
 0x797   :  { %v6021_v0 = vunpack.c.h.s8.bf16 %v5633_v28 }
 0x798   :  { %6412 = vmatpush1.bf16.msra.mxu0 %v5986_v40  ;;  %v6015_v40 = vunpack.c.l.s8.bf16 %v5631_v23 }
 0x799   :  { %6740 = vmatpush1.bf16.msra.mxu1 %v5988_v47  ;;  %6413 = vmatprep.subr.bf16.mxu0 %v5991_v57  ;;  %v5630_v47 = vld [vmem:[#allocation14 + $0x400] sm:$0xff]  ;;  %v6017_v57 = vunpack.c.l.s8.bf16 %v5633_v28 }
 0x79a   :  { %6741 = vmatprep.subr.bf16.mxu1 %v5993_v50  ;;  %v5479_v50 = vmax.f32 %v5463_v12, 0.0  ;;  %v6014_v52 = vunpack.c.l.s8.bf16 %v5630_v47  ;;  %v5644_v12 = vld [vmem:[#allocation14 + $0x470] sm:$0xff] }
 0x79c   :  { %6414 = vmatpush1.bf16.msra.mxu0 %v5990_v35  ;;  %v5492_v35 = vpack.c.bf16 %v5476_v25, %v5476_v25  ;;  %v5495_v58 = vpack.c.bf16 %v5479_v50, %v5479_v50  ;;  %v6043_v25 = vunpack.c.h.s8.bf16 %v5643_v19 }
 0x79d   :  { %6742 = vmatpush1.bf16.msra.mxu1 %v5992_v55  ;;  %6415 = vmatprep.subr.bf16.mxu0 %v5995_v56  ;;  %v6016_v55 = vunpack.c.l.s8.bf16 %v5632_v48  ;;  %v6019_v56 = vunpack.c.h.s8.bf16 %v5631_v23 }
 0x79e   :  { %6743 = vmatprep.subr.bf16.mxu1 %v5997_v37  ;;  %v5635_v37 = vld [vmem:[#allocation14 + $0x428] sm:$0xff] }
 0x79f   :  { %v6023_v63 = vunpack.c.l.s8.bf16 %v5635_v37 }
 0x7a0   :  { %6416 = vmatpush1.bf16.msra.mxu0 %v5994_v1  ;;  %v5637_v1 = vld [vmem:[#allocation14 + $0x438] sm:$0xff] }
 0x7a1   :  { %6744 = vmatpush1.bf16.msra.mxu1 %v5996_v59  ;;  %6417 = vmatprep.subr.bf16.mxu0 %v5999_v2  ;;  %v6018_v59 = vunpack.c.h.s8.bf16 %v5630_v47  ;;  %v6020_v2 = vunpack.c.h.s8.bf16 %v5632_v48  ;;  %v6025_v3 = vunpack.c.l.s8.bf16 %v5637_v1  ;;  %v5649_v47 = vld [vmem:[#allocation14 + $0x498] sm:$0xff]  ;;  %v6044_v48 = vunpack.c.h.s8.bf16 %v5644_v12 }
 0x7a2   :  { %6745 = vmatprep.subr.bf16.mxu1 %v6001_v33  ;;  %v5634_v33 = vld [vmem:[#allocation14 + $0x420] sm:$0xff] }
 0x7a3   :  { %v6022_v39 = vunpack.c.l.s8.bf16 %v5634_v33  ;;  %v6026_v9 = vunpack.c.h.s8.bf16 %v5634_v33 }
 0x7a4   :  { %6418 = vmatpush1.bf16.msra.mxu0 %v5998_v54  ;;  %v5636_v54 = vld [vmem:[#allocation14 + $0x430] sm:$0xff] }
 0x7a5   :  { %6746 = vmatpush1.bf16.msra.mxu1 %v6000_v5  ;;  %6419 = vmatprep.subr.bf16.mxu0 %v6003_v6  ;;  %v6024_v5 = vunpack.c.l.s8.bf16 %v5636_v54  ;;  %v6027_v6 = vunpack.c.h.s8.bf16 %v5635_v37 }
 0x7a6   :  { %6747 = vmatprep.subr.bf16.mxu1 %v6005_v49  ;;  %v6029_v49 = vunpack.c.h.s8.bf16 %v5637_v1  ;;  %v5651_v1 = vld [vmem:[#allocation14 + $0x4a8] sm:$0xff] }
 0x7a7   :  { %v6055_v33 = vunpack.c.l.s8.bf16 %v5651_v1 }
 0x7a8   :  { %6420 = vmatpush1.bf16.msra.mxu0 %v6002_v13  ;;  %v6028_v13 = vunpack.c.h.s8.bf16 %v5636_v54 }
 0x7a9   :  { %6748 = vmatpush1.bf16.msra.mxu1 %v6004_v60  ;;  %6421 = vmatprep.subr.bf16.mxu0 %v6007_v45  ;;  %v6033_v60 = vunpack.c.l.s8.bf16 %v5641_v38  ;;  %v5640_v45 = vld [vmem:[#allocation14 + $0x450] sm:$0xff]  ;;  %v5655_v38 = vld [vmem:[#allocation14 + $0x4c8] sm:$0xff] }
 0x7aa   :  { %6749 = vmatprep.subr.bf16.mxu1 %v6009_v16  ;;  %v6032_v16 = vunpack.c.l.s8.bf16 %v5640_v45  ;;  %v6063_v32 = vunpack.c.l.s8.bf16 %v5655_v38 }
 0x7ac   :  { %6422 = vmatpush1.bf16.msra.mxu0 %v6006_v36  ;;  %v5645_v36 = vld [vmem:[#allocation14 + $0x478] sm:$0xff] }
 0x7ad   :  { %6750 = vmatpush1.bf16.msra.mxu1 %v6008_v31  ;;  %6423 = vmatprep.subr.bf16.mxu0 %v6011_v24  ;;  %v6036_v31 = vunpack.c.h.s8.bf16 %v5640_v45  ;;  %v6039_v24 = vunpack.c.l.s8.bf16 %v5643_v19  ;;  %v6041_v23 = vunpack.c.l.s8.bf16 %v5645_v36  ;;  %v6067_v19 = vunpack.c.h.s8.bf16 %v5655_v38  ;;  %v5669_v38 = vld [vmem:[#allocation14 + $0x538] sm:$0xff] }
 0x7ae   :  { %6751 = vmatprep.subr.bf16.mxu1 %v6013_v22  ;;  %v5642_v22 = vld [vmem:[#allocation14 + $0x460] sm:$0xff] }
 0x7af   :  { %v6038_v28 = vunpack.c.l.s8.bf16 %v5642_v22 }
 0x7b0   :  { %6424 = vmatpush1.bf16.msra.mxu0 %v6010_v30  ;;  %v6040_v30 = vunpack.c.l.s8.bf16 %v5644_v12  ;;  %v5409_v12 = vrot.slane %v8800_v10, %v8556_v44 }
 0x7b1   :  { %6752 = vmatpush1.bf16.msra.mxu1 %v6012_v41  ;;  %6434 = vmatprep.subr.bf16.mxu0 %v6015_v40  ;;  %v6045_v41 = vunpack.c.h.s8.bf16 %v5645_v36  ;;  %v5647_v40 = vld [vmem:[#allocation14 + $0x488] sm:$0xff] }
 0x7b2   :  { %6762 = vmatprep.subr.bf16.mxu1 %v6017_v57  ;;  %v6042_v57 = vunpack.c.h.s8.bf16 %v5642_v22  ;;  %v6047_v50 = vunpack.c.l.s8.bf16 %v5647_v40 }
 0x7b3   :  { %6426 = vmatmul.mubr.bf16.vlgmr.msra.gmra.mrb[28].mxu0 %v5492_v35 }
 0x7b4   :  { %6754 = vmatmul.mubr.bf16.vlgmr.msra.gmra.mrb[28].mxu1 %v5492_v35  ;;  %6435 = vmatpush1.bf16.msra.mxu0 %v6014_v52  ;;  %v5646_v52 = vld [vmem:[#allocation14 + $0x480] sm:$0xff]  ;;  %v6049_v35 = vunpack.c.l.s8.bf16 %v5649_v47 }
 0x7b5   :  { %6466 = vmatprep.mubr.bf16.mxu0 %v5495_v58  ;;  %6763 = vmatpush1.bf16.msra.mxu1 %v6016_v55  ;;  %v5648_v55 = vld [vmem:[#allocation14 + $0x490] sm:$0xff] }
 0x7b6   :  { %6794 = vmatprep.mubr.bf16.mxu1 %v5495_v58  ;;  %6436 = vmatprep.subr.bf16.mxu0 %v6019_v56  ;;  %v6046_v56 = vunpack.c.l.s8.bf16 %v5646_v52  ;;  %v6048_v37 = vunpack.c.l.s8.bf16 %v5648_v55  ;;  %v6051_v58 = vunpack.c.h.s8.bf16 %v5647_v40  ;;  %v5660_v40 = vld [vmem:[#allocation14 + $0x4f0] sm:$0xff] }
 0x7b7   :  { %6764 = vmatprep.subr.bf16.mxu1 %v6021_v0  ;;  %v6053_v0 = vunpack.c.h.s8.bf16 %v5649_v47 }
 0x7b8   :  { %6437 = vmatpush1.bf16.msra.mxu0 %v6018_v59  ;;  %v5653_v59 = vld [vmem:[#allocation14 + $0x4b8] sm:$0xff] }
 0x7b9   :  { %6765 = vmatpush1.bf16.msra.mxu1 %v6020_v2  ;;  %6438 = vmatprep.subr.bf16.mxu0 %v6023_v63  ;;  %v6050_v2 = vunpack.c.h.s8.bf16 %v5646_v52  ;;  %v6052_v63 = vunpack.c.h.s8.bf16 %v5648_v55  ;;  %v6057_v54 = vunpack.c.l.s8.bf16 %v5653_v59  ;;  %v6061_v34 = vunpack.c.h.s8.bf16 %v5653_v59  ;;  %v5663_v55 = vld [vmem:[#allocation14 + $0x508] sm:$0xff]  ;;  %v5662_v59 = vld [vmem:[#allocation14 + $0x500] sm:$0xff] }
 0x7ba   :  { %6766 = vmatprep.subr.bf16.mxu1 %v6025_v3  ;;  %v5650_v3 = vld [vmem:[#allocation14 + $0x4a0] sm:$0xff] }
 0x7bc   :  { %6439 = vmatpush1.bf16.msra.mxu0 %v6022_v39  ;;  %v5652_v39 = vld [vmem:[#allocation14 + $0x4b0] sm:$0xff] }
 0x7bd   :  { %6767 = vmatpush1.bf16.msra.mxu1 %v6024_v5  ;;  %6440 = vmatprep.subr.bf16.mxu0 %v6027_v6  ;;  %v6054_v5 = vunpack.c.l.s8.bf16 %v5650_v3  ;;  %v6056_v6 = vunpack.c.l.s8.bf16 %v5652_v39 }
 0x7be   :  { %6768 = vmatprep.subr.bf16.mxu1 %v6029_v49  ;;  %v6059_v49 = vunpack.c.h.s8.bf16 %v5651_v1  ;;  %v6079_v1 = vunpack.c.l.s8.bf16 %v5663_v55 }
 0x7c0   :  { %6441 = vmatpush1.bf16.msra.mxu0 %v6026_v9  ;;  %v5657_v9 = vld [vmem:[#allocation14 + $0x4d8] sm:$0xff] }
 0x7c1   :  { %6769 = vmatpush1.bf16.msra.mxu1 %v6028_v13  ;;  %6442 = vmatprep.subr.bf16.mxu0 %v6031_v14  ;;  %v6058_v13 = vunpack.c.h.s8.bf16 %v5650_v3  ;;  %v6060_v14 = vunpack.c.h.s8.bf16 %v5652_v39  ;;  %v6065_v45 = vunpack.c.l.s8.bf16 %v5657_v9  ;;  %v6069_v36 = vunpack.c.h.s8.bf16 %v5657_v9 }
 0x7c2   :  { %6770 = vmatprep.subr.bf16.mxu1 %v6033_v60  ;;  %v5654_v60 = vld [vmem:[#allocation14 + $0x4c0] sm:$0xff]  ;;  %v6078_v3 = vunpack.c.l.s8.bf16 %v5662_v59  ;;  %v6082_v9 = vunpack.c.h.s8.bf16 %v5662_v59 }
 0x7c3   :  { %v6066_v22 = vunpack.c.h.s8.bf16 %v5654_v60 }
 0x7c4   :  { %6443 = vmatpush1.bf16.msra.mxu0 %v6030_v15  ;;  %v5656_v15 = vld [vmem:[#allocation14 + $0x4d0] sm:$0xff] }
 0x7c5   :  { %6771 = vmatpush1.bf16.msra.mxu1 %v6032_v16  ;;  %6444 = vmatprep.subr.bf16.mxu0 %v6035_v17  ;;  %v6062_v16 = vunpack.c.l.s8.bf16 %v5654_v60  ;;  %v5309_v17 = vrot.slane %v8794_v27, %v8556_v44  ;;  %v6089_v60 = vunpack.c.l.s8.bf16 %v5669_v38 }
 0x7c6   :  { %6772 = vmatprep.subr.bf16.mxu1 %v6037_v18  ;;  %v6064_v18 = vunpack.c.l.s8.bf16 %v5656_v15 }
 0x7c8   :  { %6445 = vmatpush1.bf16.msra.mxu0 %v6034_v21  ;;  %v5659_v21 = vld [vmem:[#allocation14 + $0x4e8] sm:$0xff] }
 0x7c9   :  { %6773 = vmatpush1.bf16.msra.mxu1 %v6036_v31  ;;  %6446 = vmatprep.subr.bf16.mxu0 %v6039_v24  ;;  %v5321_v31 = vrot.slane %v8794_v27, %v8568_v61  ;;  %v5661_v24 = vld [vmem:[#allocation14 + $0x4f8] sm:$0xff]  ;;  %v6075_v52 = vunpack.c.h.s8.bf16 %v5659_v21 }
 0x7ca   :  { %6774 = vmatprep.subr.bf16.mxu1 %v6041_v23  ;;  %v5362_v23 = vmul.f32 %v5309_v17, %v8733_v43  ;;  %v6072_v43 = vunpack.c.l.s8.bf16 %v5660_v40 }
 0x7cb   :  { %v5365_v47 = vmul.f32 %v5321_v31, %v8739_v42  ;;  %v6076_v42 = vunpack.c.h.s8.bf16 %v5660_v40  ;;  %v5675_v40 = vld [vmem:[#allocation14 + $0x568] sm:$0xff] }
 0x7cc   :  { %6447 = vmatpush1.bf16.msra.mxu0 %v6038_v28  ;;  %v6068_v28 = vunpack.c.h.s8.bf16 %v5656_v15 }
 0x7cd   :  { %6775 = vmatpush1.bf16.msra.mxu1 %v6040_v30  ;;  %6448 = vmatprep.subr.bf16.mxu0 %v6043_v25  ;;  %v6071_v30 = vunpack.c.l.s8.bf16 %v5659_v21  ;;  %v5658_v25 = vld [vmem:[#allocation14 + $0x4e0] sm:$0xff] }
 0x7ce   :  { %6776 = vmatprep.subr.bf16.mxu1 %v6045_v41  ;;  %v6073_v41 = vunpack.c.l.s8.bf16 %v5661_v24 }
 0x7d0   :  { %6449 = vmatpush1.bf16.msra.mxu0 %v6042_v57  ;;  %v5421_v57 = vrot.slane %v8800_v10, %v8568_v61 }
 0x7d1   :  { %6777 = vmatpush1.bf16.msra.mxu1 %v6044_v48  ;;  %6450 = vmatprep.subr.bf16.mxu0 %v6047_v50  ;;  %v6070_v48 = vunpack.c.l.s8.bf16 %v5658_v25  ;;  %v5462_v50 = vadd.f32 %v5409_v12, %v5362_v23  ;;  %v5672_v12 = vld [vmem:[#allocation14 + $0x550] sm:$0xff] }
 0x7d2   :  { %6778 = vmatprep.subr.bf16.mxu1 %v6049_v35  ;;  %v6077_v35 = vunpack.c.h.s8.bf16 %v5661_v24 }
 0x7d4   :  { %6451 = vmatpush1.bf16.msra.mxu0 %v6046_v56  ;;  %v5465_v56 = vadd.f32 %v5421_v57, %v5365_v47  ;;  %v5677_v47 = vld [vmem:[#allocation14 + $0x578] sm:$0xff] }
 0x7d5   :  { %6779 = vmatpush1.bf16.msra.mxu1 %v6048_v37  ;;  %6452 = vmatprep.subr.bf16.mxu0 %v6051_v58  ;;  %v5665_v37 = vld [vmem:[#allocation14 + $0x518] sm:$0xff]  ;;  %v6074_v58 = vunpack.c.h.s8.bf16 %v5658_v25 }
 0x7d6   :  { %6780 = vmatprep.subr.bf16.mxu1 %v6053_v0  ;;  %v5478_v0 = vmax.f32 %v5462_v50, 0.0  ;;  %v6103_v50 = vunpack.c.l.s8.bf16 %v5675_v40 }
 0x7d8   :  { %6453 = vmatpush1.bf16.msra.mxu0 %v6050_v2  ;;  %v6081_v2 = vunpack.c.l.s8.bf16 %v5665_v37 }
 0x7d9   :  { %6781 = vmatpush1.bf16.msra.mxu1 %v6052_v63  ;;  %6454 = vmatprep.subr.bf16.mxu0 %v6055_v33  ;;  %v5664_v63 = vld [vmem:[#allocation14 + $0x510] sm:$0xff]  ;;  %v5481_v33 = vmax.f32 %v5465_v56, 0.0 }
 0x7da   :  { %6782 = vmatprep.subr.bf16.mxu1 %v6057_v54  ;;  %v5494_v54 = vpack.c.bf16 %v5478_v0, %v5478_v0  ;;  %v6080_v39 = vunpack.c.l.s8.bf16 %v5664_v63  ;;  %v5679_v0 = vld [vmem:[#allocation14 + $0x588] sm:$0xff] }
 0x7dc   :  { %6455 = vmatpush1.bf16.msra.mxu0 %v6054_v5  ;;  %v6083_v5 = vunpack.c.h.s8.bf16 %v5663_v55 }
 0x7dd   :  { %6783 = vmatpush1.bf16.msra.mxu1 %v6056_v6  ;;  %6456 = vmatprep.subr.bf16.mxu0 %v6059_v49  ;;  %v5667_v6 = vld [vmem:[#allocation14 + $0x528] sm:$0xff]  ;;  %v5497_v49 = vpack.c.bf16 %v5481_v33, %v5481_v33 }
 0x7de   :  { %6784 = vmatprep.subr.bf16.mxu1 %v6061_v34  ;;  %v6085_v34 = vunpack.c.h.s8.bf16 %v5665_v37  ;;  %v6091_v17 = vunpack.c.h.s8.bf16 %v5667_v6  ;;  %v6107_v37 = vunpack.c.h.s8.bf16 %v5675_v40  ;;  %v5691_v40 = vld [vmem:[#allocation14 + $0x5e8] sm:$0xff] }
 0x7e0   :  { %6457 = vmatpush1.bf16.msra.mxu0 %v6058_v13  ;;  %v6084_v13 = vunpack.c.h.s8.bf16 %v5664_v63  ;;  %v5678_v63 = vld [vmem:[#allocation14 + $0x580] sm:$0xff] }
 0x7e1   :  { %6785 = vmatpush1.bf16.msra.mxu1 %v6060_v14  ;;  %6458 = vmatprep.subr.bf16.mxu0 %v6063_v32  ;;  %v6087_v14 = vunpack.c.l.s8.bf16 %v5667_v6  ;;  %v5666_v32 = vld [vmem:[#allocation14 + $0x520] sm:$0xff] }
 0x7e2   :  { %6786 = vmatprep.subr.bf16.mxu1 %v6065_v45  ;;  %v5668_v45 = vld [vmem:[#allocation14 + $0x530] sm:$0xff]  ;;  %v6086_v15 = vunpack.c.l.s8.bf16 %v5666_v32  ;;  %v6090_v21 = vunpack.c.h.s8.bf16 %v5666_v32 }
 0x7e3   :  { %v6092_v31 = vunpack.c.h.s8.bf16 %v5668_v45 }
 0x7e4   :  { %6459 = vmatpush1.bf16.msra.mxu0 %v6062_v16  ;;  %v6088_v16 = vunpack.c.l.s8.bf16 %v5668_v45 }
 0x7e5   :  { %6787 = vmatpush1.bf16.msra.mxu1 %v6064_v18  ;;  %6460 = vmatprep.subr.bf16.mxu0 %v6067_v19  ;;  %v6093_v18 = vunpack.c.h.s8.bf16 %v5669_v38  ;;  %v5671_v19 = vld [vmem:[#allocation14 + $0x548] sm:$0xff]  ;;  %v6114_v38 = vunpack.c.h.s8.bf16 %v5678_v63 }
 0x7e6   :  { %6788 = vmatprep.subr.bf16.mxu1 %v6069_v36  ;;  %v5673_v36 = vld [vmem:[#allocation14 + $0x558] sm:$0xff]  ;;  %v6095_v24 = vunpack.c.l.s8.bf16 %v5671_v19  ;;  %v6099_v25 = vunpack.c.h.s8.bf16 %v5671_v19 }
 0x7e7   :  { %v6097_v23 = vunpack.c.l.s8.bf16 %v5673_v36  ;;  %v5689_v19 = vld [vmem:[#allocation14 + $0x5d8] sm:$0xff] }
 0x7e8   :  { %6461 = vmatpush1.bf16.msra.mxu0 %v6066_v22  ;;  %v5670_v22 = vld [vmem:[#allocation14 + $0x540] sm:$0xff] }
 0x7e9   :  { %6789 = vmatpush1.bf16.msra.mxu1 %v6068_v28  ;;  %6462 = vmatprep.subr.bf16.mxu0 %v6071_v30  ;;  %v6094_v28 = vunpack.c.l.s8.bf16 %v5670_v22  ;;  %v6096_v30 = vunpack.c.l.s8.bf16 %v5672_v12  ;;  %v6098_v57 = vunpack.c.h.s8.bf16 %v5670_v22  ;;  %v6129_v22 = vunpack.c.l.s8.bf16 %v5689_v19 }
 0x7ea   :  { %6790 = vmatprep.subr.bf16.mxu1 %v6073_v41  ;;  %v6101_v41 = vunpack.c.h.s8.bf16 %v5673_v36 }
 0x7ec   :  { %6463 = vmatpush1.bf16.msra.mxu0 %v6070_v48  ;;  %v6100_v48 = vunpack.c.h.s8.bf16 %v5672_v12 }
 0x7ed   :  { %6791 = vmatpush1.bf16.msra.mxu1 %v6072_v43  ;;  %6464 = vmatprep.subr.bf16.mxu0 %v6075_v52  ;;  %v5674_v43 = vld [vmem:[#allocation14 + $0x560] sm:$0xff]  ;;  %v6105_v52 = vunpack.c.l.s8.bf16 %v5677_v47 }
 0x7ee   :  { %6792 = vmatprep.subr.bf16.mxu1 %v6077_v35  ;;  %v5676_v35 = vld [vmem:[#allocation14 + $0x570] sm:$0xff]  ;;  %v6102_v55 = vunpack.c.l.s8.bf16 %v5674_v43 }
 0x7ef   :  { %v6104_v56 = vunpack.c.l.s8.bf16 %v5676_v35  ;;  %v6108_v59 = vunpack.c.h.s8.bf16 %v5676_v35  ;;  %v6135_v35 = vunpack.c.l.s8.bf16 %v5691_v40 }
 0x7f0   :  { %6465 = vmatpush1.bf16.msra.mxu0 %v6074_v58  ;;  %v6109_v58 = vunpack.c.h.s8.bf16 %v5677_v47  ;;  %v5329_v47 = vrot.slane %v8794_v27, %v8637_v26 }
 0x7f1   :  { %6793 = vmatpush1.bf16.msra.mxu1 %v6076_v42  ;;  %6475 = vmatprep.subr.bf16.mxu0 %v6079_v1  ;;  %v5681_v42 = vld [vmem:[#allocation14 + $0x598] sm:$0xff]  ;;  %v6106_v1 = vunpack.c.h.s8.bf16 %v5674_v43  ;;  %v5417_v43 = vrot.slane %v8800_v10, %v8587_v53 }
 0x7f2   :  { %6803 = vmatprep.subr.bf16.mxu1 %v6081_v2  ;;  %v6111_v2 = vunpack.c.l.s8.bf16 %v5679_v0  ;;  %v6113_v33 = vunpack.c.l.s8.bf16 %v5681_v42  ;;  %v6117_v6 = vunpack.c.h.s8.bf16 %v5681_v42 }
 0x7f3   :  { %6467 = vmatmul.mubr.bf16.vlgmr.msra.gmra.mrb[28].mxu0 %v5494_v54 }
 0x7f4   :  { %6795 = vmatmul.mubr.bf16.vlgmr.msra.gmra.mrb[28].mxu1 %v5494_v54  ;;  %6476 = vmatpush1.bf16.msra.mxu0 %v6078_v3  ;;  %v5680_v3 = vld [vmem:[#allocation14 + $0x590] sm:$0xff]  ;;  %v6110_v54 = vunpack.c.l.s8.bf16 %v5678_v63 }
 0x7f5   :  { %6507 = vmatprep.mubr.bf16.mxu0 %v5497_v49  ;;  %6804 = vmatpush1.bf16.msra.mxu1 %v6080_v39  ;;  %v6112_v39 = vunpack.c.l.s8.bf16 %v5680_v3 }
 0x7f6   :  { %6835 = vmatprep.mubr.bf16.mxu1 %v5497_v49  ;;  %6477 = vmatprep.subr.bf16.mxu0 %v6083_v5  ;;  %v6115_v5 = vunpack.c.h.s8.bf16 %v5679_v0  ;;  %v5683_v49 = vld [vmem:[#allocation14 + $0x5a8] sm:$0xff] }
 0x7f7   :  { %6805 = vmatprep.subr.bf16.mxu1 %v6085_v34  ;;  %v5685_v34 = vld [vmem:[#allocation14 + $0x5b8] sm:$0xff] }
 0x7f8   :  { %6478 = vmatpush1.bf16.msra.mxu0 %v6082_v9  ;;  %v6116_v9 = vunpack.c.h.s8.bf16 %v5680_v3  ;;  %v6121_v32 = vunpack.c.l.s8.bf16 %v5685_v34 }
 0x7f9   :  { %6806 = vmatpush1.bf16.msra.mxu1 %v6084_v13  ;;  %6479 = vmatprep.subr.bf16.mxu0 %v6087_v14  ;;  %v6119_v13 = vunpack.c.l.s8.bf16 %v5683_v49  ;;  %v5682_v14 = vld [vmem:[#allocation14 + $0x5a0] sm:$0xff] }
 0x7fa   :  { %6807 = vmatprep.subr.bf16.mxu1 %v6089_v60  ;;  %v5684_v60 = vld [vmem:[#allocation14 + $0x5b0] sm:$0xff]  ;;  %v6118_v45 = vunpack.c.l.s8.bf16 %v5682_v14  ;;  %v6122_v36 = vunpack.c.h.s8.bf16 %v5682_v14 }
 0x7fc   :  { %6480 = vmatpush1.bf16.msra.mxu0 %v6086_v15  ;;  %v6120_v15 = vunpack.c.l.s8.bf16 %v5684_v60 }
 0x7fd   :  { %6808 = vmatpush1.bf16.msra.mxu1 %v6088_v16  ;;  %6481 = vmatprep.subr.bf16.mxu0 %v6091_v17  ;;  %v6123_v16 = vunpack.c.h.s8.bf16 %v5683_v49  ;;  %v6125_v17 = vunpack.c.h.s8.bf16 %v5685_v34 }
 0x7fe   :  { %6809 = vmatprep.subr.bf16.mxu1 %v6093_v18  ;;  %v5687_v18 = vld [vmem:[#allocation14 + $0x5c8] sm:$0xff] }
 0x800   :  { %6482 = vmatpush1.bf16.msra.mxu0 %v6090_v21  ;;  %v6124_v21 = vunpack.c.h.s8.bf16 %v5684_v60  ;;  %v5701_v60 = vld [vmem:[#allocation14 + $0x638] sm:$0xff] }
 0x801   :  { %6810 = vmatpush1.bf16.msra.mxu1 %v6092_v31  ;;  %6483 = vmatprep.subr.bf16.mxu0 %v6095_v24  ;;  %v6127_v31 = vunpack.c.l.s8.bf16 %v5687_v18  ;;  %v5686_v24 = vld [vmem:[#allocation14 + $0x5c0] sm:$0xff] }
 0x802   :  { %6811 = vmatprep.subr.bf16.mxu1 %v6097_v23  ;;  %v5688_v23 = vld [vmem:[#allocation14 + $0x5d0] sm:$0xff]  ;;  %v6126_v12 = vunpack.c.l.s8.bf16 %v5686_v24 }
 0x804   :  { %6484 = vmatpush1.bf16.msra.mxu0 %v6094_v28  ;;  %v5317_v28 = vrot.slane %v8794_v27, %v8587_v53  ;;  %v5429_v27 = vrot.slane %v8800_v10, %v8637_v26  ;;  %v5694_v26 = vld [vmem:[#allocation14 + $0x600] sm:$0xff] }
 0x805   :  { %6812 = vmatpush1.bf16.msra.mxu1 %v6096_v30  ;;  %6485 = vmatprep.subr.bf16.mxu0 %v6099_v25  ;;  %v6128_v30 = vunpack.c.l.s8.bf16 %v5688_v23  ;;  %v6131_v25 = vunpack.c.h.s8.bf16 %v5687_v18  ;;  %v6142_v49 = vunpack.c.l.s8.bf16 %v5694_v26  ;;  %v6153_v18 = vunpack.c.l.s8.bf16 %v5701_v60 }
 0x806   :  { %6813 = vmatprep.subr.bf16.mxu1 %v6101_v41  ;;  %v6133_v41 = vunpack.c.h.s8.bf16 %v5689_v19  ;;  %v5700_v19 = vld [vmem:[#allocation14 + $0x630] sm:$0xff] }
 0x808   :  { %6486 = vmatpush1.bf16.msra.mxu0 %v6098_v57  ;;  %v5693_v57 = vld [vmem:[#allocation14 + $0x5f8] sm:$0xff] }
 0x809   :  { %6814 = vmatpush1.bf16.msra.mxu1 %v6100_v48  ;;  %6487 = vmatprep.subr.bf16.mxu0 %v6103_v50  ;;  %v6130_v48 = vunpack.c.h.s8.bf16 %v5686_v24  ;;  %v5364_v50 = vmul.f32 %v5317_v28, %v8735_v51  ;;  %v6157_v24 = vunpack.c.h.s8.bf16 %v5701_v60  ;;  %v6156_v28 = vunpack.c.h.s8.bf16 %v5700_v19  ;;  %v5716_v60 = vld [vmem:[#allocation14 + $0x6b0] sm:$0xff] }
 0x80a   :  { %6815 = vmatprep.subr.bf16.mxu1 %v6105_v52  ;;  %v6132_v52 = vunpack.c.h.s8.bf16 %v5688_v23  ;;  %v5705_v23 = vld [vmem:[#allocation14 + $0x658] sm:$0xff] }
 0x80b   :  { %v5464_v42 = vadd.f32 %v5417_v43, %v5364_v50  ;;  %v6165_v50 = vunpack.c.h.s8.bf16 %v5705_v23  ;;  %v5707_v43 = vld [vmem:[#allocation14 + $0x668] sm:$0xff] }
 0x80c   :  { %6488 = vmatpush1.bf16.msra.mxu0 %v6102_v55  ;;  %v5690_v55 = vld [vmem:[#allocation14 + $0x5e0] sm:$0xff] }
 0x80d   :  { %6816 = vmatpush1.bf16.msra.mxu1 %v6104_v56  ;;  %6489 = vmatprep.subr.bf16.mxu0 %v6107_v37  ;;  %v6137_v56 = vunpack.c.l.s8.bf16 %v5693_v57  ;;  %v5692_v37 = vld [vmem:[#allocation14 + $0x5f0] sm:$0xff]  ;;  %v6134_v0 = vunpack.c.l.s8.bf16 %v5690_v55  ;;  %v6138_v3 = vunpack.c.h.s8.bf16 %v5690_v55 }
 0x80e   :  { %6817 = vmatprep.subr.bf16.mxu1 %v6109_v58  ;;  %v5367_v58 = vmul.f32 %v5329_v47, %v8790_v29  ;;  %v6136_v51 = vunpack.c.l.s8.bf16 %v5692_v37  ;;  %v6140_v29 = vunpack.c.h.s8.bf16 %v5692_v37  ;;  %v5706_v37 = vld [vmem:[#allocation14 + $0x660] sm:$0xff] }
 0x810   :  { %6490 = vmatpush1.bf16.msra.mxu0 %v6106_v1  ;;  %v6139_v1 = vunpack.c.h.s8.bf16 %v5691_v40  ;;  %v5467_v63 = vadd.f32 %v5429_v27, %v5367_v58  ;;  %v5704_v40 = vld [vmem:[#allocation14 + $0x650] sm:$0xff] }
 0x811   :  { %6818 = vmatpush1.bf16.msra.mxu1 %v6108_v59  ;;  %6491 = vmatprep.subr.bf16.mxu0 %v6111_v2  ;;  %v6141_v59 = vunpack.c.h.s8.bf16 %v5693_v57  ;;  %v5695_v2 = vld [vmem:[#allocation14 + $0x608] sm:$0xff]  ;;  %v6160_v57 = vunpack.c.l.s8.bf16 %v5704_v40  ;;  %v6164_v55 = vunpack.c.h.s8.bf16 %v5704_v40  ;;  %v5708_v27 = vld [vmem:[#allocation14 + $0x670] sm:$0xff] }
 0x812   :  { %6819 = vmatprep.subr.bf16.mxu1 %v6113_v33  ;;  %v5697_v33 = vld [vmem:[#allocation14 + $0x618] sm:$0xff] }
 0x813   :  { %v6145_v10 = vunpack.c.l.s8.bf16 %v5697_v33 }
 0x814   :  { %6492 = vmatpush1.bf16.msra.mxu0 %v6110_v54  ;;  %v5480_v54 = vmax.f32 %v5464_v42, 0.0  ;;  %v6168_v42 = vunpack.c.l.s8.bf16 %v5708_v27 }
 0x815   :  { %6820 = vmatpush1.bf16.msra.mxu1 %v6112_v39  ;;  %6493 = vmatprep.subr.bf16.mxu0 %v6115_v5  ;;  %v6143_v39 = vunpack.c.l.s8.bf16 %v5695_v2  ;;  %v5696_v5 = vld [vmem:[#allocation14 + $0x610] sm:$0xff] }
 0x816   :  { %6821 = vmatprep.subr.bf16.mxu1 %v6117_v6  ;;  %v5483_v6 = vmax.f32 %v5467_v63, 0.0  ;;  %v5496_v34 = vpack.c.bf16 %v5480_v54, %v5480_v54  ;;  %v6170_v63 = vunpack.c.h.s8.bf16 %v5706_v37  ;;  %v5710_v54 = vld [vmem:[#allocation14 + $0x680] sm:$0xff] }
 0x818   :  { %6494 = vmatpush1.bf16.msra.mxu0 %v6114_v38  ;;  %v6144_v38 = vunpack.c.l.s8.bf16 %v5696_v5  ;;  %v5499_v14 = vpack.c.bf16 %v5483_v6, %v5483_v6 }
 0x819   :  { %6822 = vmatpush1.bf16.msra.mxu1 %v6116_v9  ;;  %6495 = vmatprep.subr.bf16.mxu0 %v6119_v13  ;;  %v6147_v9 = vunpack.c.h.s8.bf16 %v5695_v2  ;;  %v5699_v13 = vld [vmem:[#allocation14 + $0x628] sm:$0xff]  ;;  %v5713_v2 = vld [vmem:[#allocation14 + $0x698] sm:$0xff] }
 0x81a   :  { %6823 = vmatprep.subr.bf16.mxu1 %v6121_v32  ;;  %v6149_v32 = vunpack.c.h.s8.bf16 %v5697_v33  ;;  %v6172_v33 = vunpack.c.h.s8.bf16 %v5708_v27  ;;  %v6181_v6 = vunpack.c.h.s8.bf16 %v5713_v2  ;;  %v5724_v27 = vld [vmem:[#allocation14 + $0x6f0] sm:$0xff] }
 0x81c   :  { %6496 = vmatpush1.bf16.msra.mxu0 %v6118_v45  ;;  %v6146_v45 = vunpack.c.h.s8.bf16 %v5694_v26  ;;  %v6174_v26 = vunpack.c.l.s8.bf16 %v5710_v54 }
 0x81d   :  { %6824 = vmatpush1.bf16.msra.mxu1 %v6120_v15  ;;  %6497 = vmatprep.subr.bf16.mxu0 %v6123_v16  ;;  %v6148_v15 = vunpack.c.h.s8.bf16 %v5696_v5  ;;  %v6151_v16 = vunpack.c.l.s8.bf16 %v5699_v13 }
 0x81e   :  { %6825 = vmatprep.subr.bf16.mxu1 %v6125_v17  ;;  %v5698_v17 = vld [vmem:[#allocation14 + $0x620] sm:$0xff] }
 0x820   :  { %6498 = vmatpush1.bf16.msra.mxu0 %v6122_v36  ;;  %v6150_v36 = vunpack.c.l.s8.bf16 %v5698_v17 }
 0x821   :  { %6826 = vmatpush1.bf16.msra.mxu1 %v6124_v21  ;;  %6499 = vmatprep.subr.bf16.mxu0 %v6127_v31  ;;  %v6152_v21 = vunpack.c.l.s8.bf16 %v5700_v19  ;;  %v6155_v31 = vunpack.c.h.s8.bf16 %v5699_v13  ;;  %v5721_v19 = vld [vmem:[#allocation14 + $0x6d8] sm:$0xff] }
 0x822   :  { %6827 = vmatprep.subr.bf16.mxu1 %v6129_v22  ;;  %v5703_v22 = vld [vmem:[#allocation14 + $0x648] sm:$0xff]  ;;  %v6197_v40 = vunpack.c.h.s8.bf16 %v5721_v19 }
 0x824   :  { %6500 = vmatpush1.bf16.msra.mxu0 %v6126_v12  ;;  %v6154_v12 = vunpack.c.h.s8.bf16 %v5698_v17 }
 0x825   :  { %6828 = vmatpush1.bf16.msra.mxu1 %v6128_v30  ;;  %6501 = vmatprep.subr.bf16.mxu0 %v6131_v25  ;;  %v6159_v30 = vunpack.c.l.s8.bf16 %v5703_v22  ;;  %v5702_v25 = vld [vmem:[#allocation14 + $0x640] sm:$0xff] }
 0x826   :  { %6829 = vmatprep.subr.bf16.mxu1 %v6133_v41  ;;  %v6161_v41 = vunpack.c.l.s8.bf16 %v5705_v23  ;;  %v6158_v47 = vunpack.c.l.s8.bf16 %v5702_v25  ;;  %v5720_v23 = vld [vmem:[#allocation14 + $0x6d0] sm:$0xff] }
 0x828   :  { %6502 = vmatpush1.bf16.msra.mxu0 %v6130_v48  ;;  %v6163_v48 = vunpack.c.h.s8.bf16 %v5703_v22  ;;  %v6193_v22 = vunpack.c.l.s8.bf16 %v5721_v19 }
 0x829   :  { %6830 = vmatpush1.bf16.msra.mxu1 %v6132_v52  ;;  %6503 = vmatprep.subr.bf16.mxu0 %v6135_v35  ;;  %v5709_v52 = vld [vmem:[#allocation14 + $0x678] sm:$0xff]  ;;  %v6162_v35 = vunpack.c.h.s8.bf16 %v5702_v25  ;;  %v6192_v25 = vunpack.c.l.s8.bf16 %v5720_v23 }
 0x82a   :  { %6831 = vmatprep.subr.bf16.mxu1 %v6137_v56  ;;  %v6167_v56 = vunpack.c.l.s8.bf16 %v5707_v43  ;;  %v6169_v58 = vunpack.c.l.s8.bf16 %v5709_v52 }
 0x82c   :  { %6504 = vmatpush1.bf16.msra.mxu0 %v6134_v0  ;;  %v6166_v0 = vunpack.c.l.s8.bf16 %v5706_v37  ;;  %v5722_v37 = vld [vmem:[#allocation14 + $0x6e0] sm:$0xff] }
 0x82d   :  { %6832 = vmatpush1.bf16.msra.mxu1 %v6136_v51  ;;  %6505 = vmatprep.subr.bf16.mxu0 %v6139_v1  ;;  %v6171_v51 = vunpack.c.h.s8.bf16 %v5707_v43  ;;  %v6173_v1 = vunpack.c.h.s8.bf16 %v5709_v52  ;;  %v8835_v52 = vld [vmem:[#allocation13 + $0x8] sm:$0xff] }
 0x82e   :  { %6833 = vmatprep.subr.bf16.mxu1 %v6141_v59  ;;  %v5711_v59 = vld [vmem:[#allocation14 + $0x688] sm:$0xff] }
 0x82f   :  { %v6179_v5 = vunpack.c.h.s8.bf16 %v5711_v59 }
 0x830   :  { %6506 = vmatpush1.bf16.msra.mxu0 %v6138_v3  ;;  %v6175_v3 = vunpack.c.l.s8.bf16 %v5711_v59 }
 0x831   :  { %6834 = vmatpush1.bf16.msra.mxu1 %v6140_v29  ;;  %6516 = vmatprep.subr.bf16.mxu0 %v6143_v39  ;;  %v6177_v29 = vunpack.c.l.s8.bf16 %v5713_v2  ;;  %v5712_v39 = vld [vmem:[#allocation14 + $0x690] sm:$0xff]  ;;  %v5727_v2 = vld [vmem:[#allocation14 + $0x708] sm:$0xff] }
 0x832   :  { %6844 = vmatprep.subr.bf16.mxu1 %v6145_v10  ;;  %v6176_v10 = vunpack.c.l.s8.bf16 %v5712_v39 }
 0x833   :  { %6508 = vmatmul.mubr.bf16.vlgmr.msra.gmra.mrb[28].mxu0 %v5496_v34 }
 0x834   :  { %6836 = vmatmul.mubr.bf16.vlgmr.msra.gmra.mrb[28].mxu1 %v5496_v34  ;;  %6517 = vmatpush1.bf16.msra.mxu0 %v6142_v49  ;;  %v5715_v49 = vld [vmem:[#allocation14 + $0x6a8] sm:$0xff]  ;;  %v5717_v34 = vld [vmem:[#allocation14 + $0x6b8] sm:$0xff] }
 0x835   :  { %6548 = vmatprep.mubr.bf16.mxu0 %v5499_v14  ;;  %6845 = vmatpush1.bf16.msra.mxu1 %v6144_v38  ;;  %v6178_v38 = vunpack.c.h.s8.bf16 %v5710_v54  ;;  %v6183_v13 = vunpack.c.l.s8.bf16 %v5715_v49  ;;  %v6189_v17 = vunpack.c.h.s8.bf16 %v5717_v34 }
 0x836   :  { %6876 = vmatprep.mubr.bf16.mxu1 %v5499_v14  ;;  %6518 = vmatprep.subr.bf16.mxu0 %v6147_v9  ;;  %v6180_v9 = vunpack.c.h.s8.bf16 %v5712_v39  ;;  %v5714_v14 = vld [vmem:[#allocation14 + $0x6a0] sm:$0xff] }
 0x837   :  { %6846 = vmatprep.subr.bf16.mxu1 %v6149_v32  ;;  %v6185_v32 = vunpack.c.l.s8.bf16 %v5717_v34  ;;  %v6211_v34 = vunpack.c.h.s8.bf16 %v5727_v2 }
 0x838   :  { %6519 = vmatpush1.bf16.msra.mxu0 %v6146_v45  ;;  %v6182_v45 = vunpack.c.l.s8.bf16 %v5714_v14 }
 0x839   :  { %6847 = vmatpush1.bf16.msra.mxu1 %v6148_v15  ;;  %6520 = vmatprep.subr.bf16.mxu0 %v6151_v16  ;;  %v6184_v15 = vunpack.c.l.s8.bf16 %v5716_v60  ;;  %v6187_v16 = vunpack.c.h.s8.bf16 %v5715_v49 }
 0x83a   :  { %6848 = vmatprep.subr.bf16.mxu1 %v6153_v18  ;;  %v5719_v18 = vld [vmem:[#allocation14 + $0x6c8] sm:$0xff] }
 0x83c   :  { %6521 = vmatpush1.bf16.msra.mxu0 %v6150_v36  ;;  %v6186_v36 = vunpack.c.h.s8.bf16 %v5714_v14  ;;  %v5733_v14 = vld [vmem:[#allocation14 + $0x738] sm:$0xff] }
 0x83d   :  { %6849 = vmatpush1.bf16.msra.mxu1 %v6152_v21  ;;  %6522 = vmatprep.subr.bf16.mxu0 %v6155_v31  ;;  %v6188_v21 = vunpack.c.h.s8.bf16 %v5716_v60  ;;  %v6191_v31 = vunpack.c.l.s8.bf16 %v5719_v18 }
 0x83e   :  { %6850 = vmatprep.subr.bf16.mxu1 %v6157_v24  ;;  %v5718_v24 = vld [vmem:[#allocation14 + $0x6c0] sm:$0xff] }
 0x840   :  { %6523 = vmatpush1.bf16.msra.mxu0 %v6154_v12  ;;  %v6190_v12 = vunpack.c.l.s8.bf16 %v5718_v24 }
 0x841   :  { %6851 = vmatpush1.bf16.msra.mxu1 %v6156_v28  ;;  %6524 = vmatprep.subr.bf16.mxu0 %v6159_v30  ;;  %v8828_v28 = vld [vmem:[#allocation11 + $0x8] sm:$0xff] }
 0x842   :  { %6852 = vmatprep.subr.bf16.mxu1 %v6161_v41  ;;  %v5325_v30 = vrot.slane %v8828_v28, %v8634_v7  ;;  %v6195_v41 = vunpack.c.h.s8.bf16 %v5719_v18 }
 0x844   :  { %6525 = vmatpush1.bf16.msra.mxu0 %v6158_v47  ;;  %v5723_v47 = vld [vmem:[#allocation14 + $0x6e8] sm:$0xff]  ;;  %v5366_v43 = vmul.f32 %v5325_v30, %v8786_v4  ;;  %v6198_v4 = vunpack.c.l.s8.bf16 %v5722_v37  ;;  %v5734_v30 = vld [vmem:[#allocation14 + $0x740] sm:$0xff] }
 0x845   :  { %6853 = vmatpush1.bf16.msra.mxu1 %v6160_v57  ;;  %6526 = vmatprep.subr.bf16.mxu0 %v6163_v48  ;;  %v5337_v57 = vrot.slane %v8828_v28, %v8640_v11  ;;  %v5725_v48 = vld [vmem:[#allocation14 + $0x6f8] sm:$0xff] }
 0x846   :  { %6854 = vmatprep.subr.bf16.mxu1 %v6165_v50  ;;  %v6194_v50 = vunpack.c.h.s8.bf16 %v5718_v24  ;;  %v6205_v59 = vunpack.c.h.s8.bf16 %v5725_v48  ;;  %v5737_v24 = vld [vmem:[#allocation14 + $0x758] sm:$0xff] }
 0x848   :  { %6527 = vmatpush1.bf16.msra.mxu0 %v6162_v35  ;;  %v5425_v35 = vrot.slane %v8835_v52, %v8634_v7  ;;  %v6203_v7 = vunpack.c.h.s8.bf16 %v5723_v47 }
 0x849   :  { %6855 = vmatpush1.bf16.msra.mxu1 %v6164_v55  ;;  %6528 = vmatprep.subr.bf16.mxu0 %v6167_v56  ;;  %v6196_v55 = vunpack.c.h.s8.bf16 %v5720_v23  ;;  %v6199_v56 = vunpack.c.l.s8.bf16 %v5723_v47 }
 0x84a   :  { %6856 = vmatprep.subr.bf16.mxu1 %v6169_v58  ;;  %v6201_v58 = vunpack.c.l.s8.bf16 %v5725_v48  ;;  %v6229_v48 = vunpack.c.h.s8.bf16 %v5737_v24 }
 0x84c   :  { %6529 = vmatpush1.bf16.msra.mxu0 %v6166_v0  ;;  %v5369_v0 = vmul.f32 %v5337_v57, %v8792_v62  ;;  %v6204_v62 = vunpack.c.h.s8.bf16 %v5724_v27 }
 0x84d   :  { %6857 = vmatpush1.bf16.msra.mxu1 %v6168_v42  ;;  %6530 = vmatprep.subr.bf16.mxu0 %v6171_v51  ;;  %v5437_v42 = vrot.slane %v8835_v52, %v8640_v11  ;;  %v5466_v51 = vadd.f32 %v5425_v35, %v5366_v43  ;;  %v5726_v11 = vld [vmem:[#allocation14 + $0x700] sm:$0xff]  ;;  %v5741_v43 = vld [vmem:[#allocation14 + $0x778] sm:$0xff]  ;;  %v6226_v35 = vunpack.c.h.s8.bf16 %v5734_v30 }
 0x84e   :  { %6858 = vmatprep.subr.bf16.mxu1 %v6173_v1  ;;  %v6200_v1 = vunpack.c.l.s8.bf16 %v5724_v27  ;;  %v5740_v27 = vld [vmem:[#allocation14 + $0x770] sm:$0xff] }
 0x84f   :  { %v5482_v54 = vmax.f32 %v5466_v51, 0.0  ;;  %v6237_v51 = vunpack.c.h.s8.bf16 %v5741_v43 }
 0x850   :  { %6531 = vmatpush1.bf16.msra.mxu0 %v6170_v63  ;;  %v5469_v63 = vadd.f32 %v5437_v42, %v5369_v0  ;;  %v6232_v42 = vunpack.c.l.s8.bf16 %v5740_v27 }
 0x851   :  { %6859 = vmatpush1.bf16.msra.mxu1 %v6172_v33  ;;  %6532 = vmatprep.subr.bf16.mxu0 %v6175_v3  ;;  %v5729_v33 = vld [vmem:[#allocation14 + $0x718] sm:$0xff]  ;;  %v6202_v3 = vunpack.c.h.s8.bf16 %v5722_v37  ;;  %v5738_v37 = vld [vmem:[#allocation14 + $0x760] sm:$0xff] }
 0x852   :  { %6860 = vmatprep.subr.bf16.mxu1 %v6177_v29  ;;  %v6207_v29 = vunpack.c.l.s8.bf16 %v5727_v2  ;;  %v6209_v39 = vunpack.c.l.s8.bf16 %v5729_v33  ;;  %v6230_v0 = vunpack.c.l.s8.bf16 %v5738_v37  ;;  %v6236_v2 = vunpack.c.h.s8.bf16 %v5740_v27  ;;  %v7962_v27 = vld [vmem:[#allocation19 + $0x40] sm:$0xff]  }
 0x854   :  { %6533 = vmatpush1.bf16.msra.mxu0 %v6174_v26  ;;  %v5728_v26 = vld [vmem:[#allocation14 + $0x710] sm:$0xff] }
 0x855   :  { %6861 = vmatpush1.bf16.msra.mxu1 %v6176_v10  ;;  %6534 = vmatprep.subr.bf16.mxu0 %v6179_v5  ;;  %v5485_v10 = vmax.f32 %v5469_v63, 0.0  ;;  %v6206_v5 = vunpack.c.l.s8.bf16 %v5726_v11  ;;  %v6208_v49 = vunpack.c.l.s8.bf16 %v5728_v26  ;;  %v6212_v60 = vunpack.c.h.s8.bf16 %v5728_v26  ;;  %v5747_v26 = vld [vmem:[#allocation14 + $0x7a8] sm:$0xff] }
 0x856   :  { %6862 = vmatprep.subr.bf16.mxu1 %v6181_v6  ;;  %v5498_v6 = vpack.c.bf16 %v5482_v54, %v5482_v54  ;;  %v5744_v54 = vld [vmem:[#allocation14 + $0x790] sm:$0xff] }
 0x858   :  { %6535 = vmatpush1.bf16.msra.mxu0 %v6178_v38  ;;  %v5731_v38 = vld [vmem:[#allocation14 + $0x728] sm:$0xff] }
 0x859   :  { %6863 = vmatpush1.bf16.msra.mxu1 %v6180_v9  ;;  %6536 = vmatprep.subr.bf16.mxu0 %v6183_v13  ;;  %v5501_v9 = vpack.c.bf16 %v5485_v10, %v5485_v10  ;;  %v6213_v13 = vunpack.c.h.s8.bf16 %v5729_v33  ;;  %v5742_v33 = vld [vmem:[#allocation14 + $0x780] sm:$0xff]  ;;  %v5749_v10 = vld [vmem:[#allocation14 + $0x7b8] sm:$0xff] }
 0x85a   :  { %6864 = vmatprep.subr.bf16.mxu1 %v6185_v32  ;;  %v6210_v32 = vunpack.c.h.s8.bf16 %v5726_v11 }
 0x85c   :  { %6537 = vmatpush1.bf16.msra.mxu0 %v6182_v45  ;;  %v6215_v45 = vunpack.c.l.s8.bf16 %v5731_v38 }
 0x85d   :  { %6865 = vmatpush1.bf16.msra.mxu1 %v6184_v15  ;;  %6538 = vmatprep.subr.bf16.mxu0 %v6187_v16  ;;  %v5730_v15 = vld [vmem:[#allocation14 + $0x720] sm:$0xff]  ;;  %v6217_v16 = vunpack.c.l.s8.bf16 %v5733_v14 }
 0x85e   :  { %6866 = vmatprep.subr.bf16.mxu1 %v6189_v17  ;;  %v5732_v17 = vld [vmem:[#allocation14 + $0x730] sm:$0xff]  ;;  %v6214_v18 = vunpack.c.l.s8.bf16 %v5730_v15 }
 0x85f   :  { %v6216_v19 = vunpack.c.l.s8.bf16 %v5732_v17  ;;  %v6220_v23 = vunpack.c.h.s8.bf16 %v5732_v17 }
 0x860   :  { %6539 = vmatpush1.bf16.msra.mxu0 %v6186_v36  ;;  %v6219_v36 = vunpack.c.h.s8.bf16 %v5731_v38  ;;  %v6249_v38 = vunpack.c.l.s8.bf16 %v5749_v10 }
 0x861   :  { %6867 = vmatpush1.bf16.msra.mxu1 %v6188_v21  ;;  %6540 = vmatprep.subr.bf16.mxu0 %v6191_v31  ;;  %v6221_v21 = vunpack.c.h.s8.bf16 %v5733_v14  ;;  %v5735_v31 = vld [vmem:[#allocation14 + $0x748] sm:$0xff] }
 0x862   :  { %6868 = vmatprep.subr.bf16.mxu1 %v6193_v22  ;;  %v6218_v22 = vunpack.c.h.s8.bf16 %v5730_v15  ;;  %v6227_v57 = vunpack.c.h.s8.bf16 %v5735_v31  ;;  %v5753_v15 = vld [vmem:[#allocation14 + $0x7d8] sm:$0xff] }
 0x864   :  { %6541 = vmatpush1.bf16.msra.mxu0 %v6190_v12  ;;  %v6223_v12 = vunpack.c.l.s8.bf16 %v5735_v31 }
 0x865   :  { %6869 = vmatpush1.bf16.msra.mxu1 %v6192_v25  ;;  %6542 = vmatprep.subr.bf16.mxu0 %v6195_v41  ;;  %v6225_v25 = vunpack.c.l.s8.bf16 %v5737_v24  ;;  %v5736_v41 = vld [vmem:[#allocation14 + $0x750] sm:$0xff]  ;;  %v5333_v24 = vrot.slane %v8828_v28, %v8663_v20  ;;  %v5754_v28 = vld [vmem:[#allocation14 + $0x7e0] sm:$0xff] }
 0x866   :  { %6870 = vmatprep.subr.bf16.mxu1 %v6197_v40  ;;  %v6222_v40 = vunpack.c.l.s8.bf16 %v5734_v30  ;;  %v6224_v47 = vunpack.c.l.s8.bf16 %v5736_v41  ;;  %v5755_v30 = vld [vmem:[#allocation14 + $0x7e8] sm:$0xff] }
 0x868   :  { %6543 = vmatpush1.bf16.msra.mxu0 %v6194_v50  ;;  %v5739_v50 = vld [vmem:[#allocation14 + $0x768] sm:$0xff] }
 0x869   :  { %6871 = vmatpush1.bf16.msra.mxu1 %v6196_v55  ;;  %6544 = vmatprep.subr.bf16.mxu0 %v6199_v56  ;;  %v6228_v55 = vunpack.c.h.s8.bf16 %v5736_v41  ;;  %v6231_v56 = vunpack.c.l.s8.bf16 %v5739_v50 }
 0x86a   :  { %6872 = vmatprep.subr.bf16.mxu1 %v6201_v58  ;;  %v6233_v58 = vunpack.c.l.s8.bf16 %v5741_v43  ;;  %v5756_v43 = vld [vmem:[#allocation14 + $0x7f0] sm:$0xff] }
 0x86c   :  { %6545 = vmatpush1.bf16.msra.mxu0 %v6198_v4  ;;  %v6235_v4 = vunpack.c.h.s8.bf16 %v5739_v50 }
 0x86d   :  { %6873 = vmatpush1.bf16.msra.mxu1 %v6200_v1  ;;  %6546 = vmatprep.subr.bf16.mxu0 %v6203_v7  ;;  %v5743_v1 = vld [vmem:[#allocation14 + $0x788] sm:$0xff]  ;;  %v5745_v7 = vld [vmem:[#allocation14 + $0x798] sm:$0xff] }
 0x86e   :  { %6874 = vmatprep.subr.bf16.mxu1 %v6205_v59  ;;  %v6234_v59 = vunpack.c.h.s8.bf16 %v5738_v37  ;;  %v6239_v63 = vunpack.c.l.s8.bf16 %v5743_v1  ;;  %v6243_v11 = vunpack.c.h.s8.bf16 %v5743_v1  ;;  %v6267_v37 = vunpack.c.h.s8.bf16 %v5755_v30  ;;  %v7966_v1 = vld [vmem:[#allocation19 + $0x48] sm:$0xff]  }
 0x870   :  { %6547 = vmatpush1.bf16.msra.mxu0 %v6202_v3  ;;  %v6241_v3 = vunpack.c.l.s8.bf16 %v5745_v7 }
 0x871   :  { %6875 = vmatpush1.bf16.msra.mxu1 %v6204_v62  ;;  %6557 = vmatprep.subr.bf16.mxu0 %v6207_v29  ;;  %v6238_v62 = vunpack.c.l.s8.bf16 %v5742_v33  ;;  %v6240_v29 = vunpack.c.l.s8.bf16 %v5744_v54 }
 0x872   :  { %6885 = vmatprep.subr.bf16.mxu1 %v6209_v39  ;;  %v6245_v39 = vunpack.c.h.s8.bf16 %v5745_v7  ;;  %v7967_v7 = vld [vmem:[#allocation19 + $0xc8] sm:$0xff]  }
 0x873   :  { %6549 = vmatmul.mubr.bf16.vlgmr.msra.gmra.mrb[28].mxu0 %v5498_v6 }
 0x874   :  { %6877 = vmatmul.mubr.bf16.vlgmr.msra.gmra.mrb[28].mxu1 %v5498_v6  ;;  %6558 = vmatpush1.bf16.msra.mxu0 %v6206_v5  ;;  %v6242_v5 = vunpack.c.h.s8.bf16 %v5742_v33  ;;  %v6244_v6 = vunpack.c.h.s8.bf16 %v5744_v54  ;;  %v7971_v33 = vld [vmem:[#allocation19 + $0xd0] sm:$0xff]  }
 0x875   :  { %6589 = vmatprep.mubr.bf16.mxu0 %v5501_v9  ;;  %6886 = vmatpush1.bf16.msra.mxu1 %v6208_v49  ;;  %v6247_v49 = vunpack.c.l.s8.bf16 %v5747_v26  ;;  %v7973_v54 = vld [vmem:[#allocation19 + $0x90] sm:$0xff]  }
 0x876   :  { %6917 = vmatprep.mubr.bf16.mxu1 %v5501_v9  ;;  %6559 = vmatprep.subr.bf16.mxu0 %v6211_v34  ;;  %v5746_v34 = vld [vmem:[#allocation14 + $0x7a0] sm:$0xff]  ;;  %v5748_v9 = vld [vmem:[#allocation14 + $0x7b0] sm:$0xff] }
 0x877   :  { %6887 = vmatprep.subr.bf16.mxu1 %v6213_v13  ;;  %v6246_v13 = vunpack.c.l.s8.bf16 %v5746_v34  ;;  %v6248_v14 = vunpack.c.l.s8.bf16 %v5748_v9  ;;  %v6252_v17 = vunpack.c.h.s8.bf16 %v5748_v9  ;;  %v7985_v9 = vld [vmem:[#allocation19 + $0xa8] sm:$0xff]  }
 0x878   :  { %6560 = vmatpush1.bf16.msra.mxu0 %v6210_v32  ;;  %v6251_v32 = vunpack.c.h.s8.bf16 %v5747_v26  ;;  %v7978_v26 = vld [vmem:[#allocation19 + $0x60] sm:$0xff]  }
 0x879   :  { %6888 = vmatpush1.bf16.msra.mxu1 %v6212_v60  ;;  %6561 = vmatprep.subr.bf16.mxu0 %v6215_v45  ;;  %v6253_v60 = vunpack.c.h.s8.bf16 %v5749_v10  ;;  %v5751_v45 = vld [vmem:[#allocation14 + $0x7c8] sm:$0xff] }
 0x87a   :  { %6889 = vmatprep.subr.bf16.mxu1 %v6217_v16  ;;  %v6250_v16 = vunpack.c.h.s8.bf16 %v5746_v34  ;;  %v7979_v10 = vld [vmem:[#allocation19 + $0xe0] sm:$0xff]   ;;  %v7983_v34 = vld [vmem:[#allocation19 + $0xe8] sm:$0xff]  }
 0x87c   :  { %6562 = vmatpush1.bf16.msra.mxu0 %v6214_v18  ;;  %v6255_v18 = vunpack.c.l.s8.bf16 %v5751_v45 }
 0x87d   :  { %6890 = vmatpush1.bf16.msra.mxu1 %v6216_v19  ;;  %6563 = vmatprep.subr.bf16.mxu0 %v6219_v36  ;;  %v5750_v19 = vld [vmem:[#allocation14 + $0x7c0] sm:$0xff]  ;;  %v6257_v36 = vunpack.c.l.s8.bf16 %v5753_v15 }
 0x87e   :  { %6891 = vmatprep.subr.bf16.mxu1 %v6221_v21  ;;  %v5752_v21 = vld [vmem:[#allocation14 + $0x7d0] sm:$0xff]  ;;  %v6254_v31 = vunpack.c.l.s8.bf16 %v5750_v19  ;;  %v6258_v41 = vunpack.c.h.s8.bf16 %v5750_v19  ;;  %v6952_v19 = vld [vmem:[#allocation17] sm:$0xf] }
 0x880   :  { %6564 = vmatpush1.bf16.msra.mxu0 %v6218_v22  ;;  %v6256_v22 = vunpack.c.l.s8.bf16 %v5752_v21 }
 0x881   :  { %6892 = vmatpush1.bf16.msra.mxu1 %v6220_v23  ;;  %6565 = vmatprep.subr.bf16.mxu0 %v6223_v12  ;;  %v6259_v23 = vunpack.c.h.s8.bf16 %v5751_v45  ;;  %v6261_v12 = vunpack.c.h.s8.bf16 %v5753_v15  ;;  %v7990_v45 = vld [vmem:[#allocation19 + $0x78] sm:$0xff]  }
 0x882   :  { %6893 = vmatprep.subr.bf16.mxu1 %v6225_v25  ;;  %v5757_v25 = vld [vmem:[#allocation14 + $0x7f8] sm:$0xff]  ;;  %v7991_v15 = vld [vmem:[#allocation19 + $0xf8] sm:$0xff]  }
 0x883   :  { %v6265_v50 = vunpack.c.l.s8.bf16 %v5757_v25 }
 0x884   :  { %6566 = vmatpush1.bf16.msra.mxu0 %v6222_v40  ;;  %v5368_v40 = vmul.f32 %v5333_v24, %v8788_v8  ;;  %v6269_v8 = vunpack.c.h.s8.bf16 %v5757_v25  ;;  %v6957_v24 = vrot.slane %v6952_v19, %v8556_v44 }
 0x885   :  { %6894 = vmatpush1.bf16.msra.mxu1 %v6224_v47  ;;  %6567 = vmatprep.subr.bf16.mxu0 %v6227_v57  ;;  %v5433_v47 = vrot.slane %v8835_v52, %v8663_v20  ;;  %v6260_v57 = vunpack.c.h.s8.bf16 %v5752_v21  ;;  %v6268_v52 = vunpack.c.h.s8.bf16 %v5756_v43 }
 0x886   :  { %6895 = vmatprep.subr.bf16.mxu1 %v6229_v48  ;;  %v6263_v48 = vunpack.c.l.s8.bf16 %v5755_v30  ;;  %v6961_v30 = vrot.slane %v6952_v19, %v8561_v46 }
 0x888   :  { %6568 = vmatpush1.bf16.msra.mxu0 %v6226_v35  ;;  %v6262_v35 = vunpack.c.l.s8.bf16 %v5754_v28 }
 0x889   :  { %6896 = vmatpush1.bf16.msra.mxu1 %v6228_v55  ;;  %6569 = vmatprep.subr.bf16.mxu0 %v6231_v56  ;;  %v5468_v55 = vadd.f32 %v5433_v47, %v5368_v40  ;;  %v6264_v56 = vunpack.c.l.s8.bf16 %v5756_v43  ;;  %v6969_v47 = vrot.slane %v6952_v19, %v8568_v61 }
 0x88a   :  { %6897 = vmatprep.subr.bf16.mxu1 %v6233_v58  ;;  %v6266_v58 = vunpack.c.h.s8.bf16 %v5754_v28 }
 0x88b   :  { %v5484_v20 = vmax.f32 %v5468_v55, 0.0 }
 0x88c   :  { %6570 = vmatpush1.bf16.msra.mxu0 %v6230_v0  ;;  %v7963_v0 = vld [vmem:[#allocation19 + $0xc0] sm:$0xff]  }
 0x88d   :  { %6898 = vmatpush1.bf16.msra.mxu1 %v6232_v42  ;;  %6571 = vmatprep.subr.bf16.mxu0 %v6235_v4  ;;  %v7964_v42 = vld [vmem:[#allocation19] sm:$0xff]   ;;  %v5500_v4 = vpack.c.bf16 %v5484_v20, %v5484_v20 }
 0x88e   :  { %6899 = vmatprep.subr.bf16.mxu1 %v6237_v51  ;;  %v7965_v51 = vld [vmem:[#allocation19 + $0x80] sm:$0xff]  }
 0x890   :  { %6572 = vmatpush1.bf16.msra.mxu0 %v6234_v59  ;;  %v7968_v59 = vld [vmem:[#allocation19 + $0x8] sm:$0xff]  }
 0x891   :  { %6900 = vmatpush1.bf16.msra.mxu1 %v6236_v2  ;;  %6573 = vmatprep.subr.bf16.mxu0 %v6239_v63  ;;  %v7969_v2 = vld [vmem:[#allocation19 + $0x88] sm:$0xff]   ;;  %v7970_v63 = vld [vmem:[#allocation19 + $0x50] sm:$0xff]  }
 0x892   :  { %6901 = vmatprep.subr.bf16.mxu1 %v6241_v3  ;;  %v7972_v3 = vld [vmem:[#allocation19 + $0x10] sm:$0xff]  }
 0x894   :  { %6574 = vmatpush1.bf16.msra.mxu0 %v6238_v62  ;;  %v7974_v62 = vld [vmem:[#allocation19 + $0x58] sm:$0xff]  }
 0x895   :  { %6902 = vmatpush1.bf16.msra.mxu1 %v6240_v29  ;;  %6575 = vmatprep.subr.bf16.mxu0 %v6243_v11  ;;  %v7975_v29 = vld [vmem:[#allocation19 + $0xd8] sm:$0xff]  }
 0x896   :  { %6903 = vmatprep.subr.bf16.mxu1 %v6245_v39  ;;  %v7976_v11 = vld [vmem:[#allocation19 + $0x18] sm:$0xff]  }
 0x897   :  { %v7977_v39 = vld [vmem:[#allocation19 + $0x98] sm:$0xff]  }
 0x898   :  { %6576 = vmatpush1.bf16.msra.mxu0 %v6242_v5  ;;  %v7980_v5 = vld [vmem:[#allocation19 + $0x20] sm:$0xff]  }
 0x899   :  { %6904 = vmatpush1.bf16.msra.mxu1 %v6244_v6  ;;  %6577 = vmatprep.subr.bf16.mxu0 %v6247_v49  ;;  %v7981_v6 = vld [vmem:[#allocation19 + $0xa0] sm:$0xff]   ;;  %v7982_v49 = vld [vmem:[#allocation19 + $0x68] sm:$0xff]  }
 0x89a   :  { %6905 = vmatprep.subr.bf16.mxu1 %v6249_v38  ;;  %v7984_v38 = vld [vmem:[#allocation19 + $0x28] sm:$0xff]  }
 0x89c   :  { %6578 = vmatpush1.bf16.msra.mxu0 %v6246_v13  ;;  %v7986_v13 = vld [vmem:[#allocation19 + $0x70] sm:$0xff]  }
 0x89d   :  { %6906 = vmatpush1.bf16.msra.mxu1 %v6248_v14  ;;  %6579 = vmatprep.subr.bf16.mxu0 %v6251_v32  ;;  %v7987_v14 = vld [vmem:[#allocation19 + $0xf0] sm:$0xff]  }
 0x89e   :  { %6907 = vmatprep.subr.bf16.mxu1 %v6253_v60  ;;  %v7988_v32 = vld [vmem:[#allocation19 + $0x30] sm:$0xff]  }
 0x89f   :  { %v7989_v60 = vld [vmem:[#allocation19 + $0xb0] sm:$0xff]  }
 0x8a0   :  { %6580 = vmatpush1.bf16.msra.mxu0 %v6250_v16  ;;  %v7992_v16 = vld [vmem:[#allocation19 + $0x38] sm:$0xff]  }
 0x8a1   :  { %6908 = vmatpush1.bf16.msra.mxu1 %v6252_v17  ;;  %6581 = vmatprep.subr.bf16.mxu0 %v6255_v18  ;;  %v7993_v17 = vld [vmem:[#allocation19 + $0xb8] sm:$0xff]  }
 0x8a2   :  { %6909 = vmatprep.subr.bf16.mxu1 %v6257_v36  ;;  %v6926_v18 = vld [vmem:[#allocation16] sm:$0xf] }
 0x8a3   :  { %v6931_v36 = vrot.slane %v6926_v18, %v8556_v44  ;;  %v6939_v21 = vrot.slane %v6926_v18, %v8587_v53 }
 0x8a4   :  { %6582 = vmatpush1.bf16.msra.mxu0 %v6254_v31  ;;  %v6935_v31 = vrot.slane %v6926_v18, %v8561_v46 }
 0x8a5   :  { %6910 = vmatpush1.bf16.msra.mxu1 %v6256_v22  ;;  %6583 = vmatprep.subr.bf16.mxu0 %v6259_v23  ;;  %v6943_v22 = vrot.slane %v6926_v18, %v8568_v61 }
 0x8a6   :  { %6911 = vmatprep.subr.bf16.mxu1 %v6261_v12  ;;  %v6965_v12 = vrot.slane %v6952_v19, %v8587_v53 }
 0x8a8   :  { %6584 = vmatpush1.bf16.msra.mxu0 %v6258_v41 }
 0x8a9   :  { %6912 = vmatpush1.bf16.msra.mxu1 %v6260_v57  ;;  %6585 = vmatprep.subr.bf16.mxu0 %v6263_v48 }
 0x8aa   :  { %6913 = vmatprep.subr.bf16.mxu1 %v6265_v50 }
 0x8ac   :  { %6586 = vmatpush1.bf16.msra.mxu0 %v6262_v35 }
 0x8ad   :  { %6914 = vmatpush1.bf16.msra.mxu1 %v6264_v56  ;;  %6587 = vmatprep.subr.bf16.mxu0 %v6267_v37 }
 0x8ae   :  { %6915 = vmatprep.subr.bf16.mxu1 %v6269_v8 }
 0x8b0   :  { %6588 = vmatpush1.bf16.msra.mxu0 %v6266_v58 }
 0x8b1   :  { %6916 = vmatpush1.bf16.msra.mxu1 %v6268_v52  ;;  %7672 = vmatprep.subr.bf16.mxu0 %v7962_v27 }
 0x8b2   :  { %7694 = vmatprep.subr.bf16.mxu1 %v7963_v0 }
 0x8b3   :  { %6590 = vmatmul.mubr.bf16.vlgmr.msra.gmra.mrb[28].mxu0 %v5500_v4 }
 0x8b4   :  { %6918 = vmatmul.mubr.bf16.vlgmr.msra.gmra.mrb[28].mxu1 %v5500_v4  ;;  %7673 = vmatpush3.bf16.msra.mxu0 %v7964_v42 }
 0x8b5   :  { %7695 = vmatpush3.bf16.msra.mxu1 %v7965_v51  ;;  %7674 = vmatprep.subr.bf16.mxu0 %v7966_v1  ;;  %v7639_v1 = vld [vmem:[#allocation20] ss:$0 sm:$0xff] }
 0x8b6   :  { %7696 = vmatprep.subr.bf16.mxu1 %v7967_v7 }
 0x8b8   :  { %7675 = vmatpush3.bf16.msra.mxu0 %v7968_v59 }
 0x8b9   :  { %7697 = vmatpush3.bf16.msra.mxu1 %v7969_v2  ;;  %7676 = vmatprep.subr.bf16.mxu0 %v7970_v63 }
 0x8ba   :  { %7698 = vmatprep.subr.bf16.mxu1 %v7971_v33 }
 0x8bc   :  { %7677 = vmatpush3.bf16.msra.mxu0 %v7972_v3 }
 0x8bd   :  { %7699 = vmatpush3.bf16.msra.mxu1 %v7973_v54  ;;  %7678 = vmatprep.subr.bf16.mxu0 %v7974_v62 }
 0x8be   :  { %7700 = vmatprep.subr.bf16.mxu1 %v7975_v29 }
 0x8c0   :  { %7679 = vmatpush3.bf16.msra.mxu0 %v7976_v11 }
 0x8c1   :  { %7701 = vmatpush3.bf16.msra.mxu1 %v7977_v39  ;;  %7680 = vmatprep.subr.bf16.mxu0 %v7978_v26 }
 0x8c2   :  { %7702 = vmatprep.subr.bf16.mxu1 %v7979_v10 }
 0x8c4   :  { %7681 = vmatpush3.bf16.msra.mxu0 %v7980_v5 }
 0x8c5   :  { %7703 = vmatpush3.bf16.msra.mxu1 %v7981_v6  ;;  %7682 = vmatprep.subr.bf16.mxu0 %v7982_v49 }
 0x8c6   :  { %7704 = vmatprep.subr.bf16.mxu1 %v7983_v34 }
 0x8c8   :  { %7683 = vmatpush3.bf16.msra.mxu0 %v7984_v38 }
 0x8c9   :  { %7705 = vmatpush3.bf16.msra.mxu1 %v7985_v9  ;;  %7684 = vmatprep.subr.bf16.mxu0 %v7986_v13 }
 0x8ca   :  { %7706 = vmatprep.subr.bf16.mxu1 %v7987_v14 }
 0x8cc   :  { %7685 = vmatpush3.bf16.msra.mxu0 %v7988_v32 }
 0x8cd   :  { %7707 = vmatpush3.bf16.msra.mxu1 %v7989_v60  ;;  %7686 = vmatprep.subr.bf16.mxu0 %v7990_v45 }
 0x8ce   :  { %7708 = vmatprep.subr.bf16.mxu1 %v7991_v15 }
 0x8d0   :  { %7687 = vmatpush3.bf16.msra.mxu0 %v7992_v16 }
 0x8d1   :  { %7709 = vmatpush3.bf16.msra.mxu1 %v7993_v17 }
 0x986   :  { %v6591_v23 = vpop.f32.mrb[28].mxu0 }
 0x987   :  { %v6948_v25 = vmul.f32 %v6931_v36, %v6591_v23  ;;  %v6919_v41 = vpop.f32.mrb[28].mxu1  ;;  %v6593_v40 = vpop.f32.mrb[29].mxu0 }
 0x988   :  { %v6950_v57 = vmul.f32 %v6939_v21, %v6919_v41  ;;  %v6949_v48 = vmul.f32 %v6935_v31, %v6593_v40  ;;  %v6921_v28 = vpop.f32.mrb[29].mxu1  ;;  %v6595_v50 = vpop.f32.mrb[30].mxu0 }
 0x989   :  { %v6974_v43 = vadd.f32 %v6957_v24, %v6948_v25  ;;  %v6951_v35 = vmul.f32 %v6943_v22, %v6921_v28  ;;  %v6923_v55 = vpop.f32.mrb[30].mxu1  ;;  %v6596_v44 = vpop.f32.mrb[31].mxu0 }
 0x98a   :  { %v6976_v56 = vadd.f32 %v6965_v12, %v6950_v57  ;;  %v6975_v37 = vadd.f32 %v6961_v30, %v6949_v48  ;;  %v6924_v8 = vpop.f32.mrb[31].mxu1 }
 0x98b   :  { %v6978_v58 = vmax.f32 %v6974_v43, 0.0  ;;  %v6977_v53 = vadd.f32 %v6969_v47, %v6951_v35 }
 0x98c   :  { %v6980_v20 = vmax.f32 %v6976_v56, 0.0  ;;  %v6979_v46 = vmax.f32 %v6975_v37, 0.0 }
 0x98d   :  { %v6981_v52 = vmax.f32 %v6977_v53, 0.0  ;;  %v6982_v0 = vpack.c.bf16 %v6978_v58, %v6978_v58 }
 0x98e   :  { %v6983_v27 = vpack.c.bf16 %v6979_v46, %v6979_v46  ;;  %v6984_v61 = vpack.c.bf16 %v6980_v20, %v6980_v20 }
 0x98f   :  { %v6985_v42 = vpack.c.bf16 %v6981_v52, %v6981_v52 }
 0x990   :  { %7281 = vmatprep.mubr.bf16.mxu0 %v6983_v27 }
 0x991   :  { %7321 = vmatprep.mubr.bf16.mxu1 %v6985_v42  ;;  %7282 = vmatmul.mubr.bf16.vlgmr.msra.gmra.mrb[32].mxu0 %v6982_v0 }
 0x992   :  { %7322 = vmatmul.mubr.bf16.vlgmr.msra.gmra.mrb[32].mxu1 %v6984_v61 }
 0xa64   :  { %v7688_v4 = vpop.f32.mrb[32].mxu0 }
 0xa65   :  { %v7710_v51 = vpop.f32.mrb[32].mxu1  ;;  %v7689_v7 = vpop.f32.mrb[33].mxu0 }
 0xa66   :  { %v7690_v59 = vadd.f32 %v7689_v7, %v7688_v4  ;;  %v7711_v2 = vpop.f32.mrb[33].mxu1  ;;  %v7691_v63 = vpop.f32.mrb[34].mxu0 }
 0xa67   :  { %v7712_v33 = vadd.f32 %v7711_v2, %v7710_v51  ;;  %v7713_v3 = vpop.f32.mrb[34].mxu1  ;;  %v7692_v54 = vpop.f32.mrb[35].mxu0 }
 0xa68   :  { %v7284_v62 = vadd.f32 %v7690_v59, %v7639_v1  ;;  %v7714_v29 = vpop.f32.mrb[35].mxu1 }
 0xa6a   :  { %v7324_v11 = vadd.f32 %v7712_v33, %v7284_v62 }
 0xa6c   :  { %7329 = vst [vmem:[#allocation22] sm:$0xff] %v7324_v11 }
 0xa6d   :  { %8274 = shalt.err (!%p8271_p2)
}
 0xa6e   :  { %s8275_s27 = scalar_lea.hbm %s8880_s13, 128 }
 0xa6f   :  { %p8276_p3 = scmp.ne.s32.totalorder %s8880_s13, %s8275_s27  ;;  %p8279_p4 = scmp.lt.u32.totalorder %s8275_s27, %s8880_s13 }
 0xa71   :  { %p8281_p5 = pnand %p8279_p4, %p8276_p3 }
 0xa73   :  { %8284 = shalt.err (!%p8281_p5)
}
 0xa74   :  { %7339 = dma.vmem_to_hbm [thread:$0]  %s7337_s20, 128, %s8880_s13, [#allocation4]  }
 0xa75   :  { %8299 = dma.done.wait [#allocation4], 128  }
 0xa76   :  { %8300 = vsyncadd [#allocation4], 4294967168 }
 0xa77   :  { %7343 = vsyncpa [#allocation3], 1 }
 0xa78   :  { %7344 = vsyncpa [#allocation6], 1 }
 0xa79   :  { %7345 = vsyncpa [#allocation9], 1 }
 0xa7a   :  { %7346 = vsyncpa [#allocation12], 1 }
 0xa7b   :  { %7347 = vsyncpa [#allocation15], 1 }
 0xa7c   :  { %7348 = vsyncpa [#allocation18], 1 }
 0xa7d   :  { %7349 = vsyncpa [#allocation21], 1 }
 0xa7e   :  { %7350 = vsyncpa [#allocation4], 1 }

</bundles_post_ra>
